<compile_context>
chip_gen: v7x
topology: tpu7x:2x2x1
jax: 0.10.0
libtpu: 0.0.40
codegen_flags: <defaults>
</compile_context>

<pallas_src>
import math
import functools

import jax
import jax.numpy as jnp
from jax.experimental import pallas as pl
from jax.experimental.pallas import tpu as pltpu


def _round_up(x, m):
    return ((x + m - 1) // m) * m


# ------------------------------ fused ELMo kernel ------------------------------
def _elmo_fused_kernel(T, H, n_lstm, *refs):
    """Refs layout:
        refs[0]                        : x          (T, B_blk, D_pad)      bf16
        refs[1 : 1+3*n_lstm]           : (wih, whh, b) per LSTM layer
                                         wih: (Din_pad, 4*H_pad)           bf16
                                         whh: (H_pad,   4*H_pad)           bf16
                                         b  : (1, 4*H_pad)                 f32
        refs[1+3*n_lstm]               : fc_w       (H_pad, V_pad)         bf16
        refs[2+3*n_lstm]               : fc_b       (1, V_pad)             f32
        refs[3+3*n_lstm]               : out        (B_blk, T, V_pad)      f32
        refs[4+3*n_lstm]               : act scratch (T, B_blk, H_pad)     f32
        refs[5+3*n_lstm]               : gates_x scratch (T, B_blk, 4H_pad) f32
    """
    x_ref = refs[0]
    layer_refs = refs[1:1 + 3 * n_lstm]
    fcw_ref = refs[1 + 3 * n_lstm]
    fcb_ref = refs[2 + 3 * n_lstm]
    out_ref = refs[3 + 3 * n_lstm]
    act_ref = refs[4 + 3 * n_lstm]
    gx_ref = refs[5 + 3 * n_lstm]

    B = x_ref.shape[1]
    H3 = 3 * H
    unroll = min(T, 8)          # full unroll for short T, partial for long T

    def run_layer(in_ref, wih_ref, whh_ref, b_ref):
        # --- hoisted input-side matmul (+ folded bias): one MXU op per layer ---
        x_slab = in_ref[...].astype(jnp.bfloat16).reshape(T * B, -1)
        gx = jnp.dot(x_slab, wih_ref[...], preferred_element_type=jnp.float32)
        gx_ref[...] = (gx + b_ref[...]).reshape(T, B, 4 * H)

        whh = whh_ref[...]                                  # (H, 4H) bf16, read once

        def step(t, carry):
            h, c = carry                                    # (B, H) f32 each
            gates = (jnp.dot(h.astype(jnp.bfloat16), whh,
                             preferred_element_type=jnp.float32)
                     + gx_ref[t])                           # (B, 4H) f32
            # gate columns stacked [i, f, o, g]; sigmoid(x) = 0.5*tanh(0.5x)+0.5
            sig = jnp.tanh(gates[:, :H3] * 0.5) * 0.5 + 0.5  # one EUP slab (B, 3H)
            i_g = sig[:, 0:H]
            f_g = sig[:, H:2 * H]
            o_g = sig[:, 2 * H:H3]
            g_g = jnp.tanh(gates[:, H3:])
            c_new = f_g * c + i_g * g_g
            h_new = o_g * jnp.tanh(c_new)
            act_ref[t] = h_new                              # f32: unmasked vreg store
            return h_new, c_new

        h0 = jnp.zeros((B, H), jnp.float32)
        c0 = jnp.zeros((B, H), jnp.float32)
        jax.lax.fori_loop(0, T, step, (h0, c0), unroll=unroll)

    # TODO(synk): W_hh could be kept weight-stationary on the MXU across the T
    # steps via pltpu.matmul_push_rhs / matmul_acc_lhs / matmul_pop; left as a
    # follow-up (jnp.dot re-streams the 128x512 weight each step).
    run_layer(x_ref, *layer_refs[0:3])                      # layer 0 reads kernel input
    for l in range(1, n_lstm):                              # layers 1.. reuse act in place
        run_layer(act_ref, *layer_refs[3 * l:3 * l + 3])

    # --- final linear over the whole (T*B, H) slab, stored in (B, T, V) layout ---
    act = act_ref[...].astype(jnp.bfloat16).reshape(T * B, H)
    logits = (jnp.dot(act, fcw_ref[...], preferred_element_type=jnp.float32)
              + fcb_ref[...])                               # (T*B, V_pad) f32
    logits = logits.reshape(T, B, -1)
    for t in range(T):                                      # static loop: T small stores
        out_ref[:, t, :] = logits[t]


# --------------------------------- forward -------------------------------------
@functools.partial(jax.jit, static_argnames=("vocab_size", "hidden_size"))
def elmo_forward(params, x_forward_ids, x_backward_ids, *, vocab_size, hidden_size):
    emb = params["embedding"]                               # (V, D_pad) bf16, pre-padded
    # torch forward computes the x_forward embedding but never uses it;
    # under jit this gather is dead-code-eliminated (no effect on the output).
    _unused_xf = jnp.take(emb, x_forward_ids, axis=0)

    B, T = x_backward_ids.shape
    B_pad = _round_up(B, 8)
    D_pad = emb.shape[1]
    H_pad = _round_up(hidden_size, 128)
    V_pad = params["fc_w"].shape[1]
    n_lstm = len(params["lstm_layers"])

    # Pad the tiny index array (not the activations) and gather in (T, B)-major
    # order, so the kernel input needs no separate pad / transpose / cast ops.
    ids = jnp.pad(x_backward_ids, ((0, B_pad - B), (0, 0)))
    x = jnp.take(emb, ids.T, axis=0)                        # (T, B_pad, D_pad) bf16

    layer_args = []
    for layer in params["lstm_layers"]:
        layer_args += [layer["wih"], layer["whh"], layer["b"]]

    B_BLK = 8                                               # one sublane tile per program
    grid = (B_pad // B_BLK,)

    def full_spec(a):
        nd = a.ndim
        return pl.BlockSpec(a.shape, lambda i, _nd=nd: (0,) * _nd)

    in_specs = [pl.BlockSpec((T, B_BLK, D_pad), lambda i: (0, i, 0))]
    in_specs += [full_spec(a) for a in layer_args]
    in_specs += [full_spec(params["fc_w"]), full_spec(params["fc_b"])]
    out_specs = pl.BlockSpec((B_BLK, T, V_pad), lambda i: (i, 0, 0))

    kernel = functools.partial(_elmo_fused_kernel, T, H_pad, n_lstm)
    out = pl.pallas_call(
        kernel,
        grid=grid,
        in_specs=in_specs,
        out_specs=out_specs,
        out_shape=jax.ShapeDtypeStruct((B_pad, T, V_pad), jnp.float32),
        scratch_shapes=[pltpu.VMEM((T, B_BLK, H_pad), jnp.float32),      # act slab
                        pltpu.VMEM((T, B_BLK, 4 * H_pad), jnp.float32)], # gates_x slab
        compiler_params=pltpu.CompilerParams(
            dimension_semantics=("parallel",)),
    )(x, *layer_args, params["fc_w"], params["fc_b"])       # (B_pad, T, V_pad)

    return out[:B, :, :vocab_size]


# ----------------------------- deterministic init -------------------------------
def _uniform(key, shape, k):
    return jax.random.uniform(key, shape, jnp.float32, minval=-k, maxval=k)


def init_elmo_params(key, vocab_size, hidden_size, num_layers=2):
    """Mirrors torch init (U(-1/sqrt(H), 1/sqrt(H)) for LSTM/Linear, N(0,1)
    embedding), then pads & reorders weights into the kernel's layout:
    gate columns [i, f, o, g], each zero-padded to H_pad lanes; W_ih / W_hh
    kept split; biases pre-summed (bih + bhh)."""
    H = hidden_size
    D = 100
    H_pad = _round_up(H, 128)
    D_pad = _round_up(D, 128)
    V_pad = _round_up(vocab_size, 128)
    k = 1.0 / math.sqrt(H)
    gate_perm = jnp.array([0, 1, 3, 2])     # torch (i,f,g,o) -> kernel (i,f,o,g)

    def gate_cols(w):   # (rows, 4H) torch order -> (rows, 4*H_pad) kernel order
        rows = w.shape[0]
        w4 = jnp.take(w.reshape(rows, 4, H), gate_perm, axis=1)
        w4 = jnp.pad(w4, ((0, 0), (0, 0), (0, H_pad - H)))
        return w4.reshape(rows, 4 * H_pad)

    key, ek = jax.random.split(key)
    emb = jax.random.normal(ek, (vocab_size, D), jnp.float32)
    emb = jnp.pad(emb, ((0, 0), (0, D_pad - D))).astype(jnp.bfloat16)

    lstm_layers = []
    for _stack in range(2):                 # lstm_forward then lstm_backward
        for l in range(num_layers):
            d_in = D if l == 0 else H
            d_in_pad = D_pad if l == 0 else H_pad
            key, k1, k2, k3, k4 = jax.random.split(key, 5)
            wih = _uniform(k1, (4 * H, d_in), k)            # torch layout
            whh = _uniform(k2, (4 * H, H), k)
            bih = _uniform(k3, (4 * H,), k)
            bhh = _uniform(k4, (4 * H,), k)
            wih_p = jnp.pad(gate_cols(wih.T),
                            ((0, d_in_pad - d_in), (0, 0))).astype(jnp.bfloat16)
            whh_p = jnp.pad(gate_cols(whh.T),
                            ((0, H_pad - H), (0, 0))).astype(jnp.bfloat16)
            b = gate_cols((bih + bhh)[None, :])             # (1, 4*H_pad) f32
            lstm_layers.append(dict(wih=wih_p, whh=whh_p, b=b))

    key, k1, k2 = jax.random.split(key, 3)
    fc_w = _uniform(k1, (vocab_size, H), k)                 # torch layout (V, H)
    fc_b = _uniform(k2, (vocab_size,), k)
    fc_w_p = jnp.pad(fc_w.T, ((0, H_pad - H), (0, V_pad - vocab_size))).astype(jnp.bfloat16)
    fc_b_p = jnp.pad(fc_b[None, :], ((0, 0), (0, V_pad - vocab_size)))

    params = dict(embedding=emb, lstm_layers=lstm_layers, fc_w=fc_w_p, fc_b=fc_b_p)
    return key, params


# ------------------------------------- main -------------------------------------
if __name__ == "__main__":
    vocab_size = 50
    # hidden_size must equal 100 (the hard-coded embedding dim) for the torch
    # forward to be well-formed, since lstm_backward consumes lstm_forward's
    # hidden-size output through an input_size=100 LSTM.
    hidden_size = 100
    B, T = 2, 8

    key = jax.random.PRNGKey(0)
    key, params = init_elmo_params(key, vocab_size, hidden_size, num_layers=2)

    key, kf, kb = jax.random.split(key, 3)
    x_forward = jax.random.randint(kf, (B, T), 0, vocab_size, dtype=jnp.int32)
    x_backward = jax.random.randint(kb, (B, T), 0, vocab_size, dtype=jnp.int32)

    out = elmo_forward(params, x_forward, x_backward,
                       vocab_size=vocab_size, hidden_size=hidden_size)
    out = jax.block_until_ready(out)
    assert out.shape == (B, T, vocab_size), out.shape
    assert out.dtype == jnp.float32
    print("KERNEL_OK")
</pallas_src>

<mosaic_0001>
module attributes {stable_mosaic.version = 11 : i64} {
  func.func @_elmo_fused_kernel(%arg0: i32, %arg1: memref<8x8x128xbf16, #tpu.memory_space<vmem>>, %arg2: memref<128x512xbf16, #tpu.memory_space<vmem>>, %arg3: memref<128x512xbf16, #tpu.memory_space<vmem>>, %arg4: memref<1x512xf32, #tpu.memory_space<vmem>>, %arg5: memref<128x512xbf16, #tpu.memory_space<vmem>>, %arg6: memref<128x512xbf16, #tpu.memory_space<vmem>>, %arg7: memref<1x512xf32, #tpu.memory_space<vmem>>, %arg8: memref<128x512xbf16, #tpu.memory_space<vmem>>, %arg9: memref<128x512xbf16, #tpu.memory_space<vmem>>, %arg10: memref<1x512xf32, #tpu.memory_space<vmem>>, %arg11: memref<128x512xbf16, #tpu.memory_space<vmem>>, %arg12: memref<128x512xbf16, #tpu.memory_space<vmem>>, %arg13: memref<1x512xf32, #tpu.memory_space<vmem>>, %arg14: memref<128x128xbf16, #tpu.memory_space<vmem>>, %arg15: memref<1x128xf32, #tpu.memory_space<vmem>>, %arg16: memref<8x8x128xf32, #tpu.memory_space<vmem>>, %arg17: memref<8x8x128xf32, #tpu.memory_space<vmem>>, %arg18: memref<8x8x512xf32, #tpu.memory_space<vmem>>) attributes {dimension_semantics = [#tpu.dimension_semantics<parallel>], iteration_bounds = array<i64: 1>, scalar_prefetch = 0 : i64, scratch_operands = 2 : i64, tpu.core_type = #tpu.core_type<tc>, window_params = [{transform_indices = @transform_0, window_bounds = array<i64: 8, 8, 128>}, {pipeline_mode = #tpu.pipeline_mode<synchronous>, transform_indices = @transform_1, window_bounds = array<i64: 128, 512>}, {pipeline_mode = #tpu.pipeline_mode<synchronous>, transform_indices = @transform_2, window_bounds = array<i64: 128, 512>}, {pipeline_mode = #tpu.pipeline_mode<synchronous>, transform_indices = @transform_3, window_bounds = array<i64: 1, 512>}, {pipeline_mode = #tpu.pipeline_mode<synchronous>, transform_indices = @transform_4, window_bounds = array<i64: 128, 512>}, {pipeline_mode = #tpu.pipeline_mode<synchronous>, transform_indices = @transform_5, window_bounds = array<i64: 128, 512>}, {pipeline_mode = #tpu.pipeline_mode<synchronous>, transform_indices = @transform_6, window_bounds = array<i64: 1, 512>}, {pipeline_mode = #tpu.pipeline_mode<synchronous>, transform_indices = @transform_7, window_bounds = array<i64: 128, 512>}, {pipeline_mode = #tpu.pipeline_mode<synchronous>, transform_indices = @transform_8, window_bounds = array<i64: 128, 512>}, {pipeline_mode = #tpu.pipeline_mode<synchronous>, transform_indices = @transform_9, window_bounds = array<i64: 1, 512>}, {pipeline_mode = #tpu.pipeline_mode<synchronous>, transform_indices = @transform_10, window_bounds = array<i64: 128, 512>}, {pipeline_mode = #tpu.pipeline_mode<synchronous>, transform_indices = @transform_11, window_bounds = array<i64: 128, 512>}, {pipeline_mode = #tpu.pipeline_mode<synchronous>, transform_indices = @transform_12, window_bounds = array<i64: 1, 512>}, {pipeline_mode = #tpu.pipeline_mode<synchronous>, transform_indices = @transform_13, window_bounds = array<i64: 128, 128>}, {pipeline_mode = #tpu.pipeline_mode<synchronous>, transform_indices = @transform_14, window_bounds = array<i64: 1, 128>}, {transform_indices = @transform_15, window_bounds = array<i64: 8, 8, 128>}]} {
    %c0 = arith.constant 0 : index
    %c0_0 = arith.constant 0 : index
    %c0_1 = arith.constant 0 : index
    %0 = vector.load %arg1[%c0, %c0_0, %c0_1] : memref<8x8x128xbf16, #tpu.memory_space<vmem>>, vector<8x8x128xbf16>
    %1 = vector.shape_cast %0 : vector<8x8x128xbf16> to vector<64x128xbf16>
    %c0_2 = arith.constant 0 : index
    %c0_3 = arith.constant 0 : index
    %2 = vector.load %arg2[%c0_2, %c0_3] : memref<128x512xbf16, #tpu.memory_space<vmem>>, vector<128x512xbf16>
    %cst = arith.constant dense<0.000000e+00> : vector<64x512xf32>
    %3 = tpu.matmul %1, %2, %cst {dimension_numbers = #tpu.dot_dimension_numbers<[1], [0], [0], [1], [0, 0, 1, 1], [], []>} : vector<64x128xbf16>, vector<128x512xbf16>, vector<64x512xf32> -> vector<64x512xf32>
    %c0_4 = arith.constant 0 : index
    %c0_5 = arith.constant 0 : index
    %4 = vector.load %arg4[%c0_4, %c0_5] : memref<1x512xf32, #tpu.memory_space<vmem>>, vector<1x512xf32>
    %5 = vector.broadcast %4 : vector<1x512xf32> to vector<64x512xf32>
    %6 = arith.addf %3, %5 : vector<64x512xf32>
    %7 = vector.shape_cast %6 : vector<64x512xf32> to vector<8x8x512xf32>
    %c0_6 = arith.constant 0 : index
    %c0_7 = arith.constant 0 : index
    %c0_8 = arith.constant 0 : index
    %8 = vector.load %arg18[%c0_6, %c0_7, %c0_8] : memref<8x8x512xf32, #tpu.memory_space<vmem>>, vector<8x8x512xf32>
    tpu.vector_store %arg18[%c0_6, %c0_7, %c0_8], %7 {strides = array<i32>} : memref<8x8x512xf32, #tpu.memory_space<vmem>>, vector<8x8x512xf32>,
    %c0_9 = arith.constant 0 : index
    %c0_10 = arith.constant 0 : index
    %9 = vector.load %arg3[%c0_9, %c0_10] : memref<128x512xbf16, #tpu.memory_space<vmem>>, vector<128x512xbf16>
    %cst_11 = arith.constant 0.000000e+00 : f32
    %10 = vector.broadcast %cst_11 : f32 to vector<8x128xf32>
    %cst_12 = arith.constant 0.000000e+00 : f32
    %11 = vector.broadcast %cst_12 : f32 to vector<8x128xf32>
    %c0_i32 = arith.constant 0 : i32
    %12 = arith.truncf %10 : vector<8x128xf32> to vector<8x128xbf16>
    %cst_13 = arith.constant dense<0.000000e+00> : vector<8x512xf32>
    %13 = tpu.matmul %12, %9, %cst_13 {dimension_numbers = #tpu.dot_dimension_numbers<[1], [0], [0], [1], [0, 0, 1, 1], [], []>} : vector<8x128xbf16>, vector<128x512xbf16>, vector<8x512xf32> -> vector<8x512xf32>
    %14 = arith.index_cast %c0_i32 : i32 to index
    %c0_14 = arith.constant 0 : index
    %c0_15 = arith.constant 0 : index
    %15 = vector.load %arg18[%14, %c0_14, %c0_15] : memref<8x8x512xf32, #tpu.memory_space<vmem>>, vector<1x8x512xf32>
    %16 = vector.shape_cast %15 : vector<1x8x512xf32> to vector<8x512xf32>
    %17 = arith.addf %13, %16 : vector<8x512xf32>
    %18 = vector.extract_strided_slice %17 {offsets = [0, 0], sizes = [8, 384], strides = [1, 1]} : vector<8x512xf32> to vector<8x384xf32>
    %cst_16 = arith.constant 5.000000e-01 : f32
    %19 = vector.broadcast %cst_16 : f32 to vector<8x384xf32>
    %20 = arith.mulf %18, %19 : vector<8x384xf32>
    %21 = math.tanh %20 : vector<8x384xf32>
    %cst_17 = arith.constant 5.000000e-01 : f32
    %22 = vector.broadcast %cst_17 : f32 to vector<8x384xf32>
    %23 = arith.mulf %21, %22 : vector<8x384xf32>
    %cst_18 = arith.constant 5.000000e-01 : f32
    %24 = vector.broadcast %cst_18 : f32 to vector<8x384xf32>
    %25 = arith.addf %23, %24 : vector<8x384xf32>
    %26 = vector.extract_strided_slice %25 {offsets = [0, 0], sizes = [8, 128], strides = [1, 1]} : vector<8x384xf32> to vector<8x128xf32>
    %27 = vector.extract_strided_slice %25 {offsets = [0, 128], sizes = [8, 128], strides = [1, 1]} : vector<8x384xf32> to vector<8x128xf32>
    %28 = vector.extract_strided_slice %25 {offsets = [0, 256], sizes = [8, 128], strides = [1, 1]} : vector<8x384xf32> to vector<8x128xf32>
    %29 = vector.extract_strided_slice %17 {offsets = [0, 384], sizes = [8, 128], strides = [1, 1]} : vector<8x512xf32> to vector<8x128xf32>
    %30 = math.tanh %29 : vector<8x128xf32>
    %31 = arith.mulf %27, %11 : vector<8x128xf32>
    %32 = arith.mulf %26, %30 : vector<8x128xf32>
    %33 = arith.addf %31, %32 : vector<8x128xf32>
    %34 = math.tanh %33 : vector<8x128xf32>
    %35 = arith.mulf %28, %34 : vector<8x128xf32>
    %36 = arith.index_cast %c0_i32 : i32 to index
    %c0_19 = arith.constant 0 : index
    %c0_20 = arith.constant 0 : index
    %37 = vector.load %arg17[%36, %c0_19, %c0_20] : memref<8x8x128xf32, #tpu.memory_space<vmem>>, vector<1x8x128xf32>
    %38 = vector.shape_cast %37 : vector<1x8x128xf32> to vector<8x128xf32>
    %39 = vector.shape_cast %35 : vector<8x128xf32> to vector<1x8x128xf32>
    tpu.vector_store %arg17[%36, %c0_19, %c0_20], %39 {strides = array<i32>} : memref<8x8x128xf32, #tpu.memory_space<vmem>>, vector<1x8x128xf32>,
    %c1_i32 = arith.constant 1 : i32
    %40 = arith.truncf %35 : vector<8x128xf32> to vector<8x128xbf16>
    %cst_21 = arith.constant dense<0.000000e+00> : vector<8x512xf32>
    %41 = tpu.matmul %40, %9, %cst_21 {dimension_numbers = #tpu.dot_dimension_numbers<[1], [0], [0], [1], [0, 0, 1, 1], [], []>} : vector<8x128xbf16>, vector<128x512xbf16>, vector<8x512xf32> -> vector<8x512xf32>
    %42 = arith.index_cast %c1_i32 : i32 to index
    %c0_22 = arith.constant 0 : index
    %c0_23 = arith.constant 0 : index
    %43 = vector.load %arg18[%42, %c0_22, %c0_23] : memref<8x8x512xf32, #tpu.memory_space<vmem>>, vector<1x8x512xf32>
    %44 = vector.shape_cast %43 : vector<1x8x512xf32> to vector<8x512xf32>
    %45 = arith.addf %41, %44 : vector<8x512xf32>
    %46 = vector.extract_strided_slice %45 {offsets = [0, 0], sizes = [8, 384], strides = [1, 1]} : vector<8x512xf32> to vector<8x384xf32>
    %cst_24 = arith.constant 5.000000e-01 : f32
    %47 = vector.broadcast %cst_24 : f32 to vector<8x384xf32>
    %48 = arith.mulf %46, %47 : vector<8x384xf32>
    %49 = math.tanh %48 : vector<8x384xf32>
    %cst_25 = arith.constant 5.000000e-01 : f32
    %50 = vector.broadcast %cst_25 : f32 to vector<8x384xf32>
    %51 = arith.mulf %49, %50 : vector<8x384xf32>
    %cst_26 = arith.constant 5.000000e-01 : f32
    %52 = vector.broadcast %cst_26 : f32 to vector<8x384xf32>
    %53 = arith.addf %51, %52 : vector<8x384xf32>
    %54 = vector.extract_strided_slice %53 {offsets = [0, 0], sizes = [8, 128], strides = [1, 1]} : vector<8x384xf32> to vector<8x128xf32>
    %55 = vector.extract_strided_slice %53 {offsets = [0, 128], sizes = [8, 128], strides = [1, 1]} : vector<8x384xf32> to vector<8x128xf32>
    %56 = vector.extract_strided_slice %53 {offsets = [0, 256], sizes = [8, 128], strides = [1, 1]} : vector<8x384xf32> to vector<8x128xf32>
    %57 = vector.extract_strided_slice %45 {offsets = [0, 384], sizes = [8, 128], strides = [1, 1]} : vector<8x512xf32> to vector<8x128xf32>
    %58 = math.tanh %57 : vector<8x128xf32>
    %59 = arith.mulf %55, %33 : vector<8x128xf32>
    %60 = arith.mulf %54, %58 : vector<8x128xf32>
    %61 = arith.addf %59, %60 : vector<8x128xf32>
    %62 = math.tanh %61 : vector<8x128xf32>
    %63 = arith.mulf %56, %62 : vector<8x128xf32>
    %64 = arith.index_cast %c1_i32 : i32 to index
    %c0_27 = arith.constant 0 : index
    %c0_28 = arith.constant 0 : index
    %65 = vector.load %arg17[%64, %c0_27, %c0_28] : memref<8x8x128xf32, #tpu.memory_space<vmem>>, vector<1x8x128xf32>
    %66 = vector.shape_cast %65 : vector<1x8x128xf32> to vector<8x128xf32>
    %67 = vector.shape_cast %63 : vector<8x128xf32> to vector<1x8x128xf32>
    tpu.vector_store %arg17[%64, %c0_27, %c0_28], %67 {strides = array<i32>} : memref<8x8x128xf32, #tpu.memory_space<vmem>>, vector<1x8x128xf32>,
    %c2_i32 = arith.constant 2 : i32
    %68 = arith.truncf %63 : vector<8x128xf32> to vector<8x128xbf16>
    %cst_29 = arith.constant dense<0.000000e+00> : vector<8x512xf32>
    %69 = tpu.matmul %68, %9, %cst_29 {dimension_numbers = #tpu.dot_dimension_numbers<[1], [0], [0], [1], [0, 0, 1, 1], [], []>} : vector<8x128xbf16>, vector<128x512xbf16>, vector<8x512xf32> -> vector<8x512xf32>
    %70 = arith.index_cast %c2_i32 : i32 to index
    %c0_30 = arith.constant 0 : index
    %c0_31 = arith.constant 0 : index
    %71 = vector.load %arg18[%70, %c0_30, %c0_31] : memref<8x8x512xf32, #tpu.memory_space<vmem>>, vector<1x8x512xf32>
    %72 = vector.shape_cast %71 : vector<1x8x512xf32> to vector<8x512xf32>
    %73 = arith.addf %69, %72 : vector<8x512xf32>
    %74 = vector.extract_strided_slice %73 {offsets = [0, 0], sizes = [8, 384], strides = [1, 1]} : vector<8x512xf32> to vector<8x384xf32>
    %cst_32 = arith.constant 5.000000e-01 : f32
    %75 = vector.broadcast %cst_32 : f32 to vector<8x384xf32>
    %76 = arith.mulf %74, %75 : vector<8x384xf32>
    %77 = math.tanh %76 : vector<8x384xf32>
    %cst_33 = arith.constant 5.000000e-01 : f32
    %78 = vector.broadcast %cst_33 : f32 to vector<8x384xf32>
    %79 = arith.mulf %77, %78 : vector<8x384xf32>
    %cst_34 = arith.constant 5.000000e-01 : f32
    %80 = vector.broadcast %cst_34 : f32 to vector<8x384xf32>
    %81 = arith.addf %79, %80 : vector<8x384xf32>
    %82 = vector.extract_strided_slice %81 {offsets = [0, 0], sizes = [8, 128], strides = [1, 1]} : vector<8x384xf32> to vector<8x128xf32>
    %83 = vector.extract_strided_slice %81 {offsets = [0, 128], sizes = [8, 128], strides = [1, 1]} : vector<8x384xf32> to vector<8x128xf32>
    %84 = vector.extract_strided_slice %81 {offsets = [0, 256], sizes = [8, 128], strides = [1, 1]} : vector<8x384xf32> to vector<8x128xf32>
    %85 = vector.extract_strided_slice %73 {offsets = [0, 384], sizes = [8, 128], strides = [1, 1]} : vector<8x512xf32> to vector<8x128xf32>
    %86 = math.tanh %85 : vector<8x128xf32>
    %87 = arith.mulf %83, %61 : vector<8x128xf32>
    %88 = arith.mulf %82, %86 : vector<8x128xf32>
    %89 = arith.addf %87, %88 : vector<8x128xf32>
    %90 = math.tanh %89 : vector<8x128xf32>
    %91 = arith.mulf %84, %90 : vector<8x128xf32>
    %92 = arith.index_cast %c2_i32 : i32 to index
    %c0_35 = arith.constant 0 : index
    %c0_36 = arith.constant 0 : index
    %93 = vector.load %arg17[%92, %c0_35, %c0_36] : memref<8x8x128xf32, #tpu.memory_space<vmem>>, vector<1x8x128xf32>
    %94 = vector.shape_cast %93 : vector<1x8x128xf32> to vector<8x128xf32>
    %95 = vector.shape_cast %91 : vector<8x128xf32> to vector<1x8x128xf32>
    tpu.vector_store %arg17[%92, %c0_35, %c0_36], %95 {strides = array<i32>} : memref<8x8x128xf32, #tpu.memory_space<vmem>>, vector<1x8x128xf32>,
    %c3_i32 = arith.constant 3 : i32
    %96 = arith.truncf %91 : vector<8x128xf32> to vector<8x128xbf16>
    %cst_37 = arith.constant dense<0.000000e+00> : vector<8x512xf32>
    %97 = tpu.matmul %96, %9, %cst_37 {dimension_numbers = #tpu.dot_dimension_numbers<[1], [0], [0], [1], [0, 0, 1, 1], [], []>} : vector<8x128xbf16>, vector<128x512xbf16>, vector<8x512xf32> -> vector<8x512xf32>
    %98 = arith.index_cast %c3_i32 : i32 to index
    %c0_38 = arith.constant 0 : index
    %c0_39 = arith.constant 0 : index
    %99 = vector.load %arg18[%98, %c0_38, %c0_39] : memref<8x8x512xf32, #tpu.memory_space<vmem>>, vector<1x8x512xf32>
    %100 = vector.shape_cast %99 : vector<1x8x512xf32> to vector<8x512xf32>
    %101 = arith.addf %97, %100 : vector<8x512xf32>
    %102 = vector.extract_strided_slice %101 {offsets = [0, 0], sizes = [8, 384], strides = [1, 1]} : vector<8x512xf32> to vector<8x384xf32>
    %cst_40 = arith.constant 5.000000e-01 : f32
    %103 = vector.broadcast %cst_40 : f32 to vector<8x384xf32>
    %104 = arith.mulf %102, %103 : vector<8x384xf32>
    %105 = math.tanh %104 : vector<8x384xf32>
    %cst_41 = arith.constant 5.000000e-01 : f32
    %106 = vector.broadcast %cst_41 : f32 to vector<8x384xf32>
    %107 = arith.mulf %105, %106 : vector<8x384xf32>
    %cst_42 = arith.constant 5.000000e-01 : f32
    %108 = vector.broadcast %cst_42 : f32 to vector<8x384xf32>
    %109 = arith.addf %107, %108 : vector<8x384xf32>
    %110 = vector.extract_strided_slice %109 {offsets = [0, 0], sizes = [8, 128], strides = [1, 1]} : vector<8x384xf32> to vector<8x128xf32>
    %111 = vector.extract_strided_slice %109 {offsets = [0, 128], sizes = [8, 128], strides = [1, 1]} : vector<8x384xf32> to vector<8x128xf32>
    %112 = vector.extract_strided_slice %109 {offsets = [0, 256], sizes = [8, 128], strides = [1, 1]} : vector<8x384xf32> to vector<8x128xf32>
    %113 = vector.extract_strided_slice %101 {offsets = [0, 384], sizes = [8, 128], strides = [1, 1]} : vector<8x512xf32> to vector<8x128xf32>
    %114 = math.tanh %113 : vector<8x128xf32>
    %115 = arith.mulf %111, %89 : vector<8x128xf32>
    %116 = arith.mulf %110, %114 : vector<8x128xf32>
    %117 = arith.addf %115, %116 : vector<8x128xf32>
    %118 = math.tanh %117 : vector<8x128xf32>
    %119 = arith.mulf %112, %118 : vector<8x128xf32>
    %120 = arith.index_cast %c3_i32 : i32 to index
    %c0_43 = arith.constant 0 : index
    %c0_44 = arith.constant 0 : index
    %121 = vector.load %arg17[%120, %c0_43, %c0_44] : memref<8x8x128xf32, #tpu.memory_space<vmem>>, vector<1x8x128xf32>
    %122 = vector.shape_cast %121 : vector<1x8x128xf32> to vector<8x128xf32>
    %123 = vector.shape_cast %119 : vector<8x128xf32> to vector<1x8x128xf32>
    tpu.vector_store %arg17[%120, %c0_43, %c0_44], %123 {strides = array<i32>} : memref<8x8x128xf32, #tpu.memory_space<vmem>>, vector<1x8x128xf32>,
    %c4_i32 = arith.constant 4 : i32
    %124 = arith.truncf %119 : vector<8x128xf32> to vector<8x128xbf16>
    %cst_45 = arith.constant dense<0.000000e+00> : vector<8x512xf32>
    %125 = tpu.matmul %124, %9, %cst_45 {dimension_numbers = #tpu.dot_dimension_numbers<[1], [0], [0], [1], [0, 0, 1, 1], [], []>} : vector<8x128xbf16>, vector<128x512xbf16>, vector<8x512xf32> -> vector<8x512xf32>
    %126 = arith.index_cast %c4_i32 : i32 to index
    %c0_46 = arith.constant 0 : index
    %c0_47 = arith.constant 0 : index
    %127 = vector.load %arg18[%126, %c0_46, %c0_47] : memref<8x8x512xf32, #tpu.memory_space<vmem>>, vector<1x8x512xf32>
    %128 = vector.shape_cast %127 : vector<1x8x512xf32> to vector<8x512xf32>
    %129 = arith.addf %125, %128 : vector<8x512xf32>
    %130 = vector.extract_strided_slice %129 {offsets = [0, 0], sizes = [8, 384], strides = [1, 1]} : vector<8x512xf32> to vector<8x384xf32>
    %cst_48 = arith.constant 5.000000e-01 : f32
    %131 = vector.broadcast %cst_48 : f32 to vector<8x384xf32>
    %132 = arith.mulf %130, %131 : vector<8x384xf32>
    %133 = math.tanh %132 : vector<8x384xf32>
    %cst_49 = arith.constant 5.000000e-01 : f32
    %134 = vector.broadcast %cst_49 : f32 to vector<8x384xf32>
    %135 = arith.mulf %133, %134 : vector<8x384xf32>
    %cst_50 = arith.constant 5.000000e-01 : f32
    %136 = vector.broadcast %cst_50 : f32 to vector<8x384xf32>
    %137 = arith.addf %135, %136 : vector<8x384xf32>
    %138 = vector.extract_strided_slice %137 {offsets = [0, 0], sizes = [8, 128], strides = [1, 1]} : vector<8x384xf32> to vector<8x128xf32>
    %139 = vector.extract_strided_slice %137 {offsets = [0, 128], sizes = [8, 128], strides = [1, 1]} : vector<8x384xf32> to vector<8x128xf32>
    %140 = vector.extract_strided_slice %137 {offsets = [0, 256], sizes = [8, 128], strides = [1, 1]} : vector<8x384xf32> to vector<8x128xf32>
    %141 = vector.extract_strided_slice %129 {offsets = [0, 384], sizes = [8, 128], strides = [1, 1]} : vector<8x512xf32> to vector<8x128xf32>
    %142 = math.tanh %141 : vector<8x128xf32>
    %143 = arith.mulf %139, %117 : vector<8x128xf32>
    %144 = arith.mulf %138, %142 : vector<8x128xf32>
    %145 = arith.addf %143, %144 : vector<8x128xf32>
    %146 = math.tanh %145 : vector<8x128xf32>
    %147 = arith.mulf %140, %146 : vector<8x128xf32>
    %148 = arith.index_cast %c4_i32 : i32 to index
    %c0_51 = arith.constant 0 : index
    %c0_52 = arith.constant 0 : index
    %149 = vector.load %arg17[%148, %c0_51, %c0_52] : memref<8x8x128xf32, #tpu.memory_space<vmem>>, vector<1x8x128xf32>
    %150 = vector.shape_cast %149 : vector<1x8x128xf32> to vector<8x128xf32>
    %151 = vector.shape_cast %147 : vector<8x128xf32> to vector<1x8x128xf32>
    tpu.vector_store %arg17[%148, %c0_51, %c0_52], %151 {strides = array<i32>} : memref<8x8x128xf32, #tpu.memory_space<vmem>>, vector<1x8x128xf32>,
    %c5_i32 = arith.constant 5 : i32
    %152 = arith.truncf %147 : vector<8x128xf32> to vector<8x128xbf16>
    %cst_53 = arith.constant dense<0.000000e+00> : vector<8x512xf32>
    %153 = tpu.matmul %152, %9, %cst_53 {dimension_numbers = #tpu.dot_dimension_numbers<[1], [0], [0], [1], [0, 0, 1, 1], [], []>} : vector<8x128xbf16>, vector<128x512xbf16>, vector<8x512xf32> -> vector<8x512xf32>
    %154 = arith.index_cast %c5_i32 : i32 to index
    %c0_54 = arith.constant 0 : index
    %c0_55 = arith.constant 0 : index
    %155 = vector.load %arg18[%154, %c0_54, %c0_55] : memref<8x8x512xf32, #tpu.memory_space<vmem>>, vector<1x8x512xf32>
    %156 = vector.shape_cast %155 : vector<1x8x512xf32> to vector<8x512xf32>
    %157 = arith.addf %153, %156 : vector<8x512xf32>
    %158 = vector.extract_strided_slice %157 {offsets = [0, 0], sizes = [8, 384], strides = [1, 1]} : vector<8x512xf32> to vector<8x384xf32>
    %cst_56 = arith.constant 5.000000e-01 : f32
    %159 = vector.broadcast %cst_56 : f32 to vector<8x384xf32>
    %160 = arith.mulf %158, %159 : vector<8x384xf32>
    %161 = math.tanh %160 : vector<8x384xf32>
    %cst_57 = arith.constant 5.000000e-01 : f32
    %162 = vector.broadcast %cst_57 : f32 to vector<8x384xf32>
    %163 = arith.mulf %161, %162 : vector<8x384xf32>
    %cst_58 = arith.constant 5.000000e-01 : f32
    %164 = vector.broadcast %cst_58 : f32 to vector<8x384xf32>
    %165 = arith.addf %163, %164 : vector<8x384xf32>
    %166 = vector.extract_strided_slice %165 {offsets = [0, 0], sizes = [8, 128], strides = [1, 1]} : vector<8x384xf32> to vector<8x128xf32>
    %167 = vector.extract_strided_slice %165 {offsets = [0, 128], sizes = [8, 128], strides = [1, 1]} : vector<8x384xf32> to vector<8x128xf32>
    %168 = vector.extract_strided_slice %165 {offsets = [0, 256], sizes = [8, 128], strides = [1, 1]} : vector<8x384xf32> to vector<8x128xf32>
    %169 = vector.extract_strided_slice %157 {offsets = [0, 384], sizes = [8, 128], strides = [1, 1]} : vector<8x512xf32> to vector<8x128xf32>
    %170 = math.tanh %169 : vector<8x128xf32>
    %171 = arith.mulf %167, %145 : vector<8x128xf32>
    %172 = arith.mulf %166, %170 : vector<8x128xf32>
    %173 = arith.addf %171, %172 : vector<8x128xf32>
    %174 = math.tanh %173 : vector<8x128xf32>
    %175 = arith.mulf %168, %174 : vector<8x128xf32>
    %176 = arith.index_cast %c5_i32 : i32 to index
    %c0_59 = arith.constant 0 : index
    %c0_60 = arith.constant 0 : index
    %177 = vector.load %arg17[%176, %c0_59, %c0_60] : memref<8x8x128xf32, #tpu.memory_space<vmem>>, vector<1x8x128xf32>
    %178 = vector.shape_cast %177 : vector<1x8x128xf32> to vector<8x128xf32>
    %179 = vector.shape_cast %175 : vector<8x128xf32> to vector<1x8x128xf32>
    tpu.vector_store %arg17[%176, %c0_59, %c0_60], %179 {strides = array<i32>} : memref<8x8x128xf32, #tpu.memory_space<vmem>>, vector<1x8x128xf32>,
    %c6_i32 = arith.constant 6 : i32
    %180 = arith.truncf %175 : vector<8x128xf32> to vector<8x128xbf16>
    %cst_61 = arith.constant dense<0.000000e+00> : vector<8x512xf32>
    %181 = tpu.matmul %180, %9, %cst_61 {dimension_numbers = #tpu.dot_dimension_numbers<[1], [0], [0], [1], [0, 0, 1, 1], [], []>} : vector<8x128xbf16>, vector<128x512xbf16>, vector<8x512xf32> -> vector<8x512xf32>
    %182 = arith.index_cast %c6_i32 : i32 to index
    %c0_62 = arith.constant 0 : index
    %c0_63 = arith.constant 0 : index
    %183 = vector.load %arg18[%182, %c0_62, %c0_63] : memref<8x8x512xf32, #tpu.memory_space<vmem>>, vector<1x8x512xf32>
    %184 = vector.shape_cast %183 : vector<1x8x512xf32> to vector<8x512xf32>
    %185 = arith.addf %181, %184 : vector<8x512xf32>
    %186 = vector.extract_strided_slice %185 {offsets = [0, 0], sizes = [8, 384], strides = [1, 1]} : vector<8x512xf32> to vector<8x384xf32>
    %cst_64 = arith.constant 5.000000e-01 : f32
    %187 = vector.broadcast %cst_64 : f32 to vector<8x384xf32>
    %188 = arith.mulf %186, %187 : vector<8x384xf32>
    %189 = math.tanh %188 : vector<8x384xf32>
    %cst_65 = arith.constant 5.000000e-01 : f32
    %190 = vector.broadcast %cst_65 : f32 to vector<8x384xf32>
    %191 = arith.mulf %189, %190 : vector<8x384xf32>
    %cst_66 = arith.constant 5.000000e-01 : f32
    %192 = vector.broadcast %cst_66 : f32 to vector<8x384xf32>
    %193 = arith.addf %191, %192 : vector<8x384xf32>
    %194 = vector.extract_strided_slice %193 {offsets = [0, 0], sizes = [8, 128], strides = [1, 1]} : vector<8x384xf32> to vector<8x128xf32>
    %195 = vector.extract_strided_slice %193 {offsets = [0, 128], sizes = [8, 128], strides = [1, 1]} : vector<8x384xf32> to vector<8x128xf32>
    %196 = vector.extract_strided_slice %193 {offsets = [0, 256], sizes = [8, 128], strides = [1, 1]} : vector<8x384xf32> to vector<8x128xf32>
    %197 = vector.extract_strided_slice %185 {offsets = [0, 384], sizes = [8, 128], strides = [1, 1]} : vector<8x512xf32> to vector<8x128xf32>
    %198 = math.tanh %197 : vector<8x128xf32>
    %199 = arith.mulf %195, %173 : vector<8x128xf32>
    %200 = arith.mulf %194, %198 : vector<8x128xf32>
    %201 = arith.addf %199, %200 : vector<8x128xf32>
    %202 = math.tanh %201 : vector<8x128xf32>
    %203 = arith.mulf %196, %202 : vector<8x128xf32>
    %204 = arith.index_cast %c6_i32 : i32 to index
    %c0_67 = arith.constant 0 : index
    %c0_68 = arith.constant 0 : index
    %205 = vector.load %arg17[%204, %c0_67, %c0_68] : memref<8x8x128xf32, #tpu.memory_space<vmem>>, vector<1x8x128xf32>
    %206 = vector.shape_cast %205 : vector<1x8x128xf32> to vector<8x128xf32>
    %207 = vector.shape_cast %203 : vector<8x128xf32> to vector<1x8x128xf32>
    tpu.vector_store %arg17[%204, %c0_67, %c0_68], %207 {strides = array<i32>} : memref<8x8x128xf32, #tpu.memory_space<vmem>>, vector<1x8x128xf32>,
    %c7_i32 = arith.constant 7 : i32
    %208 = arith.truncf %203 : vector<8x128xf32> to vector<8x128xbf16>
    %cst_69 = arith.constant dense<0.000000e+00> : vector<8x512xf32>
    %209 = tpu.matmul %208, %9, %cst_69 {dimension_numbers = #tpu.dot_dimension_numbers<[1], [0], [0], [1], [0, 0, 1, 1], [], []>} : vector<8x128xbf16>, vector<128x512xbf16>, vector<8x512xf32> -> vector<8x512xf32>
    %210 = arith.index_cast %c7_i32 : i32 to index
    %c0_70 = arith.constant 0 : index
    %c0_71 = arith.constant 0 : index
    %211 = vector.load %arg18[%210, %c0_70, %c0_71] : memref<8x8x512xf32, #tpu.memory_space<vmem>>, vector<1x8x512xf32>
    %212 = vector.shape_cast %211 : vector<1x8x512xf32> to vector<8x512xf32>
    %213 = arith.addf %209, %212 : vector<8x512xf32>
    %214 = vector.extract_strided_slice %213 {offsets = [0, 0], sizes = [8, 384], strides = [1, 1]} : vector<8x512xf32> to vector<8x384xf32>
    %cst_72 = arith.constant 5.000000e-01 : f32
    %215 = vector.broadcast %cst_72 : f32 to vector<8x384xf32>
    %216 = arith.mulf %214, %215 : vector<8x384xf32>
    %217 = math.tanh %216 : vector<8x384xf32>
    %cst_73 = arith.constant 5.000000e-01 : f32
    %218 = vector.broadcast %cst_73 : f32 to vector<8x384xf32>
    %219 = arith.mulf %217, %218 : vector<8x384xf32>
    %cst_74 = arith.constant 5.000000e-01 : f32
    %220 = vector.broadcast %cst_74 : f32 to vector<8x384xf32>
    %221 = arith.addf %219, %220 : vector<8x384xf32>
    %222 = vector.extract_strided_slice %221 {offsets = [0, 0], sizes = [8, 128], strides = [1, 1]} : vector<8x384xf32> to vector<8x128xf32>
    %223 = vector.extract_strided_slice %221 {offsets = [0, 128], sizes = [8, 128], strides = [1, 1]} : vector<8x384xf32> to vector<8x128xf32>
    %224 = vector.extract_strided_slice %221 {offsets = [0, 256], sizes = [8, 128], strides = [1, 1]} : vector<8x384xf32> to vector<8x128xf32>
    %225 = vector.extract_strided_slice %213 {offsets = [0, 384], sizes = [8, 128], strides = [1, 1]} : vector<8x512xf32> to vector<8x128xf32>
    %226 = math.tanh %225 : vector<8x128xf32>
    %227 = arith.mulf %223, %201 : vector<8x128xf32>
    %228 = arith.mulf %222, %226 : vector<8x128xf32>
    %229 = arith.addf %227, %228 : vector<8x128xf32>
    %230 = math.tanh %229 : vector<8x128xf32>
    %231 = arith.mulf %224, %230 : vector<8x128xf32>
    %232 = arith.index_cast %c7_i32 : i32 to index
    %c0_75 = arith.constant 0 : index
    %c0_76 = arith.constant 0 : index
    %233 = vector.load %arg17[%232, %c0_75, %c0_76] : memref<8x8x128xf32, #tpu.memory_space<vmem>>, vector<1x8x128xf32>
    %234 = vector.shape_cast %233 : vector<1x8x128xf32> to vector<8x128xf32>
    %235 = vector.shape_cast %231 : vector<8x128xf32> to vector<1x8x128xf32>
    tpu.vector_store %arg17[%232, %c0_75, %c0_76], %235 {strides = array<i32>} : memref<8x8x128xf32, #tpu.memory_space<vmem>>, vector<1x8x128xf32>,
    %c8_i32 = arith.constant 8 : i32
    %c0_77 = arith.constant 0 : index
    %c0_78 = arith.constant 0 : index
    %c0_79 = arith.constant 0 : index
    %236 = vector.load %arg17[%c0_77, %c0_78, %c0_79] : memref<8x8x128xf32, #tpu.memory_space<vmem>>, vector<8x8x128xf32>
    %237 = arith.truncf %236 : vector<8x8x128xf32> to vector<8x8x128xbf16>
    %238 = vector.shape_cast %237 : vector<8x8x128xbf16> to vector<64x128xbf16>
    %c0_80 = arith.constant 0 : index
    %c0_81 = arith.constant 0 : index
    %239 = vector.load %arg5[%c0_80, %c0_81] : memref<128x512xbf16, #tpu.memory_space<vmem>>, vector<128x512xbf16>
    %cst_82 = arith.constant dense<0.000000e+00> : vector<64x512xf32>
    %240 = tpu.matmul %238, %239, %cst_82 {dimension_numbers = #tpu.dot_dimension_numbers<[1], [0], [0], [1], [0, 0, 1, 1], [], []>} : vector<64x128xbf16>, vector<128x512xbf16>, vector<64x512xf32> -> vector<64x512xf32>
    %c0_83 = arith.constant 0 : index
    %c0_84 = arith.constant 0 : index
    %241 = vector.load %arg7[%c0_83, %c0_84] : memref<1x512xf32, #tpu.memory_space<vmem>>, vector<1x512xf32>
    %242 = vector.broadcast %241 : vector<1x512xf32> to vector<64x512xf32>
    %243 = arith.addf %240, %242 : vector<64x512xf32>
    %244 = vector.shape_cast %243 : vector<64x512xf32> to vector<8x8x512xf32>
    %c0_85 = arith.constant 0 : index
    %c0_86 = arith.constant 0 : index
    %c0_87 = arith.constant 0 : index
    %245 = vector.load %arg18[%c0_85, %c0_86, %c0_87] : memref<8x8x512xf32, #tpu.memory_space<vmem>>, vector<8x8x512xf32>
    tpu.vector_store %arg18[%c0_85, %c0_86, %c0_87], %244 {strides = array<i32>} : memref<8x8x512xf32, #tpu.memory_space<vmem>>, vector<8x8x512xf32>,
    %c0_88 = arith.constant 0 : index
    %c0_89 = arith.constant 0 : index
    %246 = vector.load %arg6[%c0_88, %c0_89] : memref<128x512xbf16, #tpu.memory_space<vmem>>, vector<128x512xbf16>
    %cst_90 = arith.constant 0.000000e+00 : f32
    %247 = vector.broadcast %cst_90 : f32 to vector<8x128xf32>
    %cst_91 = arith.constant 0.000000e+00 : f32
    %248 = vector.broadcast %cst_91 : f32 to vector<8x128xf32>
    %c0_i32_92 = arith.constant 0 : i32
    %249 = arith.truncf %247 : vector<8x128xf32> to vector<8x128xbf16>
    %cst_93 = arith.constant dense<0.000000e+00> : vector<8x512xf32>
    %250 = tpu.matmul %249, %246, %cst_93 {dimension_numbers = #tpu.dot_dimension_numbers<[1], [0], [0], [1], [0, 0, 1, 1], [], []>} : vector<8x128xbf16>, vector<128x512xbf16>, vector<8x512xf32> -> vector<8x512xf32>
    %251 = arith.index_cast %c0_i32_92 : i32 to index
    %c0_94 = arith.constant 0 : index
    %c0_95 = arith.constant 0 : index
    %252 = vector.load %arg18[%251, %c0_94, %c0_95] : memref<8x8x512xf32, #tpu.memory_space<vmem>>, vector<1x8x512xf32>
    %253 = vector.shape_cast %252 : vector<1x8x512xf32> to vector<8x512xf32>
    %254 = arith.addf %250, %253 : vector<8x512xf32>
    %255 = vector.extract_strided_slice %254 {offsets = [0, 0], sizes = [8, 384], strides = [1, 1]} : vector<8x512xf32> to vector<8x384xf32>
    %cst_96 = arith.constant 5.000000e-01 : f32
    %256 = vector.broadcast %cst_96 : f32 to vector<8x384xf32>
    %257 = arith.mulf %255, %256 : vector<8x384xf32>
    %258 = math.tanh %257 : vector<8x384xf32>
    %cst_97 = arith.constant 5.000000e-01 : f32
    %259 = vector.broadcast %cst_97 : f32 to vector<8x384xf32>
    %260 = arith.mulf %258, %259 : vector<8x384xf32>
    %cst_98 = arith.constant 5.000000e-01 : f32
    %261 = vector.broadcast %cst_98 : f32 to vector<8x384xf32>
    %262 = arith.addf %260, %261 : vector<8x384xf32>
    %263 = vector.extract_strided_slice %262 {offsets = [0, 0], sizes = [8, 128], strides = [1, 1]} : vector<8x384xf32> to vector<8x128xf32>
    %264 = vector.extract_strided_slice %262 {offsets = [0, 128], sizes = [8, 128], strides = [1, 1]} : vector<8x384xf32> to vector<8x128xf32>
    %265 = vector.extract_strided_slice %262 {offsets = [0, 256], sizes = [8, 128], strides = [1, 1]} : vector<8x384xf32> to vector<8x128xf32>
    %266 = vector.extract_strided_slice %254 {offsets = [0, 384], sizes = [8, 128], strides = [1, 1]} : vector<8x512xf32> to vector<8x128xf32>
    %267 = math.tanh %266 : vector<8x128xf32>
    %268 = arith.mulf %264, %248 : vector<8x128xf32>
    %269 = arith.mulf %263, %267 : vector<8x128xf32>
    %270 = arith.addf %268, %269 : vector<8x128xf32>
    %271 = math.tanh %270 : vector<8x128xf32>
    %272 = arith.mulf %265, %271 : vector<8x128xf32>
    %273 = arith.index_cast %c0_i32_92 : i32 to index
    %c0_99 = arith.constant 0 : index
    %c0_100 = arith.constant 0 : index
    %274 = vector.load %arg17[%273, %c0_99, %c0_100] : memref<8x8x128xf32, #tpu.memory_space<vmem>>, vector<1x8x128xf32>
    %275 = vector.shape_cast %274 : vector<1x8x128xf32> to vector<8x128xf32>
    %276 = vector.shape_cast %272 : vector<8x128xf32> to vector<1x8x128xf32>
    tpu.vector_store %arg17[%273, %c0_99, %c0_100], %276 {strides = array<i32>} : memref<8x8x128xf32, #tpu.memory_space<vmem>>, vector<1x8x128xf32>,
    %c1_i32_101 = arith.constant 1 : i32
    %277 = arith.truncf %272 : vector<8x128xf32> to vector<8x128xbf16>
    %cst_102 = arith.constant dense<0.000000e+00> : vector<8x512xf32>
    %278 = tpu.matmul %277, %246, %cst_102 {dimension_numbers = #tpu.dot_dimension_numbers<[1], [0], [0], [1], [0, 0, 1, 1], [], []>} : vector<8x128xbf16>, vector<128x512xbf16>, vector<8x512xf32> -> vector<8x512xf32>
    %279 = arith.index_cast %c1_i32_101 : i32 to index
    %c0_103 = arith.constant 0 : index
    %c0_104 = arith.constant 0 : index
    %280 = vector.load %arg18[%279, %c0_103, %c0_104] : memref<8x8x512xf32, #tpu.memory_space<vmem>>, vector<1x8x512xf32>
    %281 = vector.shape_cast %280 : vector<1x8x512xf32> to vector<8x512xf32>
    %282 = arith.addf %278, %281 : vector<8x512xf32>
    %283 = vector.extract_strided_slice %282 {offsets = [0, 0], sizes = [8, 384], strides = [1, 1]} : vector<8x512xf32> to vector<8x384xf32>
    %cst_105 = arith.constant 5.000000e-01 : f32
    %284 = vector.broadcast %cst_105 : f32 to vector<8x384xf32>
    %285 = arith.mulf %283, %284 : vector<8x384xf32>
    %286 = math.tanh %285 : vector<8x384xf32>
    %cst_106 = arith.constant 5.000000e-01 : f32
    %287 = vector.broadcast %cst_106 : f32 to vector<8x384xf32>
    %288 = arith.mulf %286, %287 : vector<8x384xf32>
    %cst_107 = arith.constant 5.000000e-01 : f32
    %289 = vector.broadcast %cst_107 : f32 to vector<8x384xf32>
    %290 = arith.addf %288, %289 : vector<8x384xf32>
    %291 = vector.extract_strided_slice %290 {offsets = [0, 0], sizes = [8, 128], strides = [1, 1]} : vector<8x384xf32> to vector<8x128xf32>
    %292 = vector.extract_strided_slice %290 {offsets = [0, 128], sizes = [8, 128], strides = [1, 1]} : vector<8x384xf32> to vector<8x128xf32>
    %293 = vector.extract_strided_slice %290 {offsets = [0, 256], sizes = [8, 128], strides = [1, 1]} : vector<8x384xf32> to vector<8x128xf32>
    %294 = vector.extract_strided_slice %282 {offsets = [0, 384], sizes = [8, 128], strides = [1, 1]} : vector<8x512xf32> to vector<8x128xf32>
    %295 = math.tanh %294 : vector<8x128xf32>
    %296 = arith.mulf %292, %270 : vector<8x128xf32>
    %297 = arith.mulf %291, %295 : vector<8x128xf32>
    %298 = arith.addf %296, %297 : vector<8x128xf32>
    %299 = math.tanh %298 : vector<8x128xf32>
    %300 = arith.mulf %293, %299 : vector<8x128xf32>
    %301 = arith.index_cast %c1_i32_101 : i32 to index
    %c0_108 = arith.constant 0 : index
    %c0_109 = arith.constant 0 : index
    %302 = vector.load %arg17[%301, %c0_108, %c0_109] : memref<8x8x128xf32, #tpu.memory_space<vmem>>, vector<1x8x128xf32>
    %303 = vector.shape_cast %302 : vector<1x8x128xf32> to vector<8x128xf32>
    %304 = vector.shape_cast %300 : vector<8x128xf32> to vector<1x8x128xf32>
    tpu.vector_store %arg17[%301, %c0_108, %c0_109], %304 {strides = array<i32>} : memref<8x8x128xf32, #tpu.memory_space<vmem>>, vector<1x8x128xf32>,
    %c2_i32_110 = arith.constant 2 : i32
    %305 = arith.truncf %300 : vector<8x128xf32> to vector<8x128xbf16>
    %cst_111 = arith.constant dense<0.000000e+00> : vector<8x512xf32>
    %306 = tpu.matmul %305, %246, %cst_111 {dimension_numbers = #tpu.dot_dimension_numbers<[1], [0], [0], [1], [0, 0, 1, 1], [], []>} : vector<8x128xbf16>, vector<128x512xbf16>, vector<8x512xf32> -> vector<8x512xf32>
    %307 = arith.index_cast %c2_i32_110 : i32 to index
    %c0_112 = arith.constant 0 : index
    %c0_113 = arith.constant 0 : index
    %308 = vector.load %arg18[%307, %c0_112, %c0_113] : memref<8x8x512xf32, #tpu.memory_space<vmem>>, vector<1x8x512xf32>
    %309 = vector.shape_cast %308 : vector<1x8x512xf32> to vector<8x512xf32>
    %310 = arith.addf %306, %309 : vector<8x512xf32>
    %311 = vector.extract_strided_slice %310 {offsets = [0, 0], sizes = [8, 384], strides = [1, 1]} : vector<8x512xf32> to vector<8x384xf32>
    %cst_114 = arith.constant 5.000000e-01 : f32
    %312 = vector.broadcast %cst_114 : f32 to vector<8x384xf32>
    %313 = arith.mulf %311, %312 : vector<8x384xf32>
    %314 = math.tanh %313 : vector<8x384xf32>
    %cst_115 = arith.constant 5.000000e-01 : f32
    %315 = vector.broadcast %cst_115 : f32 to vector<8x384xf32>
    %316 = arith.mulf %314, %315 : vector<8x384xf32>
    %cst_116 = arith.constant 5.000000e-01 : f32
    %317 = vector.broadcast %cst_116 : f32 to vector<8x384xf32>
    %318 = arith.addf %316, %317 : vector<8x384xf32>
    %319 = vector.extract_strided_slice %318 {offsets = [0, 0], sizes = [8, 128], strides = [1, 1]} : vector<8x384xf32> to vector<8x128xf32>
    %320 = vector.extract_strided_slice %318 {offsets = [0, 128], sizes = [8, 128], strides = [1, 1]} : vector<8x384xf32> to vector<8x128xf32>
    %321 = vector.extract_strided_slice %318 {offsets = [0, 256], sizes = [8, 128], strides = [1, 1]} : vector<8x384xf32> to vector<8x128xf32>
    %322 = vector.extract_strided_slice %310 {offsets = [0, 384], sizes = [8, 128], strides = [1, 1]} : vector<8x512xf32> to vector<8x128xf32>
    %323 = math.tanh %322 : vector<8x128xf32>
    %324 = arith.mulf %320, %298 : vector<8x128xf32>
    %325 = arith.mulf %319, %323 : vector<8x128xf32>
    %326 = arith.addf %324, %325 : vector<8x128xf32>
    %327 = math.tanh %326 : vector<8x128xf32>
    %328 = arith.mulf %321, %327 : vector<8x128xf32>
    %329 = arith.index_cast %c2_i32_110 : i32 to index
    %c0_117 = arith.constant 0 : index
    %c0_118 = arith.constant 0 : index
    %330 = vector.load %arg17[%329, %c0_117, %c0_118] : memref<8x8x128xf32, #tpu.memory_space<vmem>>, vector<1x8x128xf32>
    %331 = vector.shape_cast %330 : vector<1x8x128xf32> to vector<8x128xf32>
    %332 = vector.shape_cast %328 : vector<8x128xf32> to vector<1x8x128xf32>
    tpu.vector_store %arg17[%329, %c0_117, %c0_118], %332 {strides = array<i32>} : memref<8x8x128xf32, #tpu.memory_space<vmem>>, vector<1x8x128xf32>,
    %c3_i32_119 = arith.constant 3 : i32
    %333 = arith.truncf %328 : vector<8x128xf32> to vector<8x128xbf16>
    %cst_120 = arith.constant dense<0.000000e+00> : vector<8x512xf32>
    %334 = tpu.matmul %333, %246, %cst_120 {dimension_numbers = #tpu.dot_dimension_numbers<[1], [0], [0], [1], [0, 0, 1, 1], [], []>} : vector<8x128xbf16>, vector<128x512xbf16>, vector<8x512xf32> -> vector<8x512xf32>
    %335 = arith.index_cast %c3_i32_119 : i32 to index
    %c0_121 = arith.constant 0 : index
    %c0_122 = arith.constant 0 : index
    %336 = vector.load %arg18[%335, %c0_121, %c0_122] : memref<8x8x512xf32, #tpu.memory_space<vmem>>, vector<1x8x512xf32>
    %337 = vector.shape_cast %336 : vector<1x8x512xf32> to vector<8x512xf32>
    %338 = arith.addf %334, %337 : vector<8x512xf32>
    %339 = vector.extract_strided_slice %338 {offsets = [0, 0], sizes = [8, 384], strides = [1, 1]} : vector<8x512xf32> to vector<8x384xf32>
    %cst_123 = arith.constant 5.000000e-01 : f32
    %340 = vector.broadcast %cst_123 : f32 to vector<8x384xf32>
    %341 = arith.mulf %339, %340 : vector<8x384xf32>
    %342 = math.tanh %341 : vector<8x384xf32>
    %cst_124 = arith.constant 5.000000e-01 : f32
    %343 = vector.broadcast %cst_124 : f32 to vector<8x384xf32>
    %344 = arith.mulf %342, %343 : vector<8x384xf32>
    %cst_125 = arith.constant 5.000000e-01 : f32
    %345 = vector.broadcast %cst_125 : f32 to vector<8x384xf32>
    %346 = arith.addf %344, %345 : vector<8x384xf32>
    %347 = vector.extract_strided_slice %346 {offsets = [0, 0], sizes = [8, 128], strides = [1, 1]} : vector<8x384xf32> to vector<8x128xf32>
    %348 = vector.extract_strided_slice %346 {offsets = [0, 128], sizes = [8, 128], strides = [1, 1]} : vector<8x384xf32> to vector<8x128xf32>
    %349 = vector.extract_strided_slice %346 {offsets = [0, 256], sizes = [8, 128], strides = [1, 1]} : vector<8x384xf32> to vector<8x128xf32>
    %350 = vector.extract_strided_slice %338 {offsets = [0, 384], sizes = [8, 128], strides = [1, 1]} : vector<8x512xf32> to vector<8x128xf32>
    %351 = math.tanh %350 : vector<8x128xf32>
    %352 = arith.mulf %348, %326 : vector<8x128xf32>
    %353 = arith.mulf %347, %351 : vector<8x128xf32>
    %354 = arith.addf %352, %353 : vector<8x128xf32>
    %355 = math.tanh %354 : vector<8x128xf32>
    %356 = arith.mulf %349, %355 : vector<8x128xf32>
    %357 = arith.index_cast %c3_i32_119 : i32 to index
    %c0_126 = arith.constant 0 : index
    %c0_127 = arith.constant 0 : index
    %358 = vector.load %arg17[%357, %c0_126, %c0_127] : memref<8x8x128xf32, #tpu.memory_space<vmem>>, vector<1x8x128xf32>
    %359 = vector.shape_cast %358 : vector<1x8x128xf32> to vector<8x128xf32>
    %360 = vector.shape_cast %356 : vector<8x128xf32> to vector<1x8x128xf32>
    tpu.vector_store %arg17[%357, %c0_126, %c0_127], %360 {strides = array<i32>} : memref<8x8x128xf32, #tpu.memory_space<vmem>>, vector<1x8x128xf32>,
    %c4_i32_128 = arith.constant 4 : i32
    %361 = arith.truncf %356 : vector<8x128xf32> to vector<8x128xbf16>
    %cst_129 = arith.constant dense<0.000000e+00> : vector<8x512xf32>
    %362 = tpu.matmul %361, %246, %cst_129 {dimension_numbers = #tpu.dot_dimension_numbers<[1], [0], [0], [1], [0, 0, 1, 1], [], []>} : vector<8x128xbf16>, vector<128x512xbf16>, vector<8x512xf32> -> vector<8x512xf32>
    %363 = arith.index_cast %c4_i32_128 : i32 to index
    %c0_130 = arith.constant 0 : index
    %c0_131 = arith.constant 0 : index
    %364 = vector.load %arg18[%363, %c0_130, %c0_131] : memref<8x8x512xf32, #tpu.memory_space<vmem>>, vector<1x8x512xf32>
    %365 = vector.shape_cast %364 : vector<1x8x512xf32> to vector<8x512xf32>
    %366 = arith.addf %362, %365 : vector<8x512xf32>
    %367 = vector.extract_strided_slice %366 {offsets = [0, 0], sizes = [8, 384], strides = [1, 1]} : vector<8x512xf32> to vector<8x384xf32>
    %cst_132 = arith.constant 5.000000e-01 : f32
    %368 = vector.broadcast %cst_132 : f32 to vector<8x384xf32>
    %369 = arith.mulf %367, %368 : vector<8x384xf32>
    %370 = math.tanh %369 : vector<8x384xf32>
    %cst_133 = arith.constant 5.000000e-01 : f32
    %371 = vector.broadcast %cst_133 : f32 to vector<8x384xf32>
    %372 = arith.mulf %370, %371 : vector<8x384xf32>
    %cst_134 = arith.constant 5.000000e-01 : f32
    %373 = vector.broadcast %cst_134 : f32 to vector<8x384xf32>
    %374 = arith.addf %372, %373 : vector<8x384xf32>
    %375 = vector.extract_strided_slice %374 {offsets = [0, 0], sizes = [8, 128], strides = [1, 1]} : vector<8x384xf32> to vector<8x128xf32>
    %376 = vector.extract_strided_slice %374 {offsets = [0, 128], sizes = [8, 128], strides = [1, 1]} : vector<8x384xf32> to vector<8x128xf32>
    %377 = vector.extract_strided_slice %374 {offsets = [0, 256], sizes = [8, 128], strides = [1, 1]} : vector<8x384xf32> to vector<8x128xf32>
    %378 = vector.extract_strided_slice %366 {offsets = [0, 384], sizes = [8, 128], strides = [1, 1]} : vector<8x512xf32> to vector<8x128xf32>
    %379 = math.tanh %378 : vector<8x128xf32>
    %380 = arith.mulf %376, %354 : vector<8x128xf32>
    %381 = arith.mulf %375, %379 : vector<8x128xf32>
    %382 = arith.addf %380, %381 : vector<8x128xf32>
    %383 = math.tanh %382 : vector<8x128xf32>
    %384 = arith.mulf %377, %383 : vector<8x128xf32>
    %385 = arith.index_cast %c4_i32_128 : i32 to index
    %c0_135 = arith.constant 0 : index
    %c0_136 = arith.constant 0 : index
    %386 = vector.load %arg17[%385, %c0_135, %c0_136] : memref<8x8x128xf32, #tpu.memory_space<vmem>>, vector<1x8x128xf32>
    %387 = vector.shape_cast %386 : vector<1x8x128xf32> to vector<8x128xf32>
    %388 = vector.shape_cast %384 : vector<8x128xf32> to vector<1x8x128xf32>
    tpu.vector_store %arg17[%385, %c0_135, %c0_136], %388 {strides = array<i32>} : memref<8x8x128xf32, #tpu.memory_space<vmem>>, vector<1x8x128xf32>,
    %c5_i32_137 = arith.constant 5 : i32
    %389 = arith.truncf %384 : vector<8x128xf32> to vector<8x128xbf16>
    %cst_138 = arith.constant dense<0.000000e+00> : vector<8x512xf32>
    %390 = tpu.matmul %389, %246, %cst_138 {dimension_numbers = #tpu.dot_dimension_numbers<[1], [0], [0], [1], [0, 0, 1, 1], [], []>} : vector<8x128xbf16>, vector<128x512xbf16>, vector<8x512xf32> -> vector<8x512xf32>
    %391 = arith.index_cast %c5_i32_137 : i32 to index
    %c0_139 = arith.constant 0 : index
    %c0_140 = arith.constant 0 : index
    %392 = vector.load %arg18[%391, %c0_139, %c0_140] : memref<8x8x512xf32, #tpu.memory_space<vmem>>, vector<1x8x512xf32>
    %393 = vector.shape_cast %392 : vector<1x8x512xf32> to vector<8x512xf32>
    %394 = arith.addf %390, %393 : vector<8x512xf32>
    %395 = vector.extract_strided_slice %394 {offsets = [0, 0], sizes = [8, 384], strides = [1, 1]} : vector<8x512xf32> to vector<8x384xf32>
    %cst_141 = arith.constant 5.000000e-01 : f32
    %396 = vector.broadcast %cst_141 : f32 to vector<8x384xf32>
    %397 = arith.mulf %395, %396 : vector<8x384xf32>
    %398 = math.tanh %397 : vector<8x384xf32>
    %cst_142 = arith.constant 5.000000e-01 : f32
    %399 = vector.broadcast %cst_142 : f32 to vector<8x384xf32>
    %400 = arith.mulf %398, %399 : vector<8x384xf32>
    %cst_143 = arith.constant 5.000000e-01 : f32
    %401 = vector.broadcast %cst_143 : f32 to vector<8x384xf32>
    %402 = arith.addf %400, %401 : vector<8x384xf32>
    %403 = vector.extract_strided_slice %402 {offsets = [0, 0], sizes = [8, 128], strides = [1, 1]} : vector<8x384xf32> to vector<8x128xf32>
    %404 = vector.extract_strided_slice %402 {offsets = [0, 128], sizes = [8, 128], strides = [1, 1]} : vector<8x384xf32> to vector<8x128xf32>
    %405 = vector.extract_strided_slice %402 {offsets = [0, 256], sizes = [8, 128], strides = [1, 1]} : vector<8x384xf32> to vector<8x128xf32>
    %406 = vector.extract_strided_slice %394 {offsets = [0, 384], sizes = [8, 128], strides = [1, 1]} : vector<8x512xf32> to vector<8x128xf32>
    %407 = math.tanh %406 : vector<8x128xf32>
    %408 = arith.mulf %404, %382 : vector<8x128xf32>
    %409 = arith.mulf %403, %407 : vector<8x128xf32>
    %410 = arith.addf %408, %409 : vector<8x128xf32>
    %411 = math.tanh %410 : vector<8x128xf32>
    %412 = arith.mulf %405, %411 : vector<8x128xf32>
    %413 = arith.index_cast %c5_i32_137 : i32 to index
    %c0_144 = arith.constant 0 : index
    %c0_145 = arith.constant 0 : index
    %414 = vector.load %arg17[%413, %c0_144, %c0_145] : memref<8x8x128xf32, #tpu.memory_space<vmem>>, vector<1x8x128xf32>
    %415 = vector.shape_cast %414 : vector<1x8x128xf32> to vector<8x128xf32>
    %416 = vector.shape_cast %412 : vector<8x128xf32> to vector<1x8x128xf32>
    tpu.vector_store %arg17[%413, %c0_144, %c0_145], %416 {strides = array<i32>} : memref<8x8x128xf32, #tpu.memory_space<vmem>>, vector<1x8x128xf32>,
    %c6_i32_146 = arith.constant 6 : i32
    %417 = arith.truncf %412 : vector<8x128xf32> to vector<8x128xbf16>
    %cst_147 = arith.constant dense<0.000000e+00> : vector<8x512xf32>
    %418 = tpu.matmul %417, %246, %cst_147 {dimension_numbers = #tpu.dot_dimension_numbers<[1], [0], [0], [1], [0, 0, 1, 1], [], []>} : vector<8x128xbf16>, vector<128x512xbf16>, vector<8x512xf32> -> vector<8x512xf32>
    %419 = arith.index_cast %c6_i32_146 : i32 to index
    %c0_148 = arith.constant 0 : index
    %c0_149 = arith.constant 0 : index
    %420 = vector.load %arg18[%419, %c0_148, %c0_149] : memref<8x8x512xf32, #tpu.memory_space<vmem>>, vector<1x8x512xf32>
    %421 = vector.shape_cast %420 : vector<1x8x512xf32> to vector<8x512xf32>
    %422 = arith.addf %418, %421 : vector<8x512xf32>
    %423 = vector.extract_strided_slice %422 {offsets = [0, 0], sizes = [8, 384], strides = [1, 1]} : vector<8x512xf32> to vector<8x384xf32>
    %cst_150 = arith.constant 5.000000e-01 : f32
    %424 = vector.broadcast %cst_150 : f32 to vector<8x384xf32>
    %425 = arith.mulf %423, %424 : vector<8x384xf32>
    %426 = math.tanh %425 : vector<8x384xf32>
    %cst_151 = arith.constant 5.000000e-01 : f32
    %427 = vector.broadcast %cst_151 : f32 to vector<8x384xf32>
    %428 = arith.mulf %426, %427 : vector<8x384xf32>
    %cst_152 = arith.constant 5.000000e-01 : f32
    %429 = vector.broadcast %cst_152 : f32 to vector<8x384xf32>
    %430 = arith.addf %428, %429 : vector<8x384xf32>
    %431 = vector.extract_strided_slice %430 {offsets = [0, 0], sizes = [8, 128], strides = [1, 1]} : vector<8x384xf32> to vector<8x128xf32>
    %432 = vector.extract_strided_slice %430 {offsets = [0, 128], sizes = [8, 128], strides = [1, 1]} : vector<8x384xf32> to vector<8x128xf32>
    %433 = vector.extract_strided_slice %430 {offsets = [0, 256], sizes = [8, 128], strides = [1, 1]} : vector<8x384xf32> to vector<8x128xf32>
    %434 = vector.extract_strided_slice %422 {offsets = [0, 384], sizes = [8, 128], strides = [1, 1]} : vector<8x512xf32> to vector<8x128xf32>
    %435 = math.tanh %434 : vector<8x128xf32>
    %436 = arith.mulf %432, %410 : vector<8x128xf32>
    %437 = arith.mulf %431, %435 : vector<8x128xf32>
    %438 = arith.addf %436, %437 : vector<8x128xf32>
    %439 = math.tanh %438 : vector<8x128xf32>
    %440 = arith.mulf %433, %439 : vector<8x128xf32>
    %441 = arith.index_cast %c6_i32_146 : i32 to index
    %c0_153 = arith.constant 0 : index
    %c0_154 = arith.constant 0 : index
    %442 = vector.load %arg17[%441, %c0_153, %c0_154] : memref<8x8x128xf32, #tpu.memory_space<vmem>>, vector<1x8x128xf32>
    %443 = vector.shape_cast %442 : vector<1x8x128xf32> to vector<8x128xf32>
    %444 = vector.shape_cast %440 : vector<8x128xf32> to vector<1x8x128xf32>
    tpu.vector_store %arg17[%441, %c0_153, %c0_154], %444 {strides = array<i32>} : memref<8x8x128xf32, #tpu.memory_space<vmem>>, vector<1x8x128xf32>,
    %c7_i32_155 = arith.constant 7 : i32
    %445 = arith.truncf %440 : vector<8x128xf32> to vector<8x128xbf16>
    %cst_156 = arith.constant dense<0.000000e+00> : vector<8x512xf32>
    %446 = tpu.matmul %445, %246, %cst_156 {dimension_numbers = #tpu.dot_dimension_numbers<[1], [0], [0], [1], [0, 0, 1, 1], [], []>} : vector<8x128xbf16>, vector<128x512xbf16>, vector<8x512xf32> -> vector<8x512xf32>
    %447 = arith.index_cast %c7_i32_155 : i32 to index
    %c0_157 = arith.constant 0 : index
    %c0_158 = arith.constant 0 : index
    %448 = vector.load %arg18[%447, %c0_157, %c0_158] : memref<8x8x512xf32, #tpu.memory_space<vmem>>, vector<1x8x512xf32>
    %449 = vector.shape_cast %448 : vector<1x8x512xf32> to vector<8x512xf32>
    %450 = arith.addf %446, %449 : vector<8x512xf32>
    %451 = vector.extract_strided_slice %450 {offsets = [0, 0], sizes = [8, 384], strides = [1, 1]} : vector<8x512xf32> to vector<8x384xf32>
    %cst_159 = arith.constant 5.000000e-01 : f32
    %452 = vector.broadcast %cst_159 : f32 to vector<8x384xf32>
    %453 = arith.mulf %451, %452 : vector<8x384xf32>
    %454 = math.tanh %453 : vector<8x384xf32>
    %cst_160 = arith.constant 5.000000e-01 : f32
    %455 = vector.broadcast %cst_160 : f32 to vector<8x384xf32>
    %456 = arith.mulf %454, %455 : vector<8x384xf32>
    %cst_161 = arith.constant 5.000000e-01 : f32
    %457 = vector.broadcast %cst_161 : f32 to vector<8x384xf32>
    %458 = arith.addf %456, %457 : vector<8x384xf32>
    %459 = vector.extract_strided_slice %458 {offsets = [0, 0], sizes = [8, 128], strides = [1, 1]} : vector<8x384xf32> to vector<8x128xf32>
    %460 = vector.extract_strided_slice %458 {offsets = [0, 128], sizes = [8, 128], strides = [1, 1]} : vector<8x384xf32> to vector<8x128xf32>
    %461 = vector.extract_strided_slice %458 {offsets = [0, 256], sizes = [8, 128], strides = [1, 1]} : vector<8x384xf32> to vector<8x128xf32>
    %462 = vector.extract_strided_slice %450 {offsets = [0, 384], sizes = [8, 128], strides = [1, 1]} : vector<8x512xf32> to vector<8x128xf32>
    %463 = math.tanh %462 : vector<8x128xf32>
    %464 = arith.mulf %460, %438 : vector<8x128xf32>
    %465 = arith.mulf %459, %463 : vector<8x128xf32>
    %466 = arith.addf %464, %465 : vector<8x128xf32>
    %467 = math.tanh %466 : vector<8x128xf32>
    %468 = arith.mulf %461, %467 : vector<8x128xf32>
    %469 = arith.index_cast %c7_i32_155 : i32 to index
    %c0_162 = arith.constant 0 : index
    %c0_163 = arith.constant 0 : index
    %470 = vector.load %arg17[%469, %c0_162, %c0_163] : memref<8x8x128xf32, #tpu.memory_space<vmem>>, vector<1x8x128xf32>
    %471 = vector.shape_cast %470 : vector<1x8x128xf32> to vector<8x128xf32>
    %472 = vector.shape_cast %468 : vector<8x128xf32> to vector<1x8x128xf32>
    tpu.vector_store %arg17[%469, %c0_162, %c0_163], %472 {strides = array<i32>} : memref<8x8x128xf32, #tpu.memory_space<vmem>>, vector<1x8x128xf32>,
    %c8_i32_164 = arith.constant 8 : i32
    %c0_165 = arith.constant 0 : index
    %c0_166 = arith.constant 0 : index
    %c0_167 = arith.constant 0 : index
    %473 = vector.load %arg17[%c0_165, %c0_166, %c0_167] : memref<8x8x128xf32, #tpu.memory_space<vmem>>, vector<8x8x128xf32>
    %474 = arith.truncf %473 : vector<8x8x128xf32> to vector<8x8x128xbf16>
    %475 = vector.shape_cast %474 : vector<8x8x128xbf16> to vector<64x128xbf16>
    %c0_168 = arith.constant 0 : index
    %c0_169 = arith.constant 0 : index
    %476 = vector.load %arg8[%c0_168, %c0_169] : memref<128x512xbf16, #tpu.memory_space<vmem>>, vector<128x512xbf16>
    %cst_170 = arith.constant dense<0.000000e+00> : vector<64x512xf32>
    %477 = tpu.matmul %475, %476, %cst_170 {dimension_numbers = #tpu.dot_dimension_numbers<[1], [0], [0], [1], [0, 0, 1, 1], [], []>} : vector<64x128xbf16>, vector<128x512xbf16>, vector<64x512xf32> -> vector<64x512xf32>
    %c0_171 = arith.constant 0 : index
    %c0_172 = arith.constant 0 : index
    %478 = vector.load %arg10[%c0_171, %c0_172] : memref<1x512xf32, #tpu.memory_space<vmem>>, vector<1x512xf32>
    %479 = vector.broadcast %478 : vector<1x512xf32> to vector<64x512xf32>
    %480 = arith.addf %477, %479 : vector<64x512xf32>
    %481 = vector.shape_cast %480 : vector<64x512xf32> to vector<8x8x512xf32>
    %c0_173 = arith.constant 0 : index
    %c0_174 = arith.constant 0 : index
    %c0_175 = arith.constant 0 : index
    %482 = vector.load %arg18[%c0_173, %c0_174, %c0_175] : memref<8x8x512xf32, #tpu.memory_space<vmem>>, vector<8x8x512xf32>
    tpu.vector_store %arg18[%c0_173, %c0_174, %c0_175], %481 {strides = array<i32>} : memref<8x8x512xf32, #tpu.memory_space<vmem>>, vector<8x8x512xf32>,
    %c0_176 = arith.constant 0 : index
    %c0_177 = arith.constant 0 : index
    %483 = vector.load %arg9[%c0_176, %c0_177] : memref<128x512xbf16, #tpu.memory_space<vmem>>, vector<128x512xbf16>
    %cst_178 = arith.constant 0.000000e+00 : f32
    %484 = vector.broadcast %cst_178 : f32 to vector<8x128xf32>
    %cst_179 = arith.constant 0.000000e+00 : f32
    %485 = vector.broadcast %cst_179 : f32 to vector<8x128xf32>
    %c0_i32_180 = arith.constant 0 : i32
    %486 = arith.truncf %484 : vector<8x128xf32> to vector<8x128xbf16>
    %cst_181 = arith.constant dense<0.000000e+00> : vector<8x512xf32>
    %487 = tpu.matmul %486, %483, %cst_181 {dimension_numbers = #tpu.dot_dimension_numbers<[1], [0], [0], [1], [0, 0, 1, 1], [], []>} : vector<8x128xbf16>, vector<128x512xbf16>, vector<8x512xf32> -> vector<8x512xf32>
    %488 = arith.index_cast %c0_i32_180 : i32 to index
    %c0_182 = arith.constant 0 : index
    %c0_183 = arith.constant 0 : index
    %489 = vector.load %arg18[%488, %c0_182, %c0_183] : memref<8x8x512xf32, #tpu.memory_space<vmem>>, vector<1x8x512xf32>
    %490 = vector.shape_cast %489 : vector<1x8x512xf32> to vector<8x512xf32>
    %491 = arith.addf %487, %490 : vector<8x512xf32>
    %492 = vector.extract_strided_slice %491 {offsets = [0, 0], sizes = [8, 384], strides = [1, 1]} : vector<8x512xf32> to vector<8x384xf32>
    %cst_184 = arith.constant 5.000000e-01 : f32
    %493 = vector.broadcast %cst_184 : f32 to vector<8x384xf32>
    %494 = arith.mulf %492, %493 : vector<8x384xf32>
    %495 = math.tanh %494 : vector<8x384xf32>
    %cst_185 = arith.constant 5.000000e-01 : f32
    %496 = vector.broadcast %cst_185 : f32 to vector<8x384xf32>
    %497 = arith.mulf %495, %496 : vector<8x384xf32>
    %cst_186 = arith.constant 5.000000e-01 : f32
    %498 = vector.broadcast %cst_186 : f32 to vector<8x384xf32>
    %499 = arith.addf %497, %498 : vector<8x384xf32>
    %500 = vector.extract_strided_slice %499 {offsets = [0, 0], sizes = [8, 128], strides = [1, 1]} : vector<8x384xf32> to vector<8x128xf32>
    %501 = vector.extract_strided_slice %499 {offsets = [0, 128], sizes = [8, 128], strides = [1, 1]} : vector<8x384xf32> to vector<8x128xf32>
    %502 = vector.extract_strided_slice %499 {offsets = [0, 256], sizes = [8, 128], strides = [1, 1]} : vector<8x384xf32> to vector<8x128xf32>
    %503 = vector.extract_strided_slice %491 {offsets = [0, 384], sizes = [8, 128], strides = [1, 1]} : vector<8x512xf32> to vector<8x128xf32>
    %504 = math.tanh %503 : vector<8x128xf32>
    %505 = arith.mulf %501, %485 : vector<8x128xf32>
    %506 = arith.mulf %500, %504 : vector<8x128xf32>
    %507 = arith.addf %505, %506 : vector<8x128xf32>
    %508 = math.tanh %507 : vector<8x128xf32>
    %509 = arith.mulf %502, %508 : vector<8x128xf32>
    %510 = arith.index_cast %c0_i32_180 : i32 to index
    %c0_187 = arith.constant 0 : index
    %c0_188 = arith.constant 0 : index
    %511 = vector.load %arg17[%510, %c0_187, %c0_188] : memref<8x8x128xf32, #tpu.memory_space<vmem>>, vector<1x8x128xf32>
    %512 = vector.shape_cast %511 : vector<1x8x128xf32> to vector<8x128xf32>
    %513 = vector.shape_cast %509 : vector<8x128xf32> to vector<1x8x128xf32>
    tpu.vector_store %arg17[%510, %c0_187, %c0_188], %513 {strides = array<i32>} : memref<8x8x128xf32, #tpu.memory_space<vmem>>, vector<1x8x128xf32>,
    %c1_i32_189 = arith.constant 1 : i32
    %514 = arith.truncf %509 : vector<8x128xf32> to vector<8x128xbf16>
    %cst_190 = arith.constant dense<0.000000e+00> : vector<8x512xf32>
    %515 = tpu.matmul %514, %483, %cst_190 {dimension_numbers = #tpu.dot_dimension_numbers<[1], [0], [0], [1], [0, 0, 1, 1], [], []>} : vector<8x128xbf16>, vector<128x512xbf16>, vector<8x512xf32> -> vector<8x512xf32>
    %516 = arith.index_cast %c1_i32_189 : i32 to index
    %c0_191 = arith.constant 0 : index
    %c0_192 = arith.constant 0 : index
    %517 = vector.load %arg18[%516, %c0_191, %c0_192] : memref<8x8x512xf32, #tpu.memory_space<vmem>>, vector<1x8x512xf32>
    %518 = vector.shape_cast %517 : vector<1x8x512xf32> to vector<8x512xf32>
    %519 = arith.addf %515, %518 : vector<8x512xf32>
    %520 = vector.extract_strided_slice %519 {offsets = [0, 0], sizes = [8, 384], strides = [1, 1]} : vector<8x512xf32> to vector<8x384xf32>
    %cst_193 = arith.constant 5.000000e-01 : f32
    %521 = vector.broadcast %cst_193 : f32 to vector<8x384xf32>
    %522 = arith.mulf %520, %521 : vector<8x384xf32>
    %523 = math.tanh %522 : vector<8x384xf32>
    %cst_194 = arith.constant 5.000000e-01 : f32
    %524 = vector.broadcast %cst_194 : f32 to vector<8x384xf32>
    %525 = arith.mulf %523, %524 : vector<8x384xf32>
    %cst_195 = arith.constant 5.000000e-01 : f32
    %526 = vector.broadcast %cst_195 : f32 to vector<8x384xf32>
    %527 = arith.addf %525, %526 : vector<8x384xf32>
    %528 = vector.extract_strided_slice %527 {offsets = [0, 0], sizes = [8, 128], strides = [1, 1]} : vector<8x384xf32> to vector<8x128xf32>
    %529 = vector.extract_strided_slice %527 {offsets = [0, 128], sizes = [8, 128], strides = [1, 1]} : vector<8x384xf32> to vector<8x128xf32>
    %530 = vector.extract_strided_slice %527 {offsets = [0, 256], sizes = [8, 128], strides = [1, 1]} : vector<8x384xf32> to vector<8x128xf32>
    %531 = vector.extract_strided_slice %519 {offsets = [0, 384], sizes = [8, 128], strides = [1, 1]} : vector<8x512xf32> to vector<8x128xf32>
    %532 = math.tanh %531 : vector<8x128xf32>
    %533 = arith.mulf %529, %507 : vector<8x128xf32>
    %534 = arith.mulf %528, %532 : vector<8x128xf32>
    %535 = arith.addf %533, %534 : vector<8x128xf32>
    %536 = math.tanh %535 : vector<8x128xf32>
    %537 = arith.mulf %530, %536 : vector<8x128xf32>
    %538 = arith.index_cast %c1_i32_189 : i32 to index
    %c0_196 = arith.constant 0 : index
    %c0_197 = arith.constant 0 : index
    %539 = vector.load %arg17[%538, %c0_196, %c0_197] : memref<8x8x128xf32, #tpu.memory_space<vmem>>, vector<1x8x128xf32>
    %540 = vector.shape_cast %539 : vector<1x8x128xf32> to vector<8x128xf32>
    %541 = vector.shape_cast %537 : vector<8x128xf32> to vector<1x8x128xf32>
    tpu.vector_store %arg17[%538, %c0_196, %c0_197], %541 {strides = array<i32>} : memref<8x8x128xf32, #tpu.memory_space<vmem>>, vector<1x8x128xf32>,
    %c2_i32_198 = arith.constant 2 : i32
    %542 = arith.truncf %537 : vector<8x128xf32> to vector<8x128xbf16>
    %cst_199 = arith.constant dense<0.000000e+00> : vector<8x512xf32>
    %543 = tpu.matmul %542, %483, %cst_199 {dimension_numbers = #tpu.dot_dimension_numbers<[1], [0], [0], [1], [0, 0, 1, 1], [], []>} : vector<8x128xbf16>, vector<128x512xbf16>, vector<8x512xf32> -> vector<8x512xf32>
    %544 = arith.index_cast %c2_i32_198 : i32 to index
    %c0_200 = arith.constant 0 : index
    %c0_201 = arith.constant 0 : index
    %545 = vector.load %arg18[%544, %c0_200, %c0_201] : memref<8x8x512xf32, #tpu.memory_space<vmem>>, vector<1x8x512xf32>
    %546 = vector.shape_cast %545 : vector<1x8x512xf32> to vector<8x512xf32>
    %547 = arith.addf %543, %546 : vector<8x512xf32>
    %548 = vector.extract_strided_slice %547 {offsets = [0, 0], sizes = [8, 384], strides = [1, 1]} : vector<8x512xf32> to vector<8x384xf32>
    %cst_202 = arith.constant 5.000000e-01 : f32
    %549 = vector.broadcast %cst_202 : f32 to vector<8x384xf32>
    %550 = arith.mulf %548, %549 : vector<8x384xf32>
    %551 = math.tanh %550 : vector<8x384xf32>
    %cst_203 = arith.constant 5.000000e-01 : f32
    %552 = vector.broadcast %cst_203 : f32 to vector<8x384xf32>
    %553 = arith.mulf %551, %552 : vector<8x384xf32>
    %cst_204 = arith.constant 5.000000e-01 : f32
    %554 = vector.broadcast %cst_204 : f32 to vector<8x384xf32>
    %555 = arith.addf %553, %554 : vector<8x384xf32>
    %556 = vector.extract_strided_slice %555 {offsets = [0, 0], sizes = [8, 128], strides = [1, 1]} : vector<8x384xf32> to vector<8x128xf32>
    %557 = vector.extract_strided_slice %555 {offsets = [0, 128], sizes = [8, 128], strides = [1, 1]} : vector<8x384xf32> to vector<8x128xf32>
    %558 = vector.extract_strided_slice %555 {offsets = [0, 256], sizes = [8, 128], strides = [1, 1]} : vector<8x384xf32> to vector<8x128xf32>
    %559 = vector.extract_strided_slice %547 {offsets = [0, 384], sizes = [8, 128], strides = [1, 1]} : vector<8x512xf32> to vector<8x128xf32>
    %560 = math.tanh %559 : vector<8x128xf32>
    %561 = arith.mulf %557, %535 : vector<8x128xf32>
    %562 = arith.mulf %556, %560 : vector<8x128xf32>
    %563 = arith.addf %561, %562 : vector<8x128xf32>
    %564 = math.tanh %563 : vector<8x128xf32>
    %565 = arith.mulf %558, %564 : vector<8x128xf32>
    %566 = arith.index_cast %c2_i32_198 : i32 to index
    %c0_205 = arith.constant 0 : index
    %c0_206 = arith.constant 0 : index
    %567 = vector.load %arg17[%566, %c0_205, %c0_206] : memref<8x8x128xf32, #tpu.memory_space<vmem>>, vector<1x8x128xf32>
    %568 = vector.shape_cast %567 : vector<1x8x128xf32> to vector<8x128xf32>
    %569 = vector.shape_cast %565 : vector<8x128xf32> to vector<1x8x128xf32>
    tpu.vector_store %arg17[%566, %c0_205, %c0_206], %569 {strides = array<i32>} : memref<8x8x128xf32, #tpu.memory_space<vmem>>, vector<1x8x128xf32>,
    %c3_i32_207 = arith.constant 3 : i32
    %570 = arith.truncf %565 : vector<8x128xf32> to vector<8x128xbf16>
    %cst_208 = arith.constant dense<0.000000e+00> : vector<8x512xf32>
    %571 = tpu.matmul %570, %483, %cst_208 {dimension_numbers = #tpu.dot_dimension_numbers<[1], [0], [0], [1], [0, 0, 1, 1], [], []>} : vector<8x128xbf16>, vector<128x512xbf16>, vector<8x512xf32> -> vector<8x512xf32>
    %572 = arith.index_cast %c3_i32_207 : i32 to index
    %c0_209 = arith.constant 0 : index
    %c0_210 = arith.constant 0 : index
    %573 = vector.load %arg18[%572, %c0_209, %c0_210] : memref<8x8x512xf32, #tpu.memory_space<vmem>>, vector<1x8x512xf32>
    %574 = vector.shape_cast %573 : vector<1x8x512xf32> to vector<8x512xf32>
    %575 = arith.addf %571, %574 : vector<8x512xf32>
    %576 = vector.extract_strided_slice %575 {offsets = [0, 0], sizes = [8, 384], strides = [1, 1]} : vector<8x512xf32> to vector<8x384xf32>
    %cst_211 = arith.constant 5.000000e-01 : f32
    %577 = vector.broadcast %cst_211 : f32 to vector<8x384xf32>
    %578 = arith.mulf %576, %577 : vector<8x384xf32>
    %579 = math.tanh %578 : vector<8x384xf32>
    %cst_212 = arith.constant 5.000000e-01 : f32
    %580 = vector.broadcast %cst_212 : f32 to vector<8x384xf32>
    %581 = arith.mulf %579, %580 : vector<8x384xf32>
    %cst_213 = arith.constant 5.000000e-01 : f32
    %582 = vector.broadcast %cst_213 : f32 to vector<8x384xf32>
    %583 = arith.addf %581, %582 : vector<8x384xf32>
    %584 = vector.extract_strided_slice %583 {offsets = [0, 0], sizes = [8, 128], strides = [1, 1]} : vector<8x384xf32> to vector<8x128xf32>
    %585 = vector.extract_strided_slice %583 {offsets = [0, 128], sizes = [8, 128], strides = [1, 1]} : vector<8x384xf32> to vector<8x128xf32>
    %586 = vector.extract_strided_slice %583 {offsets = [0, 256], sizes = [8, 128], strides = [1, 1]} : vector<8x384xf32> to vector<8x128xf32>
    %587 = vector.extract_strided_slice %575 {offsets = [0, 384], sizes = [8, 128], strides = [1, 1]} : vector<8x512xf32> to vector<8x128xf32>
    %588 = math.tanh %587 : vector<8x128xf32>
    %589 = arith.mulf %585, %563 : vector<8x128xf32>
    %590 = arith.mulf %584, %588 : vector<8x128xf32>
    %591 = arith.addf %589, %590 : vector<8x128xf32>
    %592 = math.tanh %591 : vector<8x128xf32>
    %593 = arith.mulf %586, %592 : vector<8x128xf32>
    %594 = arith.index_cast %c3_i32_207 : i32 to index
    %c0_214 = arith.constant 0 : index
    %c0_215 = arith.constant 0 : index
    %595 = vector.load %arg17[%594, %c0_214, %c0_215] : memref<8x8x128xf32, #tpu.memory_space<vmem>>, vector<1x8x128xf32>
    %596 = vector.shape_cast %595 : vector<1x8x128xf32> to vector<8x128xf32>
    %597 = vector.shape_cast %593 : vector<8x128xf32> to vector<1x8x128xf32>
    tpu.vector_store %arg17[%594, %c0_214, %c0_215], %597 {strides = array<i32>} : memref<8x8x128xf32, #tpu.memory_space<vmem>>, vector<1x8x128xf32>,
    %c4_i32_216 = arith.constant 4 : i32
    %598 = arith.truncf %593 : vector<8x128xf32> to vector<8x128xbf16>
    %cst_217 = arith.constant dense<0.000000e+00> : vector<8x512xf32>
    %599 = tpu.matmul %598, %483, %cst_217 {dimension_numbers = #tpu.dot_dimension_numbers<[1], [0], [0], [1], [0, 0, 1, 1], [], []>} : vector<8x128xbf16>, vector<128x512xbf16>, vector<8x512xf32> -> vector<8x512xf32>
    %600 = arith.index_cast %c4_i32_216 : i32 to index
    %c0_218 = arith.constant 0 : index
    %c0_219 = arith.constant 0 : index
    %601 = vector.load %arg18[%600, %c0_218, %c0_219] : memref<8x8x512xf32, #tpu.memory_space<vmem>>, vector<1x8x512xf32>
    %602 = vector.shape_cast %601 : vector<1x8x512xf32> to vector<8x512xf32>
    %603 = arith.addf %599, %602 : vector<8x512xf32>
    %604 = vector.extract_strided_slice %603 {offsets = [0, 0], sizes = [8, 384], strides = [1, 1]} : vector<8x512xf32> to vector<8x384xf32>
    %cst_220 = arith.constant 5.000000e-01 : f32
    %605 = vector.broadcast %cst_220 : f32 to vector<8x384xf32>
    %606 = arith.mulf %604, %605 : vector<8x384xf32>
    %607 = math.tanh %606 : vector<8x384xf32>
    %cst_221 = arith.constant 5.000000e-01 : f32
    %608 = vector.broadcast %cst_221 : f32 to vector<8x384xf32>
    %609 = arith.mulf %607, %608 : vector<8x384xf32>
    %cst_222 = arith.constant 5.000000e-01 : f32
    %610 = vector.broadcast %cst_222 : f32 to vector<8x384xf32>
    %611 = arith.addf %609, %610 : vector<8x384xf32>
    %612 = vector.extract_strided_slice %611 {offsets = [0, 0], sizes = [8, 128], strides = [1, 1]} : vector<8x384xf32> to vector<8x128xf32>
    %613 = vector.extract_strided_slice %611 {offsets = [0, 128], sizes = [8, 128], strides = [1, 1]} : vector<8x384xf32> to vector<8x128xf32>
    %614 = vector.extract_strided_slice %611 {offsets = [0, 256], sizes = [8, 128], strides = [1, 1]} : vector<8x384xf32> to vector<8x128xf32>
    %615 = vector.extract_strided_slice %603 {offsets = [0, 384], sizes = [8, 128], strides = [1, 1]} : vector<8x512xf32> to vector<8x128xf32>
    %616 = math.tanh %615 : vector<8x128xf32>
    %617 = arith.mulf %613, %591 : vector<8x128xf32>
    %618 = arith.mulf %612, %616 : vector<8x128xf32>
    %619 = arith.addf %617, %618 : vector<8x128xf32>
    %620 = math.tanh %619 : vector<8x128xf32>
    %621 = arith.mulf %614, %620 : vector<8x128xf32>
    %622 = arith.index_cast %c4_i32_216 : i32 to index
    %c0_223 = arith.constant 0 : index
    %c0_224 = arith.constant 0 : index
    %623 = vector.load %arg17[%622, %c0_223, %c0_224] : memref<8x8x128xf32, #tpu.memory_space<vmem>>, vector<1x8x128xf32>
    %624 = vector.shape_cast %623 : vector<1x8x128xf32> to vector<8x128xf32>
    %625 = vector.shape_cast %621 : vector<8x128xf32> to vector<1x8x128xf32>
    tpu.vector_store %arg17[%622, %c0_223, %c0_224], %625 {strides = array<i32>} : memref<8x8x128xf32, #tpu.memory_space<vmem>>, vector<1x8x128xf32>,
    %c5_i32_225 = arith.constant 5 : i32
    %626 = arith.truncf %621 : vector<8x128xf32> to vector<8x128xbf16>
    %cst_226 = arith.constant dense<0.000000e+00> : vector<8x512xf32>
    %627 = tpu.matmul %626, %483, %cst_226 {dimension_numbers = #tpu.dot_dimension_numbers<[1], [0], [0], [1], [0, 0, 1, 1], [], []>} : vector<8x128xbf16>, vector<128x512xbf16>, vector<8x512xf32> -> vector<8x512xf32>
    %628 = arith.index_cast %c5_i32_225 : i32 to index
    %c0_227 = arith.constant 0 : index
    %c0_228 = arith.constant 0 : index
    %629 = vector.load %arg18[%628, %c0_227, %c0_228] : memref<8x8x512xf32, #tpu.memory_space<vmem>>, vector<1x8x512xf32>
    %630 = vector.shape_cast %629 : vector<1x8x512xf32> to vector<8x512xf32>
    %631 = arith.addf %627, %630 : vector<8x512xf32>
    %632 = vector.extract_strided_slice %631 {offsets = [0, 0], sizes = [8, 384], strides = [1, 1]} : vector<8x512xf32> to vector<8x384xf32>
    %cst_229 = arith.constant 5.000000e-01 : f32
    %633 = vector.broadcast %cst_229 : f32 to vector<8x384xf32>
    %634 = arith.mulf %632, %633 : vector<8x384xf32>
    %635 = math.tanh %634 : vector<8x384xf32>
    %cst_230 = arith.constant 5.000000e-01 : f32
    %636 = vector.broadcast %cst_230 : f32 to vector<8x384xf32>
    %637 = arith.mulf %635, %636 : vector<8x384xf32>
    %cst_231 = arith.constant 5.000000e-01 : f32
    %638 = vector.broadcast %cst_231 : f32 to vector<8x384xf32>
    %639 = arith.addf %637, %638 : vector<8x384xf32>
    %640 = vector.extract_strided_slice %639 {offsets = [0, 0], sizes = [8, 128], strides = [1, 1]} : vector<8x384xf32> to vector<8x128xf32>
    %641 = vector.extract_strided_slice %639 {offsets = [0, 128], sizes = [8, 128], strides = [1, 1]} : vector<8x384xf32> to vector<8x128xf32>
    %642 = vector.extract_strided_slice %639 {offsets = [0, 256], sizes = [8, 128], strides = [1, 1]} : vector<8x384xf32> to vector<8x128xf32>
    %643 = vector.extract_strided_slice %631 {offsets = [0, 384], sizes = [8, 128], strides = [1, 1]} : vector<8x512xf32> to vector<8x128xf32>
    %644 = math.tanh %643 : vector<8x128xf32>
    %645 = arith.mulf %641, %619 : vector<8x128xf32>
    %646 = arith.mulf %640, %644 : vector<8x128xf32>
    %647 = arith.addf %645, %646 : vector<8x128xf32>
    %648 = math.tanh %647 : vector<8x128xf32>
    %649 = arith.mulf %642, %648 : vector<8x128xf32>
    %650 = arith.index_cast %c5_i32_225 : i32 to index
    %c0_232 = arith.constant 0 : index
    %c0_233 = arith.constant 0 : index
    %651 = vector.load %arg17[%650, %c0_232, %c0_233] : memref<8x8x128xf32, #tpu.memory_space<vmem>>, vector<1x8x128xf32>
    %652 = vector.shape_cast %651 : vector<1x8x128xf32> to vector<8x128xf32>
    %653 = vector.shape_cast %649 : vector<8x128xf32> to vector<1x8x128xf32>
    tpu.vector_store %arg17[%650, %c0_232, %c0_233], %653 {strides = array<i32>} : memref<8x8x128xf32, #tpu.memory_space<vmem>>, vector<1x8x128xf32>,
    %c6_i32_234 = arith.constant 6 : i32
    %654 = arith.truncf %649 : vector<8x128xf32> to vector<8x128xbf16>
    %cst_235 = arith.constant dense<0.000000e+00> : vector<8x512xf32>
    %655 = tpu.matmul %654, %483, %cst_235 {dimension_numbers = #tpu.dot_dimension_numbers<[1], [0], [0], [1], [0, 0, 1, 1], [], []>} : vector<8x128xbf16>, vector<128x512xbf16>, vector<8x512xf32> -> vector<8x512xf32>
    %656 = arith.index_cast %c6_i32_234 : i32 to index
    %c0_236 = arith.constant 0 : index
    %c0_237 = arith.constant 0 : index
    %657 = vector.load %arg18[%656, %c0_236, %c0_237] : memref<8x8x512xf32, #tpu.memory_space<vmem>>, vector<1x8x512xf32>
    %658 = vector.shape_cast %657 : vector<1x8x512xf32> to vector<8x512xf32>
    %659 = arith.addf %655, %658 : vector<8x512xf32>
    %660 = vector.extract_strided_slice %659 {offsets = [0, 0], sizes = [8, 384], strides = [1, 1]} : vector<8x512xf32> to vector<8x384xf32>
    %cst_238 = arith.constant 5.000000e-01 : f32
    %661 = vector.broadcast %cst_238 : f32 to vector<8x384xf32>
    %662 = arith.mulf %660, %661 : vector<8x384xf32>
    %663 = math.tanh %662 : vector<8x384xf32>
    %cst_239 = arith.constant 5.000000e-01 : f32
    %664 = vector.broadcast %cst_239 : f32 to vector<8x384xf32>
    %665 = arith.mulf %663, %664 : vector<8x384xf32>
    %cst_240 = arith.constant 5.000000e-01 : f32
    %666 = vector.broadcast %cst_240 : f32 to vector<8x384xf32>
    %667 = arith.addf %665, %666 : vector<8x384xf32>
    %668 = vector.extract_strided_slice %667 {offsets = [0, 0], sizes = [8, 128], strides = [1, 1]} : vector<8x384xf32> to vector<8x128xf32>
    %669 = vector.extract_strided_slice %667 {offsets = [0, 128], sizes = [8, 128], strides = [1, 1]} : vector<8x384xf32> to vector<8x128xf32>
    %670 = vector.extract_strided_slice %667 {offsets = [0, 256], sizes = [8, 128], strides = [1, 1]} : vector<8x384xf32> to vector<8x128xf32>
    %671 = vector.extract_strided_slice %659 {offsets = [0, 384], sizes = [8, 128], strides = [1, 1]} : vector<8x512xf32> to vector<8x128xf32>
    %672 = math.tanh %671 : vector<8x128xf32>
    %673 = arith.mulf %669, %647 : vector<8x128xf32>
    %674 = arith.mulf %668, %672 : vector<8x128xf32>
    %675 = arith.addf %673, %674 : vector<8x128xf32>
    %676 = math.tanh %675 : vector<8x128xf32>
    %677 = arith.mulf %670, %676 : vector<8x128xf32>
    %678 = arith.index_cast %c6_i32_234 : i32 to index
    %c0_241 = arith.constant 0 : index
    %c0_242 = arith.constant 0 : index
    %679 = vector.load %arg17[%678, %c0_241, %c0_242] : memref<8x8x128xf32, #tpu.memory_space<vmem>>, vector<1x8x128xf32>
    %680 = vector.shape_cast %679 : vector<1x8x128xf32> to vector<8x128xf32>
    %681 = vector.shape_cast %677 : vector<8x128xf32> to vector<1x8x128xf32>
    tpu.vector_store %arg17[%678, %c0_241, %c0_242], %681 {strides = array<i32>} : memref<8x8x128xf32, #tpu.memory_space<vmem>>, vector<1x8x128xf32>,
    %c7_i32_243 = arith.constant 7 : i32
    %682 = arith.truncf %677 : vector<8x128xf32> to vector<8x128xbf16>
    %cst_244 = arith.constant dense<0.000000e+00> : vector<8x512xf32>
    %683 = tpu.matmul %682, %483, %cst_244 {dimension_numbers = #tpu.dot_dimension_numbers<[1], [0], [0], [1], [0, 0, 1, 1], [], []>} : vector<8x128xbf16>, vector<128x512xbf16>, vector<8x512xf32> -> vector<8x512xf32>
    %684 = arith.index_cast %c7_i32_243 : i32 to index
    %c0_245 = arith.constant 0 : index
    %c0_246 = arith.constant 0 : index
    %685 = vector.load %arg18[%684, %c0_245, %c0_246] : memref<8x8x512xf32, #tpu.memory_space<vmem>>, vector<1x8x512xf32>
    %686 = vector.shape_cast %685 : vector<1x8x512xf32> to vector<8x512xf32>
    %687 = arith.addf %683, %686 : vector<8x512xf32>
    %688 = vector.extract_strided_slice %687 {offsets = [0, 0], sizes = [8, 384], strides = [1, 1]} : vector<8x512xf32> to vector<8x384xf32>
    %cst_247 = arith.constant 5.000000e-01 : f32
    %689 = vector.broadcast %cst_247 : f32 to vector<8x384xf32>
    %690 = arith.mulf %688, %689 : vector<8x384xf32>
    %691 = math.tanh %690 : vector<8x384xf32>
    %cst_248 = arith.constant 5.000000e-01 : f32
    %692 = vector.broadcast %cst_248 : f32 to vector<8x384xf32>
    %693 = arith.mulf %691, %692 : vector<8x384xf32>
    %cst_249 = arith.constant 5.000000e-01 : f32
    %694 = vector.broadcast %cst_249 : f32 to vector<8x384xf32>
    %695 = arith.addf %693, %694 : vector<8x384xf32>
    %696 = vector.extract_strided_slice %695 {offsets = [0, 0], sizes = [8, 128], strides = [1, 1]} : vector<8x384xf32> to vector<8x128xf32>
    %697 = vector.extract_strided_slice %695 {offsets = [0, 128], sizes = [8, 128], strides = [1, 1]} : vector<8x384xf32> to vector<8x128xf32>
    %698 = vector.extract_strided_slice %695 {offsets = [0, 256], sizes = [8, 128], strides = [1, 1]} : vector<8x384xf32> to vector<8x128xf32>
    %699 = vector.extract_strided_slice %687 {offsets = [0, 384], sizes = [8, 128], strides = [1, 1]} : vector<8x512xf32> to vector<8x128xf32>
    %700 = math.tanh %699 : vector<8x128xf32>
    %701 = arith.mulf %697, %675 : vector<8x128xf32>
    %702 = arith.mulf %696, %700 : vector<8x128xf32>
    %703 = arith.addf %701, %702 : vector<8x128xf32>
    %704 = math.tanh %703 : vector<8x128xf32>
    %705 = arith.mulf %698, %704 : vector<8x128xf32>
    %706 = arith.index_cast %c7_i32_243 : i32 to index
    %c0_250 = arith.constant 0 : index
    %c0_251 = arith.constant 0 : index
    %707 = vector.load %arg17[%706, %c0_250, %c0_251] : memref<8x8x128xf32, #tpu.memory_space<vmem>>, vector<1x8x128xf32>
    %708 = vector.shape_cast %707 : vector<1x8x128xf32> to vector<8x128xf32>
    %709 = vector.shape_cast %705 : vector<8x128xf32> to vector<1x8x128xf32>
    tpu.vector_store %arg17[%706, %c0_250, %c0_251], %709 {strides = array<i32>} : memref<8x8x128xf32, #tpu.memory_space<vmem>>, vector<1x8x128xf32>,
    %c8_i32_252 = arith.constant 8 : i32
    %c0_253 = arith.constant 0 : index
    %c0_254 = arith.constant 0 : index
    %c0_255 = arith.constant 0 : index
    %710 = vector.load %arg17[%c0_253, %c0_254, %c0_255] : memref<8x8x128xf32, #tpu.memory_space<vmem>>, vector<8x8x128xf32>
    %711 = arith.truncf %710 : vector<8x8x128xf32> to vector<8x8x128xbf16>
    %712 = vector.shape_cast %711 : vector<8x8x128xbf16> to vector<64x128xbf16>
    %c0_256 = arith.constant 0 : index
    %c0_257 = arith.constant 0 : index
    %713 = vector.load %arg11[%c0_256, %c0_257] : memref<128x512xbf16, #tpu.memory_space<vmem>>, vector<128x512xbf16>
    %cst_258 = arith.constant dense<0.000000e+00> : vector<64x512xf32>
    %714 = tpu.matmul %712, %713, %cst_258 {dimension_numbers = #tpu.dot_dimension_numbers<[1], [0], [0], [1], [0, 0, 1, 1], [], []>} : vector<64x128xbf16>, vector<128x512xbf16>, vector<64x512xf32> -> vector<64x512xf32>
    %c0_259 = arith.constant 0 : index
    %c0_260 = arith.constant 0 : index
    %715 = vector.load %arg13[%c0_259, %c0_260] : memref<1x512xf32, #tpu.memory_space<vmem>>, vector<1x512xf32>
    %716 = vector.broadcast %715 : vector<1x512xf32> to vector<64x512xf32>
    %717 = arith.addf %714, %716 : vector<64x512xf32>
    %718 = vector.shape_cast %717 : vector<64x512xf32> to vector<8x8x512xf32>
    %c0_261 = arith.constant 0 : index
    %c0_262 = arith.constant 0 : index
    %c0_263 = arith.constant 0 : index
    %719 = vector.load %arg18[%c0_261, %c0_262, %c0_263] : memref<8x8x512xf32, #tpu.memory_space<vmem>>, vector<8x8x512xf32>
    tpu.vector_store %arg18[%c0_261, %c0_262, %c0_263], %718 {strides = array<i32>} : memref<8x8x512xf32, #tpu.memory_space<vmem>>, vector<8x8x512xf32>,
    %c0_264 = arith.constant 0 : index
    %c0_265 = arith.constant 0 : index
    %720 = vector.load %arg12[%c0_264, %c0_265] : memref<128x512xbf16, #tpu.memory_space<vmem>>, vector<128x512xbf16>
    %cst_266 = arith.constant 0.000000e+00 : f32
    %721 = vector.broadcast %cst_266 : f32 to vector<8x128xf32>
    %cst_267 = arith.constant 0.000000e+00 : f32
    %722 = vector.broadcast %cst_267 : f32 to vector<8x128xf32>
    %c0_i32_268 = arith.constant 0 : i32
    %723 = arith.truncf %721 : vector<8x128xf32> to vector<8x128xbf16>
    %cst_269 = arith.constant dense<0.000000e+00> : vector<8x512xf32>
    %724 = tpu.matmul %723, %720, %cst_269 {dimension_numbers = #tpu.dot_dimension_numbers<[1], [0], [0], [1], [0, 0, 1, 1], [], []>} : vector<8x128xbf16>, vector<128x512xbf16>, vector<8x512xf32> -> vector<8x512xf32>
    %725 = arith.index_cast %c0_i32_268 : i32 to index
    %c0_270 = arith.constant 0 : index
    %c0_271 = arith.constant 0 : index
    %726 = vector.load %arg18[%725, %c0_270, %c0_271] : memref<8x8x512xf32, #tpu.memory_space<vmem>>, vector<1x8x512xf32>
    %727 = vector.shape_cast %726 : vector<1x8x512xf32> to vector<8x512xf32>
    %728 = arith.addf %724, %727 : vector<8x512xf32>
    %729 = vector.extract_strided_slice %728 {offsets = [0, 0], sizes = [8, 384], strides = [1, 1]} : vector<8x512xf32> to vector<8x384xf32>
    %cst_272 = arith.constant 5.000000e-01 : f32
    %730 = vector.broadcast %cst_272 : f32 to vector<8x384xf32>
    %731 = arith.mulf %729, %730 : vector<8x384xf32>
    %732 = math.tanh %731 : vector<8x384xf32>
    %cst_273 = arith.constant 5.000000e-01 : f32
    %733 = vector.broadcast %cst_273 : f32 to vector<8x384xf32>
    %734 = arith.mulf %732, %733 : vector<8x384xf32>
    %cst_274 = arith.constant 5.000000e-01 : f32
    %735 = vector.broadcast %cst_274 : f32 to vector<8x384xf32>
    %736 = arith.addf %734, %735 : vector<8x384xf32>
    %737 = vector.extract_strided_slice %736 {offsets = [0, 0], sizes = [8, 128], strides = [1, 1]} : vector<8x384xf32> to vector<8x128xf32>
    %738 = vector.extract_strided_slice %736 {offsets = [0, 128], sizes = [8, 128], strides = [1, 1]} : vector<8x384xf32> to vector<8x128xf32>
    %739 = vector.extract_strided_slice %736 {offsets = [0, 256], sizes = [8, 128], strides = [1, 1]} : vector<8x384xf32> to vector<8x128xf32>
    %740 = vector.extract_strided_slice %728 {offsets = [0, 384], sizes = [8, 128], strides = [1, 1]} : vector<8x512xf32> to vector<8x128xf32>
    %741 = math.tanh %740 : vector<8x128xf32>
    %742 = arith.mulf %738, %722 : vector<8x128xf32>
    %743 = arith.mulf %737, %741 : vector<8x128xf32>
    %744 = arith.addf %742, %743 : vector<8x128xf32>
    %745 = math.tanh %744 : vector<8x128xf32>
    %746 = arith.mulf %739, %745 : vector<8x128xf32>
    %747 = arith.index_cast %c0_i32_268 : i32 to index
    %c0_275 = arith.constant 0 : index
    %c0_276 = arith.constant 0 : index
    %748 = vector.load %arg17[%747, %c0_275, %c0_276] : memref<8x8x128xf32, #tpu.memory_space<vmem>>, vector<1x8x128xf32>
    %749 = vector.shape_cast %748 : vector<1x8x128xf32> to vector<8x128xf32>
    %750 = vector.shape_cast %746 : vector<8x128xf32> to vector<1x8x128xf32>
    tpu.vector_store %arg17[%747, %c0_275, %c0_276], %750 {strides = array<i32>} : memref<8x8x128xf32, #tpu.memory_space<vmem>>, vector<1x8x128xf32>,
    %c1_i32_277 = arith.constant 1 : i32
    %751 = arith.truncf %746 : vector<8x128xf32> to vector<8x128xbf16>
    %cst_278 = arith.constant dense<0.000000e+00> : vector<8x512xf32>
    %752 = tpu.matmul %751, %720, %cst_278 {dimension_numbers = #tpu.dot_dimension_numbers<[1], [0], [0], [1], [0, 0, 1, 1], [], []>} : vector<8x128xbf16>, vector<128x512xbf16>, vector<8x512xf32> -> vector<8x512xf32>
    %753 = arith.index_cast %c1_i32_277 : i32 to index
    %c0_279 = arith.constant 0 : index
    %c0_280 = arith.constant 0 : index
    %754 = vector.load %arg18[%753, %c0_279, %c0_280] : memref<8x8x512xf32, #tpu.memory_space<vmem>>, vector<1x8x512xf32>
    %755 = vector.shape_cast %754 : vector<1x8x512xf32> to vector<8x512xf32>
    %756 = arith.addf %752, %755 : vector<8x512xf32>
    %757 = vector.extract_strided_slice %756 {offsets = [0, 0], sizes = [8, 384], strides = [1, 1]} : vector<8x512xf32> to vector<8x384xf32>
    %cst_281 = arith.constant 5.000000e-01 : f32
    %758 = vector.broadcast %cst_281 : f32 to vector<8x384xf32>
    %759 = arith.mulf %757, %758 : vector<8x384xf32>
    %760 = math.tanh %759 : vector<8x384xf32>
    %cst_282 = arith.constant 5.000000e-01 : f32
    %761 = vector.broadcast %cst_282 : f32 to vector<8x384xf32>
    %762 = arith.mulf %760, %761 : vector<8x384xf32>
    %cst_283 = arith.constant 5.000000e-01 : f32
    %763 = vector.broadcast %cst_283 : f32 to vector<8x384xf32>
    %764 = arith.addf %762, %763 : vector<8x384xf32>
    %765 = vector.extract_strided_slice %764 {offsets = [0, 0], sizes = [8, 128], strides = [1, 1]} : vector<8x384xf32> to vector<8x128xf32>
    %766 = vector.extract_strided_slice %764 {offsets = [0, 128], sizes = [8, 128], strides = [1, 1]} : vector<8x384xf32> to vector<8x128xf32>
    %767 = vector.extract_strided_slice %764 {offsets = [0, 256], sizes = [8, 128], strides = [1, 1]} : vector<8x384xf32> to vector<8x128xf32>
    %768 = vector.extract_strided_slice %756 {offsets = [0, 384], sizes = [8, 128], strides = [1, 1]} : vector<8x512xf32> to vector<8x128xf32>
    %769 = math.tanh %768 : vector<8x128xf32>
    %770 = arith.mulf %766, %744 : vector<8x128xf32>
    %771 = arith.mulf %765, %769 : vector<8x128xf32>
    %772 = arith.addf %770, %771 : vector<8x128xf32>
    %773 = math.tanh %772 : vector<8x128xf32>
    %774 = arith.mulf %767, %773 : vector<8x128xf32>
    %775 = arith.index_cast %c1_i32_277 : i32 to index
    %c0_284 = arith.constant 0 : index
    %c0_285 = arith.constant 0 : index
    %776 = vector.load %arg17[%775, %c0_284, %c0_285] : memref<8x8x128xf32, #tpu.memory_space<vmem>>, vector<1x8x128xf32>
    %777 = vector.shape_cast %776 : vector<1x8x128xf32> to vector<8x128xf32>
    %778 = vector.shape_cast %774 : vector<8x128xf32> to vector<1x8x128xf32>
    tpu.vector_store %arg17[%775, %c0_284, %c0_285], %778 {strides = array<i32>} : memref<8x8x128xf32, #tpu.memory_space<vmem>>, vector<1x8x128xf32>,
    %c2_i32_286 = arith.constant 2 : i32
    %779 = arith.truncf %774 : vector<8x128xf32> to vector<8x128xbf16>
    %cst_287 = arith.constant dense<0.000000e+00> : vector<8x512xf32>
    %780 = tpu.matmul %779, %720, %cst_287 {dimension_numbers = #tpu.dot_dimension_numbers<[1], [0], [0], [1], [0, 0, 1, 1], [], []>} : vector<8x128xbf16>, vector<128x512xbf16>, vector<8x512xf32> -> vector<8x512xf32>
    %781 = arith.index_cast %c2_i32_286 : i32 to index
    %c0_288 = arith.constant 0 : index
    %c0_289 = arith.constant 0 : index
    %782 = vector.load %arg18[%781, %c0_288, %c0_289] : memref<8x8x512xf32, #tpu.memory_space<vmem>>, vector<1x8x512xf32>
    %783 = vector.shape_cast %782 : vector<1x8x512xf32> to vector<8x512xf32>
    %784 = arith.addf %780, %783 : vector<8x512xf32>
    %785 = vector.extract_strided_slice %784 {offsets = [0, 0], sizes = [8, 384], strides = [1, 1]} : vector<8x512xf32> to vector<8x384xf32>
    %cst_290 = arith.constant 5.000000e-01 : f32
    %786 = vector.broadcast %cst_290 : f32 to vector<8x384xf32>
    %787 = arith.mulf %785, %786 : vector<8x384xf32>
    %788 = math.tanh %787 : vector<8x384xf32>
    %cst_291 = arith.constant 5.000000e-01 : f32
    %789 = vector.broadcast %cst_291 : f32 to vector<8x384xf32>
    %790 = arith.mulf %788, %789 : vector<8x384xf32>
    %cst_292 = arith.constant 5.000000e-01 : f32
    %791 = vector.broadcast %cst_292 : f32 to vector<8x384xf32>
    %792 = arith.addf %790, %791 : vector<8x384xf32>
    %793 = vector.extract_strided_slice %792 {offsets = [0, 0], sizes = [8, 128], strides = [1, 1]} : vector<8x384xf32> to vector<8x128xf32>
    %794 = vector.extract_strided_slice %792 {offsets = [0, 128], sizes = [8, 128], strides = [1, 1]} : vector<8x384xf32> to vector<8x128xf32>
    %795 = vector.extract_strided_slice %792 {offsets = [0, 256], sizes = [8, 128], strides = [1, 1]} : vector<8x384xf32> to vector<8x128xf32>
    %796 = vector.extract_strided_slice %784 {offsets = [0, 384], sizes = [8, 128], strides = [1, 1]} : vector<8x512xf32> to vector<8x128xf32>
    %797 = math.tanh %796 : vector<8x128xf32>
    %798 = arith.mulf %794, %772 : vector<8x128xf32>
    %799 = arith.mulf %793, %797 : vector<8x128xf32>
    %800 = arith.addf %798, %799 : vector<8x128xf32>
    %801 = math.tanh %800 : vector<8x128xf32>
    %802 = arith.mulf %795, %801 : vector<8x128xf32>
    %803 = arith.index_cast %c2_i32_286 : i32 to index
    %c0_293 = arith.constant 0 : index
    %c0_294 = arith.constant 0 : index
    %804 = vector.load %arg17[%803, %c0_293, %c0_294] : memref<8x8x128xf32, #tpu.memory_space<vmem>>, vector<1x8x128xf32>
    %805 = vector.shape_cast %804 : vector<1x8x128xf32> to vector<8x128xf32>
    %806 = vector.shape_cast %802 : vector<8x128xf32> to vector<1x8x128xf32>
    tpu.vector_store %arg17[%803, %c0_293, %c0_294], %806 {strides = array<i32>} : memref<8x8x128xf32, #tpu.memory_space<vmem>>, vector<1x8x128xf32>,
    %c3_i32_295 = arith.constant 3 : i32
    %807 = arith.truncf %802 : vector<8x128xf32> to vector<8x128xbf16>
    %cst_296 = arith.constant dense<0.000000e+00> : vector<8x512xf32>
    %808 = tpu.matmul %807, %720, %cst_296 {dimension_numbers = #tpu.dot_dimension_numbers<[1], [0], [0], [1], [0, 0, 1, 1], [], []>} : vector<8x128xbf16>, vector<128x512xbf16>, vector<8x512xf32> -> vector<8x512xf32>
    %809 = arith.index_cast %c3_i32_295 : i32 to index
    %c0_297 = arith.constant 0 : index
    %c0_298 = arith.constant 0 : index
    %810 = vector.load %arg18[%809, %c0_297, %c0_298] : memref<8x8x512xf32, #tpu.memory_space<vmem>>, vector<1x8x512xf32>
    %811 = vector.shape_cast %810 : vector<1x8x512xf32> to vector<8x512xf32>
    %812 = arith.addf %808, %811 : vector<8x512xf32>
    %813 = vector.extract_strided_slice %812 {offsets = [0, 0], sizes = [8, 384], strides = [1, 1]} : vector<8x512xf32> to vector<8x384xf32>
    %cst_299 = arith.constant 5.000000e-01 : f32
    %814 = vector.broadcast %cst_299 : f32 to vector<8x384xf32>
    %815 = arith.mulf %813, %814 : vector<8x384xf32>
    %816 = math.tanh %815 : vector<8x384xf32>
    %cst_300 = arith.constant 5.000000e-01 : f32
    %817 = vector.broadcast %cst_300 : f32 to vector<8x384xf32>
    %818 = arith.mulf %816, %817 : vector<8x384xf32>
    %cst_301 = arith.constant 5.000000e-01 : f32
    %819 = vector.broadcast %cst_301 : f32 to vector<8x384xf32>
    %820 = arith.addf %818, %819 : vector<8x384xf32>
    %821 = vector.extract_strided_slice %820 {offsets = [0, 0], sizes = [8, 128], strides = [1, 1]} : vector<8x384xf32> to vector<8x128xf32>
    %822 = vector.extract_strided_slice %820 {offsets = [0, 128], sizes = [8, 128], strides = [1, 1]} : vector<8x384xf32> to vector<8x128xf32>
    %823 = vector.extract_strided_slice %820 {offsets = [0, 256], sizes = [8, 128], strides = [1, 1]} : vector<8x384xf32> to vector<8x128xf32>
    %824 = vector.extract_strided_slice %812 {offsets = [0, 384], sizes = [8, 128], strides = [1, 1]} : vector<8x512xf32> to vector<8x128xf32>
    %825 = math.tanh %824 : vector<8x128xf32>
    %826 = arith.mulf %822, %800 : vector<8x128xf32>
    %827 = arith.mulf %821, %825 : vector<8x128xf32>
    %828 = arith.addf %826, %827 : vector<8x128xf32>
    %829 = math.tanh %828 : vector<8x128xf32>
    %830 = arith.mulf %823, %829 : vector<8x128xf32>
    %831 = arith.index_cast %c3_i32_295 : i32 to index
    %c0_302 = arith.constant 0 : index
    %c0_303 = arith.constant 0 : index
    %832 = vector.load %arg17[%831, %c0_302, %c0_303] : memref<8x8x128xf32, #tpu.memory_space<vmem>>, vector<1x8x128xf32>
    %833 = vector.shape_cast %832 : vector<1x8x128xf32> to vector<8x128xf32>
    %834 = vector.shape_cast %830 : vector<8x128xf32> to vector<1x8x128xf32>
    tpu.vector_store %arg17[%831, %c0_302, %c0_303], %834 {strides = array<i32>} : memref<8x8x128xf32, #tpu.memory_space<vmem>>, vector<1x8x128xf32>,
    %c4_i32_304 = arith.constant 4 : i32
    %835 = arith.truncf %830 : vector<8x128xf32> to vector<8x128xbf16>
    %cst_305 = arith.constant dense<0.000000e+00> : vector<8x512xf32>
    %836 = tpu.matmul %835, %720, %cst_305 {dimension_numbers = #tpu.dot_dimension_numbers<[1], [0], [0], [1], [0, 0, 1, 1], [], []>} : vector<8x128xbf16>, vector<128x512xbf16>, vector<8x512xf32> -> vector<8x512xf32>
    %837 = arith.index_cast %c4_i32_304 : i32 to index
    %c0_306 = arith.constant 0 : index
    %c0_307 = arith.constant 0 : index
    %838 = vector.load %arg18[%837, %c0_306, %c0_307] : memref<8x8x512xf32, #tpu.memory_space<vmem>>, vector<1x8x512xf32>
    %839 = vector.shape_cast %838 : vector<1x8x512xf32> to vector<8x512xf32>
    %840 = arith.addf %836, %839 : vector<8x512xf32>
    %841 = vector.extract_strided_slice %840 {offsets = [0, 0], sizes = [8, 384], strides = [1, 1]} : vector<8x512xf32> to vector<8x384xf32>
    %cst_308 = arith.constant 5.000000e-01 : f32
    %842 = vector.broadcast %cst_308 : f32 to vector<8x384xf32>
    %843 = arith.mulf %841, %842 : vector<8x384xf32>
    %844 = math.tanh %843 : vector<8x384xf32>
    %cst_309 = arith.constant 5.000000e-01 : f32
    %845 = vector.broadcast %cst_309 : f32 to vector<8x384xf32>
    %846 = arith.mulf %844, %845 : vector<8x384xf32>
    %cst_310 = arith.constant 5.000000e-01 : f32
    %847 = vector.broadcast %cst_310 : f32 to vector<8x384xf32>
    %848 = arith.addf %846, %847 : vector<8x384xf32>
    %849 = vector.extract_strided_slice %848 {offsets = [0, 0], sizes = [8, 128], strides = [1, 1]} : vector<8x384xf32> to vector<8x128xf32>
    %850 = vector.extract_strided_slice %848 {offsets = [0, 128], sizes = [8, 128], strides = [1, 1]} : vector<8x384xf32> to vector<8x128xf32>
    %851 = vector.extract_strided_slice %848 {offsets = [0, 256], sizes = [8, 128], strides = [1, 1]} : vector<8x384xf32> to vector<8x128xf32>
    %852 = vector.extract_strided_slice %840 {offsets = [0, 384], sizes = [8, 128], strides = [1, 1]} : vector<8x512xf32> to vector<8x128xf32>
    %853 = math.tanh %852 : vector<8x128xf32>
    %854 = arith.mulf %850, %828 : vector<8x128xf32>
    %855 = arith.mulf %849, %853 : vector<8x128xf32>
    %856 = arith.addf %854, %855 : vector<8x128xf32>
    %857 = math.tanh %856 : vector<8x128xf32>
    %858 = arith.mulf %851, %857 : vector<8x128xf32>
    %859 = arith.index_cast %c4_i32_304 : i32 to index
    %c0_311 = arith.constant 0 : index
    %c0_312 = arith.constant 0 : index
    %860 = vector.load %arg17[%859, %c0_311, %c0_312] : memref<8x8x128xf32, #tpu.memory_space<vmem>>, vector<1x8x128xf32>
    %861 = vector.shape_cast %860 : vector<1x8x128xf32> to vector<8x128xf32>
    %862 = vector.shape_cast %858 : vector<8x128xf32> to vector<1x8x128xf32>
    tpu.vector_store %arg17[%859, %c0_311, %c0_312], %862 {strides = array<i32>} : memref<8x8x128xf32, #tpu.memory_space<vmem>>, vector<1x8x128xf32>,
    %c5_i32_313 = arith.constant 5 : i32
    %863 = arith.truncf %858 : vector<8x128xf32> to vector<8x128xbf16>
    %cst_314 = arith.constant dense<0.000000e+00> : vector<8x512xf32>
    %864 = tpu.matmul %863, %720, %cst_314 {dimension_numbers = #tpu.dot_dimension_numbers<[1], [0], [0], [1], [0, 0, 1, 1], [], []>} : vector<8x128xbf16>, vector<128x512xbf16>, vector<8x512xf32> -> vector<8x512xf32>
    %865 = arith.index_cast %c5_i32_313 : i32 to index
    %c0_315 = arith.constant 0 : index
    %c0_316 = arith.constant 0 : index
    %866 = vector.load %arg18[%865, %c0_315, %c0_316] : memref<8x8x512xf32, #tpu.memory_space<vmem>>, vector<1x8x512xf32>
    %867 = vector.shape_cast %866 : vector<1x8x512xf32> to vector<8x512xf32>
    %868 = arith.addf %864, %867 : vector<8x512xf32>
    %869 = vector.extract_strided_slice %868 {offsets = [0, 0], sizes = [8, 384], strides = [1, 1]} : vector<8x512xf32> to vector<8x384xf32>
    %cst_317 = arith.constant 5.000000e-01 : f32
    %870 = vector.broadcast %cst_317 : f32 to vector<8x384xf32>
    %871 = arith.mulf %869, %870 : vector<8x384xf32>
    %872 = math.tanh %871 : vector<8x384xf32>
    %cst_318 = arith.constant 5.000000e-01 : f32
    %873 = vector.broadcast %cst_318 : f32 to vector<8x384xf32>
    %874 = arith.mulf %872, %873 : vector<8x384xf32>
    %cst_319 = arith.constant 5.000000e-01 : f32
    %875 = vector.broadcast %cst_319 : f32 to vector<8x384xf32>
    %876 = arith.addf %874, %875 : vector<8x384xf32>
    %877 = vector.extract_strided_slice %876 {offsets = [0, 0], sizes = [8, 128], strides = [1, 1]} : vector<8x384xf32> to vector<8x128xf32>
    %878 = vector.extract_strided_slice %876 {offsets = [0, 128], sizes = [8, 128], strides = [1, 1]} : vector<8x384xf32> to vector<8x128xf32>
    %879 = vector.extract_strided_slice %876 {offsets = [0, 256], sizes = [8, 128], strides = [1, 1]} : vector<8x384xf32> to vector<8x128xf32>
    %880 = vector.extract_strided_slice %868 {offsets = [0, 384], sizes = [8, 128], strides = [1, 1]} : vector<8x512xf32> to vector<8x128xf32>
    %881 = math.tanh %880 : vector<8x128xf32>
    %882 = arith.mulf %878, %856 : vector<8x128xf32>
    %883 = arith.mulf %877, %881 : vector<8x128xf32>
    %884 = arith.addf %882, %883 : vector<8x128xf32>
    %885 = math.tanh %884 : vector<8x128xf32>
    %886 = arith.mulf %879, %885 : vector<8x128xf32>
    %887 = arith.index_cast %c5_i32_313 : i32 to index
    %c0_320 = arith.constant 0 : index
    %c0_321 = arith.constant 0 : index
    %888 = vector.load %arg17[%887, %c0_320, %c0_321] : memref<8x8x128xf32, #tpu.memory_space<vmem>>, vector<1x8x128xf32>
    %889 = vector.shape_cast %888 : vector<1x8x128xf32> to vector<8x128xf32>
    %890 = vector.shape_cast %886 : vector<8x128xf32> to vector<1x8x128xf32>
    tpu.vector_store %arg17[%887, %c0_320, %c0_321], %890 {strides = array<i32>} : memref<8x8x128xf32, #tpu.memory_space<vmem>>, vector<1x8x128xf32>,
    %c6_i32_322 = arith.constant 6 : i32
    %891 = arith.truncf %886 : vector<8x128xf32> to vector<8x128xbf16>
    %cst_323 = arith.constant dense<0.000000e+00> : vector<8x512xf32>
    %892 = tpu.matmul %891, %720, %cst_323 {dimension_numbers = #tpu.dot_dimension_numbers<[1], [0], [0], [1], [0, 0, 1, 1], [], []>} : vector<8x128xbf16>, vector<128x512xbf16>, vector<8x512xf32> -> vector<8x512xf32>
    %893 = arith.index_cast %c6_i32_322 : i32 to index
    %c0_324 = arith.constant 0 : index
    %c0_325 = arith.constant 0 : index
    %894 = vector.load %arg18[%893, %c0_324, %c0_325] : memref<8x8x512xf32, #tpu.memory_space<vmem>>, vector<1x8x512xf32>
    %895 = vector.shape_cast %894 : vector<1x8x512xf32> to vector<8x512xf32>
    %896 = arith.addf %892, %895 : vector<8x512xf32>
    %897 = vector.extract_strided_slice %896 {offsets = [0, 0], sizes = [8, 384], strides = [1, 1]} : vector<8x512xf32> to vector<8x384xf32>
    %cst_326 = arith.constant 5.000000e-01 : f32
    %898 = vector.broadcast %cst_326 : f32 to vector<8x384xf32>
    %899 = arith.mulf %897, %898 : vector<8x384xf32>
    %900 = math.tanh %899 : vector<8x384xf32>
    %cst_327 = arith.constant 5.000000e-01 : f32
    %901 = vector.broadcast %cst_327 : f32 to vector<8x384xf32>
    %902 = arith.mulf %900, %901 : vector<8x384xf32>
    %cst_328 = arith.constant 5.000000e-01 : f32
    %903 = vector.broadcast %cst_328 : f32 to vector<8x384xf32>
    %904 = arith.addf %902, %903 : vector<8x384xf32>
    %905 = vector.extract_strided_slice %904 {offsets = [0, 0], sizes = [8, 128], strides = [1, 1]} : vector<8x384xf32> to vector<8x128xf32>
    %906 = vector.extract_strided_slice %904 {offsets = [0, 128], sizes = [8, 128], strides = [1, 1]} : vector<8x384xf32> to vector<8x128xf32>
    %907 = vector.extract_strided_slice %904 {offsets = [0, 256], sizes = [8, 128], strides = [1, 1]} : vector<8x384xf32> to vector<8x128xf32>
    %908 = vector.extract_strided_slice %896 {offsets = [0, 384], sizes = [8, 128], strides = [1, 1]} : vector<8x512xf32> to vector<8x128xf32>
    %909 = math.tanh %908 : vector<8x128xf32>
    %910 = arith.mulf %906, %884 : vector<8x128xf32>
    %911 = arith.mulf %905, %909 : vector<8x128xf32>
    %912 = arith.addf %910, %911 : vector<8x128xf32>
    %913 = math.tanh %912 : vector<8x128xf32>
    %914 = arith.mulf %907, %913 : vector<8x128xf32>
    %915 = arith.index_cast %c6_i32_322 : i32 to index
    %c0_329 = arith.constant 0 : index
    %c0_330 = arith.constant 0 : index
    %916 = vector.load %arg17[%915, %c0_329, %c0_330] : memref<8x8x128xf32, #tpu.memory_space<vmem>>, vector<1x8x128xf32>
    %917 = vector.shape_cast %916 : vector<1x8x128xf32> to vector<8x128xf32>
    %918 = vector.shape_cast %914 : vector<8x128xf32> to vector<1x8x128xf32>
    tpu.vector_store %arg17[%915, %c0_329, %c0_330], %918 {strides = array<i32>} : memref<8x8x128xf32, #tpu.memory_space<vmem>>, vector<1x8x128xf32>,
    %c7_i32_331 = arith.constant 7 : i32
    %919 = arith.truncf %914 : vector<8x128xf32> to vector<8x128xbf16>
    %cst_332 = arith.constant dense<0.000000e+00> : vector<8x512xf32>
    %920 = tpu.matmul %919, %720, %cst_332 {dimension_numbers = #tpu.dot_dimension_numbers<[1], [0], [0], [1], [0, 0, 1, 1], [], []>} : vector<8x128xbf16>, vector<128x512xbf16>, vector<8x512xf32> -> vector<8x512xf32>
    %921 = arith.index_cast %c7_i32_331 : i32 to index
    %c0_333 = arith.constant 0 : index
    %c0_334 = arith.constant 0 : index
    %922 = vector.load %arg18[%921, %c0_333, %c0_334] : memref<8x8x512xf32, #tpu.memory_space<vmem>>, vector<1x8x512xf32>
    %923 = vector.shape_cast %922 : vector<1x8x512xf32> to vector<8x512xf32>
    %924 = arith.addf %920, %923 : vector<8x512xf32>
    %925 = vector.extract_strided_slice %924 {offsets = [0, 0], sizes = [8, 384], strides = [1, 1]} : vector<8x512xf32> to vector<8x384xf32>
    %cst_335 = arith.constant 5.000000e-01 : f32
    %926 = vector.broadcast %cst_335 : f32 to vector<8x384xf32>
    %927 = arith.mulf %925, %926 : vector<8x384xf32>
    %928 = math.tanh %927 : vector<8x384xf32>
    %cst_336 = arith.constant 5.000000e-01 : f32
    %929 = vector.broadcast %cst_336 : f32 to vector<8x384xf32>
    %930 = arith.mulf %928, %929 : vector<8x384xf32>
    %cst_337 = arith.constant 5.000000e-01 : f32
    %931 = vector.broadcast %cst_337 : f32 to vector<8x384xf32>
    %932 = arith.addf %930, %931 : vector<8x384xf32>
    %933 = vector.extract_strided_slice %932 {offsets = [0, 0], sizes = [8, 128], strides = [1, 1]} : vector<8x384xf32> to vector<8x128xf32>
    %934 = vector.extract_strided_slice %932 {offsets = [0, 128], sizes = [8, 128], strides = [1, 1]} : vector<8x384xf32> to vector<8x128xf32>
    %935 = vector.extract_strided_slice %932 {offsets = [0, 256], sizes = [8, 128], strides = [1, 1]} : vector<8x384xf32> to vector<8x128xf32>
    %936 = vector.extract_strided_slice %924 {offsets = [0, 384], sizes = [8, 128], strides = [1, 1]} : vector<8x512xf32> to vector<8x128xf32>
    %937 = math.tanh %936 : vector<8x128xf32>
    %938 = arith.mulf %934, %912 : vector<8x128xf32>
    %939 = arith.mulf %933, %937 : vector<8x128xf32>
    %940 = arith.addf %938, %939 : vector<8x128xf32>
    %941 = math.tanh %940 : vector<8x128xf32>
    %942 = arith.mulf %935, %941 : vector<8x128xf32>
    %943 = arith.index_cast %c7_i32_331 : i32 to index
    %c0_338 = arith.constant 0 : index
    %c0_339 = arith.constant 0 : index
    %944 = vector.load %arg17[%943, %c0_338, %c0_339] : memref<8x8x128xf32, #tpu.memory_space<vmem>>, vector<1x8x128xf32>
    %945 = vector.shape_cast %944 : vector<1x8x128xf32> to vector<8x128xf32>
    %946 = vector.shape_cast %942 : vector<8x128xf32> to vector<1x8x128xf32>
    tpu.vector_store %arg17[%943, %c0_338, %c0_339], %946 {strides = array<i32>} : memref<8x8x128xf32, #tpu.memory_space<vmem>>, vector<1x8x128xf32>,
    %c8_i32_340 = arith.constant 8 : i32
    %c0_341 = arith.constant 0 : index
    %c0_342 = arith.constant 0 : index
    %c0_343 = arith.constant 0 : index
    %947 = vector.load %arg17[%c0_341, %c0_342, %c0_343] : memref<8x8x128xf32, #tpu.memory_space<vmem>>, vector<8x8x128xf32>
    %948 = arith.truncf %947 : vector<8x8x128xf32> to vector<8x8x128xbf16>
    %949 = vector.shape_cast %948 : vector<8x8x128xbf16> to vector<64x128xbf16>
    %c0_344 = arith.constant 0 : index
    %c0_345 = arith.constant 0 : index
    %950 = vector.load %arg14[%c0_344, %c0_345] : memref<128x128xbf16, #tpu.memory_space<vmem>>, vector<128x128xbf16>
    %cst_346 = arith.constant dense<0.000000e+00> : vector<64x128xf32>
    %951 = tpu.matmul %949, %950, %cst_346 {dimension_numbers = #tpu.dot_dimension_numbers<[1], [0], [0], [1], [0, 0, 1, 1], [], []>} : vector<64x128xbf16>, vector<128x128xbf16>, vector<64x128xf32> -> vector<64x128xf32>
    %c0_347 = arith.constant 0 : index
    %c0_348 = arith.constant 0 : index
    %952 = vector.load %arg15[%c0_347, %c0_348] : memref<1x128xf32, #tpu.memory_space<vmem>>, vector<1x128xf32>
    %953 = vector.broadcast %952 : vector<1x128xf32> to vector<64x128xf32>
    %954 = arith.addf %951, %953 : vector<64x128xf32>
    %955 = vector.shape_cast %954 : vector<64x128xf32> to vector<8x8x128xf32>
    %956 = vector.extract_strided_slice %955 {offsets = [0, 0, 0], sizes = [1, 8, 128], strides = [1, 1, 1]} : vector<8x8x128xf32> to vector<1x8x128xf32>
    %957 = vector.shape_cast %956 : vector<1x8x128xf32> to vector<8x128xf32>
    %c0_349 = arith.constant 0 : index
    %c0_350 = arith.constant 0 : index
    %c0_351 = arith.constant 0 : index
    %958 = vector.load %arg16[%c0_349, %c0_350, %c0_351] : memref<8x8x128xf32, #tpu.memory_space<vmem>>, vector<8x1x128xf32>
    %959 = vector.shape_cast %958 : vector<8x1x128xf32> to vector<8x128xf32>
    %960 = vector.shape_cast %957 : vector<8x128xf32> to vector<8x1x128xf32>
    tpu.vector_store %arg16[%c0_349, %c0_350, %c0_351], %960 {strides = array<i32>} : memref<8x8x128xf32, #tpu.memory_space<vmem>>, vector<8x1x128xf32>,
    %961 = vector.extract_strided_slice %955 {offsets = [1, 0, 0], sizes = [1, 8, 128], strides = [1, 1, 1]} : vector<8x8x128xf32> to vector<1x8x128xf32>
    %962 = vector.shape_cast %961 : vector<1x8x128xf32> to vector<8x128xf32>
    %c0_352 = arith.constant 0 : index
    %c1 = arith.constant 1 : index
    %c0_353 = arith.constant 0 : index
    %963 = vector.load %arg16[%c0_352, %c1, %c0_353] : memref<8x8x128xf32, #tpu.memory_space<vmem>>, vector<8x1x128xf32>
    %964 = vector.shape_cast %963 : vector<8x1x128xf32> to vector<8x128xf32>
    %965 = vector.shape_cast %962 : vector<8x128xf32> to vector<8x1x128xf32>
    tpu.vector_store %arg16[%c0_352, %c1, %c0_353], %965 {strides = array<i32>} : memref<8x8x128xf32, #tpu.memory_space<vmem>>, vector<8x1x128xf32>,
    %966 = vector.extract_strided_slice %955 {offsets = [2, 0, 0], sizes = [1, 8, 128], strides = [1, 1, 1]} : vector<8x8x128xf32> to vector<1x8x128xf32>
    %967 = vector.shape_cast %966 : vector<1x8x128xf32> to vector<8x128xf32>
    %c0_354 = arith.constant 0 : index
    %c2 = arith.constant 2 : index
    %c0_355 = arith.constant 0 : index
    %968 = vector.load %arg16[%c0_354, %c2, %c0_355] : memref<8x8x128xf32, #tpu.memory_space<vmem>>, vector<8x1x128xf32>
    %969 = vector.shape_cast %968 : vector<8x1x128xf32> to vector<8x128xf32>
    %970 = vector.shape_cast %967 : vector<8x128xf32> to vector<8x1x128xf32>
    tpu.vector_store %arg16[%c0_354, %c2, %c0_355], %970 {strides = array<i32>} : memref<8x8x128xf32, #tpu.memory_space<vmem>>, vector<8x1x128xf32>,
    %971 = vector.extract_strided_slice %955 {offsets = [3, 0, 0], sizes = [1, 8, 128], strides = [1, 1, 1]} : vector<8x8x128xf32> to vector<1x8x128xf32>
    %972 = vector.shape_cast %971 : vector<1x8x128xf32> to vector<8x128xf32>
    %c0_356 = arith.constant 0 : index
    %c3 = arith.constant 3 : index
    %c0_357 = arith.constant 0 : index
    %973 = vector.load %arg16[%c0_356, %c3, %c0_357] : memref<8x8x128xf32, #tpu.memory_space<vmem>>, vector<8x1x128xf32>
    %974 = vector.shape_cast %973 : vector<8x1x128xf32> to vector<8x128xf32>
    %975 = vector.shape_cast %972 : vector<8x128xf32> to vector<8x1x128xf32>
    tpu.vector_store %arg16[%c0_356, %c3, %c0_357], %975 {strides = array<i32>} : memref<8x8x128xf32, #tpu.memory_space<vmem>>, vector<8x1x128xf32>,
    %976 = vector.extract_strided_slice %955 {offsets = [4, 0, 0], sizes = [1, 8, 128], strides = [1, 1, 1]} : vector<8x8x128xf32> to vector<1x8x128xf32>
    %977 = vector.shape_cast %976 : vector<1x8x128xf32> to vector<8x128xf32>
    %c0_358 = arith.constant 0 : index
    %c4 = arith.constant 4 : index
    %c0_359 = arith.constant 0 : index
    %978 = vector.load %arg16[%c0_358, %c4, %c0_359] : memref<8x8x128xf32, #tpu.memory_space<vmem>>, vector<8x1x128xf32>
    %979 = vector.shape_cast %978 : vector<8x1x128xf32> to vector<8x128xf32>
    %980 = vector.shape_cast %977 : vector<8x128xf32> to vector<8x1x128xf32>
    tpu.vector_store %arg16[%c0_358, %c4, %c0_359], %980 {strides = array<i32>} : memref<8x8x128xf32, #tpu.memory_space<vmem>>, vector<8x1x128xf32>,
    %981 = vector.extract_strided_slice %955 {offsets = [5, 0, 0], sizes = [1, 8, 128], strides = [1, 1, 1]} : vector<8x8x128xf32> to vector<1x8x128xf32>
    %982 = vector.shape_cast %981 : vector<1x8x128xf32> to vector<8x128xf32>
    %c0_360 = arith.constant 0 : index
    %c5 = arith.constant 5 : index
    %c0_361 = arith.constant 0 : index
    %983 = vector.load %arg16[%c0_360, %c5, %c0_361] : memref<8x8x128xf32, #tpu.memory_space<vmem>>, vector<8x1x128xf32>
    %984 = vector.shape_cast %983 : vector<8x1x128xf32> to vector<8x128xf32>
    %985 = vector.shape_cast %982 : vector<8x128xf32> to vector<8x1x128xf32>
    tpu.vector_store %arg16[%c0_360, %c5, %c0_361], %985 {strides = array<i32>} : memref<8x8x128xf32, #tpu.memory_space<vmem>>, vector<8x1x128xf32>,
    %986 = vector.extract_strided_slice %955 {offsets = [6, 0, 0], sizes = [1, 8, 128], strides = [1, 1, 1]} : vector<8x8x128xf32> to vector<1x8x128xf32>
    %987 = vector.shape_cast %986 : vector<1x8x128xf32> to vector<8x128xf32>
    %c0_362 = arith.constant 0 : index
    %c6 = arith.constant 6 : index
    %c0_363 = arith.constant 0 : index
    %988 = vector.load %arg16[%c0_362, %c6, %c0_363] : memref<8x8x128xf32, #tpu.memory_space<vmem>>, vector<8x1x128xf32>
    %989 = vector.shape_cast %988 : vector<8x1x128xf32> to vector<8x128xf32>
    %990 = vector.shape_cast %987 : vector<8x128xf32> to vector<8x1x128xf32>
    tpu.vector_store %arg16[%c0_362, %c6, %c0_363], %990 {strides = array<i32>} : memref<8x8x128xf32, #tpu.memory_space<vmem>>, vector<8x1x128xf32>,
    %991 = vector.extract_strided_slice %955 {offsets = [7, 0, 0], sizes = [1, 8, 128], strides = [1, 1, 1]} : vector<8x8x128xf32> to vector<1x8x128xf32>
    %992 = vector.shape_cast %991 : vector<1x8x128xf32> to vector<8x128xf32>
    %c0_364 = arith.constant 0 : index
    %c7 = arith.constant 7 : index
    %c0_365 = arith.constant 0 : index
    %993 = vector.load %arg16[%c0_364, %c7, %c0_365] : memref<8x8x128xf32, #tpu.memory_space<vmem>>, vector<8x1x128xf32>
    %994 = vector.shape_cast %993 : vector<8x1x128xf32> to vector<8x128xf32>
    %995 = vector.shape_cast %992 : vector<8x128xf32> to vector<8x1x128xf32>
    tpu.vector_store %arg16[%c0_364, %c7, %c0_365], %995 {strides = array<i32>} : memref<8x8x128xf32, #tpu.memory_space<vmem>>, vector<8x1x128xf32>,
    return
  }
  func.func @transform_0(%arg0: i32) -> (i32, i32, i32) {
    %c0_i32 = arith.constant 0 : i32
    %c0_i32_0 = arith.constant 0 : i32
    %c0_i32_1 = arith.constant 0 : i32
    return %c0_i32, %arg0, %c0_i32_0 : i32, i32, i32
  }
  func.func @transform_1(%arg0: i32) -> (i32, i32) {
    %c0_i32 = arith.constant 0 : i32
    %c0_i32_0 = arith.constant 0 : i32
    %c0_i32_1 = arith.constant 0 : i32
    return %c0_i32, %c0_i32_0 : i32, i32
  }
  func.func @transform_2(%arg0: i32) -> (i32, i32) {
    %c0_i32 = arith.constant 0 : i32
    %c0_i32_0 = arith.constant 0 : i32
    %c0_i32_1 = arith.constant 0 : i32
    return %c0_i32, %c0_i32_0 : i32, i32
  }
  func.func @transform_3(%arg0: i32) -> (i32, i32) {
    %c0_i32 = arith.constant 0 : i32
    %c0_i32_0 = arith.constant 0 : i32
    %c0_i32_1 = arith.constant 0 : i32
    return %c0_i32, %c0_i32_0 : i32, i32
  }
  func.func @transform_4(%arg0: i32) -> (i32, i32) {
    %c0_i32 = arith.constant 0 : i32
    %c0_i32_0 = arith.constant 0 : i32
    %c0_i32_1 = arith.constant 0 : i32
    return %c0_i32, %c0_i32_0 : i32, i32
  }
  func.func @transform_5(%arg0: i32) -> (i32, i32) {
    %c0_i32 = arith.constant 0 : i32
    %c0_i32_0 = arith.constant 0 : i32
    %c0_i32_1 = arith.constant 0 : i32
    return %c0_i32, %c0_i32_0 : i32, i32
  }
  func.func @transform_6(%arg0: i32) -> (i32, i32) {
    %c0_i32 = arith.constant 0 : i32
    %c0_i32_0 = arith.constant 0 : i32
    %c0_i32_1 = arith.constant 0 : i32
    return %c0_i32, %c0_i32_0 : i32, i32
  }
  func.func @transform_7(%arg0: i32) -> (i32, i32) {
    %c0_i32 = arith.constant 0 : i32
    %c0_i32_0 = arith.constant 0 : i32
    %c0_i32_1 = arith.constant 0 : i32
    return %c0_i32, %c0_i32_0 : i32, i32
  }
  func.func @transform_8(%arg0: i32) -> (i32, i32) {
    %c0_i32 = arith.constant 0 : i32
    %c0_i32_0 = arith.constant 0 : i32
    %c0_i32_1 = arith.constant 0 : i32
    return %c0_i32, %c0_i32_0 : i32, i32
  }
  func.func @transform_9(%arg0: i32) -> (i32, i32) {
    %c0_i32 = arith.constant 0 : i32
    %c0_i32_0 = arith.constant 0 : i32
    %c0_i32_1 = arith.constant 0 : i32
    return %c0_i32, %c0_i32_0 : i32, i32
  }
  func.func @transform_10(%arg0: i32) -> (i32, i32) {
    %c0_i32 = arith.constant 0 : i32
    %c0_i32_0 = arith.constant 0 : i32
    %c0_i32_1 = arith.constant 0 : i32
    return %c0_i32, %c0_i32_0 : i32, i32
  }
  func.func @transform_11(%arg0: i32) -> (i32, i32) {
    %c0_i32 = arith.constant 0 : i32
    %c0_i32_0 = arith.constant 0 : i32
    %c0_i32_1 = arith.constant 0 : i32
    return %c0_i32, %c0_i32_0 : i32, i32
  }
  func.func @transform_12(%arg0: i32) -> (i32, i32) {
    %c0_i32 = arith.constant 0 : i32
    %c0_i32_0 = arith.constant 0 : i32
    %c0_i32_1 = arith.constant 0 : i32
    return %c0_i32, %c0_i32_0 : i32, i32
  }
  func.func @transform_13(%arg0: i32) -> (i32, i32) {
    %c0_i32 = arith.constant 0 : i32
    %c0_i32_0 = arith.constant 0 : i32
    %c0_i32_1 = arith.constant 0 : i32
    return %c0_i32, %c0_i32_0 : i32, i32
  }
  func.func @transform_14(%arg0: i32) -> (i32, i32) {
    %c0_i32 = arith.constant 0 : i32
    %c0_i32_0 = arith.constant 0 : i32
    %c0_i32_1 = arith.constant 0 : i32
    return %c0_i32, %c0_i32_0 : i32, i32
  }
  func.func @transform_15(%arg0: i32) -> (i32, i32, i32) {
    %c0_i32 = arith.constant 0 : i32
    %c0_i32_0 = arith.constant 0 : i32
    %c0_i32_1 = arith.constant 0 : i32
    return %arg0, %c0_i32, %c0_i32_0 : i32, i32, i32
  }
}

</mosaic_0001>

<bundles_post_ra>
// kernel: elmo_forward.1
= control target key start
LH: loop header
LB: loop body
LE: loop exit
PB: predicated region body
PF: predicated region fallthrough
CT: control target
= control target key end

     0   :  { %20 = vsyncpa [#allocation5], 0  ;;  %s11031_s0 = inlined_call_operand.vmem [shape: bf16[8,8,128], index: 0, kind: input, shape index: {}]   ;;  %s11032_s1 = inlined_call_operand.vmem [shape: bf16[128,512], index: 1, kind: input, shape index: {}]   ;;  %s11033_s2 = inlined_call_operand.hbm [shape: bf16[128,512], index: 2, kind: input, shape index: {}]   ;;  %s11034_s3 = inlined_call_operand.vmem [shape: f32[1,512], index: 3, kind: input, shape index: {}]   ;;  %s11035_s4 = inlined_call_operand.hbm [shape: bf16[128,512], index: 4, kind: input, shape index: {}]   ;;  %s11036_s5 = inlined_call_operand.hbm [shape: bf16[128,512], index: 5, kind: input, shape index: {}]   ;;  %s11037_s6 = inlined_call_operand.vmem [shape: f32[1,512], index: 6, kind: input, shape index: {}]   ;;  %s11038_s7 = inlined_call_operand.hbm [shape: bf16[128,512], index: 7, kind: input, shape index: {}]   ;;  %s11039_s8 = inlined_call_operand.hbm [shape: bf16[128,512], index: 8, kind: input, shape index: {}]   ;;  %s11040_s9 = inlined_call_operand.vmem [shape: f32[1,512], index: 9, kind: input, shape index: {}]   ;;  %s11041_s10 = inlined_call_operand.hbm [shape: bf16[128,512], index: 10, kind: input, shape index: {}]   ;;  %s11042_s11 = inlined_call_operand.hbm [shape: bf16[128,512], index: 11, kind: input, shape index: {}]   ;;  %s11043_s12 = inlined_call_operand.vmem [shape: f32[1,512], index: 12, kind: input, shape index: {}]   ;;  %s11044_s13 = inlined_call_operand.vmem [shape: bf16[128,128], index: 13, kind: input, shape index: {}]   ;;  %s11045_s14 = inlined_call_operand.vmem [shape: f32[1,128], index: 14, kind: input, shape index: {}]   ;;  %s11046_s15 = inlined_call_operand.vmem [shape: f32[8,8,128], index: 15, kind: output, shape index: {}]  }
   0x1   :  { %21 = vsyncpa [#allocation7], 0 }
   0x2   :  { %22 = vsyncpa [#allocation10], 0 }
   0x3   :  { %23 = vsyncpa [#allocation13], 0  ;;  %s8134_s18 = smov [#allocation6]   ;;  %s8135_s20 = smov [#allocation9]  }
   0x4   :  { %s47_s19 = sshll.u32 %s8134_s18, 4  ;;  %s73_s21 = sshll.u32 %s8135_s20, 4  ;;  %s48_s19 = int_to_ptr.vmem [resolvable:$true] %s47_s19  ;;  %s8225_s21 = int_to_ptr.vmem [resolvable:$true] %s73_s21 }
   0x5   :  { %s7972_s24 = scalar_lea.hbm %s11035_s4, 4096 }
   0x6   :  { %p7973_p0 = scmp.ne.s32.totalorder %s11035_s4, %s7972_s24  ;;  %p7976_p1 = scmp.lt.u32.totalorder %s7972_s24, %s11035_s4 }
   0x8   :  { %p7978_p2 = pnand %p7976_p1, %p7973_p0 }
   0xa   :  { %7981 = shalt.err (!%p7978_p2)
}
   0xb   :  { %s7982_s29 = scalar_lea.vmem %s48_s19, 4096  ;;  %p7987_p4 = scmp.lt.s32.totalorder %s48_s19, %s48_s19 }
   0xc   :  { %p7983_p3 = scmp.ne.s32.totalorder %s48_s19, %s7982_s29  ;;  %p7988_p5 = scmp.lt.s32.totalorder %s7982_s29, %s7982_s29 }
   0xe   :  { %p7989_p6 = por %p7988_p5, %p7987_p4 }
  0x10   :  { %p7990_p7 = pnand %p7989_p6, %p7983_p3 }
  0x12   :  { %7993 = shalt.err (!%p7990_p7)
}
  0x13   :  { %s8136_s30 = smov 256   ;;  %s8137_s16 = smov 16  }
  0x14   :  { %53 = dma.hbm_to_vmem [thread:$0]  %s11035_s4, 4096, %s48_s19, [#allocation7], %s8136_s30, %s8136_s30, %s8137_s16  }
  0x15   :  { %s7994_s23 = scalar_lea.hbm %s11038_s7, 4096 }
  0x16   :  { %p7995_p8 = scmp.ne.s32.totalorder %s11038_s7, %s7994_s23  ;;  %p7998_p9 = scmp.lt.u32.totalorder %s7994_s23, %s11038_s7 }
  0x18   :  { %p8000_p10 = pnand %p7998_p9, %p7995_p8 }
  0x1a   :  { %8003 = shalt.err (!%p8000_p10)
}
  0x1b   :  { %s8004_s28 = scalar_lea.vmem %s8225_s21, 4096  ;;  %p8009_p12 = scmp.lt.s32.totalorder %s8225_s21, %s8225_s21 }
  0x1c   :  { %p8005_p11 = scmp.ne.s32.totalorder %s8225_s21, %s8004_s28  ;;  %p8010_p13 = scmp.lt.s32.totalorder %s8004_s28, %s8004_s28 }
  0x1e   :  { %p8011_p0 = por %p8010_p13, %p8009_p12 }
  0x20   :  { %p8012_p1 = pnand %p8011_p0, %p8005_p11 }
  0x22   :  { %8015 = shalt.err (!%p8012_p1)
}
  0x23   :  { %79 = dma.hbm_to_vmem [thread:$0]  %s11038_s7, 4096, %s8225_s21, [#allocation10], %s8136_s30, %s8136_s30, %s8137_s16  }
  0x24   :  { %s8138_s29 = smov [#allocation12]   ;;  %s8139_s18 = smov [#allocation4]  }
  0x25   :  { %s99_s17 = sshll.u32 %s8138_s29, 4  ;;  %s33_s20 = sshll.u32 %s8139_s18, 4  ;;  %s100_s17 = int_to_ptr.vmem [resolvable:$true] %s99_s17  ;;  %s8262_s20 = int_to_ptr.vmem [resolvable:$true] %s33_s20 }
  0x26   :  { %s8016_s24 = scalar_lea.hbm %s11041_s10, 4096 }
  0x27   :  { %p8017_p2 = scmp.ne.s32.totalorder %s11041_s10, %s8016_s24  ;;  %p8020_p3 = scmp.lt.u32.totalorder %s8016_s24, %s11041_s10 }
  0x29   :  { %p8022_p4 = pnand %p8020_p3, %p8017_p2 }
  0x2b   :  { %8025 = shalt.err (!%p8022_p4)
}
  0x2c   :  { %s8026_s7 = scalar_lea.vmem %s100_s17, 4096  ;;  %p8031_p6 = scmp.lt.s32.totalorder %s100_s17, %s100_s17 }
  0x2d   :  { %p8027_p5 = scmp.ne.s32.totalorder %s100_s17, %s8026_s7  ;;  %p8032_p7 = scmp.lt.s32.totalorder %s8026_s7, %s8026_s7 }
  0x2f   :  { %p8033_p8 = por %p8032_p7, %p8031_p6 }
  0x31   :  { %p8034_p9 = pnand %p8033_p8, %p8027_p5 }
  0x33   :  { %8037 = shalt.err (!%p8034_p9)
}
  0x34   :  { %105 = dma.hbm_to_vmem [thread:$0]  %s11041_s10, 4096, %s100_s17, [#allocation13], %s8136_s30, %s8136_s30, %s8137_s16  }
  0x35   :  { %s8038_s18 = scalar_lea.hbm %s11033_s2, 4096 }
  0x36   :  { %p8039_p10 = scmp.ne.s32.totalorder %s11033_s2, %s8038_s18  ;;  %p8042_p11 = scmp.lt.u32.totalorder %s8038_s18, %s11033_s2 }
  0x38   :  { %p8044_p12 = pnand %p8042_p11, %p8039_p10 }
  0x3a   :  { %8047 = shalt.err (!%p8044_p12)
}
  0x3b   :  { %s8048_s26 = scalar_lea.vmem %s8262_s20, 4096  ;;  %p8053_p0 = scmp.lt.s32.totalorder %s8262_s20, %s8262_s20 }
  0x3c   :  { %p8049_p13 = scmp.ne.s32.totalorder %s8262_s20, %s8048_s26  ;;  %p8054_p1 = scmp.lt.s32.totalorder %s8048_s26, %s8048_s26 }
  0x3e   :  { %p8055_p2 = por %p8054_p1, %p8053_p0 }
  0x40   :  { %p8056_p3 = pnand %p8055_p2, %p8049_p13 }
  0x42   :  { %8059 = shalt.err (!%p8056_p3)
}
  0x43   :  { %39 = dma.hbm_to_vmem [thread:$0]  %s11033_s2, 4096, %s8262_s20, [#allocation5], %s8136_s30, %s8136_s30, %s8137_s16  }
  0x44   :  { %s8140_s27 = smov [#allocation8]   ;;  %s8141_s7 = smov [#allocation11]  }
  0x45   :  { %s59_s28 = sshll.u32 %s8140_s27, 4  ;;  %s85_s21 = sshll.u32 %s8141_s7, 4  ;;  %s60_s28 = int_to_ptr.vmem [resolvable:$true] %s59_s28  ;;  %s8299_s21 = int_to_ptr.vmem [resolvable:$true] %s85_s21 }
  0x46   :  { %s8060_s29 = scalar_lea.hbm %s11036_s5, 4096 }
  0x47   :  { %p8061_p4 = scmp.ne.s32.totalorder %s11036_s5, %s8060_s29  ;;  %p8064_p5 = scmp.lt.u32.totalorder %s8060_s29, %s11036_s5 }
  0x49   :  { %p8066_p6 = pnand %p8064_p5, %p8061_p4 }
  0x4b   :  { %8069 = shalt.err (!%p8066_p6)
}
  0x4c   :  { %s8070_s2 = scalar_lea.vmem %s60_s28, 4096  ;;  %p8075_p8 = scmp.lt.s32.totalorder %s60_s28, %s60_s28 }
  0x4d   :  { %p8071_p7 = scmp.ne.s32.totalorder %s60_s28, %s8070_s2  ;;  %p8076_p9 = scmp.lt.s32.totalorder %s8070_s2, %s8070_s2 }
  0x4f   :  { %p8077_p10 = por %p8076_p9, %p8075_p8 }
  0x51   :  { %p8078_p11 = pnand %p8077_p10, %p8071_p7 }
  0x53   :  { %8081 = shalt.err (!%p8078_p11)
}
  0x54   :  { %65 = dma.hbm_to_vmem [thread:$0]  %s11036_s5, 4096, %s60_s28, [#allocation7], %s8136_s30, %s8136_s30, %s8137_s16  }
  0x55   :  { %s8082_s17 = scalar_lea.hbm %s11039_s8, 4096 }
  0x56   :  { %p8083_p12 = scmp.ne.s32.totalorder %s11039_s8, %s8082_s17  ;;  %p8086_p13 = scmp.lt.u32.totalorder %s8082_s17, %s11039_s8 }
  0x58   :  { %p8088_p0 = pnand %p8086_p13, %p8083_p12 }
  0x5a   :  { %8091 = shalt.err (!%p8088_p0)
}
  0x5b   :  { %s8092_s29 = scalar_lea.vmem %s8299_s21, 4096  ;;  %p8097_p2 = scmp.lt.s32.totalorder %s8299_s21, %s8299_s21 }
  0x5c   :  { %p8093_p1 = scmp.ne.s32.totalorder %s8299_s21, %s8092_s29  ;;  %p8098_p3 = scmp.lt.s32.totalorder %s8092_s29, %s8092_s29 }
  0x5e   :  { %p8099_p4 = por %p8098_p3, %p8097_p2 }
  0x60   :  { %p8100_p5 = pnand %p8099_p4, %p8093_p1 }
  0x62   :  { %8103 = shalt.err (!%p8100_p5)
}
  0x63   :  { %91 = dma.hbm_to_vmem [thread:$0]  %s11039_s8, 4096, %s8299_s21, [#allocation10], %s8136_s30, %s8136_s30, %s8137_s16  }
  0x64   :  { %s8142_s18 = smov [#allocation14]   ;;  %s8104_s2 = scalar_lea.hbm %s11042_s11, 4096 }
  0x65   :  { %s111_s22 = sshll.u32 %s8142_s18, 4  ;;  %p8105_p6 = scmp.ne.s32.totalorder %s11042_s11, %s8104_s2  ;;  %s112_s22 = int_to_ptr.vmem [resolvable:$true] %s111_s22 }
  0x66   :  { %p8108_p7 = scmp.lt.u32.totalorder %s8104_s2, %s11042_s11 }
  0x68   :  { %p8110_p8 = pnand %p8108_p7, %p8105_p6 }
  0x6a   :  { %8113 = shalt.err (!%p8110_p8)
}
  0x6b   :  { %s8114_s17 = scalar_lea.vmem %s112_s22, 4096  ;;  %p8119_p10 = scmp.lt.s32.totalorder %s112_s22, %s112_s22 }
  0x6c   :  { %p8115_p9 = scmp.ne.s32.totalorder %s112_s22, %s8114_s17  ;;  %p8120_p11 = scmp.lt.s32.totalorder %s8114_s17, %s8114_s17 }
  0x6e   :  { %p8121_p12 = por %p8120_p11, %p8119_p10 }
  0x70   :  { %p8122_p13 = pnand %p8121_p12, %p8115_p9 }
  0x72   :  { %8125 = shalt.err (!%p8122_p13)
}
  0x73   :  { %117 = dma.hbm_to_vmem [thread:$0]  %s11042_s11, 4096, %s112_s22, [#allocation13], %s8136_s30, %s8136_s30, %s8137_s16  }
  0x74   :  { %8126 = dma.done.wait [#allocation5], 4096  }
  0x75   :  { %8127 = vsyncadd [#allocation5], 4294963200 }
  0x76   :  { %8128 = dma.done.wait [#allocation7], 8192  }
  0x77   :  { %8129 = vsyncadd [#allocation7], 4294959104 }
  0x78   :  { %8130 = dma.done.wait [#allocation10], 8192  }
  0x79   :  { %8131 = vsyncadd [#allocation10], 4294959104 }
  0x7a   :  { %8132 = dma.done.wait [#allocation13], 8192  }
  0x7b   :  { %8133 = vsyncadd [#allocation13], 4294959104  ;;  %v11047_v0 = vmov 0   ;;  %v7128_v1 = vld [vmem:[%s11032_s1 + $0x4] ss:$16 sps:$4 sm:$0xff]   ;;  %v7183_v39 = vld [vmem:[%s11031_s0 + $0x8] sm:$0xff]  }
  0x7c   :  { %424 = vmatprep.mubr.bf16.mxu1 %v11047_v0  ;;  %798 = vmatprep.mubr.bf16.mxu0 %v11047_v0  ;;  %v7130_v2 = vld [vmem:[%s11032_s1] ss:$16 sps:$4 sm:$0xff]   ;;  %v8359_v3 = vld [vmem:[#allocation4 + $0x4] ss:$16 sps:$4 sm:$0xff]   ;;  %v7179_v32 = vld [vmem:[%s11032_s1 + $0xc] ss:$16 sps:$4 sm:$0xff]  }
  0x7d   :  { %392 = vmatprep.subr.bf16.mxu1 %v7128_v1  ;;  %v8361_v4 = vld [vmem:[#allocation4] ss:$16 sps:$4 sm:$0xff]   ;;  %v7134_v5 = vld [vmem:[%s11032_s1 + $0x24] ss:$16 sps:$4 sm:$0xff]   ;;  %766 = vmatprep.subr.bf16.mxu0 %v8359_v3  ;;  %v7177_v35 = vld [vmem:[%s11032_s1 + $0x8] ss:$16 sps:$4 sm:$0xff]  }
  0x7e   :  { %393 = vmatpush1.bf16.msra.mxu1 %v7130_v2  ;;  %v7136_v6 = vld [vmem:[%s11032_s1 + $0x20] ss:$16 sps:$4 sm:$0xff]   ;;  %v8370_v7 = vld [vmem:[#allocation4 + $0x24] ss:$16 sps:$4 sm:$0xff]   ;;  %767 = vmatpush1.bf16.msra.mxu0 %v8361_v4  ;;  %v7182_v36 = vld [vmem:[%s11032_s1 + $0x2c] ss:$16 sps:$4 sm:$0xff]  }
  0x7f   :  { %394 = vmatprep.subr.bf16.mxu1 %v7134_v5  ;;  %v8373_v8 = vld [vmem:[#allocation4 + $0x20] ss:$16 sps:$4 sm:$0xff]   ;;  %768 = vmatprep.subr.bf16.mxu0 %v8370_v7  ;;  %v7140_v9 = vld [vmem:[%s11032_s1 + $0x44] ss:$16 sps:$4 sm:$0xff]   ;;  %v7180_v37 = vld [vmem:[%s11032_s1 + $0x28] ss:$16 sps:$4 sm:$0xff]  }
  0x80   :  { %v7142_v10 = vld [vmem:[%s11032_s1 + $0x40] ss:$16 sps:$4 sm:$0xff]   ;;  %v8382_v11 = vld [vmem:[#allocation4 + $0x44] ss:$16 sps:$4 sm:$0xff]   ;;  %v7186_v38 = vld [vmem:[%s11032_s1 + $0x4c] ss:$16 sps:$4 sm:$0xff]  }
  0x81   :  { %v7146_v12 = vld [vmem:[%s11032_s1 + $0x64] ss:$16 sps:$4 sm:$0xff]   ;;  %v8388_v13 = vld [vmem:[#allocation4 + $0x40] ss:$16 sps:$4 sm:$0xff]   ;;  %v7184_v40 = vld [vmem:[%s11032_s1 + $0x48] ss:$16 sps:$4 sm:$0xff]  }
  0x82   :  { %395 = vmatpush1.bf16.msra.mxu1 %v7136_v6  ;;  %769 = vmatpush1.bf16.msra.mxu0 %v8373_v8  ;;  %v8391_v14 = vld [vmem:[#allocation4 + $0x64] ss:$16 sps:$4 sm:$0xff]   ;;  %v7148_v15 = vld [vmem:[%s11032_s1 + $0x60] ss:$16 sps:$4 sm:$0xff]   ;;  %v7189_v41 = vld [vmem:[%s11032_s1 + $0x6c] ss:$16 sps:$4 sm:$0xff]   ;;  %v188_v6 = vlaneseq }
  0x83   :  { %396 = vmatprep.subr.bf16.mxu1 %v7140_v9  ;;  %770 = vmatprep.subr.bf16.mxu0 %v8382_v11  ;;  %v7152_v16 = vld [vmem:[%s11032_s1 + $0x84] ss:$16 sps:$4 sm:$0xff]   ;;  %v8400_v17 = vld [vmem:[#allocation4 + $0x60] ss:$16 sps:$4 sm:$0xff]   ;;  %v7187_v42 = vld [vmem:[%s11032_s1 + $0x68] ss:$16 sps:$4 sm:$0xff]  }
  0x84   :  { %v8403_v18 = vld [vmem:[#allocation4 + $0x84] ss:$16 sps:$4 sm:$0xff]   ;;  %v7154_v19 = vld [vmem:[%s11032_s1 + $0x80] ss:$16 sps:$4 sm:$0xff]   ;;  %v7193_v43 = vld [vmem:[%s11032_s1 + $0x8c] ss:$16 sps:$4 sm:$0xff]  }
  0x85   :  { %v7158_v20 = vld [vmem:[%s11032_s1 + $0xa4] ss:$16 sps:$4 sm:$0xff]   ;;  %v8412_v21 = vld [vmem:[#allocation4 + $0x80] ss:$16 sps:$4 sm:$0xff]   ;;  %v7191_v45 = vld [vmem:[%s11032_s1 + $0x88] ss:$16 sps:$4 sm:$0xff]  }
  0x86   :  { %397 = vmatpush1.bf16.msra.mxu1 %v7142_v10  ;;  %771 = vmatpush1.bf16.msra.mxu0 %v8388_v13  ;;  %v8415_v22 = vld [vmem:[#allocation4 + $0xa4] ss:$16 sps:$4 sm:$0xff]   ;;  %v7160_v23 = vld [vmem:[%s11032_s1 + $0xa0] ss:$16 sps:$4 sm:$0xff]   ;;  %v7196_v46 = vld [vmem:[%s11032_s1 + $0xac] ss:$16 sps:$4 sm:$0xff]  }
  0x87   :  { %398 = vmatprep.subr.bf16.mxu1 %v7146_v12  ;;  %772 = vmatprep.subr.bf16.mxu0 %v8391_v14  ;;  %v7164_v24 = vld [vmem:[%s11032_s1 + $0xc4] ss:$16 sps:$4 sm:$0xff]   ;;  %v8424_v25 = vld [vmem:[#allocation4 + $0xa0] ss:$16 sps:$4 sm:$0xff]   ;;  %v7194_v47 = vld [vmem:[%s11032_s1 + $0xa8] ss:$16 sps:$4 sm:$0xff]  }
  0x88   :  { %v8427_v26 = vld [vmem:[#allocation4 + $0xc4] ss:$16 sps:$4 sm:$0xff]   ;;  %v7166_v27 = vld [vmem:[%s11032_s1 + $0xc0] ss:$16 sps:$4 sm:$0xff]   ;;  %v7200_v48 = vld [vmem:[%s11032_s1 + $0xcc] ss:$16 sps:$4 sm:$0xff]  }
  0x89   :  { %v7170_v28 = vld [vmem:[%s11032_s1 + $0xe4] ss:$16 sps:$4 sm:$0xff]   ;;  %v8436_v29 = vld [vmem:[#allocation4 + $0xc0] ss:$16 sps:$4 sm:$0xff]   ;;  %v7197_v49 = vld [vmem:[%s11031_s0 + $0x18] sm:$0xff]  }
  0x8a   :  { %399 = vmatpush1.bf16.msra.mxu1 %v7148_v15  ;;  %773 = vmatpush1.bf16.msra.mxu0 %v8400_v17  ;;  %v8439_v30 = vld [vmem:[#allocation4 + $0xe4] ss:$16 sps:$4 sm:$0xff]   ;;  %v7172_v31 = vld [vmem:[%s11032_s1 + $0xe0] ss:$16 sps:$4 sm:$0xff]   ;;  %v7198_v50 = vld [vmem:[%s11032_s1 + $0xc8] ss:$16 sps:$4 sm:$0xff]  }
  0x8b   :  { %400 = vmatprep.subr.bf16.mxu1 %v7152_v16  ;;  %774 = vmatprep.subr.bf16.mxu0 %v8403_v18  ;;  %v8448_v33 = vld [vmem:[#allocation4 + $0xe0] ss:$16 sps:$4 sm:$0xff]   ;;  %v7203_v51 = vld [vmem:[%s11032_s1 + $0xec] ss:$16 sps:$4 sm:$0xff]   ;;  %v7201_v52 = vld [vmem:[%s11032_s1 + $0xe8] ss:$16 sps:$4 sm:$0xff]  }
  0x8c   :  { %v8454_v34 = vld [vmem:[%s11031_s0] sm:$0xff]   ;;  %v7190_v44 = vld [vmem:[%s11031_s0 + $0x10] sm:$0xff]   ;;  %v8529_v53 = vld [vmem:[#allocation4 + $0xc] ss:$16 sps:$4 sm:$0xff]  }
  0x8d   :  { %v8533_v54 = vld [vmem:[#allocation4 + $0x8] ss:$16 sps:$4 sm:$0xff]   ;;  %v8536_v55 = vld [vmem:[#allocation4 + $0x2c] ss:$16 sps:$4 sm:$0xff]   ;;  %v186_v9 = vld [vmem:[%s11034_s3] sm:$0xf] }
  0x8e   :  { %401 = vmatpush1.bf16.msra.mxu1 %v7154_v19  ;;  %775 = vmatpush1.bf16.msra.mxu0 %v8412_v21  ;;  %v8540_v56 = vld [vmem:[#allocation4 + $0x28] ss:$16 sps:$4 sm:$0xff]   ;;  %v8544_v57 = vld [vmem:[#allocation4 + $0x4c] ss:$16 sps:$4 sm:$0xff]  }
  0x8f   :  { %402 = vmatprep.subr.bf16.mxu1 %v7158_v20  ;;  %776 = vmatprep.subr.bf16.mxu0 %v8415_v22  ;;  %v8550_v58 = vld [vmem:[#allocation4 + $0x48] ss:$16 sps:$4 sm:$0xff]   ;;  %v8552_v59 = vld [vmem:[#allocation4 + $0x6c] ss:$16 sps:$4 sm:$0xff]  }
  0x90   :  { %v8556_v60 = vld [vmem:[#allocation4 + $0x68] ss:$16 sps:$4 sm:$0xff]   ;;  %v8558_v61 = vld [vmem:[#allocation4 + $0x8c] ss:$16 sps:$4 sm:$0xff]  }
  0x91   :  { %v8563_v62 = vld [vmem:[#allocation4 + $0x88] ss:$16 sps:$4 sm:$0xff]   ;;  %v8565_v63 = vld [vmem:[#allocation4 + $0xac] ss:$16 sps:$4 sm:$0xff]  }
  0x92   :  { %403 = vmatpush1.bf16.msra.mxu1 %v7160_v23  ;;  %777 = vmatpush1.bf16.msra.mxu0 %v8424_v25  ;;  %v8569_v1 = vld [vmem:[#allocation4 + $0xa8] ss:$16 sps:$4 sm:$0xff]   ;;  %v8571_v2 = vld [vmem:[#allocation4 + $0xcc] ss:$16 sps:$4 sm:$0xff]  }
  0x93   :  { %404 = vmatprep.subr.bf16.mxu1 %v7164_v24  ;;  %778 = vmatprep.subr.bf16.mxu0 %v8427_v26  ;;  %v8582_v5 = vld [vmem:[#allocation4 + $0xe8] ss:$16 sps:$4 sm:$0xff]  }
  0x96   :  { %405 = vmatpush1.bf16.msra.mxu1 %v7166_v27  ;;  %779 = vmatpush1.bf16.msra.mxu0 %v8436_v29 }
  0x97   :  { %406 = vmatprep.subr.bf16.mxu1 %v7170_v28  ;;  %780 = vmatprep.subr.bf16.mxu0 %v8439_v30 }
  0x9a   :  { %407 = vmatpush1.bf16.msra.mxu1 %v7172_v31  ;;  %781 = vmatpush1.bf16.msra.mxu0 %v8448_v33 }
  0x9b   :  { %465 = vmatprep.subr.bf16.mxu1 %v7179_v32  ;;  %873 = vmatprep.subr.bf16.mxu0 %v8359_v3 }
  0x9d   :  { %425 = vmatmul.mubr.bf16.vlgmr.msra.gmra.mrb[0].mxu1 %v8454_v34  ;;  %799 = vmatmul.mubr.bf16.vlgmr.msra.gmra.mrb[0].mxu0 %v11047_v0 }
  0x9e   :  { %466 = vmatpush1.bf16.msra.mxu1 %v7177_v35  ;;  %434 = vmatprep.mubr.bf16.mxu1 %v11047_v0 }
  0x9f   :  { %467 = vmatprep.subr.bf16.mxu1 %v7182_v36  ;;  %874 = vmatpush1.bf16.msra.mxu0 %v8361_v4  ;;  %v8578_v4 = vld [vmem:[#allocation4 + $0xec] ss:$16 sps:$4 sm:$0xff]  }
  0xa0   :  { %905 = vmatprep.mubr.bf16.mxu0 %v11047_v0  ;;  %875 = vmatprep.subr.bf16.mxu0 %v8370_v7  ;;  %v8607_v7 = vshrl.u32 %v188_v6, 7 }
  0xa2   :  { %468 = vmatpush1.bf16.msra.mxu1 %v7180_v37  ;;  %11059 = vst [vmem:[#allocation19_spill] sm:$0xff] %v8607_v7  ;;  %v8616_v10 = vsub.s32 1, %v8607_v7  ;;  %v8652_v6 = vsub.s32 3, %v8607_v7 }
  0xa3   :  { %469 = vmatprep.subr.bf16.mxu1 %v7186_v38  ;;  %876 = vmatpush1.bf16.msra.mxu0 %v8373_v8  ;;  %v8610_v8 = vsub.s32 0, %v8607_v7 }
  0xa4   :  { %877 = vmatprep.subr.bf16.mxu0 %v8382_v11  ;;  %11061 = vst [vmem:[#allocation21_spill] sm:$0xff] %v8616_v10  ;;  %v195_v12 = vrot.slane %v186_v9, %v8616_v10  ;;  %11070 = vst [vmem:[#allocation30_spill] sm:$0xff] %v8652_v6 }
  0xa5   :  { %435 = vmatmul.mubr.bf16.gmra.mrb[4].mxu1 %v7183_v39  ;;  %11060 = vst [vmem:[#allocation20_spill] sm:$0xff] %v8610_v8  ;;  %v191_v11 = vrot.slane %v186_v9, %v8610_v8 }
  0xa6   :  { %470 = vmatpush1.bf16.msra.mxu1 %v7184_v40  ;;  %444 = vmatprep.mubr.bf16.mxu1 %v11047_v0 }
  0xa7   :  { %471 = vmatprep.subr.bf16.mxu1 %v7189_v41  ;;  %878 = vmatpush1.bf16.msra.mxu0 %v8388_v13 }
  0xa8   :  { %879 = vmatprep.subr.bf16.mxu0 %v8391_v14 }
  0xaa   :  { %472 = vmatpush1.bf16.msra.mxu1 %v7187_v42 }
  0xab   :  { %473 = vmatprep.subr.bf16.mxu1 %v7193_v43  ;;  %880 = vmatpush1.bf16.msra.mxu0 %v8400_v17 }
  0xac   :  { %881 = vmatprep.subr.bf16.mxu0 %v8403_v18 }
  0xad   :  { %445 = vmatmul.mubr.bf16.gmra.mrb[8].mxu1 %v7190_v44 }
  0xae   :  { %474 = vmatpush1.bf16.msra.mxu1 %v7191_v45  ;;  %454 = vmatprep.mubr.bf16.mxu1 %v11047_v0 }
  0xaf   :  { %475 = vmatprep.subr.bf16.mxu1 %v7196_v46  ;;  %882 = vmatpush1.bf16.msra.mxu0 %v8412_v21 }
  0xb0   :  { %883 = vmatprep.subr.bf16.mxu0 %v8415_v22 }
  0xb2   :  { %476 = vmatpush1.bf16.msra.mxu1 %v7194_v47 }
  0xb3   :  { %477 = vmatprep.subr.bf16.mxu1 %v7200_v48  ;;  %884 = vmatpush1.bf16.msra.mxu0 %v8424_v25 }
  0xb4   :  { %885 = vmatprep.subr.bf16.mxu0 %v8427_v26 }
  0xb5   :  { %455 = vmatmul.mubr.bf16.gmra.mrb[12].mxu1 %v7197_v49 }
  0xb6   :  { %478 = vmatpush1.bf16.msra.mxu1 %v7198_v50  ;;  %497 = vmatprep.mubr.bf16.mxu1 %v11047_v0 }
  0xb7   :  { %479 = vmatprep.subr.bf16.mxu1 %v7203_v51  ;;  %886 = vmatpush1.bf16.msra.mxu0 %v8436_v29 }
  0xb8   :  { %887 = vmatprep.subr.bf16.mxu0 %v8439_v30 }
  0xba   :  { %480 = vmatpush1.bf16.msra.mxu1 %v7201_v52  ;;  %v8649_v52 = vsub.s32 2, %v8607_v7 }
  0xbb   :  { %807 = vmatprep.subr.bf16.mxu1 %v8529_v53  ;;  %888 = vmatpush1.bf16.msra.mxu0 %v8448_v33 }
  0xbc   :  { %981 = vmatprep.subr.bf16.mxu0 %v8359_v3  ;;  %v8576_v3 = vld [vmem:[#allocation4 + $0xc8] ss:$16 sps:$4 sm:$0xff]   ;;  %11069 = vst [vmem:[#allocation29_spill] sm:$0xff] %v8649_v52 }
  0xbd   :  { %498 = vmatmul.mubr.bf16.vlgmr.msra.gmra.mrb[16].mxu1 %v8454_v34 }
  0xbe   :  { %808 = vmatpush1.bf16.msra.mxu1 %v8533_v54  ;;  %507 = vmatprep.mubr.bf16.mxu1 %v11047_v0 }
  0xbf   :  { %809 = vmatprep.subr.bf16.mxu1 %v8536_v55 }
  0xc2   :  { %810 = vmatpush1.bf16.msra.mxu1 %v8540_v56 }
  0xc3   :  { %811 = vmatprep.subr.bf16.mxu1 %v8544_v57 }
  0xc5   :  { %508 = vmatmul.mubr.bf16.gmra.mrb[20].mxu1 %v7183_v39 }
  0xc6   :  { %812 = vmatpush1.bf16.msra.mxu1 %v8550_v58  ;;  %517 = vmatprep.mubr.bf16.mxu1 %v11047_v0 }
  0xc7   :  { %813 = vmatprep.subr.bf16.mxu1 %v8552_v59 }
  0xca   :  { %814 = vmatpush1.bf16.msra.mxu1 %v8556_v60 }
  0xcb   :  { %815 = vmatprep.subr.bf16.mxu1 %v8558_v61 }
  0xcd   :  { %518 = vmatmul.mubr.bf16.gmra.mrb[24].mxu1 %v7190_v44 }
  0xce   :  { %816 = vmatpush1.bf16.msra.mxu1 %v8563_v62  ;;  %527 = vmatprep.mubr.bf16.mxu1 %v11047_v0 }
  0xcf   :  { %817 = vmatprep.subr.bf16.mxu1 %v8565_v63 }
  0xd2   :  { %818 = vmatpush1.bf16.msra.mxu1 %v8569_v1 }
  0xd3   :  { %819 = vmatprep.subr.bf16.mxu1 %v8571_v2 }
  0xd5   :  { %528 = vmatmul.mubr.bf16.gmra.mrb[28].mxu1 %v7197_v49 }
  0xd6   :  { %820 = vmatpush1.bf16.msra.mxu1 %v8576_v3  ;;  %839 = vmatprep.mubr.bf16.mxu1 %v11047_v0 }
  0xd7   :  { %821 = vmatprep.subr.bf16.mxu1 %v8578_v4 }
  0xda   :  { %822 = vmatpush1.bf16.msra.mxu1 %v8582_v5 }
  0xdb   :  { %914 = vmatprep.subr.bf16.mxu1 %v8529_v53 }
  0xdd   :  { %840 = vmatmul.mubr.bf16.vlgmr.msra.gmra.mrb[32].mxu1 %v11047_v0 }
  0xde   :  { %915 = vmatpush1.bf16.msra.mxu1 %v8533_v54  ;;  %946 = vmatprep.mubr.bf16.mxu1 %v11047_v0 }
  0xdf   :  { %916 = vmatprep.subr.bf16.mxu1 %v8536_v55 }
  0xe2   :  { %917 = vmatpush1.bf16.msra.mxu1 %v8540_v56 }
  0xe3   :  { %918 = vmatprep.subr.bf16.mxu1 %v8544_v57 }
  0xe6   :  { %919 = vmatpush1.bf16.msra.mxu1 %v8550_v58 }
  0xe7   :  { %920 = vmatprep.subr.bf16.mxu1 %v8552_v59 }
  0xea   :  { %921 = vmatpush1.bf16.msra.mxu1 %v8556_v60 }
  0xeb   :  { %922 = vmatprep.subr.bf16.mxu1 %v8558_v61 }
  0xee   :  { %923 = vmatpush1.bf16.msra.mxu1 %v8563_v62 }
  0xef   :  { %924 = vmatprep.subr.bf16.mxu1 %v8565_v63 }
  0xf2   :  { %925 = vmatpush1.bf16.msra.mxu1 %v8569_v1 }
  0xf3   :  { %926 = vmatprep.subr.bf16.mxu1 %v8571_v2 }
  0xf6   :  { %927 = vmatpush1.bf16.msra.mxu1 %v8576_v3 }
  0xf7   :  { %928 = vmatprep.subr.bf16.mxu1 %v8578_v4 }
  0xfa   :  { %929 = vmatpush1.bf16.msra.mxu1 %v8582_v5 }
  0xfb   :  { %1022 = vmatprep.subr.bf16.mxu1 %v8529_v53 }
 0x170   :  { %v426_v13 = vpop.f32.mrb[0].mxu1  ;;  %v800_v18 = vpop.f32.mrb[0].mxu0 }
 0x171   :  { %v427_v14 = vadd.f32 %v426_v13, %v191_v11  ;;  %v428_v15 = vpop.f32.mrb[1].mxu1  ;;  %v802_v22 = vpop.f32.mrb[1].mxu0 }
 0x172   :  { %v429_v16 = vadd.f32 %v428_v15, %v195_v12  ;;  %v430_v17 = vpop.f32.mrb[2].mxu1  ;;  %v804_v25 = vpop.f32.mrb[2].mxu0 }
 0x173   :  { %v8620_v19 = vadd.f32 %v430_v17, %v191_v11  ;;  %v801_v20 = vadd.f32 %v800_v18, %v427_v14  ;;  %v432_v21 = vpop.f32.mrb[3].mxu1  ;;  %v805_v26 = vpop.f32.mrb[3].mxu0  ;;  %v199_v14 = vrot.slane %v186_v9, %v8649_v52 }
 0x174   :  { %v8622_v23 = vadd.f32 %v432_v21, %v195_v12  ;;  %v803_v24 = vadd.f32 %v802_v22, %v429_v16  ;;  %v203_v16 = vrot.slane %v186_v9, %v8652_v6 }
 0x178   :  { %v436_v27 = vpop.f32.mrb[4].mxu1 }
 0x179   :  { %v8624_v28 = vadd.f32 %v436_v27, %v191_v11  ;;  %v438_v29 = vpop.f32.mrb[5].mxu1 }
 0x17a   :  { %v8626_v30 = vadd.f32 %v438_v29, %v195_v12  ;;  %v440_v31 = vpop.f32.mrb[6].mxu1 }
 0x17b   :  { %v8628_v32 = vadd.f32 %v440_v31, %v191_v11  ;;  %v442_v34 = vpop.f32.mrb[7].mxu1 }
 0x17c   :  { %v8630_v35 = vadd.f32 %v442_v34, %v195_v12 }
 0x180   :  { %v446_v36 = vpop.f32.mrb[8].mxu1 }
 0x181   :  { %v8632_v37 = vadd.f32 %v446_v36, %v191_v11  ;;  %v448_v38 = vpop.f32.mrb[9].mxu1 }
 0x182   :  { %v8634_v39 = vadd.f32 %v448_v38, %v195_v12  ;;  %v450_v40 = vpop.f32.mrb[10].mxu1 }
 0x183   :  { %v8636_v41 = vadd.f32 %v450_v40, %v191_v11  ;;  %v452_v42 = vpop.f32.mrb[11].mxu1 }
 0x184   :  { %11062 = vst [vmem:[#allocation22_spill] sm:$0xff] %v8634_v39  ;;  %v8638_v43 = vadd.f32 %v452_v42, %v195_v12 }
 0x185   :  { %11063 = vst [vmem:[#allocation23_spill] sm:$0xff] %v8636_v41 }
 0x186   :  { %11064 = vst [vmem:[#allocation24_spill] sm:$0xff] %v8638_v43 }
 0x188   :  { %v456_v44 = vpop.f32.mrb[12].mxu1 }
 0x189   :  { %v8640_v45 = vadd.f32 %v456_v44, %v191_v11  ;;  %v458_v46 = vpop.f32.mrb[13].mxu1 }
 0x18a   :  { %v8642_v47 = vadd.f32 %v458_v46, %v195_v12  ;;  %v460_v48 = vpop.f32.mrb[14].mxu1 }
 0x18b   :  { %11065 = vst [vmem:[#allocation25_spill] sm:$0xff] %v8640_v45  ;;  %v8644_v49 = vadd.f32 %v460_v48, %v191_v11  ;;  %v462_v50 = vpop.f32.mrb[15].mxu1 }
 0x18c   :  { %11066 = vst [vmem:[#allocation26_spill] sm:$0xff] %v8642_v47  ;;  %v8646_v51 = vadd.f32 %v462_v50, %v195_v12  ;;  %v849_v50 = vmul.f32 0.5, %v803_v24 }
 0x18d   :  { %11067 = vst [vmem:[#allocation27_spill] sm:$0xff] %v8644_v49 }
 0x18e   :  { %11068 = vst [vmem:[#allocation28_spill] sm:$0xff] %v8646_v51  ;;  %7524 = vtanh.f32 %v849_v50 }
 0x190   :  { %v499_v13 = vpop.f32.mrb[16].mxu1 }
 0x191   :  { %v501_v15 = vpop.f32.mrb[17].mxu1 }
 0x192   :  { %v503_v17 = vpop.f32.mrb[18].mxu1  ;;  %v502_v7 = vadd.f32 %v501_v15, %v203_v16 }
 0x193   :  { %v8656_v18 = vadd.f32 %v503_v17, %v199_v14  ;;  %v505_v11 = vpop.f32.mrb[19].mxu1  ;;  %v848_v17 = vmul.f32 0.5, %v801_v20 }
 0x194   :  { %v8658_v21 = vadd.f32 %v505_v11, %v203_v16 }
 0x195   :  { %7526 = vtanh.f32 %v848_v17 }
 0x198   :  { %v509_v12 = vpop.f32.mrb[20].mxu1  ;;  %v7525_v52 = vpop.eup %7524 }
 0x199   :  { %v8660_v22 = vadd.f32 %v509_v12, %v199_v14  ;;  %v511_v25 = vpop.f32.mrb[21].mxu1 }
 0x19a   :  { %v8662_v26 = vadd.f32 %v511_v25, %v203_v16  ;;  %v513_v27 = vpop.f32.mrb[22].mxu1 }
 0x19b   :  { %v8664_v29 = vadd.f32 %v513_v27, %v199_v14  ;;  %v515_v31 = vpop.f32.mrb[23].mxu1 }
 0x19c   :  { %v8666_v34 = vadd.f32 %v515_v31, %v203_v16 }
 0x19f   :  { %v7527_v50 = vpop.eup %7526 }
 0x1a0   :  { %v519_v36 = vpop.f32.mrb[24].mxu1  ;;  %v854_v51 = vmul.f32 0.5, %v7527_v50  ;;  %v8729_v50 = vld [vmem:[#allocation4 + $0xa4] ss:$16 sps:$4 sm:$0xff]  }
 0x1a1   :  { %v8668_v9 = vadd.f32 %v519_v36, %v199_v14  ;;  %v521_v38 = vpop.f32.mrb[25].mxu1 }
 0x1a2   :  { %v8670_v40 = vadd.f32 %v521_v38, %v203_v16  ;;  %v523_v42 = vpop.f32.mrb[26].mxu1 }
 0x1a3   :  { %v8672_v44 = vadd.f32 %v523_v42, %v199_v14  ;;  %v525_v46 = vpop.f32.mrb[27].mxu1  ;;  %v500_v42 = vadd.f32 %v499_v13, %v199_v14 }
 0x1a4   :  { %11071 = vst [vmem:[#allocation31_spill] sm:$0xff] %v8670_v40  ;;  %v8674_v48 = vadd.f32 %v525_v46, %v203_v16 }
 0x1a5   :  { %11072 = vst [vmem:[#allocation32_spill] sm:$0xff] %v8672_v44 }
 0x1a6   :  { %11073 = vst [vmem:[#allocation33_spill] sm:$0xff] %v8674_v48 }
 0x1a8   :  { %v529_v11 = vpop.f32.mrb[28].mxu1 }
 0x1a9   :  { %v8676_v12 = vadd.f32 %v529_v11, %v199_v14  ;;  %v531_v25 = vpop.f32.mrb[29].mxu1 }
 0x1aa   :  { %v8678_v27 = vadd.f32 %v531_v25, %v203_v16  ;;  %v533_v31 = vpop.f32.mrb[30].mxu1  ;;  %v855_v25 = vmul.f32 0.5, %v7525_v52 }
 0x1ab   :  { %11074 = vst [vmem:[#allocation34_spill] sm:$0xff] %v8676_v12  ;;  %v8680_v36 = vadd.f32 %v533_v31, %v199_v14  ;;  %v535_v38 = vpop.f32.mrb[31].mxu1 }
 0x1ac   :  { %11075 = vst [vmem:[#allocation35_spill] sm:$0xff] %v8678_v27  ;;  %v8682_v0 = vadd.f32 %v535_v38, %v203_v16  ;;  %v858_v31 = vadd.f32 0.5, %v855_v25  ;;  %v8733_v25 = vld [vmem:[#allocation4 + $0xa0] ss:$16 sps:$4 sm:$0xff]  }
 0x1ad   :  { %11076 = vst [vmem:[#allocation36_spill] sm:$0xff] %v8680_v36  ;;  %v857_v36 = vadd.f32 0.5, %v854_v51  ;;  %v11079_v51 = vmov 0  }
 0x1ae   :  { %11077 = vst [vmem:[#allocation37_spill] sm:$0xff] %v8682_v0  ;;  %v861_v38 = vmul.f32 0.0, %v858_v31  ;;  %v8737_v31 = vld [vmem:[#allocation4 + $0xc4] ss:$16 sps:$4 sm:$0xff]  }
 0x1b0   :  { %v841_v46 = vpop.f32.mrb[32].mxu1 }
 0x1b1   :  { %v842_v6 = vadd.f32 %v841_v46, %v500_v42  ;;  %v843_v24 = vpop.f32.mrb[33].mxu1  ;;  %v8709_v42 = vld [vmem:[#allocation4 + $0x40] ss:$16 sps:$4 sm:$0xff]   ;;  %v8713_v46 = vld [vmem:[#allocation4 + $0x64] ss:$16 sps:$4 sm:$0xff]  }
 0x1b2   :  { %v844_v20 = vadd.f32 %v843_v24, %v502_v7  ;;  %v845_v10 = vpop.f32.mrb[34].mxu1  ;;  %v8717_v24 = vld [vmem:[#allocation4 + $0x60] ss:$16 sps:$4 sm:$0xff]  }
 0x1b3   :  { %v846_v11 = vpop.f32.mrb[35].mxu1  ;;  %v850_v8 = vmul.f32 0.5, %v842_v6  ;;  %v8701_v6 = vld [vmem:[#allocation4 + $0x20] ss:$16 sps:$4 sm:$0xff]  }
 0x1b4   :  { %7528 = vtanh.f32 %v844_v20  ;;  %v8721_v20 = vld [vmem:[#allocation4 + $0x84] ss:$16 sps:$4 sm:$0xff]   ;;  %v8725_v11 = vld [vmem:[#allocation4 + $0x80] ss:$16 sps:$4 sm:$0xff]  }
 0x1b5   :  { %7530 = vtanh.f32 %v850_v8  ;;  %v8691_v8 = vld [vmem:[#allocation4] ss:$16 sps:$4 sm:$0xff]  }
 0x1be   :  { %v7529_v17 = vpop.eup %7528 }
 0x1bf   :  { %v862_v0 = vmul.f32 %v7529_v17, %v857_v36  ;;  %v7531_v14 = vpop.eup %7530  ;;  %v8705_v36 = vld [vmem:[#allocation4 + $0x44] ss:$16 sps:$4 sm:$0xff]   ;;  %v8741_v17 = vld [vmem:[#allocation4 + $0xc0] ss:$16 sps:$4 sm:$0xff]  }
 0x1c0   :  { %v856_v7 = vmul.f32 0.5, %v7531_v14  ;;  %v8751_v14 = vld [vmem:[#allocation4 + $0x4] ss:$16 sps:$4 sm:$0xff]  }
 0x1c1   :  { %v8684_v13 = vadd.f32 %v862_v0, %v861_v38  ;;  %v8695_v0 = vld [vmem:[#allocation4 + $0x24] ss:$16 sps:$4 sm:$0xff]  }
 0x1c2   :  { %v859_v10 = vadd.f32 0.5, %v856_v7  ;;  %v8745_v38 = vld [vmem:[#allocation4 + $0xe4] ss:$16 sps:$4 sm:$0xff]  }
 0x1c3   :  { %7532 = vtanh.f32 %v8684_v13 }
 0x1cd   :  { %v7533_v15 = vpop.eup %7532 }
 0x1ce   :  { %v8687_v16 = vmul.f32 %v7533_v15, %v859_v10 }
 0x1d0   :  { %11078 = vst [vmem:[#allocation38_spill] sm:$0xff] %v8687_v16  ;;  %v867_v52 = vpack.c.bf16 %v8687_v16, %v8687_v16 }
 0x1d2   :  { %906 = vmatmul.mubr.bf16.vlgmr.msra.gmra.mrb[4].mxu0 %v867_v52  ;;  %947 = vmatmul.mubr.bf16.vlgmr.msra.gmra.mrb[36].mxu1 %v867_v52 }
 0x1d3   :  { %982 = vmatpush1.bf16.msra.mxu0 %v8691_v8  ;;  %1023 = vmatpush1.bf16.msra.mxu1 %v8533_v54 }
 0x1d4   :  { %983 = vmatprep.subr.bf16.mxu0 %v8695_v0  ;;  %1024 = vmatprep.subr.bf16.mxu1 %v8536_v55 }
 0x1d5   :  { %1013 = vmatprep.mubr.bf16.mxu0 %v11079_v51  ;;  %1054 = vmatprep.mubr.bf16.mxu1 %v11079_v51 }
 0x1d7   :  { %984 = vmatpush1.bf16.msra.mxu0 %v8701_v6  ;;  %1025 = vmatpush1.bf16.msra.mxu1 %v8540_v56 }
 0x1d8   :  { %985 = vmatprep.subr.bf16.mxu0 %v8705_v36  ;;  %1026 = vmatprep.subr.bf16.mxu1 %v8544_v57 }
 0x1db   :  { %986 = vmatpush1.bf16.msra.mxu0 %v8709_v42  ;;  %1027 = vmatpush1.bf16.msra.mxu1 %v8550_v58 }
 0x1dc   :  { %987 = vmatprep.subr.bf16.mxu0 %v8713_v46  ;;  %1028 = vmatprep.subr.bf16.mxu1 %v8552_v59 }
 0x1df   :  { %988 = vmatpush1.bf16.msra.mxu0 %v8717_v24  ;;  %1029 = vmatpush1.bf16.msra.mxu1 %v8556_v60 }
 0x1e0   :  { %989 = vmatprep.subr.bf16.mxu0 %v8721_v20  ;;  %1030 = vmatprep.subr.bf16.mxu1 %v8558_v61 }
 0x1e3   :  { %990 = vmatpush1.bf16.msra.mxu0 %v8725_v11  ;;  %1031 = vmatpush1.bf16.msra.mxu1 %v8563_v62 }
 0x1e4   :  { %991 = vmatprep.subr.bf16.mxu0 %v8729_v50  ;;  %1032 = vmatprep.subr.bf16.mxu1 %v8565_v63 }
 0x1e7   :  { %992 = vmatpush1.bf16.msra.mxu0 %v8733_v25  ;;  %1033 = vmatpush1.bf16.msra.mxu1 %v8569_v1 }
 0x1e8   :  { %993 = vmatprep.subr.bf16.mxu0 %v8737_v31  ;;  %1034 = vmatprep.subr.bf16.mxu1 %v8571_v2 }
 0x1eb   :  { %994 = vmatpush1.bf16.msra.mxu0 %v8741_v17  ;;  %1035 = vmatpush1.bf16.msra.mxu1 %v8576_v3 }
 0x1ec   :  { %995 = vmatprep.subr.bf16.mxu0 %v8745_v38  ;;  %1036 = vmatprep.subr.bf16.mxu1 %v8578_v4 }
 0x1ef   :  { %996 = vmatpush1.bf16.msra.mxu0 %v8448_v33  ;;  %1037 = vmatpush1.bf16.msra.mxu1 %v8582_v5 }
 0x1f0   :  { %1089 = vmatprep.subr.bf16.mxu0 %v8751_v14  ;;  %1130 = vmatprep.subr.bf16.mxu1 %v8529_v53 }
 0x2a5   :  { %v907_v7 = vpop.f32.mrb[4].mxu0  ;;  %v948_v10 = vpop.f32.mrb[36].mxu1 }
 0x2a6   :  { %v908_v15 = vadd.f32 %v907_v7, %v8620_v19  ;;  %v949_v52 = vadd.f32 %v948_v10, %v8656_v18  ;;  %v909_v49 = vpop.f32.mrb[5].mxu0  ;;  %v950_v16 = vpop.f32.mrb[37].mxu1 }
 0x2a7   :  { %v910_v27 = vadd.f32 %v909_v49, %v8622_v23  ;;  %v951_v33 = vadd.f32 %v950_v16, %v8658_v21  ;;  %v911_v47 = vpop.f32.mrb[6].mxu0  ;;  %v952_v12 = vpop.f32.mrb[38].mxu1 }
 0x2a8   :  { %v955_v45 = vmul.f32 0.5, %v908_v15  ;;  %v912_v48 = vpop.f32.mrb[7].mxu0  ;;  %v953_v43 = vpop.f32.mrb[39].mxu1  ;;  %v957_v41 = vmul.f32 0.5, %v949_v52 }
 0x2a9   :  { %v956_v44 = vmul.f32 0.5, %v910_v27 }
 0x2aa   :  { %7534 = vtanh.f32 %v955_v45 }
 0x2ab   :  { %7536 = vtanh.f32 %v956_v44 }
 0x2ac   :  { %7538 = vtanh.f32 %v951_v33 }
 0x2ad   :  { %7540 = vtanh.f32 %v957_v41 }
 0x2b4   :  { %v7535_v40 = vpop.eup %7534 }
 0x2b5   :  { %v961_v19 = vmul.f32 0.5, %v7535_v40  ;;  %v7537_v7 = vpop.eup %7536 }
 0x2b6   :  { %v962_v10 = vmul.f32 0.5, %v7537_v7  ;;  %v7539_v39 = vpop.eup %7538 }
 0x2b7   :  { %v964_v18 = vadd.f32 0.5, %v961_v19  ;;  %v7541_v43 = vpop.eup %7540 }
 0x2b8   :  { %v965_v23 = vadd.f32 0.5, %v962_v10  ;;  %v963_v45 = vmul.f32 0.5, %v7541_v43 }
 0x2b9   :  { %v969_v49 = vmul.f32 %v7539_v39, %v964_v18  ;;  %v8797_v39 = vld [vmem:[#allocation4 + $0xe0] ss:$16 sps:$4 sm:$0xff]  }
 0x2ba   :  { %v968_v47 = vmul.f32 %v965_v23, %v8684_v13  ;;  %v966_v44 = vadd.f32 0.5, %v963_v45 }
 0x2bc   :  { %v8760_v21 = vadd.f32 %v969_v49, %v968_v47 }
 0x2be   :  { %7542 = vtanh.f32 %v8760_v21 }
 0x2c8   :  { %v7543_v48 = vpop.eup %7542 }
 0x2c9   :  { %v8763_v12 = vmul.f32 %v7543_v48, %v966_v44 }
 0x2cb   :  { %v975_v40 = vpack.c.bf16 %v8763_v12, %v8763_v12 }
 0x2cd   :  { %1014 = vmatmul.mubr.bf16.vlgmr.msra.gmra.mrb[8].mxu0 %v975_v40  ;;  %1055 = vmatmul.mubr.bf16.vlgmr.msra.gmra.mrb[40].mxu1 %v975_v40 }
 0x2ce   :  { %1090 = vmatpush1.bf16.msra.mxu0 %v8691_v8  ;;  %1131 = vmatpush1.bf16.msra.mxu1 %v8533_v54 }
 0x2cf   :  { %1091 = vmatprep.subr.bf16.mxu0 %v8695_v0  ;;  %1132 = vmatprep.subr.bf16.mxu1 %v8536_v55 }
 0x2d0   :  { %1121 = vmatprep.mubr.bf16.mxu0 %v11079_v51  ;;  %1162 = vmatprep.mubr.bf16.mxu1 %v11079_v51 }
 0x2d2   :  { %1092 = vmatpush1.bf16.msra.mxu0 %v8701_v6  ;;  %1133 = vmatpush1.bf16.msra.mxu1 %v8540_v56 }
 0x2d3   :  { %1093 = vmatprep.subr.bf16.mxu0 %v8705_v36  ;;  %1134 = vmatprep.subr.bf16.mxu1 %v8544_v57 }
 0x2d6   :  { %1094 = vmatpush1.bf16.msra.mxu0 %v8709_v42  ;;  %1135 = vmatpush1.bf16.msra.mxu1 %v8550_v58 }
 0x2d7   :  { %1095 = vmatprep.subr.bf16.mxu0 %v8713_v46  ;;  %1136 = vmatprep.subr.bf16.mxu1 %v8552_v59 }
 0x2da   :  { %1096 = vmatpush1.bf16.msra.mxu0 %v8717_v24  ;;  %1137 = vmatpush1.bf16.msra.mxu1 %v8556_v60 }
 0x2db   :  { %1097 = vmatprep.subr.bf16.mxu0 %v8721_v20  ;;  %1138 = vmatprep.subr.bf16.mxu1 %v8558_v61 }
 0x2de   :  { %1098 = vmatpush1.bf16.msra.mxu0 %v8725_v11  ;;  %1139 = vmatpush1.bf16.msra.mxu1 %v8563_v62 }
 0x2df   :  { %1099 = vmatprep.subr.bf16.mxu0 %v8729_v50  ;;  %1140 = vmatprep.subr.bf16.mxu1 %v8565_v63 }
 0x2e2   :  { %1100 = vmatpush1.bf16.msra.mxu0 %v8733_v25  ;;  %1141 = vmatpush1.bf16.msra.mxu1 %v8569_v1 }
 0x2e3   :  { %1101 = vmatprep.subr.bf16.mxu0 %v8737_v31  ;;  %1142 = vmatprep.subr.bf16.mxu1 %v8571_v2 }
 0x2e6   :  { %1102 = vmatpush1.bf16.msra.mxu0 %v8741_v17  ;;  %1143 = vmatpush1.bf16.msra.mxu1 %v8576_v3 }
 0x2e7   :  { %1103 = vmatprep.subr.bf16.mxu0 %v8745_v38  ;;  %1144 = vmatprep.subr.bf16.mxu1 %v8578_v4 }
 0x2ea   :  { %1104 = vmatpush1.bf16.msra.mxu0 %v8797_v39  ;;  %1145 = vmatpush1.bf16.msra.mxu1 %v8582_v5 }
 0x2eb   :  { %1197 = vmatprep.subr.bf16.mxu0 %v8751_v14  ;;  %1238 = vmatprep.subr.bf16.mxu1 %v8529_v53 }
 0x3a0   :  { %v1015_v41 = vpop.f32.mrb[8].mxu0  ;;  %v1056_v27 = vpop.f32.mrb[40].mxu1 }
 0x3a1   :  { %v1016_v13 = vadd.f32 %v1015_v41, %v8624_v28  ;;  %v1057_v16 = vadd.f32 %v1056_v27, %v8660_v22  ;;  %v1017_v15 = vpop.f32.mrb[9].mxu0  ;;  %v1058_v52 = vpop.f32.mrb[41].mxu1 }
 0x3a2   :  { %v1018_v33 = vadd.f32 %v1017_v15, %v8626_v30  ;;  %v1059_v19 = vadd.f32 %v1058_v52, %v8662_v26  ;;  %v1019_v7 = vpop.f32.mrb[10].mxu0  ;;  %v1060_v18 = vpop.f32.mrb[42].mxu1 }
 0x3a3   :  { %v1063_v10 = vmul.f32 0.5, %v1016_v13  ;;  %v1020_v23 = vpop.f32.mrb[11].mxu0  ;;  %v1061_v49 = vpop.f32.mrb[43].mxu1  ;;  %v1065_v53 = vmul.f32 0.5, %v1057_v16 }
 0x3a4   :  { %v1064_v47 = vmul.f32 0.5, %v1018_v33 }
 0x3a5   :  { %7544 = vtanh.f32 %v1063_v10 }
 0x3a6   :  { %7546 = vtanh.f32 %v1064_v47 }
 0x3a7   :  { %7548 = vtanh.f32 %v1059_v19 }
 0x3a8   :  { %7550 = vtanh.f32 %v1065_v53 }
 0x3af   :  { %v7545_v43 = vpop.eup %7544 }
 0x3b0   :  { %v1069_v28 = vmul.f32 0.5, %v7545_v43  ;;  %v7547_v45 = vpop.eup %7546 }
 0x3b1   :  { %v1070_v44 = vmul.f32 0.5, %v7547_v45  ;;  %v7549_v48 = vpop.eup %7548 }
 0x3b2   :  { %v1072_v22 = vadd.f32 0.5, %v1069_v28  ;;  %v7551_v27 = vpop.eup %7550 }
 0x3b3   :  { %v1073_v30 = vadd.f32 0.5, %v1070_v44  ;;  %v1071_v13 = vmul.f32 0.5, %v7551_v27 }
 0x3b4   :  { %v1077_v40 = vmul.f32 %v7549_v48, %v1072_v22 }
 0x3b5   :  { %v1076_v26 = vmul.f32 %v1073_v30, %v8760_v21  ;;  %v1074_v15 = vadd.f32 0.5, %v1071_v13 }
 0x3b7   :  { %v8808_v41 = vadd.f32 %v1077_v40, %v1076_v26 }
 0x3b9   :  { %7552 = vtanh.f32 %v8808_v41 }
 0x3c3   :  { %v7553_v52 = vpop.eup %7552 }
 0x3c4   :  { %v8811_v16 = vmul.f32 %v7553_v52, %v1074_v15  ;;  %v8864_v15 = vld [vmem:[#allocation4 + $0x8] ss:$16 sps:$4 sm:$0xff]  }
 0x3c5   :  { %v8874_v52 = vld [vmem:[#allocation4 + $0x28] ss:$16 sps:$4 sm:$0xff]  }
 0x3c6   :  { %v1083_v33 = vpack.c.bf16 %v8811_v16, %v8811_v16 }
 0x3c8   :  { %1122 = vmatmul.mubr.bf16.vlgmr.msra.gmra.mrb[12].mxu0 %v1083_v33  ;;  %1163 = vmatmul.mubr.bf16.vlgmr.msra.gmra.mrb[44].mxu1 %v1083_v33  ;;  %v8878_v33 = vld [vmem:[#allocation4 + $0x4c] ss:$16 sps:$4 sm:$0xff]  }
 0x3c9   :  { %1198 = vmatpush1.bf16.msra.mxu0 %v8691_v8  ;;  %1239 = vmatpush1.bf16.msra.mxu1 %v8533_v54  ;;  %v8848_v54 = vld [vmem:[#allocation4 + $0xc] ss:$16 sps:$4 sm:$0xff]  }
 0x3ca   :  { %1199 = vmatprep.subr.bf16.mxu0 %v8695_v0  ;;  %1240 = vmatprep.subr.bf16.mxu1 %v8536_v55 }
 0x3cb   :  { %1229 = vmatprep.mubr.bf16.mxu0 %v11079_v51  ;;  %1270 = vmatprep.mubr.bf16.mxu1 %v11079_v51 }
 0x3cd   :  { %1200 = vmatpush1.bf16.msra.mxu0 %v8701_v6  ;;  %1241 = vmatpush1.bf16.msra.mxu1 %v8540_v56 }
 0x3ce   :  { %1201 = vmatprep.subr.bf16.mxu0 %v8705_v36  ;;  %1242 = vmatprep.subr.bf16.mxu1 %v8544_v57 }
 0x3d1   :  { %1202 = vmatpush1.bf16.msra.mxu0 %v8709_v42  ;;  %1243 = vmatpush1.bf16.msra.mxu1 %v8550_v58 }
 0x3d2   :  { %1203 = vmatprep.subr.bf16.mxu0 %v8713_v46  ;;  %1244 = vmatprep.subr.bf16.mxu1 %v8552_v59 }
 0x3d5   :  { %1204 = vmatpush1.bf16.msra.mxu0 %v8717_v24  ;;  %1245 = vmatpush1.bf16.msra.mxu1 %v8556_v60 }
 0x3d6   :  { %1205 = vmatprep.subr.bf16.mxu0 %v8721_v20  ;;  %1246 = vmatprep.subr.bf16.mxu1 %v8558_v61 }
 0x3d9   :  { %1206 = vmatpush1.bf16.msra.mxu0 %v8725_v11  ;;  %1247 = vmatpush1.bf16.msra.mxu1 %v8563_v62 }
 0x3da   :  { %1207 = vmatprep.subr.bf16.mxu0 %v8729_v50  ;;  %1248 = vmatprep.subr.bf16.mxu1 %v8565_v63 }
 0x3dd   :  { %1208 = vmatpush1.bf16.msra.mxu0 %v8733_v25  ;;  %1249 = vmatpush1.bf16.msra.mxu1 %v8569_v1 }
 0x3de   :  { %1209 = vmatprep.subr.bf16.mxu0 %v8737_v31  ;;  %1250 = vmatprep.subr.bf16.mxu1 %v8571_v2 }
 0x3e1   :  { %1210 = vmatpush1.bf16.msra.mxu0 %v8741_v17  ;;  %1251 = vmatpush1.bf16.msra.mxu1 %v8576_v3 }
 0x3e2   :  { %1211 = vmatprep.subr.bf16.mxu0 %v8745_v38  ;;  %1252 = vmatprep.subr.bf16.mxu1 %v8578_v4 }
 0x3e5   :  { %1212 = vmatpush1.bf16.msra.mxu0 %v8797_v39  ;;  %1253 = vmatpush1.bf16.msra.mxu1 %v8582_v5 }
 0x3e6   :  { %1305 = vmatprep.subr.bf16.mxu0 %v8751_v14  ;;  %1346 = vmatprep.subr.bf16.mxu1 %v8848_v54 }
 0x49b   :  { %v1123_v55 = vpop.f32.mrb[12].mxu0  ;;  %v1164_v56 = vpop.f32.mrb[44].mxu1 }
 0x49c   :  { %v1124_v57 = vadd.f32 %v1123_v55, %v8628_v32  ;;  %v1165_v58 = vadd.f32 %v1164_v56, %v8664_v29  ;;  %v1125_v59 = vpop.f32.mrb[13].mxu0  ;;  %v1166_v60 = vpop.f32.mrb[45].mxu1  ;;  %v8882_v55 = vld [vmem:[#allocation4 + $0x48] ss:$16 sps:$4 sm:$0xff]   ;;  %v8886_v56 = vld [vmem:[#allocation4 + $0x6c] ss:$16 sps:$4 sm:$0xff]  }
 0x49d   :  { %v1126_v61 = vadd.f32 %v1125_v59, %v8630_v35  ;;  %v1167_v21 = vadd.f32 %v1166_v60, %v8666_v34  ;;  %v1127_v19 = vpop.f32.mrb[14].mxu0  ;;  %v1168_v7 = vpop.f32.mrb[46].mxu1  ;;  %v11080_v60 = vld [vmem:[#allocation22_spill] sm:$0xff] }
 0x49e   :  { %v1171_v18 = vmul.f32 0.5, %v1124_v57  ;;  %v1128_v10 = vpop.f32.mrb[15].mxu0  ;;  %v1169_v23 = vpop.f32.mrb[47].mxu1  ;;  %v1173_v47 = vmul.f32 0.5, %v1165_v58  ;;  %v8890_v57 = vld [vmem:[#allocation4 + $0x68] ss:$16 sps:$4 sm:$0xff]  }
 0x49f   :  { %v1172_v49 = vmul.f32 0.5, %v1126_v61  ;;  %v8894_v58 = vld [vmem:[#allocation4 + $0x8c] ss:$16 sps:$4 sm:$0xff]  }
 0x4a0   :  { %7554 = vtanh.f32 %v1171_v18 }
 0x4a1   :  { %7556 = vtanh.f32 %v1172_v49 }
 0x4a2   :  { %7558 = vtanh.f32 %v1167_v21  ;;  %v11081_v21 = vld [vmem:[#allocation31_spill] sm:$0xff] }
 0x4a3   :  { %7560 = vtanh.f32 %v1173_v47 }
 0x4aa   :  { %v7555_v53 = vpop.eup %7554 }
 0x4ab   :  { %v1177_v32 = vmul.f32 0.5, %v7555_v53  ;;  %v7557_v43 = vpop.eup %7556 }
 0x4ac   :  { %v1178_v28 = vmul.f32 0.5, %v7557_v43  ;;  %v7559_v45 = vpop.eup %7558 }
 0x4ad   :  { %v1180_v29 = vadd.f32 0.5, %v1177_v32  ;;  %v7561_v48 = vpop.eup %7560 }
 0x4ae   :  { %v1181_v35 = vadd.f32 0.5, %v1178_v28  ;;  %v1179_v30 = vmul.f32 0.5, %v7561_v48 }
 0x4af   :  { %v1185_v22 = vmul.f32 %v7559_v45, %v1180_v29 }
 0x4b0   :  { %v1184_v34 = vmul.f32 %v1181_v35, %v8808_v41  ;;  %v1182_v40 = vadd.f32 0.5, %v1179_v30  ;;  %v8868_v41 = vld [vmem:[#allocation4 + $0x2c] ss:$16 sps:$4 sm:$0xff]  }
 0x4b2   :  { %v8856_v44 = vadd.f32 %v1185_v22, %v1184_v34 }
 0x4b4   :  { %7562 = vtanh.f32 %v8856_v44 }
 0x4be   :  { %v7563_v26 = vpop.eup %7562 }
 0x4bf   :  { %v8859_v27 = vmul.f32 %v7563_v26, %v1182_v40 }
 0x4c1   :  { %v1191_v13 = vpack.c.bf16 %v8859_v27, %v8859_v27 }
 0x4c3   :  { %1230 = vmatmul.mubr.bf16.vlgmr.msra.gmra.mrb[16].mxu0 %v1191_v13  ;;  %1271 = vmatmul.mubr.bf16.vlgmr.msra.gmra.mrb[48].mxu1 %v1191_v13  ;;  %v8948_v13 = vld [vmem:[#allocation4 + $0xac] ss:$16 sps:$4 sm:$0xff]  }
 0x4c4   :  { %1306 = vmatpush1.bf16.msra.mxu0 %v8691_v8  ;;  %1347 = vmatpush1.bf16.msra.mxu1 %v8864_v15 }
 0x4c5   :  { %1307 = vmatprep.subr.bf16.mxu0 %v8695_v0  ;;  %1348 = vmatprep.subr.bf16.mxu1 %v8868_v41 }
 0x4c6   :  { %1337 = vmatprep.mubr.bf16.mxu0 %v11079_v51  ;;  %1378 = vmatprep.mubr.bf16.mxu1 %v11079_v51 }
 0x4c8   :  { %1308 = vmatpush1.bf16.msra.mxu0 %v8701_v6  ;;  %1349 = vmatpush1.bf16.msra.mxu1 %v8874_v52 }
 0x4c9   :  { %1309 = vmatprep.subr.bf16.mxu0 %v8705_v36  ;;  %1350 = vmatprep.subr.bf16.mxu1 %v8878_v33 }
 0x4cc   :  { %1310 = vmatpush1.bf16.msra.mxu0 %v8709_v42  ;;  %1351 = vmatpush1.bf16.msra.mxu1 %v8882_v55 }
 0x4cd   :  { %1311 = vmatprep.subr.bf16.mxu0 %v8713_v46  ;;  %1352 = vmatprep.subr.bf16.mxu1 %v8886_v56 }
 0x4d0   :  { %1312 = vmatpush1.bf16.msra.mxu0 %v8717_v24  ;;  %1353 = vmatpush1.bf16.msra.mxu1 %v8890_v57 }
 0x4d1   :  { %1313 = vmatprep.subr.bf16.mxu0 %v8721_v20  ;;  %1354 = vmatprep.subr.bf16.mxu1 %v8894_v58 }
 0x4d4   :  { %1314 = vmatpush1.bf16.msra.mxu0 %v8725_v11  ;;  %1355 = vmatpush1.bf16.msra.mxu1 %v8563_v62 }
 0x4d5   :  { %1315 = vmatprep.subr.bf16.mxu0 %v8729_v50  ;;  %1356 = vmatprep.subr.bf16.mxu1 %v8565_v63 }
 0x4d8   :  { %1316 = vmatpush1.bf16.msra.mxu0 %v8733_v25  ;;  %1357 = vmatpush1.bf16.msra.mxu1 %v8569_v1 }
 0x4d9   :  { %1317 = vmatprep.subr.bf16.mxu0 %v8737_v31  ;;  %1358 = vmatprep.subr.bf16.mxu1 %v8571_v2 }
 0x4dc   :  { %1318 = vmatpush1.bf16.msra.mxu0 %v8741_v17  ;;  %1359 = vmatpush1.bf16.msra.mxu1 %v8576_v3 }
 0x4dd   :  { %1319 = vmatprep.subr.bf16.mxu0 %v8745_v38  ;;  %1360 = vmatprep.subr.bf16.mxu1 %v8578_v4 }
 0x4e0   :  { %1320 = vmatpush1.bf16.msra.mxu0 %v8797_v39  ;;  %1361 = vmatpush1.bf16.msra.mxu1 %v8582_v5 }
 0x4e1   :  { %1413 = vmatprep.subr.bf16.mxu0 %v8751_v14  ;;  %1454 = vmatprep.subr.bf16.mxu1 %v8848_v54 }
 0x596   :  { %v1231_v62 = vpop.f32.mrb[16].mxu0  ;;  %v1272_v63 = vpop.f32.mrb[48].mxu1 }
 0x597   :  { %v1232_v1 = vadd.f32 %v1231_v62, %v8632_v37  ;;  %v1273_v2 = vadd.f32 %v1272_v63, %v8668_v9  ;;  %v1233_v59 = vpop.f32.mrb[17].mxu0  ;;  %v1274_v3 = vpop.f32.mrb[49].mxu1  ;;  %v8952_v62 = vld [vmem:[#allocation4 + $0xa8] ss:$16 sps:$4 sm:$0xff]   ;;  %v8956_v63 = vld [vmem:[#allocation4 + $0xcc] ss:$16 sps:$4 sm:$0xff]  }
 0x598   :  { %v1234_v61 = vadd.f32 %v1233_v59, %v11080_v60  ;;  %v1275_v4 = vadd.f32 %v1274_v3, %v11081_v21  ;;  %v1235_v19 = vpop.f32.mrb[18].mxu0  ;;  %v1276_v7 = vpop.f32.mrb[50].mxu1  ;;  %v8968_v59 = vld [vmem:[#allocation4 + $0xe8] ss:$16 sps:$4 sm:$0xff]  }
 0x599   :  { %v1279_v18 = vmul.f32 0.5, %v1232_v1  ;;  %v1236_v5 = vpop.f32.mrb[19].mxu0  ;;  %v1277_v10 = vpop.f32.mrb[51].mxu1  ;;  %v1281_v49 = vmul.f32 0.5, %v1273_v2  ;;  %v8960_v1 = vld [vmem:[#allocation4 + $0xc8] ss:$16 sps:$4 sm:$0xff]  }
 0x59a   :  { %v1280_v23 = vmul.f32 0.5, %v1234_v61  ;;  %v8964_v2 = vld [vmem:[#allocation4 + $0xec] ss:$16 sps:$4 sm:$0xff]   ;;  %v11082_v61 = vld [vmem:[#allocation23_spill] sm:$0xff] }
 0x59b   :  { %7564 = vtanh.f32 %v1279_v18  ;;  %v11084_v5 = vld [vmem:[#allocation24_spill] sm:$0xff] }
 0x59c   :  { %7566 = vtanh.f32 %v1280_v23  ;;  %v11085_v23 = vld [vmem:[#allocation33_spill] sm:$0xff] }
 0x59d   :  { %7568 = vtanh.f32 %v1275_v4  ;;  %v11083_v4 = vld [vmem:[#allocation32_spill] sm:$0xff] }
 0x59e   :  { %7570 = vtanh.f32 %v1281_v49 }
 0x5a5   :  { %v7565_v47 = vpop.eup %7564 }
 0x5a6   :  { %v1285_v37 = vmul.f32 0.5, %v7565_v47  ;;  %v7567_v53 = vpop.eup %7566 }
 0x5a7   :  { %v1286_v32 = vmul.f32 0.5, %v7567_v53  ;;  %v7569_v43 = vpop.eup %7568 }
 0x5a8   :  { %v1288_v9 = vadd.f32 0.5, %v1285_v37  ;;  %v7571_v22 = vpop.eup %7570 }
 0x5a9   :  { %v1289_v29 = vadd.f32 0.5, %v1286_v32  ;;  %v1287_v34 = vmul.f32 0.5, %v7571_v22 }
 0x5aa   :  { %v1293_v28 = vmul.f32 %v7569_v43, %v1288_v9 }
 0x5ab   :  { %v1292_v45 = vmul.f32 %v1289_v29, %v8856_v44  ;;  %v1290_v48 = vadd.f32 0.5, %v1287_v34  ;;  %v8944_v44 = vld [vmem:[#allocation4 + $0x88] ss:$16 sps:$4 sm:$0xff]  }
 0x5ad   :  { %v8918_v35 = vadd.f32 %v1293_v28, %v1292_v45 }
 0x5af   :  { %7572 = vtanh.f32 %v8918_v35 }
 0x5b9   :  { %v7573_v30 = vpop.eup %7572 }
 0x5ba   :  { %v8921_v40 = vmul.f32 %v7573_v30, %v1290_v48 }
 0x5bc   :  { %v1299_v26 = vpack.c.bf16 %v8921_v40, %v8921_v40 }
 0x5be   :  { %1338 = vmatmul.mubr.bf16.vlgmr.msra.gmra.mrb[20].mxu0 %v1299_v26  ;;  %1379 = vmatmul.mubr.bf16.vlgmr.msra.gmra.mrb[52].mxu1 %v1299_v26 }
 0x5bf   :  { %1414 = vmatpush1.bf16.msra.mxu0 %v8691_v8  ;;  %1455 = vmatpush1.bf16.msra.mxu1 %v8864_v15 }
 0x5c0   :  { %1415 = vmatprep.subr.bf16.mxu0 %v8695_v0  ;;  %1456 = vmatprep.subr.bf16.mxu1 %v8868_v41 }
 0x5c1   :  { %1445 = vmatprep.mubr.bf16.mxu0 %v11079_v51  ;;  %1486 = vmatprep.mubr.bf16.mxu1 %v11079_v51 }
 0x5c3   :  { %1416 = vmatpush1.bf16.msra.mxu0 %v8701_v6  ;;  %1457 = vmatpush1.bf16.msra.mxu1 %v8874_v52 }
 0x5c4   :  { %1417 = vmatprep.subr.bf16.mxu0 %v8705_v36  ;;  %1458 = vmatprep.subr.bf16.mxu1 %v8878_v33 }
 0x5c7   :  { %1418 = vmatpush1.bf16.msra.mxu0 %v8709_v42  ;;  %1459 = vmatpush1.bf16.msra.mxu1 %v8882_v55 }
 0x5c8   :  { %1419 = vmatprep.subr.bf16.mxu0 %v8713_v46  ;;  %1460 = vmatprep.subr.bf16.mxu1 %v8886_v56 }
 0x5cb   :  { %1420 = vmatpush1.bf16.msra.mxu0 %v8717_v24  ;;  %1461 = vmatpush1.bf16.msra.mxu1 %v8890_v57 }
 0x5cc   :  { %1421 = vmatprep.subr.bf16.mxu0 %v8721_v20  ;;  %1462 = vmatprep.subr.bf16.mxu1 %v8894_v58 }
 0x5cf   :  { %1422 = vmatpush1.bf16.msra.mxu0 %v8725_v11  ;;  %1463 = vmatpush1.bf16.msra.mxu1 %v8944_v44 }
 0x5d0   :  { %1423 = vmatprep.subr.bf16.mxu0 %v8729_v50  ;;  %1464 = vmatprep.subr.bf16.mxu1 %v8948_v13 }
 0x5d3   :  { %1424 = vmatpush1.bf16.msra.mxu0 %v8733_v25  ;;  %1465 = vmatpush1.bf16.msra.mxu1 %v8952_v62 }
 0x5d4   :  { %1425 = vmatprep.subr.bf16.mxu0 %v8737_v31  ;;  %1466 = vmatprep.subr.bf16.mxu1 %v8956_v63 }
 0x5d7   :  { %1426 = vmatpush1.bf16.msra.mxu0 %v8741_v17  ;;  %1467 = vmatpush1.bf16.msra.mxu1 %v8960_v1 }
 0x5d8   :  { %1427 = vmatprep.subr.bf16.mxu0 %v8745_v38  ;;  %1468 = vmatprep.subr.bf16.mxu1 %v8964_v2 }
 0x5db   :  { %1428 = vmatpush1.bf16.msra.mxu0 %v8797_v39  ;;  %1469 = vmatpush1.bf16.msra.mxu1 %v8968_v59 }
 0x5dc   :  { %1521 = vmatprep.subr.bf16.mxu0 %v8751_v14  ;;  %1562 = vmatprep.subr.bf16.mxu1 %v8848_v54 }
 0x691   :  { %v1339_v3 = vpop.f32.mrb[20].mxu0  ;;  %v1380_v60 = vpop.f32.mrb[52].mxu1 }
 0x692   :  { %v1340_v21 = vadd.f32 %v1339_v3, %v11082_v61  ;;  %v1381_v19 = vadd.f32 %v1380_v60, %v11083_v4  ;;  %v1341_v7 = vpop.f32.mrb[21].mxu0  ;;  %v1382_v18 = vpop.f32.mrb[53].mxu1 }
 0x693   :  { %v1342_v10 = vadd.f32 %v1341_v7, %v11084_v5  ;;  %v1383_v49 = vadd.f32 %v1382_v18, %v11085_v23  ;;  %v1343_v47 = vpop.f32.mrb[22].mxu0  ;;  %v1384_v37 = vpop.f32.mrb[54].mxu1 }
 0x694   :  { %v1387_v53 = vmul.f32 0.5, %v1340_v21  ;;  %v1344_v9 = vpop.f32.mrb[23].mxu0  ;;  %v1385_v32 = vpop.f32.mrb[55].mxu1  ;;  %v1389_v54 = vmul.f32 0.5, %v1381_v19  ;;  %v7228_v47 = vld [vmem:[#allocation6] ss:$16 sps:$4 sm:$0xff]  }
 0x695   :  { %v1388_v14 = vmul.f32 0.5, %v1342_v10  ;;  %v7231_v37 = vld [vmem:[#allocation6 + $0x8] ss:$16 sps:$4 sm:$0xff]   ;;  %v7236_v9 = vld [vmem:[#allocation6 + $0x24] ss:$16 sps:$4 sm:$0xff]  }
 0x696   :  { %7574 = vtanh.f32 %v1387_v53  ;;  %v7239_v32 = vld [vmem:[#allocation6 + $0x2c] ss:$16 sps:$4 sm:$0xff]  }
 0x697   :  { %7576 = vtanh.f32 %v1388_v14  ;;  %v7234_v14 = vld [vmem:[#allocation6 + $0x20] ss:$16 sps:$4 sm:$0xff]  }
 0x698   :  { %7578 = vtanh.f32 %v1383_v49 }
 0x699   :  { %7580 = vtanh.f32 %v1389_v54  ;;  %v7237_v54 = vld [vmem:[#allocation6 + $0x28] ss:$16 sps:$4 sm:$0xff]  }
 0x6a0   :  { %v7575_v43 = vpop.eup %7574 }
 0x6a1   :  { %v1393_v29 = vmul.f32 0.5, %v7575_v43  ;;  %v7577_v28 = vpop.eup %7576  ;;  %v7242_v43 = vld [vmem:[#allocation6 + $0x44] ss:$16 sps:$4 sm:$0xff]  }
 0x6a2   :  { %v1394_v22 = vmul.f32 0.5, %v7577_v28  ;;  %v7579_v34 = vpop.eup %7578  ;;  %v7240_v28 = vld [vmem:[#allocation6 + $0x40] ss:$16 sps:$4 sm:$0xff]  }
 0x6a3   :  { %v1396_v45 = vadd.f32 0.5, %v1393_v29  ;;  %v7581_v60 = vpop.eup %7580  ;;  %v7245_v29 = vld [vmem:[#allocation6 + $0x4c] ss:$16 sps:$4 sm:$0xff]  }
 0x6a4   :  { %v1397_v48 = vadd.f32 0.5, %v1394_v22  ;;  %v1395_v61 = vmul.f32 0.5, %v7581_v60  ;;  %v7248_v22 = vld [vmem:[#allocation6 + $0x64] ss:$16 sps:$4 sm:$0xff]   ;;  %v7252_v60 = vld [vmem:[#allocation6 + $0x80] ss:$16 sps:$4 sm:$0xff]  }
 0x6a5   :  { %v1401_v30 = vmul.f32 %v7579_v34, %v1396_v45  ;;  %v7243_v45 = vld [vmem:[#allocation6 + $0x48] ss:$16 sps:$4 sm:$0xff]   ;;  %v7251_v34 = vld [vmem:[#allocation6 + $0x6c] ss:$16 sps:$4 sm:$0xff]  }
 0x6a6   :  { %v1400_v26 = vmul.f32 %v1397_v48, %v8918_v35  ;;  %v1398_v21 = vadd.f32 0.5, %v1395_v61  ;;  %v7246_v48 = vld [vmem:[#allocation6 + $0x60] ss:$16 sps:$4 sm:$0xff]   ;;  %v7255_v61 = vld [vmem:[#allocation6 + $0x88] ss:$16 sps:$4 sm:$0xff]  }
 0x6a8   :  { %v8978_v3 = vadd.f32 %v1401_v30, %v1400_v26  ;;  %v7249_v30 = vld [vmem:[#allocation6 + $0x68] ss:$16 sps:$4 sm:$0xff]   ;;  %v7254_v26 = vld [vmem:[#allocation6 + $0x84] ss:$16 sps:$4 sm:$0xff]  }
 0x6aa   :  { %7582 = vtanh.f32 %v8978_v3 }
 0x6b4   :  { %v7583_v4 = vpop.eup %7582 }
 0x6b5   :  { %v8981_v19 = vmul.f32 %v7583_v4, %v1398_v21  ;;  %v7260_v21 = vld [vmem:[#allocation6 + $0xa4] ss:$16 sps:$4 sm:$0xff]   ;;  %v7263_v4 = vld [vmem:[#allocation6 + $0xac] ss:$16 sps:$4 sm:$0xff]  }
 0x6b7   :  { %v1407_v7 = vpack.c.bf16 %v8981_v19, %v8981_v19 }
 0x6b9   :  { %1446 = vmatmul.mubr.bf16.vlgmr.msra.gmra.mrb[24].mxu0 %v1407_v7  ;;  %1487 = vmatmul.mubr.bf16.vlgmr.msra.gmra.mrb[56].mxu1 %v1407_v7  ;;  %v7258_v7 = vld [vmem:[#allocation6 + $0xa0] ss:$16 sps:$4 sm:$0xff]  }
 0x6ba   :  { %1522 = vmatpush1.bf16.msra.mxu0 %v8691_v8  ;;  %1563 = vmatpush1.bf16.msra.mxu1 %v8864_v15  ;;  %v7230_v8 = vld [vmem:[#allocation6 + $0x4] ss:$16 sps:$4 sm:$0xff]  }
 0x6bb   :  { %1523 = vmatprep.subr.bf16.mxu0 %v8695_v0  ;;  %1564 = vmatprep.subr.bf16.mxu1 %v8868_v41  ;;  %v7233_v0 = vld [vmem:[#allocation6 + $0xc] ss:$16 sps:$4 sm:$0xff]  }
 0x6bc   :  { %1553 = vmatprep.mubr.bf16.mxu0 %v11079_v51  ;;  %1594 = vmatprep.mubr.bf16.mxu1 %v11079_v51 }
 0x6be   :  { %1524 = vmatpush1.bf16.msra.mxu0 %v8701_v6  ;;  %1565 = vmatpush1.bf16.msra.mxu1 %v8874_v52 }
 0x6bf   :  { %1525 = vmatprep.subr.bf16.mxu0 %v8705_v36  ;;  %1566 = vmatprep.subr.bf16.mxu1 %v8878_v33 }
 0x6c2   :  { %1526 = vmatpush1.bf16.msra.mxu0 %v8709_v42  ;;  %1567 = vmatpush1.bf16.msra.mxu1 %v8882_v55  ;;  %v11086_v42 = vld [vmem:[#allocation25_spill] sm:$0xff] }
 0x6c3   :  { %1527 = vmatprep.subr.bf16.mxu0 %v8713_v46  ;;  %1568 = vmatprep.subr.bf16.mxu1 %v8886_v56 }
 0x6c6   :  { %1528 = vmatpush1.bf16.msra.mxu0 %v8717_v24  ;;  %1569 = vmatpush1.bf16.msra.mxu1 %v8890_v57  ;;  %v11087_v24 = vld [vmem:[#allocation34_spill] sm:$0xff] }
 0x6c7   :  { %1529 = vmatprep.subr.bf16.mxu0 %v8721_v20  ;;  %1570 = vmatprep.subr.bf16.mxu1 %v8894_v58 }
 0x6ca   :  { %1530 = vmatpush1.bf16.msra.mxu0 %v8725_v11  ;;  %1571 = vmatpush1.bf16.msra.mxu1 %v8944_v44 }
 0x6cb   :  { %1531 = vmatprep.subr.bf16.mxu0 %v8729_v50  ;;  %1572 = vmatprep.subr.bf16.mxu1 %v8948_v13 }
 0x6ce   :  { %1532 = vmatpush1.bf16.msra.mxu0 %v8733_v25  ;;  %1573 = vmatpush1.bf16.msra.mxu1 %v8952_v62  ;;  %v11088_v25 = vld [vmem:[#allocation26_spill] sm:$0xff] }
 0x6cf   :  { %1533 = vmatprep.subr.bf16.mxu0 %v8737_v31  ;;  %1574 = vmatprep.subr.bf16.mxu1 %v8956_v63 }
 0x6d2   :  { %1534 = vmatpush1.bf16.msra.mxu0 %v8741_v17  ;;  %1575 = vmatpush1.bf16.msra.mxu1 %v8960_v1  ;;  %v11089_v17 = vld [vmem:[#allocation35_spill] sm:$0xff] }
 0x6d3   :  { %1535 = vmatprep.subr.bf16.mxu0 %v8745_v38  ;;  %1576 = vmatprep.subr.bf16.mxu1 %v8964_v2 }
 0x6d6   :  { %1536 = vmatpush1.bf16.msra.mxu0 %v8797_v39  ;;  %1577 = vmatpush1.bf16.msra.mxu1 %v8968_v59 }
 0x6d7   :  { %1877 = vmatprep.subr.bf16.mxu0 %v7230_v8  ;;  %1950 = vmatprep.subr.bf16.mxu1 %v7233_v0  ;;  %v7261_v8 = vld [vmem:[#allocation6 + $0xa8] ss:$16 sps:$4 sm:$0xff]   ;;  %v7266_v0 = vld [vmem:[#allocation6 + $0xc4] ss:$16 sps:$4 sm:$0xff]  }
 0x78c   :  { %v1447_v6 = vpop.f32.mrb[24].mxu0  ;;  %v1488_v36 = vpop.f32.mrb[56].mxu1 }
 0x78d   :  { %v1448_v46 = vadd.f32 %v1447_v6, %v11086_v42  ;;  %v1489_v20 = vadd.f32 %v1488_v36, %v11087_v24  ;;  %v1449_v11 = vpop.f32.mrb[25].mxu0  ;;  %v1490_v50 = vpop.f32.mrb[57].mxu1  ;;  %v7269_v6 = vld [vmem:[#allocation6 + $0xcc] ss:$16 sps:$4 sm:$0xff]   ;;  %v7264_v36 = vld [vmem:[#allocation6 + $0xc0] ss:$16 sps:$4 sm:$0xff]  }
 0x78e   :  { %v1450_v31 = vadd.f32 %v1449_v11, %v11088_v25  ;;  %v1491_v38 = vadd.f32 %v1490_v50, %v11089_v17  ;;  %v1451_v15 = vpop.f32.mrb[26].mxu0  ;;  %v1492_v39 = vpop.f32.mrb[58].mxu1  ;;  %v7267_v42 = vld [vmem:[#allocation6 + $0xc8] ss:$16 sps:$4 sm:$0xff]   ;;  %v7275_v24 = vld [vmem:[#allocation6 + $0xec] ss:$16 sps:$4 sm:$0xff]   ;;  %v7067_v17 = vpack.c.bf16 %v8981_v19, %v8921_v40 }
 0x78f   :  { %v1495_v41 = vmul.f32 0.5, %v1448_v46  ;;  %v1452_v52 = vpop.f32.mrb[27].mxu0  ;;  %v1493_v33 = vpop.f32.mrb[59].mxu1  ;;  %v1497_v56 = vmul.f32 0.5, %v1489_v20  ;;  %v7272_v46 = vld [vmem:[#allocation6 + $0xe4] ss:$16 sps:$4 sm:$0xff]  }
 0x790   :  { %v1496_v55 = vmul.f32 0.5, %v1450_v31  ;;  %v7270_v20 = vld [vmem:[#allocation6 + $0xe0] ss:$16 sps:$4 sm:$0xff]   ;;  %v7273_v11 = vld [vmem:[#allocation6 + $0xe8] ss:$16 sps:$4 sm:$0xff]   ;;  %v7066_v31 = vpack.c.bf16 %v8859_v27, %v8811_v16 }
 0x791   :  { %7584 = vtanh.f32 %v1495_v41  ;;  %v11090_v50 = vld [vmem:[#allocation38_spill] sm:$0xff]  ;;  %v9047_v16 = vld [vmem:[#allocation8] ss:$16 sps:$4 sm:$0xff]   ;;  %v9055_v40 = vld [vmem:[#allocation8 + $0x24] ss:$16 sps:$4 sm:$0xff]  }
 0x792   :  { %7586 = vtanh.f32 %v1496_v55  ;;  %v7065_v25 = vpack.c.bf16 %v8763_v12, %v11090_v50  ;;  %v9043_v12 = vld [vmem:[#allocation8 + $0x4] ss:$16 sps:$4 sm:$0xff]   ;;  %v9049_v27 = vld [vmem:[#allocation8 + $0x8] ss:$16 sps:$4 sm:$0xff]   ;;  %v9057_v19 = vld [vmem:[#allocation8 + $0x2c] ss:$16 sps:$4 sm:$0xff]  }
 0x793   :  { %7588 = vtanh.f32 %v1491_v38  ;;  %v9045_v38 = vld [vmem:[#allocation8 + $0xc] ss:$16 sps:$4 sm:$0xff]   ;;  %v9059_v15 = vld [vmem:[#allocation8 + $0x20] ss:$16 sps:$4 sm:$0xff]   ;;  %v9061_v39 = vld [vmem:[#allocation8 + $0x28] ss:$16 sps:$4 sm:$0xff]  }
 0x794   :  { %7590 = vtanh.f32 %v1497_v56  ;;  %v9067_v41 = vld [vmem:[#allocation8 + $0x44] ss:$16 sps:$4 sm:$0xff]   ;;  %v9069_v52 = vld [vmem:[#allocation8 + $0x4c] ss:$16 sps:$4 sm:$0xff]   ;;  %v9071_v33 = vld [vmem:[#allocation8 + $0x40] ss:$16 sps:$4 sm:$0xff]  }
 0x795   :  { %v9073_v55 = vld [vmem:[#allocation8 + $0x48] ss:$16 sps:$4 sm:$0xff]   ;;  %v9079_v56 = vld [vmem:[#allocation8 + $0x64] ss:$16 sps:$4 sm:$0xff]  }
 0x79b   :  { %v7585_v57 = vpop.eup %7584 }
 0x79c   :  { %v1501_v58 = vmul.f32 0.5, %v7585_v57  ;;  %v7587_v35 = vpop.eup %7586  ;;  %v9081_v57 = vld [vmem:[#allocation8 + $0x6c] ss:$16 sps:$4 sm:$0xff]  }
 0x79d   :  { %v1502_v13 = vmul.f32 0.5, %v7587_v35  ;;  %v7589_v62 = vpop.eup %7588  ;;  %v9085_v35 = vld [vmem:[#allocation8 + $0x68] ss:$16 sps:$4 sm:$0xff]  }
 0x79e   :  { %v1504_v44 = vadd.f32 0.5, %v1501_v58  ;;  %v7591_v18 = vpop.eup %7590  ;;  %v9083_v58 = vld [vmem:[#allocation8 + $0x60] ss:$16 sps:$4 sm:$0xff]  }
 0x79f   :  { %v1505_v63 = vadd.f32 0.5, %v1502_v13  ;;  %v1503_v5 = vmul.f32 0.5, %v7591_v18  ;;  %v9093_v13 = vld [vmem:[#allocation8 + $0x8c] ss:$16 sps:$4 sm:$0xff]   ;;  %v9107_v18 = vld [vmem:[#allocation8 + $0xa0] ss:$16 sps:$4 sm:$0xff]  }
 0x7a0   :  { %v1509_v1 = vmul.f32 %v7589_v62, %v1504_v44  ;;  %v9091_v44 = vld [vmem:[#allocation8 + $0x84] ss:$16 sps:$4 sm:$0xff]   ;;  %v9095_v62 = vld [vmem:[#allocation8 + $0x80] ss:$16 sps:$4 sm:$0xff]  }
 0x7a1   :  { %v1508_v2 = vmul.f32 %v1505_v63, %v8978_v3  ;;  %v1506_v10 = vadd.f32 0.5, %v1503_v5  ;;  %v7257_v3 = vld [vmem:[#allocation6 + $0x8c] ss:$16 sps:$4 sm:$0xff]   ;;  %v9097_v63 = vld [vmem:[#allocation8 + $0x88] ss:$16 sps:$4 sm:$0xff]  }
 0x7a2   :  { %v9109_v5 = vld [vmem:[#allocation8 + $0xa8] ss:$16 sps:$4 sm:$0xff]  }
 0x7a3   :  { %v9022_v59 = vadd.f32 %v1509_v1, %v1508_v2  ;;  %v9103_v1 = vld [vmem:[#allocation8 + $0xa4] ss:$16 sps:$4 sm:$0xff]   ;;  %v9105_v2 = vld [vmem:[#allocation8 + $0xac] ss:$16 sps:$4 sm:$0xff]  }
 0x7a5   :  { %7592 = vtanh.f32 %v9022_v59 }
 0x7af   :  { %v7593_v23 = vpop.eup %7592 }
 0x7b0   :  { %v9025_v49 = vmul.f32 %v7593_v23, %v1506_v10  ;;  %v9115_v10 = vld [vmem:[#allocation8 + $0xc4] ss:$16 sps:$4 sm:$0xff]   ;;  %v9117_v23 = vld [vmem:[#allocation8 + $0xcc] ss:$16 sps:$4 sm:$0xff]  }
 0x7b2   :  { %v1515_v53 = vpack.c.bf16 %v9025_v49, %v9025_v49 }
 0x7b4   :  { %1554 = vmatmul.mubr.bf16.vlgmr.msra.gmra.mrb[28].mxu0 %v1515_v53  ;;  %1595 = vmatmul.mubr.bf16.vlgmr.msra.gmra.mrb[60].mxu1 %v1515_v53  ;;  %v9127_v53 = vld [vmem:[#allocation8 + $0xe4] ss:$16 sps:$4 sm:$0xff]  }
 0x7b5   :  { %1878 = vmatpush1.bf16.msra.mxu0 %v7228_v47  ;;  %1951 = vmatpush1.bf16.msra.mxu1 %v7231_v37  ;;  %v9119_v47 = vld [vmem:[#allocation8 + $0xc0] ss:$16 sps:$4 sm:$0xff]   ;;  %v9121_v37 = vld [vmem:[#allocation8 + $0xc8] ss:$16 sps:$4 sm:$0xff]  }
 0x7b6   :  { %1879 = vmatprep.subr.bf16.mxu0 %v7236_v9  ;;  %1952 = vmatprep.subr.bf16.mxu1 %v7239_v32  ;;  %v9129_v9 = vld [vmem:[#allocation8 + $0xec] ss:$16 sps:$4 sm:$0xff]   ;;  %v9131_v32 = vld [vmem:[#allocation8 + $0xe0] ss:$16 sps:$4 sm:$0xff]  }
 0x7b7   :  { %1909 = vmatprep.mubr.bf16.mxu0 %v11079_v51  ;;  %1982 = vmatprep.mubr.bf16.mxu1 %v11079_v51 }
 0x7b9   :  { %1880 = vmatpush1.bf16.msra.mxu0 %v7234_v14  ;;  %1953 = vmatpush1.bf16.msra.mxu1 %v7237_v54  ;;  %v9133_v14 = vld [vmem:[#allocation8 + $0xe8] ss:$16 sps:$4 sm:$0xff]  }
 0x7ba   :  { %1881 = vmatprep.subr.bf16.mxu0 %v7242_v43  ;;  %1954 = vmatprep.subr.bf16.mxu1 %v7245_v29  ;;  %v11091_v29 = vld [vmem:[#allocation27_spill] sm:$0xff] }
 0x7bd   :  { %1882 = vmatpush1.bf16.msra.mxu0 %v7240_v28  ;;  %1955 = vmatpush1.bf16.msra.mxu1 %v7243_v45  ;;  %v11092_v45 = vld [vmem:[#allocation36_spill] sm:$0xff] }
 0x7be   :  { %1883 = vmatprep.subr.bf16.mxu0 %v7248_v22  ;;  %1956 = vmatprep.subr.bf16.mxu1 %v7251_v34 }
 0x7c1   :  { %1884 = vmatpush1.bf16.msra.mxu0 %v7246_v48  ;;  %1957 = vmatpush1.bf16.msra.mxu1 %v7249_v30  ;;  %v11093_v30 = vld [vmem:[#allocation28_spill] sm:$0xff] }
 0x7c2   :  { %1885 = vmatprep.subr.bf16.mxu0 %v7254_v26  ;;  %1958 = vmatprep.subr.bf16.mxu1 %v7257_v3  ;;  %v11094_v3 = vld [vmem:[#allocation37_spill] sm:$0xff] }
 0x7c5   :  { %1886 = vmatpush1.bf16.msra.mxu0 %v7252_v60  ;;  %1959 = vmatpush1.bf16.msra.mxu1 %v7255_v61 }
 0x7c6   :  { %1887 = vmatprep.subr.bf16.mxu0 %v7260_v21  ;;  %1960 = vmatprep.subr.bf16.mxu1 %v7263_v4 }
 0x7c9   :  { %1888 = vmatpush1.bf16.msra.mxu0 %v7258_v7  ;;  %1961 = vmatpush1.bf16.msra.mxu1 %v7261_v8 }
 0x7ca   :  { %1889 = vmatprep.subr.bf16.mxu0 %v7266_v0  ;;  %1962 = vmatprep.subr.bf16.mxu1 %v7269_v6 }
 0x7cd   :  { %1890 = vmatpush1.bf16.msra.mxu0 %v7264_v36  ;;  %1963 = vmatpush1.bf16.msra.mxu1 %v7267_v42 }
 0x7ce   :  { %1891 = vmatprep.subr.bf16.mxu0 %v7272_v46  ;;  %1964 = vmatprep.subr.bf16.mxu1 %v7275_v24 }
 0x7d1   :  { %1892 = vmatpush1.bf16.msra.mxu0 %v7270_v20  ;;  %1965 = vmatpush1.bf16.msra.mxu1 %v7273_v11 }
 0x7d2   :  { %2251 = vmatprep.subr.bf16.mxu0 %v9043_v12  ;;  %2292 = vmatprep.subr.bf16.mxu1 %v9045_v38 }
 0x7d4   :  { %1910 = vmatmul.mubr.bf16.vlgmr.msra.gmra.mrb[32].mxu0 %v7065_v25  ;;  %1983 = vmatmul.mubr.bf16.vlgmr.msra.gmra.mrb[64].mxu1 %v7065_v25 }
 0x7d5   :  { %1919 = vmatprep.mubr.bf16.mxu0 %v11079_v51  ;;  %1992 = vmatprep.mubr.bf16.mxu1 %v11079_v51 }
 0x7d6   :  { %2252 = vmatpush1.bf16.msra.mxu0 %v9047_v16  ;;  %2293 = vmatpush1.bf16.msra.mxu1 %v9049_v27 }
 0x7d7   :  { %2253 = vmatprep.subr.bf16.mxu0 %v9055_v40  ;;  %2294 = vmatprep.subr.bf16.mxu1 %v9057_v19 }
 0x7da   :  { %2254 = vmatpush1.bf16.msra.mxu0 %v9059_v15  ;;  %2295 = vmatpush1.bf16.msra.mxu1 %v9061_v39 }
 0x7db   :  { %2255 = vmatprep.subr.bf16.mxu0 %v9067_v41  ;;  %2296 = vmatprep.subr.bf16.mxu1 %v9069_v52 }
 0x7dc   :  { %1920 = vmatmul.mubr.bf16.gmra.mrb[36].mxu0 %v7066_v31  ;;  %1993 = vmatmul.mubr.bf16.gmra.mrb[68].mxu1 %v7066_v31 }
 0x7dd   :  { %1929 = vmatprep.mubr.bf16.mxu0 %v11079_v51  ;;  %2002 = vmatprep.mubr.bf16.mxu1 %v11079_v51 }
 0x7de   :  { %2256 = vmatpush1.bf16.msra.mxu0 %v9071_v33  ;;  %2297 = vmatpush1.bf16.msra.mxu1 %v9073_v55 }
 0x7df   :  { %2257 = vmatprep.subr.bf16.mxu0 %v9079_v56  ;;  %2298 = vmatprep.subr.bf16.mxu1 %v9081_v57 }
 0x7e2   :  { %2258 = vmatpush1.bf16.msra.mxu0 %v9083_v58  ;;  %2299 = vmatpush1.bf16.msra.mxu1 %v9085_v35 }
 0x7e3   :  { %2259 = vmatprep.subr.bf16.mxu0 %v9091_v44  ;;  %2300 = vmatprep.subr.bf16.mxu1 %v9093_v13 }
 0x7e4   :  { %1930 = vmatmul.mubr.bf16.gmra.mrb[40].mxu0 %v7067_v17  ;;  %2003 = vmatmul.mubr.bf16.gmra.mrb[72].mxu1 %v7067_v17 }
 0x7e5   :  { %1939 = vmatprep.mubr.bf16.mxu0 %v11079_v51  ;;  %2012 = vmatprep.mubr.bf16.mxu1 %v11079_v51 }
 0x7e6   :  { %2260 = vmatpush1.bf16.msra.mxu0 %v9095_v62  ;;  %2301 = vmatpush1.bf16.msra.mxu1 %v9097_v63 }
 0x7e7   :  { %2261 = vmatprep.subr.bf16.mxu0 %v9103_v1  ;;  %2302 = vmatprep.subr.bf16.mxu1 %v9105_v2 }
 0x7ea   :  { %2262 = vmatpush1.bf16.msra.mxu0 %v9107_v18  ;;  %2303 = vmatpush1.bf16.msra.mxu1 %v9109_v5 }
 0x7eb   :  { %2263 = vmatprep.subr.bf16.mxu0 %v9115_v10  ;;  %2304 = vmatprep.subr.bf16.mxu1 %v9117_v23 }
 0x7ee   :  { %2264 = vmatpush1.bf16.msra.mxu0 %v9119_v47  ;;  %2305 = vmatpush1.bf16.msra.mxu1 %v9121_v37 }
 0x7ef   :  { %2265 = vmatprep.subr.bf16.mxu0 %v9127_v53  ;;  %2306 = vmatprep.subr.bf16.mxu1 %v9129_v9 }
 0x7f2   :  { %2266 = vmatpush1.bf16.msra.mxu0 %v9131_v32  ;;  %2307 = vmatpush1.bf16.msra.mxu1 %v9133_v14 }
 0x7f3   :  { %2357 = vmatprep.subr.bf16.mxu0 %v9043_v12  ;;  %2398 = vmatprep.subr.bf16.mxu1 %v9045_v38 }
 0x887   :  { %v1555_v54 = vpop.f32.mrb[28].mxu0  ;;  %v1596_v43 = vpop.f32.mrb[60].mxu1 }
 0x888   :  { %v1556_v28 = vadd.f32 %v1555_v54, %v11091_v29  ;;  %v1597_v22 = vadd.f32 %v1596_v43, %v11092_v45  ;;  %v1557_v34 = vpop.f32.mrb[29].mxu0  ;;  %v1598_v48 = vpop.f32.mrb[61].mxu1 }
 0x889   :  { %v1558_v26 = vadd.f32 %v1557_v34, %v11093_v30  ;;  %v1599_v60 = vadd.f32 %v1598_v48, %v11094_v3  ;;  %v1559_v61 = vpop.f32.mrb[30].mxu0  ;;  %v1600_v21 = vpop.f32.mrb[62].mxu1 }
 0x88a   :  { %v1603_v4 = vmul.f32 0.5, %v1556_v28  ;;  %v1560_v7 = vpop.f32.mrb[31].mxu0  ;;  %v1601_v8 = vpop.f32.mrb[63].mxu1  ;;  %v1605_v6 = vmul.f32 0.5, %v1597_v22 }
 0x88b   :  { %v1604_v0 = vmul.f32 0.5, %v1558_v26 }
 0x88c   :  { %7594 = vtanh.f32 %v1603_v4 }
 0x88d   :  { %7596 = vtanh.f32 %v1604_v0 }
 0x88e   :  { %7598 = vtanh.f32 %v1599_v60 }
 0x88f   :  { %7600 = vtanh.f32 %v1605_v6 }
 0x896   :  { %v7595_v36 = vpop.eup %7594 }
 0x897   :  { %v1609_v42 = vmul.f32 0.5, %v7595_v36  ;;  %v7597_v46 = vpop.eup %7596 }
 0x898   :  { %v1610_v20 = vmul.f32 0.5, %v7597_v46  ;;  %v7599_v11 = vpop.eup %7598 }
 0x899   :  { %v1612_v24 = vadd.f32 0.5, %v1609_v42  ;;  %v7601_v54 = vpop.eup %7600 }
 0x89a   :  { %v1613_v50 = vadd.f32 0.5, %v1610_v20  ;;  %v1611_v43 = vmul.f32 0.5, %v7601_v54 }
 0x89b   :  { %v1617_v25 = vmul.f32 %v7599_v11, %v1612_v24 }
 0x89c   :  { %v1616_v31 = vmul.f32 %v1613_v50, %v9022_v59  ;;  %v1614_v30 = vadd.f32 0.5, %v1611_v43 }
 0x89e   :  { %v1618_v17 = vadd.f32 %v1617_v25, %v1616_v31 }
 0x8a0   :  { %7602 = vtanh.f32 %v1618_v17  ;;  %v1671_v17 = vld [vmem:[%s11037_s6] sm:$0xf] }
 0x8a7   :  { %v9146_v29 = vpop.f32.mrb[32].mxu0  ;;  %v9148_v28 = vpop.f32.mrb[64].mxu1 }
 0x8a8   :  { %v9150_v45 = vpop.f32.mrb[33].mxu0  ;;  %v9152_v22 = vpop.f32.mrb[65].mxu1 }
 0x8a9   :  { %v9154_v34 = vpop.f32.mrb[34].mxu0  ;;  %v9156_v48 = vpop.f32.mrb[66].mxu1 }
 0x8aa   :  { %v9158_v26 = vpop.f32.mrb[35].mxu0  ;;  %v9160_v59 = vpop.f32.mrb[67].mxu1 }
 0x8ab   :  { %v7603_v3 = vpop.eup %7602 }
 0x8ac   :  { %v1620_v60 = vmul.f32 %v7603_v3, %v1614_v30 }
 0x8ae   :  { %v7068_v61 = vpack.c.bf16 %v1620_v60, %v9025_v49 }
 0x8af   :  { %v9163_v21 = vpop.f32.mrb[36].mxu0  ;;  %v9165_v4 = vpop.f32.mrb[68].mxu1 }
 0x8b0   :  { %11095 = vst [vmem:[#allocation22_spill] sm:$0xff] %v9163_v21  ;;  %11096 = vst [vmem:[#allocation31_spill] sm:$0xff] %v9165_v4  ;;  %v9167_v7 = vpop.f32.mrb[37].mxu0  ;;  %1940 = vmatmul.mubr.bf16.gmra.mrb[44].mxu0 %v7068_v61  ;;  %v9169_v8 = vpop.f32.mrb[69].mxu1  ;;  %2013 = vmatmul.mubr.bf16.gmra.mrb[76].mxu1 %v7068_v61 }
 0x8b1   :  { %11097 = vst [vmem:[#allocation23_spill] sm:$0xff] %v9167_v7  ;;  %11098 = vst [vmem:[#allocation32_spill] sm:$0xff] %v9169_v8  ;;  %v9171_v0 = vpop.f32.mrb[38].mxu0  ;;  %v9173_v6 = vpop.f32.mrb[70].mxu1  ;;  %2283 = vmatprep.mubr.bf16.mxu0 %v11079_v51  ;;  %2324 = vmatprep.mubr.bf16.mxu1 %v11079_v51 }
 0x8b2   :  { %11099 = vst [vmem:[#allocation24_spill] sm:$0xff] %v9171_v0  ;;  %11100 = vst [vmem:[#allocation33_spill] sm:$0xff] %v9173_v6  ;;  %v9177_v36 = vpop.f32.mrb[39].mxu0  ;;  %v9179_v49 = vpop.f32.mrb[71].mxu1 }
 0x8b3   :  { %11101 = vst [vmem:[#allocation25_spill] sm:$0xff] %v9177_v36  ;;  %11102 = vst [vmem:[#allocation34_spill] sm:$0xff] %v9179_v49 }
 0x8b7   :  { %v9181_v42 = vpop.f32.mrb[40].mxu0  ;;  %v9183_v46 = vpop.f32.mrb[72].mxu1 }
 0x8b8   :  { %11103 = vst [vmem:[#allocation26_spill] sm:$0xff] %v9181_v42  ;;  %11104 = vst [vmem:[#allocation35_spill] sm:$0xff] %v9183_v46  ;;  %v9185_v24 = vpop.f32.mrb[41].mxu0  ;;  %v9187_v20 = vpop.f32.mrb[73].mxu1  ;;  %2284 = vmatmul.mubr.bf16.vlgmr.msra.gmra.mrb[48].mxu0 %v11079_v51  ;;  %2325 = vmatmul.mubr.bf16.vlgmr.msra.gmra.mrb[80].mxu1 %v11079_v51 }
 0x8b9   :  { %11105 = vst [vmem:[#allocation38_spill] sm:$0xff] %v9185_v24  ;;  %11106 = vst [vmem:[#allocation27_spill] sm:$0xff] %v9187_v20  ;;  %v9191_v11 = vpop.f32.mrb[42].mxu0  ;;  %v9193_v50 = vpop.f32.mrb[74].mxu1  ;;  %2358 = vmatpush1.bf16.msra.mxu0 %v9047_v16  ;;  %2399 = vmatpush1.bf16.msra.mxu1 %v9049_v27 }
 0x8ba   :  { %11107 = vst [vmem:[#allocation36_spill] sm:$0xff] %v9191_v11  ;;  %11108 = vst [vmem:[#allocation28_spill] sm:$0xff] %v9193_v50  ;;  %v9197_v25 = vpop.f32.mrb[43].mxu0  ;;  %v9199_v31 = vpop.f32.mrb[75].mxu1  ;;  %2359 = vmatprep.subr.bf16.mxu0 %v9055_v40  ;;  %2400 = vmatprep.subr.bf16.mxu1 %v9057_v19  ;;  %v11118_v50 = vld [vmem:[#allocation29_spill] sm:$0xff] }
 0x8bb   :  { %11109 = vst [vmem:[#allocation37_spill] sm:$0xff] %v9197_v25  ;;  %11110 = vst [vmem:[#allocation39_spill] sm:$0xff] %v9199_v31  ;;  %2389 = vmatprep.mubr.bf16.mxu0 %v11079_v51  ;;  %2430 = vmatprep.mubr.bf16.mxu1 %v11079_v51  ;;  %v11117_v31 = vld [vmem:[#allocation20_spill] sm:$0xff]  ;;  %v9252_v11 = vrot.slane %v1671_v17, %v11118_v50 }
 0x8bc   :  { %v9249_v25 = vrot.slane %v1671_v17, %v11117_v31 }
 0x8bd   :  { %2360 = vmatpush1.bf16.msra.mxu0 %v9059_v15  ;;  %2401 = vmatpush1.bf16.msra.mxu1 %v9061_v39  ;;  %v1985_v31 = vadd.f32 %v9148_v28, %v9252_v11 }
 0x8be   :  { %2361 = vmatprep.subr.bf16.mxu0 %v9067_v41  ;;  %2402 = vmatprep.subr.bf16.mxu1 %v9069_v52 }
 0x8c1   :  { %2362 = vmatpush1.bf16.msra.mxu0 %v9071_v33  ;;  %2403 = vmatpush1.bf16.msra.mxu1 %v9073_v55 }
 0x8c2   :  { %2363 = vmatprep.subr.bf16.mxu0 %v9079_v56  ;;  %2404 = vmatprep.subr.bf16.mxu1 %v9081_v57 }
 0x8c5   :  { %2364 = vmatpush1.bf16.msra.mxu0 %v9083_v58  ;;  %2405 = vmatpush1.bf16.msra.mxu1 %v9085_v35 }
 0x8c6   :  { %2365 = vmatprep.subr.bf16.mxu0 %v9091_v44  ;;  %2406 = vmatprep.subr.bf16.mxu1 %v9093_v13 }
 0x8c9   :  { %2366 = vmatpush1.bf16.msra.mxu0 %v9095_v62  ;;  %2407 = vmatpush1.bf16.msra.mxu1 %v9097_v63 }
 0x8ca   :  { %2367 = vmatprep.subr.bf16.mxu0 %v9103_v1  ;;  %2408 = vmatprep.subr.bf16.mxu1 %v9105_v2 }
 0x8cd   :  { %2368 = vmatpush1.bf16.msra.mxu0 %v9107_v18  ;;  %2409 = vmatpush1.bf16.msra.mxu1 %v9109_v5 }
 0x8ce   :  { %2369 = vmatprep.subr.bf16.mxu0 %v9115_v10  ;;  %2410 = vmatprep.subr.bf16.mxu1 %v9117_v23 }
 0x8d1   :  { %2370 = vmatpush1.bf16.msra.mxu0 %v9119_v47  ;;  %2411 = vmatpush1.bf16.msra.mxu1 %v9121_v37 }
 0x8d2   :  { %2371 = vmatprep.subr.bf16.mxu0 %v9127_v53  ;;  %2412 = vmatprep.subr.bf16.mxu1 %v9129_v9 }
 0x8d5   :  { %2372 = vmatpush1.bf16.msra.mxu0 %v9131_v32  ;;  %2413 = vmatpush1.bf16.msra.mxu1 %v9133_v14 }
 0x8d6   :  { %2463 = vmatprep.subr.bf16.mxu0 %v9043_v12  ;;  %2504 = vmatprep.subr.bf16.mxu1 %v9045_v38 }
 0x983   :  { %v9236_v54 = vpop.f32.mrb[44].mxu0  ;;  %v9238_v43 = vpop.f32.mrb[76].mxu1 }
 0x984   :  { %11111 = vst [vmem:[#allocation40_spill] sm:$0xff] %v9236_v54  ;;  %11112 = vst [vmem:[#allocation41_spill] sm:$0xff] %v9238_v43  ;;  %v9240_v30 = vpop.f32.mrb[45].mxu0  ;;  %v9242_v3 = vpop.f32.mrb[77].mxu1  ;;  %v11121_v54 = vld [vmem:[#allocation21_spill] sm:$0xff] }
 0x985   :  { %11113 = vst [vmem:[#allocation42_spill] sm:$0xff] %v9240_v30  ;;  %11114 = vst [vmem:[#allocation43_spill] sm:$0xff] %v9242_v3  ;;  %v9244_v60 = vpop.f32.mrb[46].mxu0  ;;  %v9246_v61 = vpop.f32.mrb[78].mxu1  ;;  %v9259_v43 = vrot.slane %v1671_v17, %v11121_v54  ;;  %v11122_v30 = vld [vmem:[#allocation30_spill] sm:$0xff] }
 0x986   :  { %11115 = vst [vmem:[#allocation44_spill] sm:$0xff] %v9244_v60  ;;  %11116 = vst [vmem:[#allocation45_spill] sm:$0xff] %v9246_v61  ;;  %v9254_v20 = vpop.f32.mrb[47].mxu0  ;;  %v9256_v24 = vpop.f32.mrb[79].mxu1  ;;  %v9262_v46 = vrot.slane %v1671_v17, %v11122_v30  ;;  %v1912_v60 = vadd.f32 %v9146_v29, %v9249_v25 }
 0x987   :  { %11119 = vst [vmem:[#allocation46_spill] sm:$0xff] %v9254_v20  ;;  %11120 = vst [vmem:[#allocation47_spill] sm:$0xff] %v9256_v24  ;;  %v1914_v50 = vadd.f32 %v9150_v45, %v9259_v43 }
 0x988   :  { %v1987_v20 = vadd.f32 %v9152_v22, %v9262_v46 }
 0x98b   :  { %v2285_v61 = vpop.f32.mrb[48].mxu0  ;;  %v2326_v24 = vpop.f32.mrb[80].mxu1 }
 0x98c   :  { %v2286_v3 = vadd.f32 %v2285_v61, %v1912_v60  ;;  %v2327_v54 = vadd.f32 %v2326_v24, %v1985_v31  ;;  %v2287_v42 = vpop.f32.mrb[49].mxu0  ;;  %v2328_v49 = vpop.f32.mrb[81].mxu1 }
 0x98d   :  { %v2288_v17 = vadd.f32 %v2287_v42, %v1914_v50  ;;  %v2329_v30 = vadd.f32 %v2328_v49, %v1987_v20  ;;  %v2289_v36 = vpop.f32.mrb[50].mxu0  ;;  %v2330_v6 = vpop.f32.mrb[82].mxu1 }
 0x98e   :  { %v2333_v29 = vmul.f32 0.5, %v2286_v3  ;;  %v2290_v0 = vpop.f32.mrb[51].mxu0  ;;  %v2331_v8 = vpop.f32.mrb[83].mxu1  ;;  %v2335_v45 = vmul.f32 0.5, %v2327_v54  ;;  %v1918_v54 = vadd.f32 %v9158_v26, %v9259_v43 }
 0x98f   :  { %v2334_v28 = vmul.f32 0.5, %v2288_v17 }
 0x990   :  { %7604 = vtanh.f32 %v2333_v29 }
 0x991   :  { %7606 = vtanh.f32 %v2334_v28 }
 0x992   :  { %7608 = vtanh.f32 %v2329_v30  ;;  %v1991_v30 = vadd.f32 %v9160_v59, %v9262_v46 }
 0x993   :  { %7610 = vtanh.f32 %v2335_v45 }
 0x99a   :  { %v7605_v7 = vpop.eup %7604 }
 0x99b   :  { %v2339_v22 = vmul.f32 0.5, %v7605_v7  ;;  %v7607_v4 = vpop.eup %7606 }
 0x99c   :  { %v2340_v24 = vmul.f32 0.5, %v7607_v4  ;;  %v7609_v31 = vpop.eup %7608  ;;  %v1989_v4 = vadd.f32 %v9156_v48, %v9252_v11 }
 0x99d   :  { %v2342_v21 = vadd.f32 0.5, %v2339_v22  ;;  %v7611_v8 = vpop.eup %7610 }
 0x99e   :  { %v2343_v60 = vadd.f32 0.5, %v2340_v24  ;;  %v2341_v0 = vmul.f32 0.5, %v7611_v8 }
 0x99f   :  { %v2347_v42 = vmul.f32 %v7609_v31, %v2342_v21  ;;  %v1916_v21 = vadd.f32 %v9154_v34, %v9249_v25 }
 0x9a0   :  { %v2346_v49 = vmul.f32 0.0, %v2343_v60  ;;  %v2344_v6 = vadd.f32 0.5, %v2341_v0 }
 0x9a2   :  { %v9272_v36 = vadd.f32 %v2347_v42, %v2346_v49 }
 0x9a4   :  { %7612 = vtanh.f32 %v9272_v36 }
 0x9ae   :  { %v7613_v20 = vpop.eup %7612 }
 0x9af   :  { %v9275_v50 = vmul.f32 %v7613_v20, %v2344_v6 }
 0x9b1   :  { %v2352_v7 = vpack.c.bf16 %v9275_v50, %v9275_v50 }
 0x9b3   :  { %2390 = vmatmul.mubr.bf16.vlgmr.msra.gmra.mrb[52].mxu0 %v2352_v7  ;;  %2431 = vmatmul.mubr.bf16.vlgmr.msra.gmra.mrb[84].mxu1 %v2352_v7 }
 0x9b4   :  { %2464 = vmatpush1.bf16.msra.mxu0 %v9047_v16  ;;  %2505 = vmatpush1.bf16.msra.mxu1 %v9049_v27 }
 0x9b5   :  { %2465 = vmatprep.subr.bf16.mxu0 %v9055_v40  ;;  %2506 = vmatprep.subr.bf16.mxu1 %v9057_v19 }
 0x9b6   :  { %2495 = vmatprep.mubr.bf16.mxu0 %v11079_v51  ;;  %2536 = vmatprep.mubr.bf16.mxu1 %v11079_v51 }
 0x9b8   :  { %2466 = vmatpush1.bf16.msra.mxu0 %v9059_v15  ;;  %2507 = vmatpush1.bf16.msra.mxu1 %v9061_v39 }
 0x9b9   :  { %2467 = vmatprep.subr.bf16.mxu0 %v9067_v41  ;;  %2508 = vmatprep.subr.bf16.mxu1 %v9069_v52 }
 0x9bc   :  { %2468 = vmatpush1.bf16.msra.mxu0 %v9071_v33  ;;  %2509 = vmatpush1.bf16.msra.mxu1 %v9073_v55 }
 0x9bd   :  { %2469 = vmatprep.subr.bf16.mxu0 %v9079_v56  ;;  %2510 = vmatprep.subr.bf16.mxu1 %v9081_v57 }
 0x9c0   :  { %2470 = vmatpush1.bf16.msra.mxu0 %v9083_v58  ;;  %2511 = vmatpush1.bf16.msra.mxu1 %v9085_v35 }
 0x9c1   :  { %2471 = vmatprep.subr.bf16.mxu0 %v9091_v44  ;;  %2512 = vmatprep.subr.bf16.mxu1 %v9093_v13 }
 0x9c4   :  { %2472 = vmatpush1.bf16.msra.mxu0 %v9095_v62  ;;  %2513 = vmatpush1.bf16.msra.mxu1 %v9097_v63 }
 0x9c5   :  { %2473 = vmatprep.subr.bf16.mxu0 %v9103_v1  ;;  %2514 = vmatprep.subr.bf16.mxu1 %v9105_v2 }
 0x9c8   :  { %2474 = vmatpush1.bf16.msra.mxu0 %v9107_v18  ;;  %2515 = vmatpush1.bf16.msra.mxu1 %v9109_v5 }
 0x9c9   :  { %2475 = vmatprep.subr.bf16.mxu0 %v9115_v10  ;;  %2516 = vmatprep.subr.bf16.mxu1 %v9117_v23 }
 0x9cc   :  { %2476 = vmatpush1.bf16.msra.mxu0 %v9119_v47  ;;  %2517 = vmatpush1.bf16.msra.mxu1 %v9121_v37 }
 0x9cd   :  { %2477 = vmatprep.subr.bf16.mxu0 %v9127_v53  ;;  %2518 = vmatprep.subr.bf16.mxu1 %v9129_v9 }
 0x9d0   :  { %2478 = vmatpush1.bf16.msra.mxu0 %v9131_v32  ;;  %2519 = vmatpush1.bf16.msra.mxu1 %v9133_v14 }
 0x9d1   :  { %2569 = vmatprep.subr.bf16.mxu0 %v9043_v12  ;;  %2610 = vmatprep.subr.bf16.mxu1 %v9045_v38 }
 0xa86   :  { %v2391_v3 = vpop.f32.mrb[52].mxu0  ;;  %v2432_v61 = vpop.f32.mrb[84].mxu1 }
 0xa87   :  { %v2392_v17 = vadd.f32 %v2391_v3, %v1916_v21  ;;  %v2433_v29 = vadd.f32 %v2432_v61, %v1989_v4  ;;  %v2393_v28 = vpop.f32.mrb[53].mxu0  ;;  %v2434_v45 = vpop.f32.mrb[85].mxu1 }
 0xa88   :  { %v2394_v22 = vadd.f32 %v2393_v28, %v1918_v54  ;;  %v2435_v24 = vadd.f32 %v2434_v45, %v1991_v30  ;;  %v2395_v31 = vpop.f32.mrb[54].mxu0  ;;  %v2436_v60 = vpop.f32.mrb[86].mxu1 }
 0xa89   :  { %v2439_v34 = vmul.f32 0.5, %v2392_v17  ;;  %v2396_v42 = vpop.f32.mrb[55].mxu0  ;;  %v2437_v49 = vpop.f32.mrb[87].mxu1  ;;  %v2441_v26 = vmul.f32 0.5, %v2433_v29  ;;  %v11125_v60 = vld [vmem:[#allocation23_spill] sm:$0xff] }
 0xa8a   :  { %v2440_v48 = vmul.f32 0.5, %v2394_v22  ;;  %v11126_v42 = vld [vmem:[#allocation32_spill] sm:$0xff] }
 0xa8b   :  { %7614 = vtanh.f32 %v2439_v34  ;;  %v1924_v34 = vadd.f32 %v11125_v60, %v9259_v43  ;;  %v1997_v49 = vadd.f32 %v11126_v42, %v9262_v46 }
 0xa8c   :  { %7616 = vtanh.f32 %v2440_v48 }
 0xa8d   :  { %7618 = vtanh.f32 %v2435_v24  ;;  %v11124_v24 = vld [vmem:[#allocation31_spill] sm:$0xff] }
 0xa8e   :  { %7620 = vtanh.f32 %v2441_v26  ;;  %v1995_v31 = vadd.f32 %v11124_v24, %v9252_v11 }
 0xa95   :  { %v7615_v8 = vpop.eup %7614 }
 0xa96   :  { %v2445_v59 = vmul.f32 0.5, %v7615_v8  ;;  %v7617_v0 = vpop.eup %7616 }
 0xa97   :  { %v2446_v20 = vmul.f32 0.5, %v7617_v0  ;;  %v7619_v7 = vpop.eup %7618 }
 0xa98   :  { %v2448_v6 = vadd.f32 0.5, %v2445_v59  ;;  %v7621_v3 = vpop.eup %7620 }
 0xa99   :  { %v2449_v21 = vadd.f32 0.5, %v2446_v20  ;;  %v2447_v61 = vmul.f32 0.5, %v7621_v3 }
 0xa9a   :  { %v2453_v4 = vmul.f32 %v7619_v7, %v2448_v6 }
 0xa9b   :  { %v2452_v54 = vmul.f32 %v2449_v21, %v9272_v36  ;;  %v2450_v17 = vadd.f32 0.5, %v2447_v61  ;;  %v11123_v36 = vld [vmem:[#allocation22_spill] sm:$0xff] }
 0xa9c   :  { %v1922_v22 = vadd.f32 %v11123_v36, %v9249_v25 }
 0xa9d   :  { %v9322_v30 = vadd.f32 %v2453_v4, %v2452_v54 }
 0xa9f   :  { %7622 = vtanh.f32 %v9322_v30 }
 0xaa9   :  { %v7623_v28 = vpop.eup %7622 }
 0xaaa   :  { %v9325_v29 = vmul.f32 %v7623_v28, %v2450_v17 }
 0xaac   :  { %v2458_v45 = vpack.c.bf16 %v9325_v29, %v9325_v29 }
 0xaae   :  { %2496 = vmatmul.mubr.bf16.vlgmr.msra.gmra.mrb[56].mxu0 %v2458_v45  ;;  %2537 = vmatmul.mubr.bf16.vlgmr.msra.gmra.mrb[88].mxu1 %v2458_v45 }
 0xaaf   :  { %2570 = vmatpush1.bf16.msra.mxu0 %v9047_v16  ;;  %2611 = vmatpush1.bf16.msra.mxu1 %v9049_v27 }
 0xab0   :  { %2571 = vmatprep.subr.bf16.mxu0 %v9055_v40  ;;  %2612 = vmatprep.subr.bf16.mxu1 %v9057_v19 }
 0xab1   :  { %2601 = vmatprep.mubr.bf16.mxu0 %v11079_v51  ;;  %2642 = vmatprep.mubr.bf16.mxu1 %v11079_v51 }
 0xab3   :  { %2572 = vmatpush1.bf16.msra.mxu0 %v9059_v15  ;;  %2613 = vmatpush1.bf16.msra.mxu1 %v9061_v39 }
 0xab4   :  { %2573 = vmatprep.subr.bf16.mxu0 %v9067_v41  ;;  %2614 = vmatprep.subr.bf16.mxu1 %v9069_v52 }
 0xab7   :  { %2574 = vmatpush1.bf16.msra.mxu0 %v9071_v33  ;;  %2615 = vmatpush1.bf16.msra.mxu1 %v9073_v55 }
 0xab8   :  { %2575 = vmatprep.subr.bf16.mxu0 %v9079_v56  ;;  %2616 = vmatprep.subr.bf16.mxu1 %v9081_v57 }
 0xabb   :  { %2576 = vmatpush1.bf16.msra.mxu0 %v9083_v58  ;;  %2617 = vmatpush1.bf16.msra.mxu1 %v9085_v35 }
 0xabc   :  { %2577 = vmatprep.subr.bf16.mxu0 %v9091_v44  ;;  %2618 = vmatprep.subr.bf16.mxu1 %v9093_v13 }
 0xabf   :  { %2578 = vmatpush1.bf16.msra.mxu0 %v9095_v62  ;;  %2619 = vmatpush1.bf16.msra.mxu1 %v9097_v63 }
 0xac0   :  { %2579 = vmatprep.subr.bf16.mxu0 %v9103_v1  ;;  %2620 = vmatprep.subr.bf16.mxu1 %v9105_v2 }
 0xac3   :  { %2580 = vmatpush1.bf16.msra.mxu0 %v9107_v18  ;;  %2621 = vmatpush1.bf16.msra.mxu1 %v9109_v5 }
 0xac4   :  { %2581 = vmatprep.subr.bf16.mxu0 %v9115_v10  ;;  %2622 = vmatprep.subr.bf16.mxu1 %v9117_v23 }
 0xac7   :  { %2582 = vmatpush1.bf16.msra.mxu0 %v9119_v47  ;;  %2623 = vmatpush1.bf16.msra.mxu1 %v9121_v37 }
 0xac8   :  { %2583 = vmatprep.subr.bf16.mxu0 %v9127_v53  ;;  %2624 = vmatprep.subr.bf16.mxu1 %v9129_v9 }
 0xacb   :  { %2584 = vmatpush1.bf16.msra.mxu0 %v9131_v32  ;;  %2625 = vmatpush1.bf16.msra.mxu1 %v9133_v14 }
 0xacc   :  { %2675 = vmatprep.subr.bf16.mxu0 %v9043_v12  ;;  %2716 = vmatprep.subr.bf16.mxu1 %v9045_v38 }
 0xb81   :  { %v2497_v48 = vpop.f32.mrb[56].mxu0  ;;  %v2538_v26 = vpop.f32.mrb[88].mxu1 }
 0xb82   :  { %v2498_v8 = vadd.f32 %v2497_v48, %v1922_v22  ;;  %v2539_v59 = vadd.f32 %v2538_v26, %v1995_v31  ;;  %v2499_v0 = vpop.f32.mrb[57].mxu0  ;;  %v2540_v6 = vpop.f32.mrb[89].mxu1 }
 0xb83   :  { %v2500_v20 = vadd.f32 %v2499_v0, %v1924_v34  ;;  %v2541_v7 = vadd.f32 %v2540_v6, %v1997_v49  ;;  %v2501_v21 = vpop.f32.mrb[58].mxu0  ;;  %v2542_v4 = vpop.f32.mrb[90].mxu1 }
 0xb84   :  { %v2545_v54 = vmul.f32 0.5, %v2498_v8  ;;  %v2502_v3 = vpop.f32.mrb[59].mxu0  ;;  %v2543_v61 = vpop.f32.mrb[91].mxu1  ;;  %v2547_v28 = vmul.f32 0.5, %v2539_v59  ;;  %v11128_v21 = vld [vmem:[#allocation33_spill] sm:$0xff] }
 0xb85   :  { %v2546_v17 = vmul.f32 0.5, %v2500_v20  ;;  %v1999_v4 = vadd.f32 %v11128_v21, %v9252_v11  ;;  %v11130_v61 = vld [vmem:[#allocation34_spill] sm:$0xff] }
 0xb86   :  { %7624 = vtanh.f32 %v2545_v54  ;;  %v11129_v54 = vld [vmem:[#allocation25_spill] sm:$0xff] }
 0xb87   :  { %7626 = vtanh.f32 %v2546_v17  ;;  %v1928_v3 = vadd.f32 %v11129_v54, %v9259_v43  ;;  %v2001_v17 = vadd.f32 %v11130_v61, %v9262_v46 }
 0xb88   :  { %7628 = vtanh.f32 %v2541_v7 }
 0xb89   :  { %7630 = vtanh.f32 %v2547_v28 }
 0xb90   :  { %v7625_v45 = vpop.eup %7624 }
 0xb91   :  { %v2551_v36 = vmul.f32 0.5, %v7625_v45  ;;  %v7627_v24 = vpop.eup %7626 }
 0xb92   :  { %v2552_v22 = vmul.f32 0.5, %v7627_v24  ;;  %v7629_v31 = vpop.eup %7628 }
 0xb93   :  { %v2554_v60 = vadd.f32 0.5, %v2551_v36  ;;  %v7631_v26 = vpop.eup %7630 }
 0xb94   :  { %v2555_v42 = vadd.f32 0.5, %v2552_v22  ;;  %v2553_v8 = vmul.f32 0.5, %v7631_v26 }
 0xb95   :  { %v2559_v34 = vmul.f32 %v7629_v31, %v2554_v60 }
 0xb96   :  { %v2558_v49 = vmul.f32 %v2555_v42, %v9322_v30  ;;  %v2556_v0 = vadd.f32 0.5, %v2553_v8  ;;  %v11127_v30 = vld [vmem:[#allocation24_spill] sm:$0xff] }
 0xb97   :  { %v1926_v7 = vadd.f32 %v11127_v30, %v9249_v25 }
 0xb98   :  { %v9372_v48 = vadd.f32 %v2559_v34, %v2558_v49 }
 0xb9a   :  { %7632 = vtanh.f32 %v9372_v48 }
 0xba4   :  { %v7633_v6 = vpop.eup %7632 }
 0xba5   :  { %v9375_v59 = vmul.f32 %v7633_v6, %v2556_v0 }
 0xba7   :  { %v2564_v20 = vpack.c.bf16 %v9375_v59, %v9375_v59 }
 0xba9   :  { %2602 = vmatmul.mubr.bf16.vlgmr.msra.gmra.mrb[60].mxu0 %v2564_v20  ;;  %2643 = vmatmul.mubr.bf16.vlgmr.msra.gmra.mrb[92].mxu1 %v2564_v20 }
 0xbaa   :  { %2676 = vmatpush1.bf16.msra.mxu0 %v9047_v16  ;;  %2717 = vmatpush1.bf16.msra.mxu1 %v9049_v27 }
 0xbab   :  { %2677 = vmatprep.subr.bf16.mxu0 %v9055_v40  ;;  %2718 = vmatprep.subr.bf16.mxu1 %v9057_v19 }
 0xbac   :  { %2707 = vmatprep.mubr.bf16.mxu0 %v11079_v51  ;;  %2748 = vmatprep.mubr.bf16.mxu1 %v11079_v51 }
 0xbae   :  { %2678 = vmatpush1.bf16.msra.mxu0 %v9059_v15  ;;  %2719 = vmatpush1.bf16.msra.mxu1 %v9061_v39 }
 0xbaf   :  { %2679 = vmatprep.subr.bf16.mxu0 %v9067_v41  ;;  %2720 = vmatprep.subr.bf16.mxu1 %v9069_v52 }
 0xbb2   :  { %2680 = vmatpush1.bf16.msra.mxu0 %v9071_v33  ;;  %2721 = vmatpush1.bf16.msra.mxu1 %v9073_v55 }
 0xbb3   :  { %2681 = vmatprep.subr.bf16.mxu0 %v9079_v56  ;;  %2722 = vmatprep.subr.bf16.mxu1 %v9081_v57 }
 0xbb6   :  { %2682 = vmatpush1.bf16.msra.mxu0 %v9083_v58  ;;  %2723 = vmatpush1.bf16.msra.mxu1 %v9085_v35 }
 0xbb7   :  { %2683 = vmatprep.subr.bf16.mxu0 %v9091_v44  ;;  %2724 = vmatprep.subr.bf16.mxu1 %v9093_v13 }
 0xbba   :  { %2684 = vmatpush1.bf16.msra.mxu0 %v9095_v62  ;;  %2725 = vmatpush1.bf16.msra.mxu1 %v9097_v63 }
 0xbbb   :  { %2685 = vmatprep.subr.bf16.mxu0 %v9103_v1  ;;  %2726 = vmatprep.subr.bf16.mxu1 %v9105_v2 }
 0xbbe   :  { %2686 = vmatpush1.bf16.msra.mxu0 %v9107_v18  ;;  %2727 = vmatpush1.bf16.msra.mxu1 %v9109_v5 }
 0xbbf   :  { %2687 = vmatprep.subr.bf16.mxu0 %v9115_v10  ;;  %2728 = vmatprep.subr.bf16.mxu1 %v9117_v23 }
 0xbc2   :  { %2688 = vmatpush1.bf16.msra.mxu0 %v9119_v47  ;;  %2729 = vmatpush1.bf16.msra.mxu1 %v9121_v37 }
 0xbc3   :  { %2689 = vmatprep.subr.bf16.mxu0 %v9127_v53  ;;  %2730 = vmatprep.subr.bf16.mxu1 %v9129_v9 }
 0xbc6   :  { %2690 = vmatpush1.bf16.msra.mxu0 %v9131_v32  ;;  %2731 = vmatpush1.bf16.msra.mxu1 %v9133_v14 }
 0xbc7   :  { %2781 = vmatprep.subr.bf16.mxu0 %v9043_v12  ;;  %2822 = vmatprep.subr.bf16.mxu1 %v9045_v38 }
 0xc7c   :  { %v2603_v28 = vpop.f32.mrb[60].mxu0  ;;  %v2644_v45 = vpop.f32.mrb[92].mxu1 }
 0xc7d   :  { %v2604_v36 = vadd.f32 %v2603_v28, %v1926_v7  ;;  %v2645_v24 = vadd.f32 %v2644_v45, %v1999_v4  ;;  %v2605_v60 = vpop.f32.mrb[61].mxu0  ;;  %v2646_v22 = vpop.f32.mrb[93].mxu1 }
 0xc7e   :  { %v2606_v31 = vadd.f32 %v2605_v60, %v1928_v3  ;;  %v2647_v42 = vadd.f32 %v2646_v22, %v2001_v17  ;;  %v2607_v34 = vpop.f32.mrb[62].mxu0  ;;  %v2648_v49 = vpop.f32.mrb[94].mxu1 }
 0xc7f   :  { %v2651_v26 = vmul.f32 0.5, %v2604_v36  ;;  %v2608_v8 = vpop.f32.mrb[63].mxu0  ;;  %v2649_v0 = vpop.f32.mrb[95].mxu1  ;;  %v2653_v20 = vmul.f32 0.5, %v2645_v24 }
 0xc80   :  { %v2652_v6 = vmul.f32 0.5, %v2606_v31 }
 0xc81   :  { %7634 = vtanh.f32 %v2651_v26 }
 0xc82   :  { %7636 = vtanh.f32 %v2652_v6 }
 0xc83   :  { %7638 = vtanh.f32 %v2647_v42 }
 0xc84   :  { %7640 = vtanh.f32 %v2653_v20 }
 0xc8b   :  { %v7635_v30 = vpop.eup %7634 }
 0xc8c   :  { %v2657_v21 = vmul.f32 0.5, %v7635_v30  ;;  %v7637_v54 = vpop.eup %7636 }
 0xc8d   :  { %v2658_v7 = vmul.f32 0.5, %v7637_v54  ;;  %v7639_v4 = vpop.eup %7638 }
 0xc8e   :  { %v2660_v61 = vadd.f32 0.5, %v2657_v21  ;;  %v7641_v36 = vpop.eup %7640 }
 0xc8f   :  { %v2661_v28 = vadd.f32 0.5, %v2658_v7  ;;  %v2659_v60 = vmul.f32 0.5, %v7641_v36 }
 0xc90   :  { %v2665_v3 = vmul.f32 %v7639_v4, %v2660_v61 }
 0xc91   :  { %v2664_v17 = vmul.f32 %v2661_v28, %v9372_v48  ;;  %v2662_v22 = vadd.f32 0.5, %v2659_v60 }
 0xc93   :  { %v9422_v45 = vadd.f32 %v2665_v3, %v2664_v17 }
 0xc95   :  { %7642 = vtanh.f32 %v9422_v45 }
 0xc9f   :  { %v7643_v31 = vpop.eup %7642 }
 0xca0   :  { %v9425_v24 = vmul.f32 %v7643_v31, %v2662_v22 }
 0xca2   :  { %v2670_v42 = vpack.c.bf16 %v9425_v24, %v9425_v24 }
 0xca4   :  { %2708 = vmatmul.mubr.bf16.vlgmr.msra.gmra.mrb[64].mxu0 %v2670_v42  ;;  %2749 = vmatmul.mubr.bf16.vlgmr.msra.gmra.mrb[96].mxu1 %v2670_v42 }
 0xca5   :  { %2782 = vmatpush1.bf16.msra.mxu0 %v9047_v16  ;;  %2823 = vmatpush1.bf16.msra.mxu1 %v9049_v27  ;;  %v11131_v16 = vld [vmem:[#allocation26_spill] sm:$0xff] }
 0xca6   :  { %2783 = vmatprep.subr.bf16.mxu0 %v9055_v40  ;;  %2824 = vmatprep.subr.bf16.mxu1 %v9057_v19  ;;  %v1932_v27 = vadd.f32 %v11131_v16, %v9249_v25  ;;  %v11132_v40 = vld [vmem:[#allocation35_spill] sm:$0xff] }
 0xca7   :  { %2813 = vmatprep.mubr.bf16.mxu0 %v11079_v51  ;;  %2854 = vmatprep.mubr.bf16.mxu1 %v11079_v51  ;;  %v2005_v19 = vadd.f32 %v11132_v40, %v9252_v11  ;;  %v9485_v40 = vld [vmem:[#allocation8 + $0x24] ss:$16 sps:$4 sm:$0xff]  }
 0xca9   :  { %2784 = vmatpush1.bf16.msra.mxu0 %v9059_v15  ;;  %2825 = vmatpush1.bf16.msra.mxu1 %v9061_v39  ;;  %v11133_v15 = vld [vmem:[#allocation38_spill] sm:$0xff] }
 0xcaa   :  { %2785 = vmatprep.subr.bf16.mxu0 %v9067_v41  ;;  %2826 = vmatprep.subr.bf16.mxu1 %v9069_v52  ;;  %v1934_v39 = vadd.f32 %v11133_v15, %v9259_v43  ;;  %v11134_v41 = vld [vmem:[#allocation27_spill] sm:$0xff] }
 0xcab   :  { %v2007_v52 = vadd.f32 %v11134_v41, %v9262_v46  ;;  %v9493_v15 = vld [vmem:[#allocation8 + $0x20] ss:$16 sps:$4 sm:$0xff]   ;;  %v9499_v41 = vld [vmem:[#allocation8 + $0x44] ss:$16 sps:$4 sm:$0xff]  }
 0xcad   :  { %2786 = vmatpush1.bf16.msra.mxu0 %v9071_v33  ;;  %2827 = vmatpush1.bf16.msra.mxu1 %v9073_v55 }
 0xcae   :  { %2787 = vmatprep.subr.bf16.mxu0 %v9079_v56  ;;  %2828 = vmatprep.subr.bf16.mxu1 %v9081_v57 }
 0xcb1   :  { %2788 = vmatpush1.bf16.msra.mxu0 %v9083_v58  ;;  %2829 = vmatpush1.bf16.msra.mxu1 %v9085_v35 }
 0xcb2   :  { %2789 = vmatprep.subr.bf16.mxu0 %v9091_v44  ;;  %2830 = vmatprep.subr.bf16.mxu1 %v9093_v13 }
 0xcb5   :  { %2790 = vmatpush1.bf16.msra.mxu0 %v9095_v62  ;;  %2831 = vmatpush1.bf16.msra.mxu1 %v9097_v63 }
 0xcb6   :  { %2791 = vmatprep.subr.bf16.mxu0 %v9103_v1  ;;  %2832 = vmatprep.subr.bf16.mxu1 %v9105_v2 }
 0xcb9   :  { %2792 = vmatpush1.bf16.msra.mxu0 %v9107_v18  ;;  %2833 = vmatpush1.bf16.msra.mxu1 %v9109_v5 }
 0xcba   :  { %2793 = vmatprep.subr.bf16.mxu0 %v9115_v10  ;;  %2834 = vmatprep.subr.bf16.mxu1 %v9117_v23 }
 0xcbd   :  { %2794 = vmatpush1.bf16.msra.mxu0 %v9119_v47  ;;  %2835 = vmatpush1.bf16.msra.mxu1 %v9121_v37 }
 0xcbe   :  { %2795 = vmatprep.subr.bf16.mxu0 %v9127_v53  ;;  %2836 = vmatprep.subr.bf16.mxu1 %v9129_v9 }
 0xcc1   :  { %2796 = vmatpush1.bf16.msra.mxu0 %v9131_v32  ;;  %2837 = vmatpush1.bf16.msra.mxu1 %v9133_v14 }
 0xcc2   :  { %2887 = vmatprep.subr.bf16.mxu0 %v9043_v12  ;;  %2928 = vmatprep.subr.bf16.mxu1 %v9045_v38 }
 0xd77   :  { %v2709_v33 = vpop.f32.mrb[64].mxu0  ;;  %v2750_v55 = vpop.f32.mrb[96].mxu1 }
 0xd78   :  { %v2710_v56 = vadd.f32 %v2709_v33, %v1932_v27  ;;  %v2751_v57 = vadd.f32 %v2750_v55, %v2005_v19  ;;  %v2711_v58 = vpop.f32.mrb[65].mxu0  ;;  %v2752_v12 = vpop.f32.mrb[97].mxu1  ;;  %v9479_v27 = vld [vmem:[#allocation8] ss:$16 sps:$4 sm:$0xff]   ;;  %v9488_v19 = vld [vmem:[#allocation8 + $0x2c] ss:$16 sps:$4 sm:$0xff]  }
 0xd79   :  { %v2712_v35 = vadd.f32 %v2711_v58, %v1934_v39  ;;  %v2753_v38 = vadd.f32 %v2752_v12, %v2007_v52  ;;  %v2713_v48 = vpop.f32.mrb[66].mxu0  ;;  %v2754_v34 = vpop.f32.mrb[98].mxu1  ;;  %v9496_v39 = vld [vmem:[#allocation8 + $0x28] ss:$16 sps:$4 sm:$0xff]   ;;  %v9502_v52 = vld [vmem:[#allocation8 + $0x4c] ss:$16 sps:$4 sm:$0xff]  }
 0xd7a   :  { %v2757_v49 = vmul.f32 0.5, %v2710_v56  ;;  %v2714_v26 = vpop.f32.mrb[67].mxu0  ;;  %v2755_v8 = vpop.f32.mrb[99].mxu1  ;;  %v2759_v6 = vmul.f32 0.5, %v2751_v57  ;;  %v9505_v33 = vld [vmem:[#allocation8 + $0x40] ss:$16 sps:$4 sm:$0xff]  }
 0xd7b   :  { %v2758_v0 = vmul.f32 0.5, %v2712_v35  ;;  %v9508_v55 = vld [vmem:[#allocation8 + $0x48] ss:$16 sps:$4 sm:$0xff]   ;;  %v9511_v56 = vld [vmem:[#allocation8 + $0x64] ss:$16 sps:$4 sm:$0xff]  }
 0xd7c   :  { %7644 = vtanh.f32 %v2757_v49  ;;  %v9514_v57 = vld [vmem:[#allocation8 + $0x6c] ss:$16 sps:$4 sm:$0xff]   ;;  %v9517_v58 = vld [vmem:[#allocation8 + $0x60] ss:$16 sps:$4 sm:$0xff]   ;;  %v9520_v12 = vld [vmem:[#allocation8 + $0x68] ss:$16 sps:$4 sm:$0xff]  }
 0xd7d   :  { %7646 = vtanh.f32 %v2758_v0 }
 0xd7e   :  { %7648 = vtanh.f32 %v2753_v38 }
 0xd7f   :  { %7650 = vtanh.f32 %v2759_v6 }
 0xd86   :  { %v7645_v20 = vpop.eup %7644 }
 0xd87   :  { %v2763_v30 = vmul.f32 0.5, %v7645_v20  ;;  %v7647_v21 = vpop.eup %7646 }
 0xd88   :  { %v2764_v61 = vmul.f32 0.5, %v7647_v21  ;;  %v7649_v7 = vpop.eup %7648 }
 0xd89   :  { %v2766_v54 = vadd.f32 0.5, %v2763_v30  ;;  %v7651_v36 = vpop.eup %7650 }
 0xd8a   :  { %v2767_v4 = vadd.f32 0.5, %v2764_v61  ;;  %v2765_v60 = vmul.f32 0.5, %v7651_v36 }
 0xd8b   :  { %v2771_v28 = vmul.f32 %v7649_v7, %v2766_v54 }
 0xd8c   :  { %v2770_v3 = vmul.f32 %v2767_v4, %v9422_v45  ;;  %v2768_v22 = vadd.f32 0.5, %v2765_v60  ;;  %v9482_v45 = vld [vmem:[#allocation8 + $0x8] ss:$16 sps:$4 sm:$0xff]  }
 0xd8e   :  { %v9472_v17 = vadd.f32 %v2771_v28, %v2770_v3 }
 0xd90   :  { %7652 = vtanh.f32 %v9472_v17 }
 0xd9a   :  { %v7653_v31 = vpop.eup %7652 }
 0xd9b   :  { %v9475_v42 = vmul.f32 %v7653_v31, %v2768_v22 }
 0xd9d   :  { %v2776_v16 = vpack.c.bf16 %v9475_v42, %v9475_v42 }
 0xd9f   :  { %2814 = vmatmul.mubr.bf16.vlgmr.msra.gmra.mrb[68].mxu0 %v2776_v16  ;;  %2855 = vmatmul.mubr.bf16.vlgmr.msra.gmra.mrb[100].mxu1 %v2776_v16 }
 0xda0   :  { %2888 = vmatpush1.bf16.msra.mxu0 %v9479_v27  ;;  %2929 = vmatpush1.bf16.msra.mxu1 %v9482_v45 }
 0xda1   :  { %2889 = vmatprep.subr.bf16.mxu0 %v9485_v40  ;;  %2930 = vmatprep.subr.bf16.mxu1 %v9488_v19 }
 0xda2   :  { %2919 = vmatprep.mubr.bf16.mxu0 %v11079_v51  ;;  %2960 = vmatprep.mubr.bf16.mxu1 %v11079_v51 }
 0xda4   :  { %2890 = vmatpush1.bf16.msra.mxu0 %v9493_v15  ;;  %2931 = vmatpush1.bf16.msra.mxu1 %v9496_v39 }
 0xda5   :  { %2891 = vmatprep.subr.bf16.mxu0 %v9499_v41  ;;  %2932 = vmatprep.subr.bf16.mxu1 %v9502_v52 }
 0xda8   :  { %2892 = vmatpush1.bf16.msra.mxu0 %v9505_v33  ;;  %2933 = vmatpush1.bf16.msra.mxu1 %v9508_v55 }
 0xda9   :  { %2893 = vmatprep.subr.bf16.mxu0 %v9511_v56  ;;  %2934 = vmatprep.subr.bf16.mxu1 %v9514_v57 }
 0xdac   :  { %2894 = vmatpush1.bf16.msra.mxu0 %v9517_v58  ;;  %2935 = vmatpush1.bf16.msra.mxu1 %v9520_v12 }
 0xdad   :  { %2895 = vmatprep.subr.bf16.mxu0 %v9091_v44  ;;  %2936 = vmatprep.subr.bf16.mxu1 %v9093_v13  ;;  %v7890_v44 = vld [vmem:[#allocation8 + $0x4] ss:$16 sps:$4 sm:$0xff]   ;;  %v7891_v13 = vld [vmem:[#allocation8 + $0xc] ss:$16 sps:$4 sm:$0xff]  }
 0xdb0   :  { %2896 = vmatpush1.bf16.msra.mxu0 %v9095_v62  ;;  %2937 = vmatpush1.bf16.msra.mxu1 %v9097_v63  ;;  %v11135_v62 = vld [vmem:[#allocation36_spill] sm:$0xff] }
 0xdb1   :  { %2897 = vmatprep.subr.bf16.mxu0 %v9103_v1  ;;  %2938 = vmatprep.subr.bf16.mxu1 %v9105_v2  ;;  %v1936_v63 = vadd.f32 %v11135_v62, %v9249_v25  ;;  %v11136_v1 = vld [vmem:[#allocation28_spill] sm:$0xff] }
 0xdb2   :  { %v2009_v2 = vadd.f32 %v11136_v1, %v9252_v11  ;;  %v7907_v62 = vld [vmem:[#allocation8 + $0xe8] ss:$16 sps:$4 sm:$0xff]   ;;  %v7329_v1 = vld [vmem:[#allocation9 + $0xc] ss:$16 sps:$4 sm:$0xff]  }
 0xdb4   :  { %2898 = vmatpush1.bf16.msra.mxu0 %v9107_v18  ;;  %2939 = vmatpush1.bf16.msra.mxu1 %v9109_v5  ;;  %v11137_v18 = vld [vmem:[#allocation37_spill] sm:$0xff] }
 0xdb5   :  { %2899 = vmatprep.subr.bf16.mxu0 %v9115_v10  ;;  %2940 = vmatprep.subr.bf16.mxu1 %v9117_v23  ;;  %v1938_v5 = vadd.f32 %v11137_v18, %v9259_v43  ;;  %v11138_v10 = vld [vmem:[#allocation39_spill] sm:$0xff] }
 0xdb6   :  { %v2011_v23 = vadd.f32 %v11138_v10, %v9262_v46 }
 0xdb8   :  { %2900 = vmatpush1.bf16.msra.mxu0 %v9119_v47  ;;  %2941 = vmatpush1.bf16.msra.mxu1 %v9121_v37 }
 0xdb9   :  { %2901 = vmatprep.subr.bf16.mxu0 %v9127_v53  ;;  %2942 = vmatprep.subr.bf16.mxu1 %v9129_v9 }
 0xdbc   :  { %2902 = vmatpush1.bf16.msra.mxu0 %v9131_v32  ;;  %2943 = vmatpush1.bf16.msra.mxu1 %v9133_v14 }
 0xdbd   :  { %2993 = vmatprep.subr.bf16.mxu0 %v7890_v44  ;;  %3034 = vmatprep.subr.bf16.mxu1 %v7891_v13 }
 0xe72   :  { %v2815_v47 = vpop.f32.mrb[68].mxu0  ;;  %v2856_v37 = vpop.f32.mrb[100].mxu1 }
 0xe73   :  { %v2816_v53 = vadd.f32 %v2815_v47, %v1936_v63  ;;  %v2857_v9 = vadd.f32 %v2856_v37, %v2009_v2  ;;  %v2817_v32 = vpop.f32.mrb[69].mxu0  ;;  %v2858_v14 = vpop.f32.mrb[101].mxu1  ;;  %v7326_v63 = vld [vmem:[#allocation9 + $0x4] ss:$16 sps:$4 sm:$0xff]   ;;  %v11139_v2 = vld [vmem:[#allocation40_spill] sm:$0xff] }
 0xe74   :  { %v2818_v35 = vadd.f32 %v2817_v32, %v1938_v5  ;;  %v2859_v38 = vadd.f32 %v2858_v14, %v2011_v23  ;;  %v2819_v48 = vpop.f32.mrb[70].mxu0  ;;  %v2860_v34 = vpop.f32.mrb[102].mxu1  ;;  %v1942_v18 = vadd.f32 %v11139_v2, %v9249_v25  ;;  %v11140_v5 = vld [vmem:[#allocation41_spill] sm:$0xff]  ;;  %v11141_v23 = vld [vmem:[#allocation42_spill] sm:$0xff]  ;;  %v11142_v37 = vld [vmem:[#allocation43_spill] sm:$0xff] }
 0xe75   :  { %v2863_v49 = vmul.f32 0.5, %v2816_v53  ;;  %v2820_v26 = vpop.f32.mrb[71].mxu0  ;;  %v2861_v8 = vpop.f32.mrb[103].mxu1  ;;  %v2865_v6 = vmul.f32 0.5, %v2857_v9  ;;  %v2015_v10 = vadd.f32 %v11140_v5, %v9252_v11  ;;  %v1944_v47 = vadd.f32 %v11141_v23, %v9259_v43  ;;  %v7350_v2 = vld [vmem:[#allocation9 + $0x84] ss:$16 sps:$4 sm:$0xff]  }
 0xe76   :  { %v2864_v0 = vmul.f32 0.5, %v2818_v35  ;;  %v2017_v53 = vadd.f32 %v11142_v37, %v9262_v46  ;;  %v7348_v5 = vld [vmem:[#allocation9 + $0x80] ss:$16 sps:$4 sm:$0xff]   ;;  %v7356_v23 = vld [vmem:[#allocation9 + $0xa4] ss:$16 sps:$4 sm:$0xff]  }
 0xe77   :  { %7654 = vtanh.f32 %v2863_v49  ;;  %v7354_v37 = vld [vmem:[#allocation9 + $0xa0] ss:$16 sps:$4 sm:$0xff]  }
 0xe78   :  { %7656 = vtanh.f32 %v2864_v0 }
 0xe79   :  { %7658 = vtanh.f32 %v2859_v38 }
 0xe7a   :  { %7660 = vtanh.f32 %v2865_v6 }
 0xe81   :  { %v7655_v20 = vpop.eup %7654 }
 0xe82   :  { %v2869_v30 = vmul.f32 0.5, %v7655_v20  ;;  %v7657_v21 = vpop.eup %7656 }
 0xe83   :  { %v2870_v61 = vmul.f32 0.5, %v7657_v21  ;;  %v7659_v7 = vpop.eup %7658 }
 0xe84   :  { %v2872_v54 = vadd.f32 0.5, %v2869_v30  ;;  %v7661_v60 = vpop.eup %7660 }
 0xe85   :  { %v2873_v4 = vadd.f32 0.5, %v2870_v61  ;;  %v2871_v22 = vmul.f32 0.5, %v7661_v60 }
 0xe86   :  { %v2877_v28 = vmul.f32 %v7659_v7, %v2872_v54 }
 0xe87   :  { %v2876_v3 = vmul.f32 %v2873_v4, %v9472_v17  ;;  %v2874_v31 = vadd.f32 0.5, %v2871_v22  ;;  %v7892_v17 = vld [vmem:[#allocation8 + $0x84] ss:$16 sps:$4 sm:$0xff]  }
 0xe89   :  { %v9548_v36 = vadd.f32 %v2877_v28, %v2876_v3 }
 0xe8b   :  { %7662 = vtanh.f32 %v9548_v36 }
 0xe95   :  { %v7663_v16 = vpop.eup %7662 }
 0xe96   :  { %v9551_v44 = vmul.f32 %v7663_v16, %v2874_v31 }
 0xe98   :  { %v2882_v13 = vpack.c.bf16 %v9551_v44, %v9551_v44 }
 0xe9a   :  { %2920 = vmatmul.mubr.bf16.vlgmr.msra.gmra.mrb[72].mxu0 %v2882_v13  ;;  %2961 = vmatmul.mubr.bf16.vlgmr.msra.gmra.mrb[104].mxu1 %v2882_v13 }
 0xe9b   :  { %2994 = vmatpush1.bf16.msra.mxu0 %v9479_v27  ;;  %3035 = vmatpush1.bf16.msra.mxu1 %v9482_v45  ;;  %v7893_v27 = vld [vmem:[#allocation8 + $0x8c] ss:$16 sps:$4 sm:$0xff]   ;;  %v7894_v45 = vld [vmem:[#allocation8 + $0x80] ss:$16 sps:$4 sm:$0xff]  }
 0xe9c   :  { %2995 = vmatprep.subr.bf16.mxu0 %v9485_v40  ;;  %3036 = vmatprep.subr.bf16.mxu1 %v9488_v19  ;;  %v7895_v40 = vld [vmem:[#allocation8 + $0x88] ss:$16 sps:$4 sm:$0xff]   ;;  %v7896_v19 = vld [vmem:[#allocation8 + $0xa4] ss:$16 sps:$4 sm:$0xff]  }
 0xe9d   :  { %3025 = vmatprep.mubr.bf16.mxu0 %v11079_v51  ;;  %3066 = vmatprep.mubr.bf16.mxu1 %v11079_v51 }
 0xe9f   :  { %2996 = vmatpush1.bf16.msra.mxu0 %v9493_v15  ;;  %3037 = vmatpush1.bf16.msra.mxu1 %v9496_v39  ;;  %v7897_v15 = vld [vmem:[#allocation8 + $0xac] ss:$16 sps:$4 sm:$0xff]   ;;  %v7898_v39 = vld [vmem:[#allocation8 + $0xa0] ss:$16 sps:$4 sm:$0xff]  }
 0xea0   :  { %2997 = vmatprep.subr.bf16.mxu0 %v9499_v41  ;;  %3038 = vmatprep.subr.bf16.mxu1 %v9502_v52  ;;  %v7899_v41 = vld [vmem:[#allocation8 + $0xa8] ss:$16 sps:$4 sm:$0xff]   ;;  %v7900_v52 = vld [vmem:[#allocation8 + $0xc4] ss:$16 sps:$4 sm:$0xff]  }
 0xea3   :  { %2998 = vmatpush1.bf16.msra.mxu0 %v9505_v33  ;;  %3039 = vmatpush1.bf16.msra.mxu1 %v9508_v55  ;;  %v7901_v33 = vld [vmem:[#allocation8 + $0xcc] ss:$16 sps:$4 sm:$0xff]   ;;  %v7902_v55 = vld [vmem:[#allocation8 + $0xc0] ss:$16 sps:$4 sm:$0xff]  }
 0xea4   :  { %2999 = vmatprep.subr.bf16.mxu0 %v9511_v56  ;;  %3040 = vmatprep.subr.bf16.mxu1 %v9514_v57  ;;  %v7903_v56 = vld [vmem:[#allocation8 + $0xc8] ss:$16 sps:$4 sm:$0xff]   ;;  %v7904_v57 = vld [vmem:[#allocation8 + $0xe4] ss:$16 sps:$4 sm:$0xff]  }
 0xea7   :  { %3000 = vmatpush1.bf16.msra.mxu0 %v9517_v58  ;;  %3041 = vmatpush1.bf16.msra.mxu1 %v9520_v12  ;;  %v7905_v58 = vld [vmem:[#allocation8 + $0xec] ss:$16 sps:$4 sm:$0xff]   ;;  %v7906_v12 = vld [vmem:[#allocation8 + $0xe0] ss:$16 sps:$4 sm:$0xff]  }
 0xea8   :  { %3001 = vmatprep.subr.bf16.mxu0 %v7892_v17  ;;  %3042 = vmatprep.subr.bf16.mxu1 %v7893_v27 }
 0xeab   :  { %3002 = vmatpush1.bf16.msra.mxu0 %v7894_v45  ;;  %3043 = vmatpush1.bf16.msra.mxu1 %v7895_v40 }
 0xeac   :  { %3003 = vmatprep.subr.bf16.mxu0 %v7896_v19  ;;  %3044 = vmatprep.subr.bf16.mxu1 %v7897_v15  ;;  %v7324_v19 = vld [vmem:[#allocation9] ss:$16 sps:$4 sm:$0xff]   ;;  %v7327_v15 = vld [vmem:[#allocation9 + $0x8] ss:$16 sps:$4 sm:$0xff]  }
 0xeaf   :  { %3004 = vmatpush1.bf16.msra.mxu0 %v7898_v39  ;;  %3045 = vmatpush1.bf16.msra.mxu1 %v7899_v41  ;;  %v7332_v41 = vld [vmem:[#allocation9 + $0x24] ss:$16 sps:$4 sm:$0xff]  }
 0xeb0   :  { %3005 = vmatprep.subr.bf16.mxu0 %v7900_v52  ;;  %3046 = vmatprep.subr.bf16.mxu1 %v7901_v33  ;;  %v7335_v52 = vld [vmem:[#allocation9 + $0x2c] ss:$16 sps:$4 sm:$0xff]   ;;  %v7333_v33 = vld [vmem:[#allocation9 + $0x28] ss:$16 sps:$4 sm:$0xff]  }
 0xeb3   :  { %3006 = vmatpush1.bf16.msra.mxu0 %v7902_v55  ;;  %3047 = vmatpush1.bf16.msra.mxu1 %v7903_v56  ;;  %v7338_v55 = vld [vmem:[#allocation9 + $0x44] ss:$16 sps:$4 sm:$0xff]   ;;  %v7341_v56 = vld [vmem:[#allocation9 + $0x4c] ss:$16 sps:$4 sm:$0xff]  }
 0xeb4   :  { %3007 = vmatprep.subr.bf16.mxu0 %v7904_v57  ;;  %3048 = vmatprep.subr.bf16.mxu1 %v7905_v58  ;;  %v7336_v57 = vld [vmem:[#allocation9 + $0x40] ss:$16 sps:$4 sm:$0xff]   ;;  %v7339_v58 = vld [vmem:[#allocation9 + $0x48] ss:$16 sps:$4 sm:$0xff]  }
 0xeb7   :  { %3008 = vmatpush1.bf16.msra.mxu0 %v7906_v12  ;;  %3049 = vmatpush1.bf16.msra.mxu1 %v7907_v62  ;;  %v7344_v12 = vld [vmem:[#allocation9 + $0x64] ss:$16 sps:$4 sm:$0xff]   ;;  %v7347_v62 = vld [vmem:[#allocation9 + $0x6c] ss:$16 sps:$4 sm:$0xff]  }
 0xeb8   :  { %3348 = vmatprep.subr.bf16.mxu0 %v7326_v63  ;;  %3421 = vmatprep.subr.bf16.mxu1 %v7329_v1  ;;  %v7342_v63 = vld [vmem:[#allocation9 + $0x60] ss:$16 sps:$4 sm:$0xff]   ;;  %v7345_v1 = vld [vmem:[#allocation9 + $0x68] ss:$16 sps:$4 sm:$0xff]  }
 0xf6d   :  { %v2921_v9 = vpop.f32.mrb[72].mxu0  ;;  %v2962_v32 = vpop.f32.mrb[104].mxu1 }
 0xf6e   :  { %v2922_v14 = vadd.f32 %v2921_v9, %v1942_v18  ;;  %v2963_v35 = vadd.f32 %v2962_v32, %v2015_v10  ;;  %v2923_v38 = vpop.f32.mrb[73].mxu0  ;;  %v2964_v48 = vpop.f32.mrb[105].mxu1  ;;  %v7353_v18 = vld [vmem:[#allocation9 + $0x8c] ss:$16 sps:$4 sm:$0xff]   ;;  %v7351_v10 = vld [vmem:[#allocation9 + $0x88] ss:$16 sps:$4 sm:$0xff]  }
 0xf6f   :  { %v2924_v34 = vadd.f32 %v2923_v38, %v1944_v47  ;;  %v2965_v49 = vadd.f32 %v2964_v48, %v2017_v53  ;;  %v2925_v26 = vpop.f32.mrb[74].mxu0  ;;  %v2966_v8 = vpop.f32.mrb[106].mxu1  ;;  %v7359_v47 = vld [vmem:[#allocation9 + $0xac] ss:$16 sps:$4 sm:$0xff]   ;;  %v7357_v53 = vld [vmem:[#allocation9 + $0xa8] ss:$16 sps:$4 sm:$0xff]  }
 0xf70   :  { %v2969_v0 = vmul.f32 0.5, %v2922_v14  ;;  %v2926_v6 = vpop.f32.mrb[75].mxu0  ;;  %v2967_v20 = vpop.f32.mrb[107].mxu1  ;;  %v2971_v21 = vmul.f32 0.5, %v2963_v35  ;;  %v7362_v9 = vld [vmem:[#allocation9 + $0xc4] ss:$16 sps:$4 sm:$0xff]   ;;  %v7069_v26 = vpack.c.bf16 %v9325_v29, %v9275_v50  ;;  %v7070_v8 = vpack.c.bf16 %v9425_v24, %v9375_v59 }
 0xf71   :  { %v2970_v30 = vmul.f32 0.5, %v2924_v34  ;;  %v7365_v32 = vld [vmem:[#allocation9 + $0xcc] ss:$16 sps:$4 sm:$0xff]   ;;  %v7360_v14 = vld [vmem:[#allocation9 + $0xc0] ss:$16 sps:$4 sm:$0xff]  }
 0xf72   :  { %7664 = vtanh.f32 %v2969_v0  ;;  %v7363_v35 = vld [vmem:[#allocation9 + $0xc8] ss:$16 sps:$4 sm:$0xff]   ;;  %v7368_v38 = vld [vmem:[#allocation9 + $0xe4] ss:$16 sps:$4 sm:$0xff]   ;;  %v7371_v48 = vld [vmem:[#allocation9 + $0xec] ss:$16 sps:$4 sm:$0xff]   ;;  %v7071_v0 = vpack.c.bf16 %v9551_v44, %v9475_v42 }
 0xf73   :  { %7666 = vtanh.f32 %v2970_v30  ;;  %v7366_v34 = vld [vmem:[#allocation9 + $0xe0] ss:$16 sps:$4 sm:$0xff]   ;;  %v9601_v50 = vld [vmem:[#allocation11 + $0x4] ss:$16 sps:$4 sm:$0xff]   ;;  %v9603_v29 = vld [vmem:[#allocation11 + $0xc] ss:$16 sps:$4 sm:$0xff]  }
 0xf74   :  { %7668 = vtanh.f32 %v2965_v49  ;;  %v7369_v49 = vld [vmem:[#allocation9 + $0xe8] ss:$16 sps:$4 sm:$0xff]   ;;  %v9605_v59 = vld [vmem:[#allocation11] ss:$16 sps:$4 sm:$0xff]   ;;  %v9613_v42 = vld [vmem:[#allocation11 + $0x24] ss:$16 sps:$4 sm:$0xff]  }
 0xf75   :  { %7670 = vtanh.f32 %v2971_v21  ;;  %v9607_v24 = vld [vmem:[#allocation11 + $0x8] ss:$16 sps:$4 sm:$0xff]   ;;  %v9615_v44 = vld [vmem:[#allocation11 + $0x2c] ss:$16 sps:$4 sm:$0xff]   ;;  %v9617_v6 = vld [vmem:[#allocation11 + $0x20] ss:$16 sps:$4 sm:$0xff]  }
 0xf76   :  { %v9619_v20 = vld [vmem:[#allocation11 + $0x28] ss:$16 sps:$4 sm:$0xff]   ;;  %v9625_v30 = vld [vmem:[#allocation11 + $0x44] ss:$16 sps:$4 sm:$0xff]   ;;  %v9627_v21 = vld [vmem:[#allocation11 + $0x4c] ss:$16 sps:$4 sm:$0xff]  }
 0xf7c   :  { %v7665_v54 = vpop.eup %7664 }
 0xf7d   :  { %v2975_v61 = vmul.f32 0.5, %v7665_v54  ;;  %v7667_v7 = vpop.eup %7666  ;;  %v9629_v54 = vld [vmem:[#allocation11 + $0x40] ss:$16 sps:$4 sm:$0xff]  }
 0xf7e   :  { %v2976_v28 = vmul.f32 0.5, %v7667_v7  ;;  %v7669_v3 = vpop.eup %7668  ;;  %v9637_v7 = vld [vmem:[#allocation11 + $0x64] ss:$16 sps:$4 sm:$0xff]  }
 0xf7f   :  { %v2978_v4 = vadd.f32 0.5, %v2975_v61  ;;  %v7671_v13 = vpop.eup %7670  ;;  %v9631_v61 = vld [vmem:[#allocation11 + $0x48] ss:$16 sps:$4 sm:$0xff]  }
 0xf80   :  { %v2979_v60 = vadd.f32 0.5, %v2976_v28  ;;  %v2977_v17 = vmul.f32 0.5, %v7671_v13  ;;  %v9641_v28 = vld [vmem:[#allocation11 + $0x60] ss:$16 sps:$4 sm:$0xff]   ;;  %v9655_v13 = vld [vmem:[#allocation11 + $0x88] ss:$16 sps:$4 sm:$0xff]  }
 0xf81   :  { %v2983_v22 = vmul.f32 %v7669_v3, %v2978_v4  ;;  %v9639_v4 = vld [vmem:[#allocation11 + $0x6c] ss:$16 sps:$4 sm:$0xff]   ;;  %v9643_v3 = vld [vmem:[#allocation11 + $0x68] ss:$16 sps:$4 sm:$0xff]  }
 0xf82   :  { %v2982_v31 = vmul.f32 %v2979_v60, %v9548_v36  ;;  %v2980_v27 = vadd.f32 0.5, %v2977_v17  ;;  %v7330_v36 = vld [vmem:[#allocation9 + $0x20] ss:$16 sps:$4 sm:$0xff]   ;;  %v9649_v60 = vld [vmem:[#allocation11 + $0x84] ss:$16 sps:$4 sm:$0xff]  }
 0xf83   :  { %v9661_v17 = vld [vmem:[#allocation11 + $0xa4] ss:$16 sps:$4 sm:$0xff]  }
 0xf84   :  { %v9580_v16 = vadd.f32 %v2983_v22, %v2982_v31  ;;  %v9651_v22 = vld [vmem:[#allocation11 + $0x8c] ss:$16 sps:$4 sm:$0xff]   ;;  %v9653_v31 = vld [vmem:[#allocation11 + $0x80] ss:$16 sps:$4 sm:$0xff]  }
 0xf86   :  { %7672 = vtanh.f32 %v9580_v16 }
 0xf90   :  { %v7673_v45 = vpop.eup %7672 }
 0xf91   :  { %v9583_v40 = vmul.f32 %v7673_v45, %v2980_v27  ;;  %v9663_v27 = vld [vmem:[#allocation11 + $0xac] ss:$16 sps:$4 sm:$0xff]   ;;  %v9665_v45 = vld [vmem:[#allocation11 + $0xa0] ss:$16 sps:$4 sm:$0xff]  }
 0xf93   :  { %v2988_v39 = vpack.c.bf16 %v9583_v40, %v9583_v40 }
 0xf95   :  { %3026 = vmatmul.mubr.bf16.vlgmr.msra.gmra.mrb[76].mxu0 %v2988_v39  ;;  %3067 = vmatmul.mubr.bf16.vlgmr.msra.gmra.mrb[108].mxu1 %v2988_v39  ;;  %v9675_v39 = vld [vmem:[#allocation11 + $0xcc] ss:$16 sps:$4 sm:$0xff]  }
 0xf96   :  { %3349 = vmatpush1.bf16.msra.mxu0 %v7324_v19  ;;  %3422 = vmatpush1.bf16.msra.mxu1 %v7327_v15  ;;  %v9667_v19 = vld [vmem:[#allocation11 + $0xa8] ss:$16 sps:$4 sm:$0xff]   ;;  %v9673_v15 = vld [vmem:[#allocation11 + $0xc4] ss:$16 sps:$4 sm:$0xff]  }
 0xf97   :  { %3350 = vmatprep.subr.bf16.mxu0 %v7332_v41  ;;  %3423 = vmatprep.subr.bf16.mxu1 %v7335_v52  ;;  %v9677_v41 = vld [vmem:[#allocation11 + $0xc0] ss:$16 sps:$4 sm:$0xff]   ;;  %v9679_v52 = vld [vmem:[#allocation11 + $0xc8] ss:$16 sps:$4 sm:$0xff]  }
 0xf98   :  { %3380 = vmatprep.mubr.bf16.mxu0 %v11079_v51  ;;  %3453 = vmatprep.mubr.bf16.mxu1 %v11079_v51 }
 0xf9a   :  { %3351 = vmatpush1.bf16.msra.mxu0 %v7330_v36  ;;  %3424 = vmatpush1.bf16.msra.mxu1 %v7333_v33  ;;  %v9685_v36 = vld [vmem:[#allocation11 + $0xe4] ss:$16 sps:$4 sm:$0xff]   ;;  %v9687_v33 = vld [vmem:[#allocation11 + $0xec] ss:$16 sps:$4 sm:$0xff]  }
 0xf9b   :  { %3352 = vmatprep.subr.bf16.mxu0 %v7338_v55  ;;  %3425 = vmatprep.subr.bf16.mxu1 %v7341_v56  ;;  %v9689_v55 = vld [vmem:[#allocation11 + $0xe0] ss:$16 sps:$4 sm:$0xff]   ;;  %v9691_v56 = vld [vmem:[#allocation11 + $0xe8] ss:$16 sps:$4 sm:$0xff]  }
 0xf9e   :  { %3353 = vmatpush1.bf16.msra.mxu0 %v7336_v57  ;;  %3426 = vmatpush1.bf16.msra.mxu1 %v7339_v58  ;;  %v11143_v57 = vld [vmem:[#allocation44_spill] sm:$0xff] }
 0xf9f   :  { %3354 = vmatprep.subr.bf16.mxu0 %v7344_v12  ;;  %3427 = vmatprep.subr.bf16.mxu1 %v7347_v62  ;;  %v1946_v58 = vadd.f32 %v11143_v57, %v9249_v25  ;;  %v11144_v12 = vld [vmem:[#allocation45_spill] sm:$0xff] }
 0xfa0   :  { %v2019_v62 = vadd.f32 %v11144_v12, %v9252_v11 }
 0xfa2   :  { %3355 = vmatpush1.bf16.msra.mxu0 %v7342_v63  ;;  %3428 = vmatpush1.bf16.msra.mxu1 %v7345_v1  ;;  %v11145_v63 = vld [vmem:[#allocation46_spill] sm:$0xff] }
 0xfa3   :  { %3356 = vmatprep.subr.bf16.mxu0 %v7350_v2  ;;  %3429 = vmatprep.subr.bf16.mxu1 %v7353_v18  ;;  %v1948_v1 = vadd.f32 %v11145_v63, %v9259_v43  ;;  %v11146_v2 = vld [vmem:[#allocation47_spill] sm:$0xff] }
 0xfa4   :  { %v2021_v18 = vadd.f32 %v11146_v2, %v9262_v46 }
 0xfa6   :  { %3357 = vmatpush1.bf16.msra.mxu0 %v7348_v5  ;;  %3430 = vmatpush1.bf16.msra.mxu1 %v7351_v10 }
 0xfa7   :  { %3358 = vmatprep.subr.bf16.mxu0 %v7356_v23  ;;  %3431 = vmatprep.subr.bf16.mxu1 %v7359_v47 }
 0xfaa   :  { %3359 = vmatpush1.bf16.msra.mxu0 %v7354_v37  ;;  %3432 = vmatpush1.bf16.msra.mxu1 %v7357_v53 }
 0xfab   :  { %3360 = vmatprep.subr.bf16.mxu0 %v7362_v9  ;;  %3433 = vmatprep.subr.bf16.mxu1 %v7365_v32 }
 0xfae   :  { %3361 = vmatpush1.bf16.msra.mxu0 %v7360_v14  ;;  %3434 = vmatpush1.bf16.msra.mxu1 %v7363_v35 }
 0xfaf   :  { %3362 = vmatprep.subr.bf16.mxu0 %v7368_v38  ;;  %3435 = vmatprep.subr.bf16.mxu1 %v7371_v48 }
 0xfb2   :  { %3363 = vmatpush1.bf16.msra.mxu0 %v7366_v34  ;;  %3436 = vmatpush1.bf16.msra.mxu1 %v7369_v49 }
 0xfb3   :  { %3722 = vmatprep.subr.bf16.mxu0 %v9601_v50  ;;  %3763 = vmatprep.subr.bf16.mxu1 %v9603_v29 }
 0xfb5   :  { %3381 = vmatmul.mubr.bf16.vlgmr.msra.gmra.mrb[80].mxu0 %v7069_v26  ;;  %3454 = vmatmul.mubr.bf16.vlgmr.msra.gmra.mrb[112].mxu1 %v7069_v26 }
 0xfb6   :  { %3390 = vmatprep.mubr.bf16.mxu0 %v11079_v51  ;;  %3463 = vmatprep.mubr.bf16.mxu1 %v11079_v51 }
 0xfb7   :  { %3723 = vmatpush1.bf16.msra.mxu0 %v9605_v59  ;;  %3764 = vmatpush1.bf16.msra.mxu1 %v9607_v24 }
 0xfb8   :  { %3724 = vmatprep.subr.bf16.mxu0 %v9613_v42  ;;  %3765 = vmatprep.subr.bf16.mxu1 %v9615_v44 }
 0xfbb   :  { %3725 = vmatpush1.bf16.msra.mxu0 %v9617_v6  ;;  %3766 = vmatpush1.bf16.msra.mxu1 %v9619_v20 }
 0xfbc   :  { %3726 = vmatprep.subr.bf16.mxu0 %v9625_v30  ;;  %3767 = vmatprep.subr.bf16.mxu1 %v9627_v21 }
 0xfbd   :  { %3391 = vmatmul.mubr.bf16.gmra.mrb[84].mxu0 %v7070_v8  ;;  %3464 = vmatmul.mubr.bf16.gmra.mrb[116].mxu1 %v7070_v8 }
 0xfbe   :  { %3400 = vmatprep.mubr.bf16.mxu0 %v11079_v51  ;;  %3473 = vmatprep.mubr.bf16.mxu1 %v11079_v51 }
 0xfbf   :  { %3727 = vmatpush1.bf16.msra.mxu0 %v9629_v54  ;;  %3768 = vmatpush1.bf16.msra.mxu1 %v9631_v61 }
 0xfc0   :  { %3728 = vmatprep.subr.bf16.mxu0 %v9637_v7  ;;  %3769 = vmatprep.subr.bf16.mxu1 %v9639_v4 }
 0xfc3   :  { %3729 = vmatpush1.bf16.msra.mxu0 %v9641_v28  ;;  %3770 = vmatpush1.bf16.msra.mxu1 %v9643_v3 }
 0xfc4   :  { %3730 = vmatprep.subr.bf16.mxu0 %v9649_v60  ;;  %3771 = vmatprep.subr.bf16.mxu1 %v9651_v22 }
 0xfc5   :  { %3401 = vmatmul.mubr.bf16.gmra.mrb[88].mxu0 %v7071_v0  ;;  %3474 = vmatmul.mubr.bf16.gmra.mrb[120].mxu1 %v7071_v0 }
 0xfc6   :  { %3410 = vmatprep.mubr.bf16.mxu0 %v11079_v51  ;;  %3483 = vmatprep.mubr.bf16.mxu1 %v11079_v51 }
 0xfc7   :  { %3731 = vmatpush1.bf16.msra.mxu0 %v9653_v31  ;;  %3772 = vmatpush1.bf16.msra.mxu1 %v9655_v13 }
 0xfc8   :  { %3732 = vmatprep.subr.bf16.mxu0 %v9661_v17  ;;  %3773 = vmatprep.subr.bf16.mxu1 %v9663_v27 }
 0xfcb   :  { %3733 = vmatpush1.bf16.msra.mxu0 %v9665_v45  ;;  %3774 = vmatpush1.bf16.msra.mxu1 %v9667_v19 }
 0xfcc   :  { %3734 = vmatprep.subr.bf16.mxu0 %v9673_v15  ;;  %3775 = vmatprep.subr.bf16.mxu1 %v9675_v39 }
 0xfcf   :  { %3735 = vmatpush1.bf16.msra.mxu0 %v9677_v41  ;;  %3776 = vmatpush1.bf16.msra.mxu1 %v9679_v52 }
 0xfd0   :  { %3736 = vmatprep.subr.bf16.mxu0 %v9685_v36  ;;  %3777 = vmatprep.subr.bf16.mxu1 %v9687_v33 }
 0xfd3   :  { %3737 = vmatpush1.bf16.msra.mxu0 %v9689_v55  ;;  %3778 = vmatpush1.bf16.msra.mxu1 %v9691_v56 }
 0xfd4   :  { %3828 = vmatprep.subr.bf16.mxu0 %v9601_v50  ;;  %3869 = vmatprep.subr.bf16.mxu1 %v9603_v29 }
0x1068   :  { %v3027_v5 = vpop.f32.mrb[76].mxu0  ;;  %v3068_v10 = vpop.f32.mrb[108].mxu1 }
0x1069   :  { %v3028_v23 = vadd.f32 %v3027_v5, %v1946_v58  ;;  %v3069_v47 = vadd.f32 %v3068_v10, %v2019_v62  ;;  %v3029_v37 = vpop.f32.mrb[77].mxu0  ;;  %v3070_v53 = vpop.f32.mrb[109].mxu1 }
0x106a   :  { %v3030_v9 = vadd.f32 %v3029_v37, %v1948_v1  ;;  %v3071_v32 = vadd.f32 %v3070_v53, %v2021_v18  ;;  %v3031_v14 = vpop.f32.mrb[78].mxu0  ;;  %v3072_v35 = vpop.f32.mrb[110].mxu1 }
0x106b   :  { %v3075_v25 = vmul.f32 0.5, %v3028_v23  ;;  %v3032_v38 = vpop.f32.mrb[79].mxu0  ;;  %v3073_v48 = vpop.f32.mrb[111].mxu1  ;;  %v3077_v43 = vmul.f32 0.5, %v3069_v47 }
0x106c   :  { %v3076_v11 = vmul.f32 0.5, %v3030_v9 }
0x106d   :  { %7674 = vtanh.f32 %v3075_v25 }
0x106e   :  { %7676 = vtanh.f32 %v3076_v11 }
0x106f   :  { %7678 = vtanh.f32 %v3071_v32 }
0x1070   :  { %7680 = vtanh.f32 %v3077_v43 }
0x1077   :  { %v7675_v34 = vpop.eup %7674 }
0x1078   :  { %v3081_v46 = vmul.f32 0.5, %v7675_v34  ;;  %v7677_v49 = vpop.eup %7676 }
0x1079   :  { %v3082_v8 = vmul.f32 0.5, %v7677_v49  ;;  %v7679_v0 = vpop.eup %7678 }
0x107a   :  { %v3084_v26 = vadd.f32 0.5, %v3081_v46  ;;  %v7681_v63 = vpop.eup %7680 }
0x107b   :  { %v3085_v57 = vadd.f32 0.5, %v3082_v8  ;;  %v3083_v1 = vmul.f32 0.5, %v7681_v63 }
0x107c   :  { %v3089_v58 = vmul.f32 %v7679_v0, %v3084_v26 }
0x107d   :  { %v3088_v12 = vmul.f32 %v3085_v57, %v9580_v16  ;;  %v3086_v37 = vadd.f32 0.5, %v3083_v1 }
0x107f   :  { %v3090_v62 = vadd.f32 %v3089_v58, %v3088_v12 }
0x1081   :  { %7682 = vtanh.f32 %v3090_v62  ;;  %v3142_v62 = vld [vmem:[%s11040_s9] sm:$0xf] }
0x1088   :  { %v9708_v2 = vpop.f32.mrb[80].mxu0  ;;  %v9710_v18 = vpop.f32.mrb[112].mxu1 }
0x1089   :  { %v9712_v5 = vpop.f32.mrb[81].mxu0  ;;  %v9714_v10 = vpop.f32.mrb[113].mxu1 }
0x108a   :  { %v9716_v23 = vpop.f32.mrb[82].mxu0  ;;  %v9718_v47 = vpop.f32.mrb[114].mxu1 }
0x108b   :  { %v9720_v53 = vpop.f32.mrb[83].mxu0  ;;  %v9722_v16 = vpop.f32.mrb[115].mxu1 }
0x108c   :  { %v7683_v9 = vpop.eup %7682 }
0x108d   :  { %v3092_v32 = vmul.f32 %v7683_v9, %v3086_v37 }
0x108f   :  { %v7072_v14 = vpack.c.bf16 %v3092_v32, %v9583_v40 }
0x1090   :  { %v9725_v35 = vpop.f32.mrb[84].mxu0  ;;  %v9727_v25 = vpop.f32.mrb[116].mxu1 }
0x1091   :  { %11147 = vst [vmem:[#allocation22_spill] sm:$0xff] %v9725_v35  ;;  %11148 = vst [vmem:[#allocation31_spill] sm:$0xff] %v9727_v25  ;;  %v9729_v38 = vpop.f32.mrb[85].mxu0  ;;  %3411 = vmatmul.mubr.bf16.gmra.mrb[92].mxu0 %v7072_v14  ;;  %v9731_v48 = vpop.f32.mrb[117].mxu1  ;;  %3484 = vmatmul.mubr.bf16.gmra.mrb[124].mxu1 %v7072_v14 }
0x1092   :  { %11149 = vst [vmem:[#allocation23_spill] sm:$0xff] %v9729_v38  ;;  %11150 = vst [vmem:[#allocation32_spill] sm:$0xff] %v9731_v48  ;;  %v9733_v11 = vpop.f32.mrb[86].mxu0  ;;  %v9735_v43 = vpop.f32.mrb[118].mxu1  ;;  %3754 = vmatprep.mubr.bf16.mxu0 %v11079_v51  ;;  %3795 = vmatprep.mubr.bf16.mxu1 %v11079_v51 }
0x1093   :  { %11151 = vst [vmem:[#allocation24_spill] sm:$0xff] %v9733_v11  ;;  %11152 = vst [vmem:[#allocation33_spill] sm:$0xff] %v9735_v43  ;;  %v9739_v34 = vpop.f32.mrb[87].mxu0  ;;  %v9741_v40 = vpop.f32.mrb[119].mxu1 }
0x1094   :  { %11153 = vst [vmem:[#allocation25_spill] sm:$0xff] %v9739_v34  ;;  %11154 = vst [vmem:[#allocation34_spill] sm:$0xff] %v9741_v40 }
0x1098   :  { %v9743_v46 = vpop.f32.mrb[88].mxu0  ;;  %v9745_v49 = vpop.f32.mrb[120].mxu1 }
0x1099   :  { %11155 = vst [vmem:[#allocation26_spill] sm:$0xff] %v9743_v46  ;;  %11156 = vst [vmem:[#allocation35_spill] sm:$0xff] %v9745_v49  ;;  %v9747_v26 = vpop.f32.mrb[89].mxu0  ;;  %v9749_v8 = vpop.f32.mrb[121].mxu1  ;;  %3755 = vmatmul.mubr.bf16.vlgmr.msra.gmra.mrb[96].mxu0 %v11079_v51  ;;  %3796 = vmatmul.mubr.bf16.vlgmr.msra.gmra.mrb[128].mxu1 %v11079_v51 }
0x109a   :  { %11157 = vst [vmem:[#allocation38_spill] sm:$0xff] %v9747_v26  ;;  %11158 = vst [vmem:[#allocation27_spill] sm:$0xff] %v9749_v8  ;;  %v9753_v0 = vpop.f32.mrb[90].mxu0  ;;  %v9755_v57 = vpop.f32.mrb[122].mxu1  ;;  %3829 = vmatpush1.bf16.msra.mxu0 %v9605_v59  ;;  %3870 = vmatpush1.bf16.msra.mxu1 %v9607_v24 }
0x109b   :  { %11159 = vst [vmem:[#allocation36_spill] sm:$0xff] %v9753_v0  ;;  %11160 = vst [vmem:[#allocation28_spill] sm:$0xff] %v9755_v57  ;;  %v9759_v58 = vpop.f32.mrb[91].mxu0  ;;  %v9761_v12 = vpop.f32.mrb[123].mxu1  ;;  %3830 = vmatprep.subr.bf16.mxu0 %v9613_v42  ;;  %3871 = vmatprep.subr.bf16.mxu1 %v9615_v44  ;;  %v11170_v57 = vld [vmem:[#allocation29_spill] sm:$0xff] }
0x109c   :  { %11161 = vst [vmem:[#allocation37_spill] sm:$0xff] %v9759_v58  ;;  %11162 = vst [vmem:[#allocation39_spill] sm:$0xff] %v9761_v12  ;;  %3860 = vmatprep.mubr.bf16.mxu0 %v11079_v51  ;;  %3901 = vmatprep.mubr.bf16.mxu1 %v11079_v51  ;;  %v11169_v12 = vld [vmem:[#allocation20_spill] sm:$0xff]  ;;  %v9814_v0 = vrot.slane %v3142_v62, %v11170_v57 }
0x109d   :  { %v9811_v58 = vrot.slane %v3142_v62, %v11169_v12 }
0x109e   :  { %3831 = vmatpush1.bf16.msra.mxu0 %v9617_v6  ;;  %3872 = vmatpush1.bf16.msra.mxu1 %v9619_v20  ;;  %v3456_v12 = vadd.f32 %v9710_v18, %v9814_v0 }
0x109f   :  { %3832 = vmatprep.subr.bf16.mxu0 %v9625_v30  ;;  %3873 = vmatprep.subr.bf16.mxu1 %v9627_v21 }
0x10a2   :  { %3833 = vmatpush1.bf16.msra.mxu0 %v9629_v54  ;;  %3874 = vmatpush1.bf16.msra.mxu1 %v9631_v61 }
0x10a3   :  { %3834 = vmatprep.subr.bf16.mxu0 %v9637_v7  ;;  %3875 = vmatprep.subr.bf16.mxu1 %v9639_v4 }
0x10a6   :  { %3835 = vmatpush1.bf16.msra.mxu0 %v9641_v28  ;;  %3876 = vmatpush1.bf16.msra.mxu1 %v9643_v3 }
0x10a7   :  { %3836 = vmatprep.subr.bf16.mxu0 %v9649_v60  ;;  %3877 = vmatprep.subr.bf16.mxu1 %v9651_v22 }
0x10aa   :  { %3837 = vmatpush1.bf16.msra.mxu0 %v9653_v31  ;;  %3878 = vmatpush1.bf16.msra.mxu1 %v9655_v13 }
0x10ab   :  { %3838 = vmatprep.subr.bf16.mxu0 %v9661_v17  ;;  %3879 = vmatprep.subr.bf16.mxu1 %v9663_v27 }
0x10ae   :  { %3839 = vmatpush1.bf16.msra.mxu0 %v9665_v45  ;;  %3880 = vmatpush1.bf16.msra.mxu1 %v9667_v19 }
0x10af   :  { %3840 = vmatprep.subr.bf16.mxu0 %v9673_v15  ;;  %3881 = vmatprep.subr.bf16.mxu1 %v9675_v39 }
0x10b2   :  { %3841 = vmatpush1.bf16.msra.mxu0 %v9677_v41  ;;  %3882 = vmatpush1.bf16.msra.mxu1 %v9679_v52 }
0x10b3   :  { %3842 = vmatprep.subr.bf16.mxu0 %v9685_v36  ;;  %3883 = vmatprep.subr.bf16.mxu1 %v9687_v33 }
0x10b6   :  { %3843 = vmatpush1.bf16.msra.mxu0 %v9689_v55  ;;  %3884 = vmatpush1.bf16.msra.mxu1 %v9691_v56 }
0x10b7   :  { %3934 = vmatprep.subr.bf16.mxu0 %v9601_v50  ;;  %3975 = vmatprep.subr.bf16.mxu1 %v9603_v29 }
0x1164   :  { %v9798_v63 = vpop.f32.mrb[92].mxu0  ;;  %v9800_v1 = vpop.f32.mrb[124].mxu1 }
0x1165   :  { %11163 = vst [vmem:[#allocation40_spill] sm:$0xff] %v9798_v63  ;;  %11164 = vst [vmem:[#allocation41_spill] sm:$0xff] %v9800_v1  ;;  %v9802_v37 = vpop.f32.mrb[93].mxu0  ;;  %v9804_v9 = vpop.f32.mrb[125].mxu1  ;;  %v11173_v63 = vld [vmem:[#allocation21_spill] sm:$0xff] }
0x1166   :  { %11165 = vst [vmem:[#allocation42_spill] sm:$0xff] %v9802_v37  ;;  %11166 = vst [vmem:[#allocation43_spill] sm:$0xff] %v9804_v9  ;;  %v9806_v32 = vpop.f32.mrb[94].mxu0  ;;  %v9808_v14 = vpop.f32.mrb[126].mxu1  ;;  %v9821_v1 = vrot.slane %v3142_v62, %v11173_v63  ;;  %v11174_v37 = vld [vmem:[#allocation30_spill] sm:$0xff] }
0x1167   :  { %11167 = vst [vmem:[#allocation44_spill] sm:$0xff] %v9806_v32  ;;  %11168 = vst [vmem:[#allocation45_spill] sm:$0xff] %v9808_v14  ;;  %v9816_v8 = vpop.f32.mrb[95].mxu0  ;;  %v9818_v26 = vpop.f32.mrb[127].mxu1  ;;  %v9824_v49 = vrot.slane %v3142_v62, %v11174_v37  ;;  %v3383_v32 = vadd.f32 %v9708_v2, %v9811_v58 }
0x1168   :  { %11171 = vst [vmem:[#allocation46_spill] sm:$0xff] %v9816_v8  ;;  %11172 = vst [vmem:[#allocation47_spill] sm:$0xff] %v9818_v26  ;;  %v3385_v57 = vadd.f32 %v9712_v5, %v9821_v1 }
0x1169   :  { %v3458_v8 = vadd.f32 %v9714_v10, %v9824_v49 }
0x116c   :  { %v3756_v14 = vpop.f32.mrb[96].mxu0  ;;  %v3797_v26 = vpop.f32.mrb[128].mxu1 }
0x116d   :  { %v3757_v9 = vadd.f32 %v3756_v14, %v3383_v32  ;;  %v3798_v63 = vadd.f32 %v3797_v26, %v3456_v12  ;;  %v3758_v46 = vpop.f32.mrb[97].mxu0  ;;  %v3799_v40 = vpop.f32.mrb[129].mxu1 }
0x116e   :  { %v3759_v62 = vadd.f32 %v3758_v46, %v3385_v57  ;;  %v3800_v37 = vadd.f32 %v3799_v40, %v3458_v8  ;;  %v3760_v34 = vpop.f32.mrb[98].mxu0  ;;  %v3801_v43 = vpop.f32.mrb[130].mxu1 }
0x116f   :  { %v3804_v2 = vmul.f32 0.5, %v3757_v9  ;;  %v3761_v11 = vpop.f32.mrb[99].mxu0  ;;  %v3802_v48 = vpop.f32.mrb[131].mxu1  ;;  %v3806_v5 = vmul.f32 0.5, %v3798_v63  ;;  %v3389_v63 = vadd.f32 %v9720_v53, %v9821_v1 }
0x1170   :  { %v3805_v18 = vmul.f32 0.5, %v3759_v62 }
0x1171   :  { %7684 = vtanh.f32 %v3804_v2 }
0x1172   :  { %7686 = vtanh.f32 %v3805_v18 }
0x1173   :  { %7688 = vtanh.f32 %v3800_v37  ;;  %v3462_v37 = vadd.f32 %v9722_v16, %v9824_v49 }
0x1174   :  { %7690 = vtanh.f32 %v3806_v5 }
0x117b   :  { %v7685_v38 = vpop.eup %7684 }
0x117c   :  { %v3810_v10 = vmul.f32 0.5, %v7685_v38  ;;  %v7687_v25 = vpop.eup %7686 }
0x117d   :  { %v3811_v26 = vmul.f32 0.5, %v7687_v25  ;;  %v7689_v12 = vpop.eup %7688  ;;  %v3460_v25 = vadd.f32 %v9718_v47, %v9814_v0 }
0x117e   :  { %v3813_v35 = vadd.f32 0.5, %v3810_v10  ;;  %v7691_v48 = vpop.eup %7690 }
0x117f   :  { %v3814_v32 = vadd.f32 0.5, %v3811_v26  ;;  %v3812_v11 = vmul.f32 0.5, %v7691_v48 }
0x1180   :  { %v3818_v46 = vmul.f32 %v7689_v12, %v3813_v35  ;;  %v3387_v35 = vadd.f32 %v9716_v23, %v9811_v58 }
0x1181   :  { %v3817_v40 = vmul.f32 0.0, %v3814_v32  ;;  %v3815_v43 = vadd.f32 0.5, %v3812_v11 }
0x1183   :  { %v9834_v34 = vadd.f32 %v3818_v46, %v3817_v40 }
0x1185   :  { %7692 = vtanh.f32 %v9834_v34 }
0x118f   :  { %v7693_v8 = vpop.eup %7692 }
0x1190   :  { %v9837_v57 = vmul.f32 %v7693_v8, %v3815_v43 }
0x1192   :  { %v3823_v38 = vpack.c.bf16 %v9837_v57, %v9837_v57 }
0x1194   :  { %3861 = vmatmul.mubr.bf16.vlgmr.msra.gmra.mrb[100].mxu0 %v3823_v38  ;;  %3902 = vmatmul.mubr.bf16.vlgmr.msra.gmra.mrb[132].mxu1 %v3823_v38 }
0x1195   :  { %3935 = vmatpush1.bf16.msra.mxu0 %v9605_v59  ;;  %3976 = vmatpush1.bf16.msra.mxu1 %v9607_v24 }
0x1196   :  { %3936 = vmatprep.subr.bf16.mxu0 %v9613_v42  ;;  %3977 = vmatprep.subr.bf16.mxu1 %v9615_v44 }
0x1197   :  { %3966 = vmatprep.mubr.bf16.mxu0 %v11079_v51  ;;  %4007 = vmatprep.mubr.bf16.mxu1 %v11079_v51 }
0x1199   :  { %3937 = vmatpush1.bf16.msra.mxu0 %v9617_v6  ;;  %3978 = vmatpush1.bf16.msra.mxu1 %v9619_v20 }
0x119a   :  { %3938 = vmatprep.subr.bf16.mxu0 %v9625_v30  ;;  %3979 = vmatprep.subr.bf16.mxu1 %v9627_v21 }
0x119d   :  { %3939 = vmatpush1.bf16.msra.mxu0 %v9629_v54  ;;  %3980 = vmatpush1.bf16.msra.mxu1 %v9631_v61 }
0x119e   :  { %3940 = vmatprep.subr.bf16.mxu0 %v9637_v7  ;;  %3981 = vmatprep.subr.bf16.mxu1 %v9639_v4 }
0x11a1   :  { %3941 = vmatpush1.bf16.msra.mxu0 %v9641_v28  ;;  %3982 = vmatpush1.bf16.msra.mxu1 %v9643_v3 }
0x11a2   :  { %3942 = vmatprep.subr.bf16.mxu0 %v9649_v60  ;;  %3983 = vmatprep.subr.bf16.mxu1 %v9651_v22 }
0x11a5   :  { %3943 = vmatpush1.bf16.msra.mxu0 %v9653_v31  ;;  %3984 = vmatpush1.bf16.msra.mxu1 %v9655_v13 }
0x11a6   :  { %3944 = vmatprep.subr.bf16.mxu0 %v9661_v17  ;;  %3985 = vmatprep.subr.bf16.mxu1 %v9663_v27 }
0x11a9   :  { %3945 = vmatpush1.bf16.msra.mxu0 %v9665_v45  ;;  %3986 = vmatpush1.bf16.msra.mxu1 %v9667_v19 }
0x11aa   :  { %3946 = vmatprep.subr.bf16.mxu0 %v9673_v15  ;;  %3987 = vmatprep.subr.bf16.mxu1 %v9675_v39 }
0x11ad   :  { %3947 = vmatpush1.bf16.msra.mxu0 %v9677_v41  ;;  %3988 = vmatpush1.bf16.msra.mxu1 %v9679_v52 }
0x11ae   :  { %3948 = vmatprep.subr.bf16.mxu0 %v9685_v36  ;;  %3989 = vmatprep.subr.bf16.mxu1 %v9687_v33 }
0x11b1   :  { %3949 = vmatpush1.bf16.msra.mxu0 %v9689_v55  ;;  %3990 = vmatpush1.bf16.msra.mxu1 %v9691_v56 }
0x11b2   :  { %4040 = vmatprep.subr.bf16.mxu0 %v9601_v50  ;;  %4081 = vmatprep.subr.bf16.mxu1 %v9603_v29 }
0x1267   :  { %v3862_v9 = vpop.f32.mrb[100].mxu0  ;;  %v3903_v14 = vpop.f32.mrb[132].mxu1 }
0x1268   :  { %v3863_v62 = vadd.f32 %v3862_v9, %v3387_v35  ;;  %v3904_v2 = vadd.f32 %v3903_v14, %v3460_v25  ;;  %v3864_v18 = vpop.f32.mrb[101].mxu0  ;;  %v3905_v5 = vpop.f32.mrb[133].mxu1 }
0x1269   :  { %v3865_v10 = vadd.f32 %v3864_v18, %v3389_v63  ;;  %v3906_v26 = vadd.f32 %v3905_v5, %v3462_v37  ;;  %v3866_v12 = vpop.f32.mrb[102].mxu0  ;;  %v3907_v32 = vpop.f32.mrb[134].mxu1 }
0x126a   :  { %v3910_v23 = vmul.f32 0.5, %v3863_v62  ;;  %v3867_v46 = vpop.f32.mrb[103].mxu0  ;;  %v3908_v40 = vpop.f32.mrb[135].mxu1  ;;  %v3912_v53 = vmul.f32 0.5, %v3904_v2  ;;  %v11177_v32 = vld [vmem:[#allocation23_spill] sm:$0xff] }
0x126b   :  { %v3911_v47 = vmul.f32 0.5, %v3865_v10  ;;  %v11178_v46 = vld [vmem:[#allocation32_spill] sm:$0xff] }
0x126c   :  { %7694 = vtanh.f32 %v3910_v23  ;;  %v3395_v23 = vadd.f32 %v11177_v32, %v9821_v1  ;;  %v3468_v40 = vadd.f32 %v11178_v46, %v9824_v49 }
0x126d   :  { %7696 = vtanh.f32 %v3911_v47 }
0x126e   :  { %7698 = vtanh.f32 %v3906_v26  ;;  %v11176_v26 = vld [vmem:[#allocation31_spill] sm:$0xff] }
0x126f   :  { %7700 = vtanh.f32 %v3912_v53  ;;  %v3466_v12 = vadd.f32 %v11176_v26, %v9814_v0 }
0x1276   :  { %v7695_v48 = vpop.eup %7694 }
0x1277   :  { %v3916_v16 = vmul.f32 0.5, %v7695_v48  ;;  %v7697_v11 = vpop.eup %7696 }
0x1278   :  { %v3917_v8 = vmul.f32 0.5, %v7697_v11  ;;  %v7699_v38 = vpop.eup %7698 }
0x1279   :  { %v3919_v43 = vadd.f32 0.5, %v3916_v16  ;;  %v7701_v9 = vpop.eup %7700 }
0x127a   :  { %v3920_v35 = vadd.f32 0.5, %v3917_v8  ;;  %v3918_v14 = vmul.f32 0.5, %v7701_v9 }
0x127b   :  { %v3924_v25 = vmul.f32 %v7699_v38, %v3919_v43 }
0x127c   :  { %v3923_v63 = vmul.f32 %v3920_v35, %v9834_v34  ;;  %v3921_v62 = vadd.f32 0.5, %v3918_v14  ;;  %v11175_v34 = vld [vmem:[#allocation22_spill] sm:$0xff] }
0x127d   :  { %v3393_v10 = vadd.f32 %v11175_v34, %v9811_v58 }
0x127e   :  { %v9884_v37 = vadd.f32 %v3924_v25, %v3923_v63 }
0x1280   :  { %7702 = vtanh.f32 %v9884_v37 }
0x128a   :  { %v7703_v18 = vpop.eup %7702 }
0x128b   :  { %v9887_v2 = vmul.f32 %v7703_v18, %v3921_v62 }
0x128d   :  { %v3929_v5 = vpack.c.bf16 %v9887_v2, %v9887_v2 }
0x128f   :  { %3967 = vmatmul.mubr.bf16.vlgmr.msra.gmra.mrb[104].mxu0 %v3929_v5  ;;  %4008 = vmatmul.mubr.bf16.vlgmr.msra.gmra.mrb[136].mxu1 %v3929_v5 }
0x1290   :  { %4041 = vmatpush1.bf16.msra.mxu0 %v9605_v59  ;;  %4082 = vmatpush1.bf16.msra.mxu1 %v9607_v24 }
0x1291   :  { %4042 = vmatprep.subr.bf16.mxu0 %v9613_v42  ;;  %4083 = vmatprep.subr.bf16.mxu1 %v9615_v44 }
0x1292   :  { %4072 = vmatprep.mubr.bf16.mxu0 %v11079_v51  ;;  %4113 = vmatprep.mubr.bf16.mxu1 %v11079_v51 }
0x1294   :  { %4043 = vmatpush1.bf16.msra.mxu0 %v9617_v6  ;;  %4084 = vmatpush1.bf16.msra.mxu1 %v9619_v20 }
0x1295   :  { %4044 = vmatprep.subr.bf16.mxu0 %v9625_v30  ;;  %4085 = vmatprep.subr.bf16.mxu1 %v9627_v21 }
0x1298   :  { %4045 = vmatpush1.bf16.msra.mxu0 %v9629_v54  ;;  %4086 = vmatpush1.bf16.msra.mxu1 %v9631_v61 }
0x1299   :  { %4046 = vmatprep.subr.bf16.mxu0 %v9637_v7  ;;  %4087 = vmatprep.subr.bf16.mxu1 %v9639_v4 }
0x129c   :  { %4047 = vmatpush1.bf16.msra.mxu0 %v9641_v28  ;;  %4088 = vmatpush1.bf16.msra.mxu1 %v9643_v3 }
0x129d   :  { %4048 = vmatprep.subr.bf16.mxu0 %v9649_v60  ;;  %4089 = vmatprep.subr.bf16.mxu1 %v9651_v22 }
0x12a0   :  { %4049 = vmatpush1.bf16.msra.mxu0 %v9653_v31  ;;  %4090 = vmatpush1.bf16.msra.mxu1 %v9655_v13 }
0x12a1   :  { %4050 = vmatprep.subr.bf16.mxu0 %v9661_v17  ;;  %4091 = vmatprep.subr.bf16.mxu1 %v9663_v27 }
0x12a4   :  { %4051 = vmatpush1.bf16.msra.mxu0 %v9665_v45  ;;  %4092 = vmatpush1.bf16.msra.mxu1 %v9667_v19 }
0x12a5   :  { %4052 = vmatprep.subr.bf16.mxu0 %v9673_v15  ;;  %4093 = vmatprep.subr.bf16.mxu1 %v9675_v39 }
0x12a8   :  { %4053 = vmatpush1.bf16.msra.mxu0 %v9677_v41  ;;  %4094 = vmatpush1.bf16.msra.mxu1 %v9679_v52 }
0x12a9   :  { %4054 = vmatprep.subr.bf16.mxu0 %v9685_v36  ;;  %4095 = vmatprep.subr.bf16.mxu1 %v9687_v33 }
0x12ac   :  { %4055 = vmatpush1.bf16.msra.mxu0 %v9689_v55  ;;  %4096 = vmatpush1.bf16.msra.mxu1 %v9691_v56 }
0x12ad   :  { %4146 = vmatprep.subr.bf16.mxu0 %v9601_v50  ;;  %4187 = vmatprep.subr.bf16.mxu1 %v9603_v29 }
0x1362   :  { %v3968_v47 = vpop.f32.mrb[104].mxu0  ;;  %v4009_v53 = vpop.f32.mrb[136].mxu1 }
0x1363   :  { %v3969_v48 = vadd.f32 %v3968_v47, %v3393_v10  ;;  %v4010_v16 = vadd.f32 %v4009_v53, %v3466_v12  ;;  %v3970_v11 = vpop.f32.mrb[105].mxu0  ;;  %v4011_v43 = vpop.f32.mrb[137].mxu1 }
0x1364   :  { %v3971_v8 = vadd.f32 %v3970_v11, %v3395_v23  ;;  %v4012_v38 = vadd.f32 %v4011_v43, %v3468_v40  ;;  %v3972_v35 = vpop.f32.mrb[106].mxu0  ;;  %v4013_v25 = vpop.f32.mrb[138].mxu1 }
0x1365   :  { %v4016_v63 = vmul.f32 0.5, %v3969_v48  ;;  %v3973_v9 = vpop.f32.mrb[107].mxu0  ;;  %v4014_v14 = vpop.f32.mrb[139].mxu1  ;;  %v4018_v18 = vmul.f32 0.5, %v4010_v16  ;;  %v11180_v35 = vld [vmem:[#allocation33_spill] sm:$0xff] }
0x1366   :  { %v4017_v62 = vmul.f32 0.5, %v3971_v8  ;;  %v3470_v25 = vadd.f32 %v11180_v35, %v9814_v0  ;;  %v11182_v14 = vld [vmem:[#allocation34_spill] sm:$0xff] }
0x1367   :  { %7704 = vtanh.f32 %v4016_v63  ;;  %v11181_v63 = vld [vmem:[#allocation25_spill] sm:$0xff] }
0x1368   :  { %7706 = vtanh.f32 %v4017_v62  ;;  %v3399_v9 = vadd.f32 %v11181_v63, %v9821_v1  ;;  %v3472_v62 = vadd.f32 %v11182_v14, %v9824_v49 }
0x1369   :  { %7708 = vtanh.f32 %v4012_v38 }
0x136a   :  { %7710 = vtanh.f32 %v4018_v18 }
0x1371   :  { %v7705_v5 = vpop.eup %7704 }
0x1372   :  { %v4022_v34 = vmul.f32 0.5, %v7705_v5  ;;  %v7707_v26 = vpop.eup %7706 }
0x1373   :  { %v4023_v10 = vmul.f32 0.5, %v7707_v26  ;;  %v7709_v12 = vpop.eup %7708 }
0x1374   :  { %v4025_v32 = vadd.f32 0.5, %v4022_v34  ;;  %v7711_v53 = vpop.eup %7710 }
0x1375   :  { %v4026_v46 = vadd.f32 0.5, %v4023_v10  ;;  %v4024_v48 = vmul.f32 0.5, %v7711_v53 }
0x1376   :  { %v4030_v23 = vmul.f32 %v7709_v12, %v4025_v32 }
0x1377   :  { %v4029_v40 = vmul.f32 %v4026_v46, %v9884_v37  ;;  %v4027_v11 = vadd.f32 0.5, %v4024_v48  ;;  %v11179_v37 = vld [vmem:[#allocation24_spill] sm:$0xff] }
0x1378   :  { %v3397_v38 = vadd.f32 %v11179_v37, %v9811_v58 }
0x1379   :  { %v9934_v47 = vadd.f32 %v4030_v23, %v4029_v40 }
0x137b   :  { %7712 = vtanh.f32 %v9934_v47 }
0x1385   :  { %v7713_v43 = vpop.eup %7712 }
0x1386   :  { %v9937_v16 = vmul.f32 %v7713_v43, %v4027_v11 }
0x1388   :  { %v4035_v8 = vpack.c.bf16 %v9937_v16, %v9937_v16 }
0x138a   :  { %4073 = vmatmul.mubr.bf16.vlgmr.msra.gmra.mrb[108].mxu0 %v4035_v8  ;;  %4114 = vmatmul.mubr.bf16.vlgmr.msra.gmra.mrb[140].mxu1 %v4035_v8 }
0x138b   :  { %4147 = vmatpush1.bf16.msra.mxu0 %v9605_v59  ;;  %4188 = vmatpush1.bf16.msra.mxu1 %v9607_v24 }
0x138c   :  { %4148 = vmatprep.subr.bf16.mxu0 %v9613_v42  ;;  %4189 = vmatprep.subr.bf16.mxu1 %v9615_v44 }
0x138d   :  { %4178 = vmatprep.mubr.bf16.mxu0 %v11079_v51  ;;  %4219 = vmatprep.mubr.bf16.mxu1 %v11079_v51 }
0x138f   :  { %4149 = vmatpush1.bf16.msra.mxu0 %v9617_v6  ;;  %4190 = vmatpush1.bf16.msra.mxu1 %v9619_v20 }
0x1390   :  { %4150 = vmatprep.subr.bf16.mxu0 %v9625_v30  ;;  %4191 = vmatprep.subr.bf16.mxu1 %v9627_v21 }
0x1393   :  { %4151 = vmatpush1.bf16.msra.mxu0 %v9629_v54  ;;  %4192 = vmatpush1.bf16.msra.mxu1 %v9631_v61 }
0x1394   :  { %4152 = vmatprep.subr.bf16.mxu0 %v9637_v7  ;;  %4193 = vmatprep.subr.bf16.mxu1 %v9639_v4 }
0x1397   :  { %4153 = vmatpush1.bf16.msra.mxu0 %v9641_v28  ;;  %4194 = vmatpush1.bf16.msra.mxu1 %v9643_v3 }
0x1398   :  { %4154 = vmatprep.subr.bf16.mxu0 %v9649_v60  ;;  %4195 = vmatprep.subr.bf16.mxu1 %v9651_v22 }
0x139b   :  { %4155 = vmatpush1.bf16.msra.mxu0 %v9653_v31  ;;  %4196 = vmatpush1.bf16.msra.mxu1 %v9655_v13 }
0x139c   :  { %4156 = vmatprep.subr.bf16.mxu0 %v9661_v17  ;;  %4197 = vmatprep.subr.bf16.mxu1 %v9663_v27 }
0x139f   :  { %4157 = vmatpush1.bf16.msra.mxu0 %v9665_v45  ;;  %4198 = vmatpush1.bf16.msra.mxu1 %v9667_v19 }
0x13a0   :  { %4158 = vmatprep.subr.bf16.mxu0 %v9673_v15  ;;  %4199 = vmatprep.subr.bf16.mxu1 %v9675_v39 }
0x13a3   :  { %4159 = vmatpush1.bf16.msra.mxu0 %v9677_v41  ;;  %4200 = vmatpush1.bf16.msra.mxu1 %v9679_v52 }
0x13a4   :  { %4160 = vmatprep.subr.bf16.mxu0 %v9685_v36  ;;  %4201 = vmatprep.subr.bf16.mxu1 %v9687_v33 }
0x13a7   :  { %4161 = vmatpush1.bf16.msra.mxu0 %v9689_v55  ;;  %4202 = vmatpush1.bf16.msra.mxu1 %v9691_v56 }
0x13a8   :  { %4252 = vmatprep.subr.bf16.mxu0 %v9601_v50  ;;  %4293 = vmatprep.subr.bf16.mxu1 %v9603_v29 }
0x145d   :  { %v4074_v18 = vpop.f32.mrb[108].mxu0  ;;  %v4115_v5 = vpop.f32.mrb[140].mxu1 }
0x145e   :  { %v4075_v34 = vadd.f32 %v4074_v18, %v3397_v38  ;;  %v4116_v26 = vadd.f32 %v4115_v5, %v3470_v25  ;;  %v4076_v32 = vpop.f32.mrb[109].mxu0  ;;  %v4117_v10 = vpop.f32.mrb[141].mxu1 }
0x145f   :  { %v4077_v12 = vadd.f32 %v4076_v32, %v3399_v9  ;;  %v4118_v46 = vadd.f32 %v4117_v10, %v3472_v62  ;;  %v4078_v23 = vpop.f32.mrb[110].mxu0  ;;  %v4119_v40 = vpop.f32.mrb[142].mxu1 }
0x1460   :  { %v4122_v53 = vmul.f32 0.5, %v4075_v34  ;;  %v4079_v48 = vpop.f32.mrb[111].mxu0  ;;  %v4120_v11 = vpop.f32.mrb[143].mxu1  ;;  %v4124_v8 = vmul.f32 0.5, %v4116_v26 }
0x1461   :  { %v4123_v43 = vmul.f32 0.5, %v4077_v12 }
0x1462   :  { %7714 = vtanh.f32 %v4122_v53 }
0x1463   :  { %7716 = vtanh.f32 %v4123_v43 }
0x1464   :  { %7718 = vtanh.f32 %v4118_v46 }
0x1465   :  { %7720 = vtanh.f32 %v4124_v8 }
0x146c   :  { %v7715_v37 = vpop.eup %7714 }
0x146d   :  { %v4128_v35 = vmul.f32 0.5, %v7715_v37  ;;  %v7717_v63 = vpop.eup %7716 }
0x146e   :  { %v4129_v38 = vmul.f32 0.5, %v7717_v63  ;;  %v7719_v25 = vpop.eup %7718 }
0x146f   :  { %v4131_v14 = vadd.f32 0.5, %v4128_v35  ;;  %v7721_v34 = vpop.eup %7720 }
0x1470   :  { %v4132_v18 = vadd.f32 0.5, %v4129_v38  ;;  %v4130_v32 = vmul.f32 0.5, %v7721_v34 }
0x1471   :  { %v4136_v9 = vmul.f32 %v7719_v25, %v4131_v14 }
0x1472   :  { %v4135_v62 = vmul.f32 %v4132_v18, %v9934_v47  ;;  %v4133_v10 = vadd.f32 0.5, %v4130_v32 }
0x1474   :  { %v9984_v5 = vadd.f32 %v4136_v9, %v4135_v62 }
0x1476   :  { %7722 = vtanh.f32 %v9984_v5 }
0x1480   :  { %v7723_v12 = vpop.eup %7722 }
0x1481   :  { %v9987_v26 = vmul.f32 %v7723_v12, %v4133_v10  ;;  %v10041_v10 = vld [vmem:[#allocation11] ss:$16 sps:$4 sm:$0xff]   ;;  %v10047_v12 = vld [vmem:[#allocation11 + $0x24] ss:$16 sps:$4 sm:$0xff]  }
0x1483   :  { %v4141_v46 = vpack.c.bf16 %v9987_v26, %v9987_v26 }
0x1485   :  { %4179 = vmatmul.mubr.bf16.vlgmr.msra.gmra.mrb[112].mxu0 %v4141_v46  ;;  %4220 = vmatmul.mubr.bf16.vlgmr.msra.gmra.mrb[144].mxu1 %v4141_v46  ;;  %v10050_v46 = vld [vmem:[#allocation11 + $0x2c] ss:$16 sps:$4 sm:$0xff]  }
0x1486   :  { %4253 = vmatpush1.bf16.msra.mxu0 %v9605_v59  ;;  %4294 = vmatpush1.bf16.msra.mxu1 %v9607_v24  ;;  %v11183_v59 = vld [vmem:[#allocation26_spill] sm:$0xff] }
0x1487   :  { %4254 = vmatprep.subr.bf16.mxu0 %v9613_v42  ;;  %4295 = vmatprep.subr.bf16.mxu1 %v9615_v44  ;;  %v3403_v24 = vadd.f32 %v11183_v59, %v9811_v58  ;;  %v11184_v42 = vld [vmem:[#allocation35_spill] sm:$0xff] }
0x1488   :  { %4284 = vmatprep.mubr.bf16.mxu0 %v11079_v51  ;;  %4325 = vmatprep.mubr.bf16.mxu1 %v11079_v51  ;;  %v3476_v44 = vadd.f32 %v11184_v42, %v9814_v0  ;;  %v10055_v59 = vld [vmem:[#allocation11 + $0x20] ss:$16 sps:$4 sm:$0xff]   ;;  %v10061_v42 = vld [vmem:[#allocation11 + $0x44] ss:$16 sps:$4 sm:$0xff]  }
0x148a   :  { %4255 = vmatpush1.bf16.msra.mxu0 %v9617_v6  ;;  %4296 = vmatpush1.bf16.msra.mxu1 %v9619_v20  ;;  %v11185_v6 = vld [vmem:[#allocation38_spill] sm:$0xff] }
0x148b   :  { %4256 = vmatprep.subr.bf16.mxu0 %v9625_v30  ;;  %4297 = vmatprep.subr.bf16.mxu1 %v9627_v21  ;;  %v3405_v20 = vadd.f32 %v11185_v6, %v9821_v1  ;;  %v11186_v30 = vld [vmem:[#allocation27_spill] sm:$0xff] }
0x148c   :  { %v3478_v21 = vadd.f32 %v11186_v30, %v9824_v49  ;;  %v10067_v6 = vld [vmem:[#allocation11 + $0x40] ss:$16 sps:$4 sm:$0xff]   ;;  %v10073_v30 = vld [vmem:[#allocation11 + $0x64] ss:$16 sps:$4 sm:$0xff]  }
0x148e   :  { %4257 = vmatpush1.bf16.msra.mxu0 %v9629_v54  ;;  %4298 = vmatpush1.bf16.msra.mxu1 %v9631_v61 }
0x148f   :  { %4258 = vmatprep.subr.bf16.mxu0 %v9637_v7  ;;  %4299 = vmatprep.subr.bf16.mxu1 %v9639_v4 }
0x1492   :  { %4259 = vmatpush1.bf16.msra.mxu0 %v9641_v28  ;;  %4300 = vmatpush1.bf16.msra.mxu1 %v9643_v3 }
0x1493   :  { %4260 = vmatprep.subr.bf16.mxu0 %v9649_v60  ;;  %4301 = vmatprep.subr.bf16.mxu1 %v9651_v22 }
0x1496   :  { %4261 = vmatpush1.bf16.msra.mxu0 %v9653_v31  ;;  %4302 = vmatpush1.bf16.msra.mxu1 %v9655_v13 }
0x1497   :  { %4262 = vmatprep.subr.bf16.mxu0 %v9661_v17  ;;  %4303 = vmatprep.subr.bf16.mxu1 %v9663_v27 }
0x149a   :  { %4263 = vmatpush1.bf16.msra.mxu0 %v9665_v45  ;;  %4304 = vmatpush1.bf16.msra.mxu1 %v9667_v19 }
0x149b   :  { %4264 = vmatprep.subr.bf16.mxu0 %v9673_v15  ;;  %4305 = vmatprep.subr.bf16.mxu1 %v9675_v39 }
0x149e   :  { %4265 = vmatpush1.bf16.msra.mxu0 %v9677_v41  ;;  %4306 = vmatpush1.bf16.msra.mxu1 %v9679_v52 }
0x149f   :  { %4266 = vmatprep.subr.bf16.mxu0 %v9685_v36  ;;  %4307 = vmatprep.subr.bf16.mxu1 %v9687_v33 }
0x14a2   :  { %4267 = vmatpush1.bf16.msra.mxu0 %v9689_v55  ;;  %4308 = vmatpush1.bf16.msra.mxu1 %v9691_v56 }
0x14a3   :  { %4358 = vmatprep.subr.bf16.mxu0 %v9601_v50  ;;  %4399 = vmatprep.subr.bf16.mxu1 %v9603_v29 }
0x1558   :  { %v4180_v54 = vpop.f32.mrb[112].mxu0  ;;  %v4221_v61 = vpop.f32.mrb[144].mxu1 }
0x1559   :  { %v4181_v7 = vadd.f32 %v4180_v54, %v3403_v24  ;;  %v4222_v4 = vadd.f32 %v4221_v61, %v3476_v44  ;;  %v4182_v28 = vpop.f32.mrb[113].mxu0  ;;  %v4223_v50 = vpop.f32.mrb[145].mxu1  ;;  %v10058_v24 = vld [vmem:[#allocation11 + $0x28] ss:$16 sps:$4 sm:$0xff]   ;;  %v10064_v44 = vld [vmem:[#allocation11 + $0x4c] ss:$16 sps:$4 sm:$0xff]  }
0x155a   :  { %v4183_v3 = vadd.f32 %v4182_v28, %v3405_v20  ;;  %v4224_v29 = vadd.f32 %v4223_v50, %v3478_v21  ;;  %v4184_v60 = vpop.f32.mrb[114].mxu0  ;;  %v4225_v22 = vpop.f32.mrb[146].mxu1  ;;  %v10070_v20 = vld [vmem:[#allocation11 + $0x48] ss:$16 sps:$4 sm:$0xff]   ;;  %v10076_v21 = vld [vmem:[#allocation11 + $0x6c] ss:$16 sps:$4 sm:$0xff]  }
0x155b   :  { %v4228_v31 = vmul.f32 0.5, %v4181_v7  ;;  %v4185_v13 = vpop.f32.mrb[115].mxu0  ;;  %v4226_v47 = vpop.f32.mrb[147].mxu1  ;;  %v4230_v40 = vmul.f32 0.5, %v4222_v4  ;;  %v10079_v54 = vld [vmem:[#allocation11 + $0x60] ss:$16 sps:$4 sm:$0xff]  }
0x155c   :  { %v4229_v23 = vmul.f32 0.5, %v4183_v3  ;;  %v10082_v61 = vld [vmem:[#allocation11 + $0x68] ss:$16 sps:$4 sm:$0xff]   ;;  %v10085_v7 = vld [vmem:[#allocation11 + $0x84] ss:$16 sps:$4 sm:$0xff]  }
0x155d   :  { %7724 = vtanh.f32 %v4228_v31  ;;  %v10088_v4 = vld [vmem:[#allocation11 + $0x8c] ss:$16 sps:$4 sm:$0xff]   ;;  %v10091_v28 = vld [vmem:[#allocation11 + $0x80] ss:$16 sps:$4 sm:$0xff]   ;;  %v10094_v50 = vld [vmem:[#allocation11 + $0x88] ss:$16 sps:$4 sm:$0xff]  }
0x155e   :  { %7726 = vtanh.f32 %v4229_v23 }
0x155f   :  { %7728 = vtanh.f32 %v4224_v29 }
0x1560   :  { %7730 = vtanh.f32 %v4230_v40 }
0x1567   :  { %v7725_v53 = vpop.eup %7724 }
0x1568   :  { %v4234_v48 = vmul.f32 0.5, %v7725_v53  ;;  %v7727_v11 = vpop.eup %7726 }
0x1569   :  { %v4235_v8 = vmul.f32 0.5, %v7727_v11  ;;  %v7729_v37 = vpop.eup %7728 }
0x156a   :  { %v4237_v43 = vadd.f32 0.5, %v4234_v48  ;;  %v7731_v25 = vpop.eup %7730 }
0x156b   :  { %v4238_v35 = vadd.f32 0.5, %v4235_v8  ;;  %v4236_v18 = vmul.f32 0.5, %v7731_v25 }
0x156c   :  { %v4242_v63 = vmul.f32 %v7729_v37, %v4237_v43 }
0x156d   :  { %v4241_v14 = vmul.f32 %v4238_v35, %v9984_v5  ;;  %v4239_v9 = vadd.f32 0.5, %v4236_v18  ;;  %v10044_v5 = vld [vmem:[#allocation11 + $0x8] ss:$16 sps:$4 sm:$0xff]  }
0x156f   :  { %v10034_v38 = vadd.f32 %v4242_v63, %v4241_v14 }
0x1571   :  { %7732 = vtanh.f32 %v10034_v38 }
0x157b   :  { %v7733_v62 = vpop.eup %7732 }
0x157c   :  { %v10037_v34 = vmul.f32 %v7733_v62, %v4239_v9 }
0x157e   :  { %v4247_v32 = vpack.c.bf16 %v10037_v34, %v10037_v34 }
0x1580   :  { %4285 = vmatmul.mubr.bf16.vlgmr.msra.gmra.mrb[116].mxu0 %v4247_v32  ;;  %4326 = vmatmul.mubr.bf16.vlgmr.msra.gmra.mrb[148].mxu1 %v4247_v32 }
0x1581   :  { %4359 = vmatpush1.bf16.msra.mxu0 %v10041_v10  ;;  %4400 = vmatpush1.bf16.msra.mxu1 %v10044_v5 }
0x1582   :  { %4360 = vmatprep.subr.bf16.mxu0 %v10047_v12  ;;  %4401 = vmatprep.subr.bf16.mxu1 %v10050_v46 }
0x1583   :  { %4390 = vmatprep.mubr.bf16.mxu0 %v11079_v51  ;;  %4431 = vmatprep.mubr.bf16.mxu1 %v11079_v51 }
0x1585   :  { %4361 = vmatpush1.bf16.msra.mxu0 %v10055_v59  ;;  %4402 = vmatpush1.bf16.msra.mxu1 %v10058_v24 }
0x1586   :  { %4362 = vmatprep.subr.bf16.mxu0 %v10061_v42  ;;  %4403 = vmatprep.subr.bf16.mxu1 %v10064_v44 }
0x1589   :  { %4363 = vmatpush1.bf16.msra.mxu0 %v10067_v6  ;;  %4404 = vmatpush1.bf16.msra.mxu1 %v10070_v20 }
0x158a   :  { %4364 = vmatprep.subr.bf16.mxu0 %v10073_v30  ;;  %4405 = vmatprep.subr.bf16.mxu1 %v10076_v21 }
0x158d   :  { %4365 = vmatpush1.bf16.msra.mxu0 %v10079_v54  ;;  %4406 = vmatpush1.bf16.msra.mxu1 %v10082_v61 }
0x158e   :  { %4366 = vmatprep.subr.bf16.mxu0 %v10085_v7  ;;  %4407 = vmatprep.subr.bf16.mxu1 %v10088_v4 }
0x1591   :  { %4367 = vmatpush1.bf16.msra.mxu0 %v10091_v28  ;;  %4408 = vmatpush1.bf16.msra.mxu1 %v10094_v50 }
0x1592   :  { %4368 = vmatprep.subr.bf16.mxu0 %v9661_v17  ;;  %4409 = vmatprep.subr.bf16.mxu1 %v9663_v27  ;;  %v7926_v17 = vld [vmem:[#allocation11 + $0x4] ss:$16 sps:$4 sm:$0xff]   ;;  %v7927_v27 = vld [vmem:[#allocation11 + $0xc] ss:$16 sps:$4 sm:$0xff]  }
0x1595   :  { %4369 = vmatpush1.bf16.msra.mxu0 %v9665_v45  ;;  %4410 = vmatpush1.bf16.msra.mxu1 %v9667_v19  ;;  %v11187_v45 = vld [vmem:[#allocation36_spill] sm:$0xff] }
0x1596   :  { %4370 = vmatprep.subr.bf16.mxu0 %v9673_v15  ;;  %4411 = vmatprep.subr.bf16.mxu1 %v9675_v39  ;;  %v3407_v19 = vadd.f32 %v11187_v45, %v9811_v58  ;;  %v11188_v15 = vld [vmem:[#allocation28_spill] sm:$0xff] }
0x1597   :  { %v3480_v39 = vadd.f32 %v11188_v15, %v9814_v0 }
0x1599   :  { %4371 = vmatpush1.bf16.msra.mxu0 %v9677_v41  ;;  %4412 = vmatpush1.bf16.msra.mxu1 %v9679_v52  ;;  %v11189_v41 = vld [vmem:[#allocation37_spill] sm:$0xff] }
0x159a   :  { %4372 = vmatprep.subr.bf16.mxu0 %v9685_v36  ;;  %4413 = vmatprep.subr.bf16.mxu1 %v9687_v33  ;;  %v3409_v52 = vadd.f32 %v11189_v41, %v9821_v1  ;;  %v11190_v36 = vld [vmem:[#allocation39_spill] sm:$0xff] }
0x159b   :  { %v3482_v33 = vadd.f32 %v11190_v36, %v9824_v49 }
0x159d   :  { %4373 = vmatpush1.bf16.msra.mxu0 %v9689_v55  ;;  %4414 = vmatpush1.bf16.msra.mxu1 %v9691_v56 }
0x159e   :  { %4464 = vmatprep.subr.bf16.mxu0 %v7926_v17  ;;  %4505 = vmatprep.subr.bf16.mxu1 %v7927_v27 }
0x1653   :  { %v4286_v3 = vpop.f32.mrb[116].mxu0  ;;  %v4327_v55 = vpop.f32.mrb[148].mxu1 }
0x1654   :  { %v4287_v29 = vadd.f32 %v4286_v3, %v3407_v19  ;;  %v4328_v56 = vadd.f32 %v4327_v55, %v3480_v39  ;;  %v4288_v60 = vpop.f32.mrb[117].mxu0  ;;  %v4329_v22 = vpop.f32.mrb[149].mxu1 }
0x1655   :  { %v4289_v31 = vadd.f32 %v4288_v60, %v3409_v52  ;;  %v4330_v13 = vadd.f32 %v4329_v22, %v3482_v33  ;;  %v4290_v47 = vpop.f32.mrb[118].mxu0  ;;  %v4331_v23 = vpop.f32.mrb[150].mxu1  ;;  %v11194_v52 = vld [vmem:[#allocation43_spill] sm:$0xff] }
0x1656   :  { %v4334_v40 = vmul.f32 0.5, %v4287_v29  ;;  %v4291_v53 = vpop.f32.mrb[119].mxu0  ;;  %v4332_v48 = vpop.f32.mrb[151].mxu1  ;;  %v4336_v43 = vmul.f32 0.5, %v4328_v56  ;;  %v3488_v36 = vadd.f32 %v11194_v52, %v9824_v49  ;;  %v7450_v52 = vld [vmem:[#allocation12 + $0xa0] ss:$16 sps:$4 sm:$0xff]  }
0x1657   :  { %v4335_v11 = vmul.f32 0.5, %v4289_v31 }
0x1658   :  { %7734 = vtanh.f32 %v4334_v40 }
0x1659   :  { %7736 = vtanh.f32 %v4335_v11 }
0x165a   :  { %7738 = vtanh.f32 %v4330_v13 }
0x165b   :  { %7740 = vtanh.f32 %v4336_v43 }
0x1662   :  { %v7735_v8 = vpop.eup %7734 }
0x1663   :  { %v4340_v37 = vmul.f32 0.5, %v7735_v8  ;;  %v7737_v35 = vpop.eup %7736 }
0x1664   :  { %v4341_v14 = vmul.f32 0.5, %v7737_v35  ;;  %v7739_v25 = vpop.eup %7738 }
0x1665   :  { %v4343_v63 = vadd.f32 0.5, %v4340_v37  ;;  %v7741_v17 = vpop.eup %7740 }
0x1666   :  { %v4344_v18 = vadd.f32 0.5, %v4341_v14  ;;  %v4342_v27 = vmul.f32 0.5, %v7741_v17 }
0x1667   :  { %v4348_v9 = vmul.f32 %v7739_v25, %v4343_v63 }
0x1668   :  { %v4347_v62 = vmul.f32 %v4344_v18, %v10034_v38  ;;  %v4345_v45 = vadd.f32 0.5, %v4342_v27  ;;  %v7928_v38 = vld [vmem:[#allocation11 + $0xa4] ss:$16 sps:$4 sm:$0xff]  }
0x166a   :  { %v10118_v32 = vadd.f32 %v4348_v9, %v4347_v62 }
0x166c   :  { %7742 = vtanh.f32 %v10118_v32 }
0x1676   :  { %v7743_v19 = vpop.eup %7742 }
0x1677   :  { %v10121_v15 = vmul.f32 %v7743_v19, %v4345_v45 }
0x1679   :  { %v4353_v39 = vpack.c.bf16 %v10121_v15, %v10121_v15 }
0x167b   :  { %4391 = vmatmul.mubr.bf16.vlgmr.msra.gmra.mrb[120].mxu0 %v4353_v39  ;;  %4432 = vmatmul.mubr.bf16.vlgmr.msra.gmra.mrb[152].mxu1 %v4353_v39 }
0x167c   :  { %4465 = vmatpush1.bf16.msra.mxu0 %v10041_v10  ;;  %4506 = vmatpush1.bf16.msra.mxu1 %v10044_v5  ;;  %v7929_v10 = vld [vmem:[#allocation11 + $0xac] ss:$16 sps:$4 sm:$0xff]   ;;  %v7930_v5 = vld [vmem:[#allocation11 + $0xa0] ss:$16 sps:$4 sm:$0xff]  }
0x167d   :  { %4466 = vmatprep.subr.bf16.mxu0 %v10047_v12  ;;  %4507 = vmatprep.subr.bf16.mxu1 %v10050_v46  ;;  %v7931_v12 = vld [vmem:[#allocation11 + $0xa8] ss:$16 sps:$4 sm:$0xff]   ;;  %v7932_v46 = vld [vmem:[#allocation11 + $0xc4] ss:$16 sps:$4 sm:$0xff]  }
0x167e   :  { %4496 = vmatprep.mubr.bf16.mxu0 %v11079_v51  ;;  %4537 = vmatprep.mubr.bf16.mxu1 %v11079_v51 }
0x1680   :  { %4467 = vmatpush1.bf16.msra.mxu0 %v10055_v59  ;;  %4508 = vmatpush1.bf16.msra.mxu1 %v10058_v24  ;;  %v7933_v59 = vld [vmem:[#allocation11 + $0xcc] ss:$16 sps:$4 sm:$0xff]   ;;  %v7934_v24 = vld [vmem:[#allocation11 + $0xc0] ss:$16 sps:$4 sm:$0xff]  }
0x1681   :  { %4468 = vmatprep.subr.bf16.mxu0 %v10061_v42  ;;  %4509 = vmatprep.subr.bf16.mxu1 %v10064_v44  ;;  %v7935_v42 = vld [vmem:[#allocation11 + $0xc8] ss:$16 sps:$4 sm:$0xff]   ;;  %v7936_v44 = vld [vmem:[#allocation11 + $0xe4] ss:$16 sps:$4 sm:$0xff]  }
0x1684   :  { %4469 = vmatpush1.bf16.msra.mxu0 %v10067_v6  ;;  %4510 = vmatpush1.bf16.msra.mxu1 %v10070_v20  ;;  %v7937_v6 = vld [vmem:[#allocation11 + $0xec] ss:$16 sps:$4 sm:$0xff]   ;;  %v7938_v20 = vld [vmem:[#allocation11 + $0xe0] ss:$16 sps:$4 sm:$0xff]  }
0x1685   :  { %4470 = vmatprep.subr.bf16.mxu0 %v10073_v30  ;;  %4511 = vmatprep.subr.bf16.mxu1 %v10076_v21  ;;  %v7939_v30 = vld [vmem:[#allocation11 + $0xe8] ss:$16 sps:$4 sm:$0xff]   ;;  %v7422_v21 = vld [vmem:[#allocation12 + $0x4] ss:$16 sps:$4 sm:$0xff]  }
0x1688   :  { %4471 = vmatpush1.bf16.msra.mxu0 %v10079_v54  ;;  %4512 = vmatpush1.bf16.msra.mxu1 %v10082_v61  ;;  %v7425_v54 = vld [vmem:[#allocation12 + $0xc] ss:$16 sps:$4 sm:$0xff]  }
0x1689   :  { %4472 = vmatprep.subr.bf16.mxu0 %v10085_v7  ;;  %4513 = vmatprep.subr.bf16.mxu1 %v10088_v4  ;;  %v11191_v61 = vld [vmem:[#allocation40_spill] sm:$0xff]  ;;  %v11192_v4 = vld [vmem:[#allocation41_spill] sm:$0xff] }
0x168a   :  { %v3413_v7 = vadd.f32 %v11191_v61, %v9811_v58  ;;  %v7446_v61 = vld [vmem:[#allocation12 + $0x84] ss:$16 sps:$4 sm:$0xff]  }
0x168c   :  { %4473 = vmatpush1.bf16.msra.mxu0 %v10091_v28  ;;  %4514 = vmatpush1.bf16.msra.mxu1 %v10094_v50  ;;  %v3486_v28 = vadd.f32 %v11192_v4, %v9814_v0  ;;  %v11193_v50 = vld [vmem:[#allocation42_spill] sm:$0xff]  ;;  %v7444_v4 = vld [vmem:[#allocation12 + $0x80] ss:$16 sps:$4 sm:$0xff]  }
0x168d   :  { %4474 = vmatprep.subr.bf16.mxu0 %v7928_v38  ;;  %4515 = vmatprep.subr.bf16.mxu1 %v7929_v10  ;;  %v3415_v41 = vadd.f32 %v11193_v50, %v9821_v1  ;;  %v7420_v38 = vld [vmem:[#allocation12] ss:$16 sps:$4 sm:$0xff]   ;;  %v7423_v10 = vld [vmem:[#allocation12 + $0x8] ss:$16 sps:$4 sm:$0xff]   ;;  %v7452_v50 = vld [vmem:[#allocation12 + $0xa4] ss:$16 sps:$4 sm:$0xff]  }
0x1690   :  { %4475 = vmatpush1.bf16.msra.mxu0 %v7930_v5  ;;  %4516 = vmatpush1.bf16.msra.mxu1 %v7931_v12  ;;  %v7428_v12 = vld [vmem:[#allocation12 + $0x24] ss:$16 sps:$4 sm:$0xff]  }
0x1691   :  { %4476 = vmatprep.subr.bf16.mxu0 %v7932_v46  ;;  %4517 = vmatprep.subr.bf16.mxu1 %v7933_v59  ;;  %v7431_v46 = vld [vmem:[#allocation12 + $0x2c] ss:$16 sps:$4 sm:$0xff]   ;;  %v7429_v59 = vld [vmem:[#allocation12 + $0x28] ss:$16 sps:$4 sm:$0xff]  }
0x1694   :  { %4477 = vmatpush1.bf16.msra.mxu0 %v7934_v24  ;;  %4518 = vmatpush1.bf16.msra.mxu1 %v7935_v42  ;;  %v7434_v24 = vld [vmem:[#allocation12 + $0x44] ss:$16 sps:$4 sm:$0xff]   ;;  %v7437_v42 = vld [vmem:[#allocation12 + $0x4c] ss:$16 sps:$4 sm:$0xff]  }
0x1695   :  { %4478 = vmatprep.subr.bf16.mxu0 %v7936_v44  ;;  %4519 = vmatprep.subr.bf16.mxu1 %v7937_v6  ;;  %v7432_v44 = vld [vmem:[#allocation12 + $0x40] ss:$16 sps:$4 sm:$0xff]   ;;  %v7435_v6 = vld [vmem:[#allocation12 + $0x48] ss:$16 sps:$4 sm:$0xff]  }
0x1698   :  { %4479 = vmatpush1.bf16.msra.mxu0 %v7938_v20  ;;  %4520 = vmatpush1.bf16.msra.mxu1 %v7939_v30  ;;  %v7440_v20 = vld [vmem:[#allocation12 + $0x64] ss:$16 sps:$4 sm:$0xff]   ;;  %v7443_v30 = vld [vmem:[#allocation12 + $0x6c] ss:$16 sps:$4 sm:$0xff]  }
0x1699   :  { %4819 = vmatprep.subr.bf16.mxu0 %v7422_v21  ;;  %4892 = vmatprep.subr.bf16.mxu1 %v7425_v54  ;;  %v7438_v21 = vld [vmem:[#allocation12 + $0x60] ss:$16 sps:$4 sm:$0xff]   ;;  %v7441_v54 = vld [vmem:[#allocation12 + $0x68] ss:$16 sps:$4 sm:$0xff]  }
0x174e   :  { %v4392_v33 = vpop.f32.mrb[120].mxu0  ;;  %v4433_v3 = vpop.f32.mrb[152].mxu1 }
0x174f   :  { %v4393_v55 = vadd.f32 %v4392_v33, %v3413_v7  ;;  %v4434_v29 = vadd.f32 %v4433_v3, %v3486_v28  ;;  %v4394_v56 = vpop.f32.mrb[121].mxu0  ;;  %v4435_v60 = vpop.f32.mrb[153].mxu1  ;;  %v7449_v7 = vld [vmem:[#allocation12 + $0x8c] ss:$16 sps:$4 sm:$0xff]   ;;  %v7447_v28 = vld [vmem:[#allocation12 + $0x88] ss:$16 sps:$4 sm:$0xff]  }
0x1750   :  { %v4395_v22 = vadd.f32 %v4394_v56, %v3415_v41  ;;  %v4436_v31 = vadd.f32 %v4435_v60, %v3488_v36  ;;  %v4396_v13 = vpop.f32.mrb[122].mxu0  ;;  %v4437_v47 = vpop.f32.mrb[154].mxu1  ;;  %v7455_v41 = vld [vmem:[#allocation12 + $0xac] ss:$16 sps:$4 sm:$0xff]   ;;  %v7453_v36 = vld [vmem:[#allocation12 + $0xa8] ss:$16 sps:$4 sm:$0xff]  }
0x1751   :  { %v4440_v23 = vmul.f32 0.5, %v4393_v55  ;;  %v4397_v40 = vpop.f32.mrb[123].mxu0  ;;  %v4438_v53 = vpop.f32.mrb[155].mxu1  ;;  %v4442_v11 = vmul.f32 0.5, %v4434_v29  ;;  %v7458_v33 = vld [vmem:[#allocation12 + $0xc4] ss:$16 sps:$4 sm:$0xff]   ;;  %v7073_v13 = vpack.c.bf16 %v9887_v2, %v9837_v57  ;;  %v7074_v47 = vpack.c.bf16 %v9987_v26, %v9937_v16 }
0x1752   :  { %v4441_v48 = vmul.f32 0.5, %v4395_v22  ;;  %v7461_v3 = vld [vmem:[#allocation12 + $0xcc] ss:$16 sps:$4 sm:$0xff]   ;;  %v7456_v55 = vld [vmem:[#allocation12 + $0xc0] ss:$16 sps:$4 sm:$0xff]  }
0x1753   :  { %7744 = vtanh.f32 %v4440_v23  ;;  %v7459_v29 = vld [vmem:[#allocation12 + $0xc8] ss:$16 sps:$4 sm:$0xff]   ;;  %v7464_v56 = vld [vmem:[#allocation12 + $0xe4] ss:$16 sps:$4 sm:$0xff]   ;;  %v7467_v60 = vld [vmem:[#allocation12 + $0xec] ss:$16 sps:$4 sm:$0xff]   ;;  %v7075_v23 = vpack.c.bf16 %v10121_v15, %v10037_v34 }
0x1754   :  { %7746 = vtanh.f32 %v4441_v48  ;;  %v7462_v22 = vld [vmem:[#allocation12 + $0xe0] ss:$16 sps:$4 sm:$0xff]   ;;  %v10175_v57 = vld [vmem:[#allocation14 + $0x4] ss:$16 sps:$4 sm:$0xff]   ;;  %v10177_v2 = vld [vmem:[#allocation14 + $0xc] ss:$16 sps:$4 sm:$0xff]  }
0x1755   :  { %7748 = vtanh.f32 %v4436_v31  ;;  %v7465_v31 = vld [vmem:[#allocation12 + $0xe8] ss:$16 sps:$4 sm:$0xff]   ;;  %v10179_v16 = vld [vmem:[#allocation14] ss:$16 sps:$4 sm:$0xff]   ;;  %v10187_v34 = vld [vmem:[#allocation14 + $0x24] ss:$16 sps:$4 sm:$0xff]  }
0x1756   :  { %7750 = vtanh.f32 %v4442_v11  ;;  %v10181_v26 = vld [vmem:[#allocation14 + $0x8] ss:$16 sps:$4 sm:$0xff]   ;;  %v10189_v15 = vld [vmem:[#allocation14 + $0x2c] ss:$16 sps:$4 sm:$0xff]   ;;  %v10191_v40 = vld [vmem:[#allocation14 + $0x20] ss:$16 sps:$4 sm:$0xff]  }
0x1757   :  { %v10193_v53 = vld [vmem:[#allocation14 + $0x28] ss:$16 sps:$4 sm:$0xff]   ;;  %v10199_v48 = vld [vmem:[#allocation14 + $0x44] ss:$16 sps:$4 sm:$0xff]   ;;  %v10201_v11 = vld [vmem:[#allocation14 + $0x4c] ss:$16 sps:$4 sm:$0xff]  }
0x175d   :  { %v7745_v43 = vpop.eup %7744 }
0x175e   :  { %v4446_v8 = vmul.f32 0.5, %v7745_v43  ;;  %v7747_v37 = vpop.eup %7746  ;;  %v10203_v43 = vld [vmem:[#allocation14 + $0x40] ss:$16 sps:$4 sm:$0xff]  }
0x175f   :  { %v4447_v63 = vmul.f32 0.5, %v7747_v37  ;;  %v7749_v14 = vpop.eup %7748  ;;  %v10211_v37 = vld [vmem:[#allocation14 + $0x64] ss:$16 sps:$4 sm:$0xff]  }
0x1760   :  { %v4449_v35 = vadd.f32 0.5, %v4446_v8  ;;  %v7751_v17 = vpop.eup %7750  ;;  %v10205_v8 = vld [vmem:[#allocation14 + $0x48] ss:$16 sps:$4 sm:$0xff]  }
0x1761   :  { %v4450_v25 = vadd.f32 0.5, %v4447_v63  ;;  %v4448_v27 = vmul.f32 0.5, %v7751_v17  ;;  %v10215_v63 = vld [vmem:[#allocation14 + $0x60] ss:$16 sps:$4 sm:$0xff]   ;;  %v10229_v17 = vld [vmem:[#allocation14 + $0x88] ss:$16 sps:$4 sm:$0xff]  }
0x1762   :  { %v4454_v18 = vmul.f32 %v7749_v14, %v4449_v35  ;;  %v10213_v35 = vld [vmem:[#allocation14 + $0x6c] ss:$16 sps:$4 sm:$0xff]   ;;  %v10217_v14 = vld [vmem:[#allocation14 + $0x68] ss:$16 sps:$4 sm:$0xff]  }
0x1763   :  { %v4453_v9 = vmul.f32 %v4450_v25, %v10118_v32  ;;  %v4451_v45 = vadd.f32 0.5, %v4448_v27  ;;  %v7426_v32 = vld [vmem:[#allocation12 + $0x20] ss:$16 sps:$4 sm:$0xff]   ;;  %v10223_v25 = vld [vmem:[#allocation14 + $0x84] ss:$16 sps:$4 sm:$0xff]  }
0x1764   :  { %v10235_v27 = vld [vmem:[#allocation14 + $0xa4] ss:$16 sps:$4 sm:$0xff]  }
0x1765   :  { %v10154_v62 = vadd.f32 %v4454_v18, %v4453_v9  ;;  %v10225_v18 = vld [vmem:[#allocation14 + $0x8c] ss:$16 sps:$4 sm:$0xff]   ;;  %v10227_v9 = vld [vmem:[#allocation14 + $0x80] ss:$16 sps:$4 sm:$0xff]  }
0x1767   :  { %7752 = vtanh.f32 %v10154_v62 }
0x1771   :  { %v7753_v19 = vpop.eup %7752 }
0x1772   :  { %v10157_v39 = vmul.f32 %v7753_v19, %v4451_v45  ;;  %v10237_v45 = vld [vmem:[#allocation14 + $0xac] ss:$16 sps:$4 sm:$0xff]   ;;  %v10239_v19 = vld [vmem:[#allocation14 + $0xa0] ss:$16 sps:$4 sm:$0xff]  }
0x1774   :  { %v4459_v5 = vpack.c.bf16 %v10157_v39, %v10157_v39 }
0x1776   :  { %4497 = vmatmul.mubr.bf16.vlgmr.msra.gmra.mrb[124].mxu0 %v4459_v5  ;;  %4538 = vmatmul.mubr.bf16.vlgmr.msra.gmra.mrb[156].mxu1 %v4459_v5  ;;  %v10249_v5 = vld [vmem:[#allocation14 + $0xcc] ss:$16 sps:$4 sm:$0xff]  }
0x1777   :  { %4820 = vmatpush1.bf16.msra.mxu0 %v7420_v38  ;;  %4893 = vmatpush1.bf16.msra.mxu1 %v7423_v10  ;;  %v10241_v38 = vld [vmem:[#allocation14 + $0xa8] ss:$16 sps:$4 sm:$0xff]   ;;  %v10247_v10 = vld [vmem:[#allocation14 + $0xc4] ss:$16 sps:$4 sm:$0xff]  }
0x1778   :  { %4821 = vmatprep.subr.bf16.mxu0 %v7428_v12  ;;  %4894 = vmatprep.subr.bf16.mxu1 %v7431_v46  ;;  %v10251_v12 = vld [vmem:[#allocation14 + $0xc0] ss:$16 sps:$4 sm:$0xff]   ;;  %v10253_v46 = vld [vmem:[#allocation14 + $0xc8] ss:$16 sps:$4 sm:$0xff]  }
0x1779   :  { %4851 = vmatprep.mubr.bf16.mxu0 %v11079_v51  ;;  %4924 = vmatprep.mubr.bf16.mxu1 %v11079_v51 }
0x177b   :  { %4822 = vmatpush1.bf16.msra.mxu0 %v7426_v32  ;;  %4895 = vmatpush1.bf16.msra.mxu1 %v7429_v59  ;;  %v10259_v32 = vld [vmem:[#allocation14 + $0xe4] ss:$16 sps:$4 sm:$0xff]   ;;  %v10261_v59 = vld [vmem:[#allocation14 + $0xec] ss:$16 sps:$4 sm:$0xff]  }
0x177c   :  { %4823 = vmatprep.subr.bf16.mxu0 %v7434_v24  ;;  %4896 = vmatprep.subr.bf16.mxu1 %v7437_v42  ;;  %v10263_v24 = vld [vmem:[#allocation14 + $0xe0] ss:$16 sps:$4 sm:$0xff]   ;;  %v10265_v42 = vld [vmem:[#allocation14 + $0xe8] ss:$16 sps:$4 sm:$0xff]  }
0x177f   :  { %4824 = vmatpush1.bf16.msra.mxu0 %v7432_v44  ;;  %4897 = vmatpush1.bf16.msra.mxu1 %v7435_v6  ;;  %v11195_v44 = vld [vmem:[#allocation44_spill] sm:$0xff] }
0x1780   :  { %4825 = vmatprep.subr.bf16.mxu0 %v7440_v20  ;;  %4898 = vmatprep.subr.bf16.mxu1 %v7443_v30  ;;  %v3417_v6 = vadd.f32 %v11195_v44, %v9811_v58  ;;  %v11196_v20 = vld [vmem:[#allocation45_spill] sm:$0xff] }
0x1781   :  { %v3490_v30 = vadd.f32 %v11196_v20, %v9814_v0 }
0x1783   :  { %4826 = vmatpush1.bf16.msra.mxu0 %v7438_v21  ;;  %4899 = vmatpush1.bf16.msra.mxu1 %v7441_v54  ;;  %v11197_v21 = vld [vmem:[#allocation46_spill] sm:$0xff] }
0x1784   :  { %4827 = vmatprep.subr.bf16.mxu0 %v7446_v61  ;;  %4900 = vmatprep.subr.bf16.mxu1 %v7449_v7  ;;  %v3419_v54 = vadd.f32 %v11197_v21, %v9821_v1  ;;  %v11198_v61 = vld [vmem:[#allocation47_spill] sm:$0xff] }
0x1785   :  { %v3492_v7 = vadd.f32 %v11198_v61, %v9824_v49 }
0x1787   :  { %4828 = vmatpush1.bf16.msra.mxu0 %v7444_v4  ;;  %4901 = vmatpush1.bf16.msra.mxu1 %v7447_v28 }
0x1788   :  { %4829 = vmatprep.subr.bf16.mxu0 %v7452_v50  ;;  %4902 = vmatprep.subr.bf16.mxu1 %v7455_v41 }
0x178b   :  { %4830 = vmatpush1.bf16.msra.mxu0 %v7450_v52  ;;  %4903 = vmatpush1.bf16.msra.mxu1 %v7453_v36 }
0x178c   :  { %4831 = vmatprep.subr.bf16.mxu0 %v7458_v33  ;;  %4904 = vmatprep.subr.bf16.mxu1 %v7461_v3 }
0x178f   :  { %4832 = vmatpush1.bf16.msra.mxu0 %v7456_v55  ;;  %4905 = vmatpush1.bf16.msra.mxu1 %v7459_v29 }
0x1790   :  { %4833 = vmatprep.subr.bf16.mxu0 %v7464_v56  ;;  %4906 = vmatprep.subr.bf16.mxu1 %v7467_v60 }
0x1793   :  { %4834 = vmatpush1.bf16.msra.mxu0 %v7462_v22  ;;  %4907 = vmatpush1.bf16.msra.mxu1 %v7465_v31 }
0x1794   :  { %5193 = vmatprep.subr.bf16.mxu0 %v10175_v57  ;;  %5234 = vmatprep.subr.bf16.mxu1 %v10177_v2 }
0x1796   :  { %4852 = vmatmul.mubr.bf16.vlgmr.msra.gmra.mrb[128].mxu0 %v7073_v13  ;;  %4925 = vmatmul.mubr.bf16.vlgmr.msra.gmra.mrb[160].mxu1 %v7073_v13 }
0x1797   :  { %4861 = vmatprep.mubr.bf16.mxu0 %v11079_v51  ;;  %4934 = vmatprep.mubr.bf16.mxu1 %v11079_v51 }
0x1798   :  { %5194 = vmatpush1.bf16.msra.mxu0 %v10179_v16  ;;  %5235 = vmatpush1.bf16.msra.mxu1 %v10181_v26 }
0x1799   :  { %5195 = vmatprep.subr.bf16.mxu0 %v10187_v34  ;;  %5236 = vmatprep.subr.bf16.mxu1 %v10189_v15 }
0x179c   :  { %5196 = vmatpush1.bf16.msra.mxu0 %v10191_v40  ;;  %5237 = vmatpush1.bf16.msra.mxu1 %v10193_v53 }
0x179d   :  { %5197 = vmatprep.subr.bf16.mxu0 %v10199_v48  ;;  %5238 = vmatprep.subr.bf16.mxu1 %v10201_v11 }
0x179e   :  { %4862 = vmatmul.mubr.bf16.gmra.mrb[132].mxu0 %v7074_v47  ;;  %4935 = vmatmul.mubr.bf16.gmra.mrb[164].mxu1 %v7074_v47 }
0x179f   :  { %4871 = vmatprep.mubr.bf16.mxu0 %v11079_v51  ;;  %4944 = vmatprep.mubr.bf16.mxu1 %v11079_v51 }
0x17a0   :  { %5198 = vmatpush1.bf16.msra.mxu0 %v10203_v43  ;;  %5239 = vmatpush1.bf16.msra.mxu1 %v10205_v8 }
0x17a1   :  { %5199 = vmatprep.subr.bf16.mxu0 %v10211_v37  ;;  %5240 = vmatprep.subr.bf16.mxu1 %v10213_v35 }
0x17a4   :  { %5200 = vmatpush1.bf16.msra.mxu0 %v10215_v63  ;;  %5241 = vmatpush1.bf16.msra.mxu1 %v10217_v14 }
0x17a5   :  { %5201 = vmatprep.subr.bf16.mxu0 %v10223_v25  ;;  %5242 = vmatprep.subr.bf16.mxu1 %v10225_v18 }
0x17a6   :  { %4872 = vmatmul.mubr.bf16.gmra.mrb[136].mxu0 %v7075_v23  ;;  %4945 = vmatmul.mubr.bf16.gmra.mrb[168].mxu1 %v7075_v23 }
0x17a7   :  { %4881 = vmatprep.mubr.bf16.mxu0 %v11079_v51  ;;  %4954 = vmatprep.mubr.bf16.mxu1 %v11079_v51 }
0x17a8   :  { %5202 = vmatpush1.bf16.msra.mxu0 %v10227_v9  ;;  %5243 = vmatpush1.bf16.msra.mxu1 %v10229_v17 }
0x17a9   :  { %5203 = vmatprep.subr.bf16.mxu0 %v10235_v27  ;;  %5244 = vmatprep.subr.bf16.mxu1 %v10237_v45 }
0x17ac   :  { %5204 = vmatpush1.bf16.msra.mxu0 %v10239_v19  ;;  %5245 = vmatpush1.bf16.msra.mxu1 %v10241_v38 }
0x17ad   :  { %5205 = vmatprep.subr.bf16.mxu0 %v10247_v10  ;;  %5246 = vmatprep.subr.bf16.mxu1 %v10249_v5 }
0x17b0   :  { %5206 = vmatpush1.bf16.msra.mxu0 %v10251_v12  ;;  %5247 = vmatpush1.bf16.msra.mxu1 %v10253_v46 }
0x17b1   :  { %5207 = vmatprep.subr.bf16.mxu0 %v10259_v32  ;;  %5248 = vmatprep.subr.bf16.mxu1 %v10261_v59 }
0x17b4   :  { %5208 = vmatpush1.bf16.msra.mxu0 %v10263_v24  ;;  %5249 = vmatpush1.bf16.msra.mxu1 %v10265_v42 }
0x17b5   :  { %5299 = vmatprep.subr.bf16.mxu0 %v10175_v57  ;;  %5340 = vmatprep.subr.bf16.mxu1 %v10177_v2 }
0x1849   :  { %v4498_v4 = vpop.f32.mrb[124].mxu0  ;;  %v4539_v28 = vpop.f32.mrb[156].mxu1 }
0x184a   :  { %v4499_v50 = vadd.f32 %v4498_v4, %v3417_v6  ;;  %v4540_v41 = vadd.f32 %v4539_v28, %v3490_v30  ;;  %v4500_v52 = vpop.f32.mrb[125].mxu0  ;;  %v4541_v36 = vpop.f32.mrb[157].mxu1 }
0x184b   :  { %v4501_v33 = vadd.f32 %v4500_v52, %v3419_v54  ;;  %v4542_v3 = vadd.f32 %v4541_v36, %v3492_v7  ;;  %v4502_v55 = vpop.f32.mrb[126].mxu0  ;;  %v4543_v29 = vpop.f32.mrb[158].mxu1 }
0x184c   :  { %v4546_v58 = vmul.f32 0.5, %v4499_v50  ;;  %v4503_v56 = vpop.f32.mrb[127].mxu0  ;;  %v4544_v60 = vpop.f32.mrb[159].mxu1  ;;  %v4548_v1 = vmul.f32 0.5, %v4540_v41 }
0x184d   :  { %v4547_v0 = vmul.f32 0.5, %v4501_v33 }
0x184e   :  { %7754 = vtanh.f32 %v4546_v58 }
0x184f   :  { %7756 = vtanh.f32 %v4547_v0 }
0x1850   :  { %7758 = vtanh.f32 %v4542_v3 }
0x1851   :  { %7760 = vtanh.f32 %v4548_v1 }
0x1858   :  { %v7755_v22 = vpop.eup %7754 }
0x1859   :  { %v4552_v49 = vmul.f32 0.5, %v7755_v22  ;;  %v7757_v31 = vpop.eup %7756 }
0x185a   :  { %v4553_v47 = vmul.f32 0.5, %v7757_v31  ;;  %v7759_v23 = vpop.eup %7758 }
0x185b   :  { %v4555_v13 = vadd.f32 0.5, %v4552_v49  ;;  %v7761_v21 = vpop.eup %7760 }
0x185c   :  { %v4556_v44 = vadd.f32 0.5, %v4553_v47  ;;  %v4554_v54 = vmul.f32 0.5, %v7761_v21 }
0x185d   :  { %v4560_v6 = vmul.f32 %v7759_v23, %v4555_v13 }
0x185e   :  { %v4559_v20 = vmul.f32 %v4556_v44, %v10154_v62  ;;  %v4557_v52 = vadd.f32 0.5, %v4554_v54 }
0x1860   :  { %v4561_v30 = vadd.f32 %v4560_v6, %v4559_v20 }
0x1862   :  { %7762 = vtanh.f32 %v4561_v30  ;;  %v4613_v30 = vld [vmem:[%s11043_s12] sm:$0xf] }
0x1869   :  { %v10282_v61 = vpop.f32.mrb[128].mxu0  ;;  %v10284_v7 = vpop.f32.mrb[160].mxu1 }
0x186a   :  { %v10286_v4 = vpop.f32.mrb[129].mxu0  ;;  %v10288_v28 = vpop.f32.mrb[161].mxu1 }
0x186b   :  { %v10290_v50 = vpop.f32.mrb[130].mxu0  ;;  %v10292_v41 = vpop.f32.mrb[162].mxu1 }
0x186c   :  { %v10294_v36 = vpop.f32.mrb[131].mxu0  ;;  %v10296_v62 = vpop.f32.mrb[163].mxu1 }
0x186d   :  { %v7763_v33 = vpop.eup %7762 }
0x186e   :  { %v4563_v3 = vmul.f32 %v7763_v33, %v4557_v52 }
0x1870   :  { %v7076_v55 = vpack.c.bf16 %v4563_v3, %v10157_v39 }
0x1871   :  { %v10299_v29 = vpop.f32.mrb[132].mxu0  ;;  %v10301_v58 = vpop.f32.mrb[164].mxu1 }
0x1872   :  { %11199 = vst [vmem:[#allocation22_spill] sm:$0xff] %v10299_v29  ;;  %11200 = vst [vmem:[#allocation31_spill] sm:$0xff] %v10301_v58  ;;  %v10303_v56 = vpop.f32.mrb[133].mxu0  ;;  %4882 = vmatmul.mubr.bf16.gmra.mrb[140].mxu0 %v7076_v55  ;;  %v10305_v60 = vpop.f32.mrb[165].mxu1  ;;  %4955 = vmatmul.mubr.bf16.gmra.mrb[172].mxu1 %v7076_v55 }
0x1873   :  { %11201 = vst [vmem:[#allocation23_spill] sm:$0xff] %v10303_v56  ;;  %11202 = vst [vmem:[#allocation32_spill] sm:$0xff] %v10305_v60  ;;  %v10307_v0 = vpop.f32.mrb[134].mxu0  ;;  %v10309_v1 = vpop.f32.mrb[166].mxu1  ;;  %5225 = vmatprep.mubr.bf16.mxu0 %v11079_v51  ;;  %5266 = vmatprep.mubr.bf16.mxu1 %v11079_v51 }
0x1874   :  { %11203 = vst [vmem:[#allocation24_spill] sm:$0xff] %v10307_v0  ;;  %11204 = vst [vmem:[#allocation33_spill] sm:$0xff] %v10309_v1  ;;  %v10313_v22 = vpop.f32.mrb[135].mxu0  ;;  %v10315_v39 = vpop.f32.mrb[167].mxu1 }
0x1875   :  { %11205 = vst [vmem:[#allocation25_spill] sm:$0xff] %v10313_v22  ;;  %11206 = vst [vmem:[#allocation34_spill] sm:$0xff] %v10315_v39 }
0x1879   :  { %v10317_v49 = vpop.f32.mrb[136].mxu0  ;;  %v10319_v31 = vpop.f32.mrb[168].mxu1 }
0x187a   :  { %11207 = vst [vmem:[#allocation26_spill] sm:$0xff] %v10317_v49  ;;  %11208 = vst [vmem:[#allocation35_spill] sm:$0xff] %v10319_v31  ;;  %v10321_v13 = vpop.f32.mrb[137].mxu0  ;;  %v10323_v47 = vpop.f32.mrb[169].mxu1  ;;  %5226 = vmatmul.mubr.bf16.vlgmr.msra.gmra.mrb[144].mxu0 %v11079_v51  ;;  %5267 = vmatmul.mubr.bf16.vlgmr.msra.gmra.mrb[176].mxu1 %v11079_v51 }
0x187b   :  { %11209 = vst [vmem:[#allocation38_spill] sm:$0xff] %v10321_v13  ;;  %11210 = vst [vmem:[#allocation27_spill] sm:$0xff] %v10323_v47  ;;  %v10327_v23 = vpop.f32.mrb[138].mxu0  ;;  %v10329_v44 = vpop.f32.mrb[170].mxu1  ;;  %5300 = vmatpush1.bf16.msra.mxu0 %v10179_v16  ;;  %5341 = vmatpush1.bf16.msra.mxu1 %v10181_v26 }
0x187c   :  { %11211 = vst [vmem:[#allocation36_spill] sm:$0xff] %v10327_v23  ;;  %11212 = vst [vmem:[#allocation28_spill] sm:$0xff] %v10329_v44  ;;  %v10333_v6 = vpop.f32.mrb[139].mxu0  ;;  %v10335_v20 = vpop.f32.mrb[171].mxu1  ;;  %5301 = vmatprep.subr.bf16.mxu0 %v10187_v34  ;;  %5342 = vmatprep.subr.bf16.mxu1 %v10189_v15  ;;  %v11222_v44 = vld [vmem:[#allocation29_spill] sm:$0xff] }
0x187d   :  { %11213 = vst [vmem:[#allocation37_spill] sm:$0xff] %v10333_v6  ;;  %11214 = vst [vmem:[#allocation39_spill] sm:$0xff] %v10335_v20  ;;  %5331 = vmatprep.mubr.bf16.mxu0 %v11079_v51  ;;  %5372 = vmatprep.mubr.bf16.mxu1 %v11079_v51  ;;  %v11221_v20 = vld [vmem:[#allocation20_spill] sm:$0xff]  ;;  %v10388_v23 = vrot.slane %v4613_v30, %v11222_v44 }
0x187e   :  { %v10385_v6 = vrot.slane %v4613_v30, %v11221_v20 }
0x187f   :  { %5302 = vmatpush1.bf16.msra.mxu0 %v10191_v40  ;;  %5343 = vmatpush1.bf16.msra.mxu1 %v10193_v53  ;;  %v4927_v20 = vadd.f32 %v10284_v7, %v10388_v23 }
0x1880   :  { %5303 = vmatprep.subr.bf16.mxu0 %v10199_v48  ;;  %5344 = vmatprep.subr.bf16.mxu1 %v10201_v11 }
0x1883   :  { %5304 = vmatpush1.bf16.msra.mxu0 %v10203_v43  ;;  %5345 = vmatpush1.bf16.msra.mxu1 %v10205_v8 }
0x1884   :  { %5305 = vmatprep.subr.bf16.mxu0 %v10211_v37  ;;  %5346 = vmatprep.subr.bf16.mxu1 %v10213_v35 }
0x1887   :  { %5306 = vmatpush1.bf16.msra.mxu0 %v10215_v63  ;;  %5347 = vmatpush1.bf16.msra.mxu1 %v10217_v14 }
0x1888   :  { %5307 = vmatprep.subr.bf16.mxu0 %v10223_v25  ;;  %5348 = vmatprep.subr.bf16.mxu1 %v10225_v18 }
0x188b   :  { %5308 = vmatpush1.bf16.msra.mxu0 %v10227_v9  ;;  %5349 = vmatpush1.bf16.msra.mxu1 %v10229_v17 }
0x188c   :  { %5309 = vmatprep.subr.bf16.mxu0 %v10235_v27  ;;  %5350 = vmatprep.subr.bf16.mxu1 %v10237_v45 }
0x188f   :  { %5310 = vmatpush1.bf16.msra.mxu0 %v10239_v19  ;;  %5351 = vmatpush1.bf16.msra.mxu1 %v10241_v38 }
0x1890   :  { %5311 = vmatprep.subr.bf16.mxu0 %v10247_v10  ;;  %5352 = vmatprep.subr.bf16.mxu1 %v10249_v5 }
0x1893   :  { %5312 = vmatpush1.bf16.msra.mxu0 %v10251_v12  ;;  %5353 = vmatpush1.bf16.msra.mxu1 %v10253_v46 }
0x1894   :  { %5313 = vmatprep.subr.bf16.mxu0 %v10259_v32  ;;  %5354 = vmatprep.subr.bf16.mxu1 %v10261_v59 }
0x1897   :  { %5314 = vmatpush1.bf16.msra.mxu0 %v10263_v24  ;;  %5355 = vmatpush1.bf16.msra.mxu1 %v10265_v42 }
0x1898   :  { %5405 = vmatprep.subr.bf16.mxu0 %v10175_v57  ;;  %5446 = vmatprep.subr.bf16.mxu1 %v10177_v2 }
0x1945   :  { %v10372_v21 = vpop.f32.mrb[140].mxu0  ;;  %v10374_v54 = vpop.f32.mrb[172].mxu1 }
0x1946   :  { %11215 = vst [vmem:[#allocation40_spill] sm:$0xff] %v10372_v21  ;;  %11216 = vst [vmem:[#allocation41_spill] sm:$0xff] %v10374_v54  ;;  %v10376_v52 = vpop.f32.mrb[141].mxu0  ;;  %v10378_v33 = vpop.f32.mrb[173].mxu1  ;;  %v11225_v21 = vld [vmem:[#allocation21_spill] sm:$0xff] }
0x1947   :  { %11217 = vst [vmem:[#allocation42_spill] sm:$0xff] %v10376_v52  ;;  %11218 = vst [vmem:[#allocation43_spill] sm:$0xff] %v10378_v33  ;;  %v10380_v3 = vpop.f32.mrb[142].mxu0  ;;  %v10382_v55 = vpop.f32.mrb[174].mxu1  ;;  %v10395_v54 = vrot.slane %v4613_v30, %v11225_v21  ;;  %v11226_v52 = vld [vmem:[#allocation30_spill] sm:$0xff] }
0x1948   :  { %11219 = vst [vmem:[#allocation44_spill] sm:$0xff] %v10380_v3  ;;  %11220 = vst [vmem:[#allocation45_spill] sm:$0xff] %v10382_v55  ;;  %v10390_v47 = vpop.f32.mrb[143].mxu0  ;;  %v10392_v13 = vpop.f32.mrb[175].mxu1  ;;  %v10398_v31 = vrot.slane %v4613_v30, %v11226_v52  ;;  %v4854_v3 = vadd.f32 %v10282_v61, %v10385_v6 }
0x1949   :  { %11223 = vst [vmem:[#allocation46_spill] sm:$0xff] %v10390_v47  ;;  %11224 = vst [vmem:[#allocation47_spill] sm:$0xff] %v10392_v13  ;;  %v4856_v44 = vadd.f32 %v10286_v4, %v10395_v54 }
0x194a   :  { %v4929_v47 = vadd.f32 %v10288_v28, %v10398_v31 }
0x194d   :  { %v5227_v55 = vpop.f32.mrb[144].mxu0  ;;  %v5268_v13 = vpop.f32.mrb[176].mxu1 }
0x194e   :  { %v5228_v33 = vadd.f32 %v5227_v55, %v4854_v3  ;;  %v5269_v21 = vadd.f32 %v5268_v13, %v4927_v20  ;;  %v5229_v49 = vpop.f32.mrb[145].mxu0  ;;  %v5270_v39 = vpop.f32.mrb[177].mxu1  ;;  %v4860_v20 = vadd.f32 %v10294_v36, %v10395_v54 }
0x194f   :  { %v5230_v30 = vadd.f32 %v5229_v49, %v4856_v44  ;;  %v5271_v52 = vadd.f32 %v5270_v39, %v4929_v47  ;;  %v5231_v22 = vpop.f32.mrb[146].mxu0  ;;  %v5272_v1 = vpop.f32.mrb[178].mxu1  ;;  %v4933_v44 = vadd.f32 %v10296_v62, %v10398_v31 }
0x1950   :  { %v5275_v61 = vmul.f32 0.5, %v5228_v33  ;;  %v5232_v0 = vpop.f32.mrb[147].mxu0  ;;  %v5273_v60 = vpop.f32.mrb[179].mxu1  ;;  %v5277_v4 = vmul.f32 0.5, %v5269_v21 }
0x1951   :  { %v5276_v7 = vmul.f32 0.5, %v5230_v30 }
0x1952   :  { %7764 = vtanh.f32 %v5275_v61 }
0x1953   :  { %7766 = vtanh.f32 %v5276_v7 }
0x1954   :  { %7768 = vtanh.f32 %v5271_v52 }
0x1955   :  { %7770 = vtanh.f32 %v5277_v4 }
0x195c   :  { %v7765_v56 = vpop.eup %7764 }
0x195d   :  { %v5281_v28 = vmul.f32 0.5, %v7765_v56  ;;  %v7767_v58 = vpop.eup %7766 }
0x195e   :  { %v5282_v13 = vmul.f32 0.5, %v7767_v58  ;;  %v7769_v3 = vpop.eup %7768  ;;  %v4931_v58 = vadd.f32 %v10292_v41, %v10388_v23 }
0x195f   :  { %v5284_v29 = vadd.f32 0.5, %v5281_v28  ;;  %v7771_v60 = vpop.eup %7770 }
0x1960   :  { %v5285_v55 = vadd.f32 0.5, %v5282_v13  ;;  %v5283_v0 = vmul.f32 0.5, %v7771_v60 }
0x1961   :  { %v5289_v49 = vmul.f32 %v7769_v3, %v5284_v29  ;;  %v4858_v29 = vadd.f32 %v10290_v50, %v10385_v6 }
0x1962   :  { %v5288_v39 = vmul.f32 0.0, %v5285_v55  ;;  %v5286_v1 = vadd.f32 0.5, %v5283_v0 }
0x1964   :  { %v10408_v22 = vadd.f32 %v5289_v49, %v5288_v39 }
0x1966   :  { %7772 = vtanh.f32 %v10408_v22 }
0x1970   :  { %v7773_v47 = vpop.eup %7772 }
0x1971   :  { %v10411_v33 = vmul.f32 %v7773_v47, %v5286_v1 }
0x1973   :  { %v5294_v56 = vpack.c.bf16 %v10411_v33, %v10411_v33 }
0x1975   :  { %5332 = vmatmul.mubr.bf16.vlgmr.msra.gmra.mrb[148].mxu0 %v5294_v56  ;;  %5373 = vmatmul.mubr.bf16.vlgmr.msra.gmra.mrb[180].mxu1 %v5294_v56 }
0x1976   :  { %5406 = vmatpush1.bf16.msra.mxu0 %v10179_v16  ;;  %5447 = vmatpush1.bf16.msra.mxu1 %v10181_v26 }
0x1977   :  { %5407 = vmatprep.subr.bf16.mxu0 %v10187_v34  ;;  %5448 = vmatprep.subr.bf16.mxu1 %v10189_v15 }
0x1978   :  { %5437 = vmatprep.mubr.bf16.mxu0 %v11079_v51  ;;  %5478 = vmatprep.mubr.bf16.mxu1 %v11079_v51 }
0x197a   :  { %5408 = vmatpush1.bf16.msra.mxu0 %v10191_v40  ;;  %5449 = vmatpush1.bf16.msra.mxu1 %v10193_v53 }
0x197b   :  { %5409 = vmatprep.subr.bf16.mxu0 %v10199_v48  ;;  %5450 = vmatprep.subr.bf16.mxu1 %v10201_v11 }
0x197e   :  { %5410 = vmatpush1.bf16.msra.mxu0 %v10203_v43  ;;  %5451 = vmatpush1.bf16.msra.mxu1 %v10205_v8 }
0x197f   :  { %5411 = vmatprep.subr.bf16.mxu0 %v10211_v37  ;;  %5452 = vmatprep.subr.bf16.mxu1 %v10213_v35 }
0x1982   :  { %5412 = vmatpush1.bf16.msra.mxu0 %v10215_v63  ;;  %5453 = vmatpush1.bf16.msra.mxu1 %v10217_v14 }
0x1983   :  { %5413 = vmatprep.subr.bf16.mxu0 %v10223_v25  ;;  %5454 = vmatprep.subr.bf16.mxu1 %v10225_v18 }
0x1986   :  { %5414 = vmatpush1.bf16.msra.mxu0 %v10227_v9  ;;  %5455 = vmatpush1.bf16.msra.mxu1 %v10229_v17 }
0x1987   :  { %5415 = vmatprep.subr.bf16.mxu0 %v10235_v27  ;;  %5456 = vmatprep.subr.bf16.mxu1 %v10237_v45 }
0x198a   :  { %5416 = vmatpush1.bf16.msra.mxu0 %v10239_v19  ;;  %5457 = vmatpush1.bf16.msra.mxu1 %v10241_v38 }
0x198b   :  { %5417 = vmatprep.subr.bf16.mxu0 %v10247_v10  ;;  %5458 = vmatprep.subr.bf16.mxu1 %v10249_v5 }
0x198e   :  { %5418 = vmatpush1.bf16.msra.mxu0 %v10251_v12  ;;  %5459 = vmatpush1.bf16.msra.mxu1 %v10253_v46 }
0x198f   :  { %5419 = vmatprep.subr.bf16.mxu0 %v10259_v32  ;;  %5460 = vmatprep.subr.bf16.mxu1 %v10261_v59 }
0x1992   :  { %5420 = vmatpush1.bf16.msra.mxu0 %v10263_v24  ;;  %5461 = vmatpush1.bf16.msra.mxu1 %v10265_v42 }
0x1993   :  { %5511 = vmatprep.subr.bf16.mxu0 %v10175_v57  ;;  %5552 = vmatprep.subr.bf16.mxu1 %v10177_v2 }
0x1a48   :  { %v5333_v21 = vpop.f32.mrb[148].mxu0  ;;  %v5374_v30 = vpop.f32.mrb[180].mxu1 }
0x1a49   :  { %v5334_v52 = vadd.f32 %v5333_v21, %v4858_v29  ;;  %v5375_v61 = vadd.f32 %v5374_v30, %v4931_v58  ;;  %v5335_v7 = vpop.f32.mrb[149].mxu0  ;;  %v5376_v4 = vpop.f32.mrb[181].mxu1 }
0x1a4a   :  { %v5336_v28 = vadd.f32 %v5335_v7, %v4860_v20  ;;  %v5377_v13 = vadd.f32 %v5376_v4, %v4933_v44  ;;  %v5337_v3 = vpop.f32.mrb[150].mxu0  ;;  %v5378_v55 = vpop.f32.mrb[182].mxu1 }
0x1a4b   :  { %v5381_v50 = vmul.f32 0.5, %v5334_v52  ;;  %v5338_v49 = vpop.f32.mrb[151].mxu0  ;;  %v5379_v39 = vpop.f32.mrb[183].mxu1  ;;  %v5383_v36 = vmul.f32 0.5, %v5375_v61  ;;  %v11229_v55 = vld [vmem:[#allocation23_spill] sm:$0xff] }
0x1a4c   :  { %v5382_v41 = vmul.f32 0.5, %v5336_v28  ;;  %v11230_v49 = vld [vmem:[#allocation32_spill] sm:$0xff] }
0x1a4d   :  { %7774 = vtanh.f32 %v5381_v50  ;;  %v4866_v50 = vadd.f32 %v11229_v55, %v10395_v54  ;;  %v4939_v39 = vadd.f32 %v11230_v49, %v10398_v31 }
0x1a4e   :  { %7776 = vtanh.f32 %v5382_v41 }
0x1a4f   :  { %7778 = vtanh.f32 %v5377_v13  ;;  %v11228_v13 = vld [vmem:[#allocation31_spill] sm:$0xff] }
0x1a50   :  { %7780 = vtanh.f32 %v5383_v36  ;;  %v4937_v3 = vadd.f32 %v11228_v13, %v10388_v23 }
0x1a57   :  { %v7775_v60 = vpop.eup %7774 }
0x1a58   :  { %v5387_v62 = vmul.f32 0.5, %v7775_v60  ;;  %v7777_v0 = vpop.eup %7776 }
0x1a59   :  { %v5388_v47 = vmul.f32 0.5, %v7777_v0  ;;  %v7779_v56 = vpop.eup %7778 }
0x1a5a   :  { %v5390_v1 = vadd.f32 0.5, %v5387_v62  ;;  %v7781_v21 = vpop.eup %7780 }
0x1a5b   :  { %v5391_v29 = vadd.f32 0.5, %v5388_v47  ;;  %v5389_v30 = vmul.f32 0.5, %v7781_v21 }
0x1a5c   :  { %v5395_v58 = vmul.f32 %v7779_v56, %v5390_v1 }
0x1a5d   :  { %v5394_v20 = vmul.f32 %v5391_v29, %v10408_v22  ;;  %v5392_v52 = vadd.f32 0.5, %v5389_v30  ;;  %v11227_v22 = vld [vmem:[#allocation22_spill] sm:$0xff] }
0x1a5e   :  { %v4864_v28 = vadd.f32 %v11227_v22, %v10385_v6 }
0x1a5f   :  { %v10458_v44 = vadd.f32 %v5395_v58, %v5394_v20 }
0x1a61   :  { %7782 = vtanh.f32 %v10458_v44 }
0x1a6b   :  { %v7783_v7 = vpop.eup %7782 }
0x1a6c   :  { %v10461_v61 = vmul.f32 %v7783_v7, %v5392_v52 }
0x1a6e   :  { %v5400_v4 = vpack.c.bf16 %v10461_v61, %v10461_v61 }
0x1a70   :  { %5438 = vmatmul.mubr.bf16.vlgmr.msra.gmra.mrb[152].mxu0 %v5400_v4  ;;  %5479 = vmatmul.mubr.bf16.vlgmr.msra.gmra.mrb[184].mxu1 %v5400_v4 }
0x1a71   :  { %5512 = vmatpush1.bf16.msra.mxu0 %v10179_v16  ;;  %5553 = vmatpush1.bf16.msra.mxu1 %v10181_v26 }
0x1a72   :  { %5513 = vmatprep.subr.bf16.mxu0 %v10187_v34  ;;  %5554 = vmatprep.subr.bf16.mxu1 %v10189_v15 }
0x1a73   :  { %5543 = vmatprep.mubr.bf16.mxu0 %v11079_v51  ;;  %5584 = vmatprep.mubr.bf16.mxu1 %v11079_v51 }
0x1a75   :  { %5514 = vmatpush1.bf16.msra.mxu0 %v10191_v40  ;;  %5555 = vmatpush1.bf16.msra.mxu1 %v10193_v53 }
0x1a76   :  { %5515 = vmatprep.subr.bf16.mxu0 %v10199_v48  ;;  %5556 = vmatprep.subr.bf16.mxu1 %v10201_v11 }
0x1a79   :  { %5516 = vmatpush1.bf16.msra.mxu0 %v10203_v43  ;;  %5557 = vmatpush1.bf16.msra.mxu1 %v10205_v8 }
0x1a7a   :  { %5517 = vmatprep.subr.bf16.mxu0 %v10211_v37  ;;  %5558 = vmatprep.subr.bf16.mxu1 %v10213_v35 }
0x1a7d   :  { %5518 = vmatpush1.bf16.msra.mxu0 %v10215_v63  ;;  %5559 = vmatpush1.bf16.msra.mxu1 %v10217_v14 }
0x1a7e   :  { %5519 = vmatprep.subr.bf16.mxu0 %v10223_v25  ;;  %5560 = vmatprep.subr.bf16.mxu1 %v10225_v18 }
0x1a81   :  { %5520 = vmatpush1.bf16.msra.mxu0 %v10227_v9  ;;  %5561 = vmatpush1.bf16.msra.mxu1 %v10229_v17 }
0x1a82   :  { %5521 = vmatprep.subr.bf16.mxu0 %v10235_v27  ;;  %5562 = vmatprep.subr.bf16.mxu1 %v10237_v45 }
0x1a85   :  { %5522 = vmatpush1.bf16.msra.mxu0 %v10239_v19  ;;  %5563 = vmatpush1.bf16.msra.mxu1 %v10241_v38 }
0x1a86   :  { %5523 = vmatprep.subr.bf16.mxu0 %v10247_v10  ;;  %5564 = vmatprep.subr.bf16.mxu1 %v10249_v5 }
0x1a89   :  { %5524 = vmatpush1.bf16.msra.mxu0 %v10251_v12  ;;  %5565 = vmatpush1.bf16.msra.mxu1 %v10253_v46 }
0x1a8a   :  { %5525 = vmatprep.subr.bf16.mxu0 %v10259_v32  ;;  %5566 = vmatprep.subr.bf16.mxu1 %v10261_v59 }
0x1a8d   :  { %5526 = vmatpush1.bf16.msra.mxu0 %v10263_v24  ;;  %5567 = vmatpush1.bf16.msra.mxu1 %v10265_v42 }
0x1a8e   :  { %5617 = vmatprep.subr.bf16.mxu0 %v10175_v57  ;;  %5658 = vmatprep.subr.bf16.mxu1 %v10177_v2 }
0x1b43   :  { %v5439_v41 = vpop.f32.mrb[152].mxu0  ;;  %v5480_v36 = vpop.f32.mrb[184].mxu1 }
0x1b44   :  { %v5440_v60 = vadd.f32 %v5439_v41, %v4864_v28  ;;  %v5481_v62 = vadd.f32 %v5480_v36, %v4937_v3  ;;  %v5441_v0 = vpop.f32.mrb[153].mxu0  ;;  %v5482_v1 = vpop.f32.mrb[185].mxu1 }
0x1b45   :  { %v5442_v47 = vadd.f32 %v5441_v0, %v4866_v50  ;;  %v5483_v56 = vadd.f32 %v5482_v1, %v4939_v39  ;;  %v5443_v29 = vpop.f32.mrb[154].mxu0  ;;  %v5484_v58 = vpop.f32.mrb[186].mxu1 }
0x1b46   :  { %v5487_v20 = vmul.f32 0.5, %v5440_v60  ;;  %v5444_v21 = vpop.f32.mrb[155].mxu0  ;;  %v5485_v30 = vpop.f32.mrb[187].mxu1  ;;  %v5489_v7 = vmul.f32 0.5, %v5481_v62  ;;  %v11232_v29 = vld [vmem:[#allocation33_spill] sm:$0xff] }
0x1b47   :  { %v5488_v52 = vmul.f32 0.5, %v5442_v47  ;;  %v4941_v58 = vadd.f32 %v11232_v29, %v10388_v23  ;;  %v11234_v30 = vld [vmem:[#allocation34_spill] sm:$0xff] }
0x1b48   :  { %7784 = vtanh.f32 %v5487_v20  ;;  %v11233_v20 = vld [vmem:[#allocation25_spill] sm:$0xff] }
0x1b49   :  { %7786 = vtanh.f32 %v5488_v52  ;;  %v4870_v21 = vadd.f32 %v11233_v20, %v10395_v54  ;;  %v4943_v52 = vadd.f32 %v11234_v30, %v10398_v31 }
0x1b4a   :  { %7788 = vtanh.f32 %v5483_v56 }
0x1b4b   :  { %7790 = vtanh.f32 %v5489_v7 }
0x1b52   :  { %v7785_v4 = vpop.eup %7784 }
0x1b53   :  { %v5493_v22 = vmul.f32 0.5, %v7785_v4  ;;  %v7787_v13 = vpop.eup %7786 }
0x1b54   :  { %v5494_v28 = vmul.f32 0.5, %v7787_v13  ;;  %v7789_v3 = vpop.eup %7788 }
0x1b55   :  { %v5496_v55 = vadd.f32 0.5, %v5493_v22  ;;  %v7791_v36 = vpop.eup %7790 }
0x1b56   :  { %v5497_v49 = vadd.f32 0.5, %v5494_v28  ;;  %v5495_v60 = vmul.f32 0.5, %v7791_v36 }
0x1b57   :  { %v5501_v50 = vmul.f32 %v7789_v3, %v5496_v55 }
0x1b58   :  { %v5500_v39 = vmul.f32 %v5497_v49, %v10458_v44  ;;  %v5498_v0 = vadd.f32 0.5, %v5495_v60  ;;  %v11231_v44 = vld [vmem:[#allocation24_spill] sm:$0xff] }
0x1b59   :  { %v4868_v56 = vadd.f32 %v11231_v44, %v10385_v6 }
0x1b5a   :  { %v10508_v41 = vadd.f32 %v5501_v50, %v5500_v39 }
0x1b5c   :  { %7792 = vtanh.f32 %v10508_v41 }
0x1b66   :  { %v7793_v1 = vpop.eup %7792 }
0x1b67   :  { %v10511_v62 = vmul.f32 %v7793_v1, %v5498_v0 }
0x1b69   :  { %v5506_v47 = vpack.c.bf16 %v10511_v62, %v10511_v62 }
0x1b6b   :  { %5544 = vmatmul.mubr.bf16.vlgmr.msra.gmra.mrb[156].mxu0 %v5506_v47  ;;  %5585 = vmatmul.mubr.bf16.vlgmr.msra.gmra.mrb[188].mxu1 %v5506_v47 }
0x1b6c   :  { %5618 = vmatpush1.bf16.msra.mxu0 %v10179_v16  ;;  %5659 = vmatpush1.bf16.msra.mxu1 %v10181_v26 }
0x1b6d   :  { %5619 = vmatprep.subr.bf16.mxu0 %v10187_v34  ;;  %5660 = vmatprep.subr.bf16.mxu1 %v10189_v15 }
0x1b6e   :  { %5649 = vmatprep.mubr.bf16.mxu0 %v11079_v51  ;;  %5690 = vmatprep.mubr.bf16.mxu1 %v11079_v51 }
0x1b70   :  { %5620 = vmatpush1.bf16.msra.mxu0 %v10191_v40  ;;  %5661 = vmatpush1.bf16.msra.mxu1 %v10193_v53 }
0x1b71   :  { %5621 = vmatprep.subr.bf16.mxu0 %v10199_v48  ;;  %5662 = vmatprep.subr.bf16.mxu1 %v10201_v11 }
0x1b74   :  { %5622 = vmatpush1.bf16.msra.mxu0 %v10203_v43  ;;  %5663 = vmatpush1.bf16.msra.mxu1 %v10205_v8 }
0x1b75   :  { %5623 = vmatprep.subr.bf16.mxu0 %v10211_v37  ;;  %5664 = vmatprep.subr.bf16.mxu1 %v10213_v35 }
0x1b78   :  { %5624 = vmatpush1.bf16.msra.mxu0 %v10215_v63  ;;  %5665 = vmatpush1.bf16.msra.mxu1 %v10217_v14 }
0x1b79   :  { %5625 = vmatprep.subr.bf16.mxu0 %v10223_v25  ;;  %5666 = vmatprep.subr.bf16.mxu1 %v10225_v18 }
0x1b7c   :  { %5626 = vmatpush1.bf16.msra.mxu0 %v10227_v9  ;;  %5667 = vmatpush1.bf16.msra.mxu1 %v10229_v17 }
0x1b7d   :  { %5627 = vmatprep.subr.bf16.mxu0 %v10235_v27  ;;  %5668 = vmatprep.subr.bf16.mxu1 %v10237_v45 }
0x1b80   :  { %5628 = vmatpush1.bf16.msra.mxu0 %v10239_v19  ;;  %5669 = vmatpush1.bf16.msra.mxu1 %v10241_v38 }
0x1b81   :  { %5629 = vmatprep.subr.bf16.mxu0 %v10247_v10  ;;  %5670 = vmatprep.subr.bf16.mxu1 %v10249_v5 }
0x1b84   :  { %5630 = vmatpush1.bf16.msra.mxu0 %v10251_v12  ;;  %5671 = vmatpush1.bf16.msra.mxu1 %v10253_v46 }
0x1b85   :  { %5631 = vmatprep.subr.bf16.mxu0 %v10259_v32  ;;  %5672 = vmatprep.subr.bf16.mxu1 %v10261_v59 }
0x1b88   :  { %5632 = vmatpush1.bf16.msra.mxu0 %v10263_v24  ;;  %5673 = vmatpush1.bf16.msra.mxu1 %v10265_v42 }
0x1b89   :  { %5723 = vmatprep.subr.bf16.mxu0 %v10175_v57  ;;  %5764 = vmatprep.subr.bf16.mxu1 %v10177_v2 }
0x1c3e   :  { %v5545_v7 = vpop.f32.mrb[156].mxu0  ;;  %v5586_v4 = vpop.f32.mrb[188].mxu1 }
0x1c3f   :  { %v5546_v22 = vadd.f32 %v5545_v7, %v4868_v56  ;;  %v5587_v13 = vadd.f32 %v5586_v4, %v4941_v58  ;;  %v5547_v55 = vpop.f32.mrb[157].mxu0  ;;  %v5588_v28 = vpop.f32.mrb[189].mxu1 }
0x1c40   :  { %v5548_v3 = vadd.f32 %v5547_v55, %v4870_v21  ;;  %v5589_v49 = vadd.f32 %v5588_v28, %v4943_v52  ;;  %v5549_v50 = vpop.f32.mrb[158].mxu0  ;;  %v5590_v39 = vpop.f32.mrb[190].mxu1 }
0x1c41   :  { %v5593_v36 = vmul.f32 0.5, %v5546_v22  ;;  %v5550_v60 = vpop.f32.mrb[159].mxu0  ;;  %v5591_v0 = vpop.f32.mrb[191].mxu1  ;;  %v5595_v47 = vmul.f32 0.5, %v5587_v13 }
0x1c42   :  { %v5594_v1 = vmul.f32 0.5, %v5548_v3 }
0x1c43   :  { %7794 = vtanh.f32 %v5593_v36 }
0x1c44   :  { %7796 = vtanh.f32 %v5594_v1 }
0x1c45   :  { %7798 = vtanh.f32 %v5589_v49 }
0x1c46   :  { %7800 = vtanh.f32 %v5595_v47 }
0x1c4d   :  { %v7795_v44 = vpop.eup %7794 }
0x1c4e   :  { %v5599_v29 = vmul.f32 0.5, %v7795_v44  ;;  %v7797_v20 = vpop.eup %7796 }
0x1c4f   :  { %v5600_v56 = vmul.f32 0.5, %v7797_v20  ;;  %v7799_v58 = vpop.eup %7798 }
0x1c50   :  { %v5602_v30 = vadd.f32 0.5, %v5599_v29  ;;  %v7801_v22 = vpop.eup %7800 }
0x1c51   :  { %v5603_v7 = vadd.f32 0.5, %v5600_v56  ;;  %v5601_v55 = vmul.f32 0.5, %v7801_v22 }
0x1c52   :  { %v5607_v21 = vmul.f32 %v7799_v58, %v5602_v30 }
0x1c53   :  { %v5606_v52 = vmul.f32 %v5603_v7, %v10508_v41  ;;  %v5604_v28 = vadd.f32 0.5, %v5601_v55 }
0x1c55   :  { %v10558_v4 = vadd.f32 %v5607_v21, %v5606_v52 }
0x1c57   :  { %7802 = vtanh.f32 %v10558_v4 }
0x1c61   :  { %v7803_v3 = vpop.eup %7802 }
0x1c62   :  { %v10561_v13 = vmul.f32 %v7803_v3, %v5604_v28  ;;  %v10615_v28 = vld [vmem:[#allocation14] ss:$16 sps:$4 sm:$0xff]   ;;  %v10621_v3 = vld [vmem:[#allocation14 + $0x24] ss:$16 sps:$4 sm:$0xff]  }
0x1c64   :  { %v5612_v49 = vpack.c.bf16 %v10561_v13, %v10561_v13 }
0x1c66   :  { %5650 = vmatmul.mubr.bf16.vlgmr.msra.gmra.mrb[160].mxu0 %v5612_v49  ;;  %5691 = vmatmul.mubr.bf16.vlgmr.msra.gmra.mrb[192].mxu1 %v5612_v49  ;;  %v10624_v49 = vld [vmem:[#allocation14 + $0x2c] ss:$16 sps:$4 sm:$0xff]  }
0x1c67   :  { %5724 = vmatpush1.bf16.msra.mxu0 %v10179_v16  ;;  %5765 = vmatpush1.bf16.msra.mxu1 %v10181_v26  ;;  %v11235_v16 = vld [vmem:[#allocation26_spill] sm:$0xff] }
0x1c68   :  { %5725 = vmatprep.subr.bf16.mxu0 %v10187_v34  ;;  %5766 = vmatprep.subr.bf16.mxu1 %v10189_v15  ;;  %v4874_v26 = vadd.f32 %v11235_v16, %v10385_v6  ;;  %v11236_v34 = vld [vmem:[#allocation35_spill] sm:$0xff] }
0x1c69   :  { %5755 = vmatprep.mubr.bf16.mxu0 %v11079_v51  ;;  %5796 = vmatprep.mubr.bf16.mxu1 %v11079_v51  ;;  %v4947_v15 = vadd.f32 %v11236_v34, %v10388_v23  ;;  %v10629_v16 = vld [vmem:[#allocation14 + $0x20] ss:$16 sps:$4 sm:$0xff]   ;;  %v10635_v34 = vld [vmem:[#allocation14 + $0x44] ss:$16 sps:$4 sm:$0xff]  }
0x1c6b   :  { %5726 = vmatpush1.bf16.msra.mxu0 %v10191_v40  ;;  %5767 = vmatpush1.bf16.msra.mxu1 %v10193_v53  ;;  %v11237_v40 = vld [vmem:[#allocation38_spill] sm:$0xff] }
0x1c6c   :  { %5727 = vmatprep.subr.bf16.mxu0 %v10199_v48  ;;  %5768 = vmatprep.subr.bf16.mxu1 %v10201_v11  ;;  %v4876_v53 = vadd.f32 %v11237_v40, %v10395_v54  ;;  %v11238_v48 = vld [vmem:[#allocation27_spill] sm:$0xff] }
0x1c6d   :  { %v4949_v11 = vadd.f32 %v11238_v48, %v10398_v31  ;;  %v10641_v40 = vld [vmem:[#allocation14 + $0x40] ss:$16 sps:$4 sm:$0xff]   ;;  %v10647_v48 = vld [vmem:[#allocation14 + $0x64] ss:$16 sps:$4 sm:$0xff]  }
0x1c6f   :  { %5728 = vmatpush1.bf16.msra.mxu0 %v10203_v43  ;;  %5769 = vmatpush1.bf16.msra.mxu1 %v10205_v8 }
0x1c70   :  { %5729 = vmatprep.subr.bf16.mxu0 %v10211_v37  ;;  %5770 = vmatprep.subr.bf16.mxu1 %v10213_v35 }
0x1c73   :  { %5730 = vmatpush1.bf16.msra.mxu0 %v10215_v63  ;;  %5771 = vmatpush1.bf16.msra.mxu1 %v10217_v14 }
0x1c74   :  { %5731 = vmatprep.subr.bf16.mxu0 %v10223_v25  ;;  %5772 = vmatprep.subr.bf16.mxu1 %v10225_v18 }
0x1c77   :  { %5732 = vmatpush1.bf16.msra.mxu0 %v10227_v9  ;;  %5773 = vmatpush1.bf16.msra.mxu1 %v10229_v17 }
0x1c78   :  { %5733 = vmatprep.subr.bf16.mxu0 %v10235_v27  ;;  %5774 = vmatprep.subr.bf16.mxu1 %v10237_v45 }
0x1c7b   :  { %5734 = vmatpush1.bf16.msra.mxu0 %v10239_v19  ;;  %5775 = vmatpush1.bf16.msra.mxu1 %v10241_v38 }
0x1c7c   :  { %5735 = vmatprep.subr.bf16.mxu0 %v10247_v10  ;;  %5776 = vmatprep.subr.bf16.mxu1 %v10249_v5 }
0x1c7f   :  { %5736 = vmatpush1.bf16.msra.mxu0 %v10251_v12  ;;  %5777 = vmatpush1.bf16.msra.mxu1 %v10253_v46 }
0x1c80   :  { %5737 = vmatprep.subr.bf16.mxu0 %v10259_v32  ;;  %5778 = vmatprep.subr.bf16.mxu1 %v10261_v59 }
0x1c83   :  { %5738 = vmatpush1.bf16.msra.mxu0 %v10263_v24  ;;  %5779 = vmatpush1.bf16.msra.mxu1 %v10265_v42 }
0x1c84   :  { %5829 = vmatprep.subr.bf16.mxu0 %v10175_v57  ;;  %5870 = vmatprep.subr.bf16.mxu1 %v10177_v2 }
0x1d39   :  { %v5651_v43 = vpop.f32.mrb[160].mxu0  ;;  %v5692_v8 = vpop.f32.mrb[192].mxu1 }
0x1d3a   :  { %v5652_v37 = vadd.f32 %v5651_v43, %v4874_v26  ;;  %v5693_v35 = vadd.f32 %v5692_v8, %v4947_v15  ;;  %v5653_v63 = vpop.f32.mrb[161].mxu0  ;;  %v5694_v57 = vpop.f32.mrb[193].mxu1  ;;  %v10632_v26 = vld [vmem:[#allocation14 + $0x28] ss:$16 sps:$4 sm:$0xff]   ;;  %v10638_v15 = vld [vmem:[#allocation14 + $0x4c] ss:$16 sps:$4 sm:$0xff]  }
0x1d3b   :  { %v5654_v14 = vadd.f32 %v5653_v63, %v4876_v53  ;;  %v5695_v2 = vadd.f32 %v5694_v57, %v4949_v11  ;;  %v5655_v25 = vpop.f32.mrb[162].mxu0  ;;  %v5696_v18 = vpop.f32.mrb[194].mxu1  ;;  %v10644_v53 = vld [vmem:[#allocation14 + $0x48] ss:$16 sps:$4 sm:$0xff]   ;;  %v10650_v11 = vld [vmem:[#allocation14 + $0x6c] ss:$16 sps:$4 sm:$0xff]  }
0x1d3c   :  { %v5699_v9 = vmul.f32 0.5, %v5652_v37  ;;  %v5656_v17 = vpop.f32.mrb[163].mxu0  ;;  %v5697_v41 = vpop.f32.mrb[195].mxu1  ;;  %v5701_v39 = vmul.f32 0.5, %v5693_v35  ;;  %v10653_v43 = vld [vmem:[#allocation14 + $0x60] ss:$16 sps:$4 sm:$0xff]  }
0x1d3d   :  { %v5700_v50 = vmul.f32 0.5, %v5654_v14  ;;  %v10656_v8 = vld [vmem:[#allocation14 + $0x68] ss:$16 sps:$4 sm:$0xff]   ;;  %v10659_v37 = vld [vmem:[#allocation14 + $0x84] ss:$16 sps:$4 sm:$0xff]  }
0x1d3e   :  { %7804 = vtanh.f32 %v5699_v9  ;;  %v10662_v35 = vld [vmem:[#allocation14 + $0x8c] ss:$16 sps:$4 sm:$0xff]   ;;  %v10665_v63 = vld [vmem:[#allocation14 + $0x80] ss:$16 sps:$4 sm:$0xff]   ;;  %v10668_v57 = vld [vmem:[#allocation14 + $0x88] ss:$16 sps:$4 sm:$0xff]  }
0x1d3f   :  { %7806 = vtanh.f32 %v5700_v50 }
0x1d40   :  { %7808 = vtanh.f32 %v5695_v2 }
0x1d41   :  { %7810 = vtanh.f32 %v5701_v39 }
0x1d48   :  { %v7805_v36 = vpop.eup %7804 }
0x1d49   :  { %v5705_v60 = vmul.f32 0.5, %v7805_v36  ;;  %v7807_v0 = vpop.eup %7806 }
0x1d4a   :  { %v5706_v47 = vmul.f32 0.5, %v7807_v0  ;;  %v7809_v44 = vpop.eup %7808 }
0x1d4b   :  { %v5708_v1 = vadd.f32 0.5, %v5705_v60  ;;  %v7811_v58 = vpop.eup %7810 }
0x1d4c   :  { %v5709_v29 = vadd.f32 0.5, %v5706_v47  ;;  %v5707_v7 = vmul.f32 0.5, %v7811_v58 }
0x1d4d   :  { %v5713_v20 = vmul.f32 %v7809_v44, %v5708_v1 }
0x1d4e   :  { %v5712_v30 = vmul.f32 %v5709_v29, %v10558_v4  ;;  %v5710_v21 = vadd.f32 0.5, %v5707_v7  ;;  %v10618_v4 = vld [vmem:[#allocation14 + $0x8] ss:$16 sps:$4 sm:$0xff]  }
0x1d50   :  { %v10608_v56 = vadd.f32 %v5713_v20, %v5712_v30 }
0x1d52   :  { %7812 = vtanh.f32 %v10608_v56 }
0x1d5c   :  { %v7813_v52 = vpop.eup %7812 }
0x1d5d   :  { %v10611_v22 = vmul.f32 %v7813_v52, %v5710_v21 }
0x1d5f   :  { %v5718_v55 = vpack.c.bf16 %v10611_v22, %v10611_v22 }
0x1d61   :  { %5756 = vmatmul.mubr.bf16.vlgmr.msra.gmra.mrb[164].mxu0 %v5718_v55  ;;  %5797 = vmatmul.mubr.bf16.vlgmr.msra.gmra.mrb[196].mxu1 %v5718_v55 }
0x1d62   :  { %5830 = vmatpush1.bf16.msra.mxu0 %v10615_v28  ;;  %5871 = vmatpush1.bf16.msra.mxu1 %v10618_v4 }
0x1d63   :  { %5831 = vmatprep.subr.bf16.mxu0 %v10621_v3  ;;  %5872 = vmatprep.subr.bf16.mxu1 %v10624_v49 }
0x1d64   :  { %5861 = vmatprep.mubr.bf16.mxu0 %v11079_v51  ;;  %5902 = vmatprep.mubr.bf16.mxu1 %v11079_v51 }
0x1d66   :  { %5832 = vmatpush1.bf16.msra.mxu0 %v10629_v16  ;;  %5873 = vmatpush1.bf16.msra.mxu1 %v10632_v26 }
0x1d67   :  { %5833 = vmatprep.subr.bf16.mxu0 %v10635_v34  ;;  %5874 = vmatprep.subr.bf16.mxu1 %v10638_v15 }
0x1d6a   :  { %5834 = vmatpush1.bf16.msra.mxu0 %v10641_v40  ;;  %5875 = vmatpush1.bf16.msra.mxu1 %v10644_v53 }
0x1d6b   :  { %5835 = vmatprep.subr.bf16.mxu0 %v10647_v48  ;;  %5876 = vmatprep.subr.bf16.mxu1 %v10650_v11 }
0x1d6e   :  { %5836 = vmatpush1.bf16.msra.mxu0 %v10653_v43  ;;  %5877 = vmatpush1.bf16.msra.mxu1 %v10656_v8 }
0x1d6f   :  { %5837 = vmatprep.subr.bf16.mxu0 %v10659_v37  ;;  %5878 = vmatprep.subr.bf16.mxu1 %v10662_v35 }
0x1d72   :  { %5838 = vmatpush1.bf16.msra.mxu0 %v10665_v63  ;;  %5879 = vmatpush1.bf16.msra.mxu1 %v10668_v57 }
0x1d73   :  { %5839 = vmatprep.subr.bf16.mxu0 %v10235_v27  ;;  %5880 = vmatprep.subr.bf16.mxu1 %v10237_v45  ;;  %v7958_v27 = vld [vmem:[#allocation14 + $0x4] ss:$16 sps:$4 sm:$0xff]   ;;  %v7959_v45 = vld [vmem:[#allocation14 + $0xc] ss:$16 sps:$4 sm:$0xff]  }
0x1d76   :  { %5840 = vmatpush1.bf16.msra.mxu0 %v10239_v19  ;;  %5881 = vmatpush1.bf16.msra.mxu1 %v10241_v38  ;;  %v11239_v19 = vld [vmem:[#allocation36_spill] sm:$0xff] }
0x1d77   :  { %5841 = vmatprep.subr.bf16.mxu0 %v10247_v10  ;;  %5882 = vmatprep.subr.bf16.mxu1 %v10249_v5  ;;  %v4878_v38 = vadd.f32 %v11239_v19, %v10385_v6  ;;  %v11240_v10 = vld [vmem:[#allocation28_spill] sm:$0xff] }
0x1d78   :  { %v4951_v5 = vadd.f32 %v11240_v10, %v10388_v23 }
0x1d7a   :  { %5842 = vmatpush1.bf16.msra.mxu0 %v10251_v12  ;;  %5883 = vmatpush1.bf16.msra.mxu1 %v10253_v46  ;;  %v11241_v12 = vld [vmem:[#allocation37_spill] sm:$0xff] }
0x1d7b   :  { %5843 = vmatprep.subr.bf16.mxu0 %v10259_v32  ;;  %5884 = vmatprep.subr.bf16.mxu1 %v10261_v59  ;;  %v4880_v46 = vadd.f32 %v11241_v12, %v10395_v54  ;;  %v11242_v32 = vld [vmem:[#allocation39_spill] sm:$0xff] }
0x1d7c   :  { %v4953_v59 = vadd.f32 %v11242_v32, %v10398_v31 }
0x1d7e   :  { %5844 = vmatpush1.bf16.msra.mxu0 %v10263_v24  ;;  %5885 = vmatpush1.bf16.msra.mxu1 %v10265_v42 }
0x1d7f   :  { %5935 = vmatprep.subr.bf16.mxu0 %v7958_v27  ;;  %5976 = vmatprep.subr.bf16.mxu1 %v7959_v45 }
0x1e34   :  { %v5757_v14 = vpop.f32.mrb[164].mxu0  ;;  %v5798_v24 = vpop.f32.mrb[196].mxu1 }
0x1e35   :  { %v5758_v2 = vadd.f32 %v5757_v14, %v4878_v38  ;;  %v5799_v42 = vadd.f32 %v5798_v24, %v4951_v5  ;;  %v5759_v25 = vpop.f32.mrb[165].mxu0  ;;  %v5800_v18 = vpop.f32.mrb[197].mxu1 }
0x1e36   :  { %v5760_v9 = vadd.f32 %v5759_v25, %v4880_v46  ;;  %v5801_v17 = vadd.f32 %v5800_v18, %v4953_v59  ;;  %v5761_v41 = vpop.f32.mrb[166].mxu0  ;;  %v5802_v50 = vpop.f32.mrb[198].mxu1 }
0x1e37   :  { %v5805_v39 = vmul.f32 0.5, %v5758_v2  ;;  %v5762_v36 = vpop.f32.mrb[167].mxu0  ;;  %v5803_v60 = vpop.f32.mrb[199].mxu1  ;;  %v5807_v1 = vmul.f32 0.5, %v5799_v42 }
0x1e38   :  { %v5806_v0 = vmul.f32 0.5, %v5760_v9 }
0x1e39   :  { %7814 = vtanh.f32 %v5805_v39 }
0x1e3a   :  { %7816 = vtanh.f32 %v5806_v0 }
0x1e3b   :  { %7818 = vtanh.f32 %v5801_v17 }
0x1e3c   :  { %7820 = vtanh.f32 %v5807_v1 }
0x1e43   :  { %v7815_v47 = vpop.eup %7814 }
0x1e44   :  { %v5811_v44 = vmul.f32 0.5, %v7815_v47  ;;  %v7817_v29 = vpop.eup %7816 }
0x1e45   :  { %v5812_v30 = vmul.f32 0.5, %v7817_v29  ;;  %v7819_v58 = vpop.eup %7818 }
0x1e46   :  { %v5814_v20 = vadd.f32 0.5, %v5811_v44  ;;  %v7821_v27 = vpop.eup %7820 }
0x1e47   :  { %v5815_v7 = vadd.f32 0.5, %v5812_v30  ;;  %v5813_v45 = vmul.f32 0.5, %v7821_v27 }
0x1e48   :  { %v5819_v21 = vmul.f32 %v7819_v58, %v5814_v20 }
0x1e49   :  { %v5818_v52 = vmul.f32 %v5815_v7, %v10608_v56  ;;  %v5816_v19 = vadd.f32 0.5, %v5813_v45  ;;  %v7961_v56 = vld [vmem:[#allocation14 + $0xac] ss:$16 sps:$4 sm:$0xff]  }
0x1e4b   :  { %v10692_v55 = vadd.f32 %v5819_v21, %v5818_v52 }
0x1e4d   :  { %7822 = vtanh.f32 %v10692_v55 }
0x1e57   :  { %v7823_v38 = vpop.eup %7822 }
0x1e58   :  { %v10695_v10 = vmul.f32 %v7823_v38, %v5816_v19 }
0x1e5a   :  { %v5824_v5 = vpack.c.bf16 %v10695_v10, %v10695_v10 }
0x1e5c   :  { %5862 = vmatmul.mubr.bf16.vlgmr.msra.gmra.mrb[168].mxu0 %v5824_v5  ;;  %5903 = vmatmul.mubr.bf16.vlgmr.msra.gmra.mrb[200].mxu1 %v5824_v5  ;;  %v7517_v5 = vld [vmem:[%s11044_s13 + $0x8] sm:$0xff]  }
0x1e5d   :  { %5936 = vmatpush1.bf16.msra.mxu0 %v10615_v28  ;;  %5977 = vmatpush1.bf16.msra.mxu1 %v10618_v4  ;;  %v7962_v28 = vld [vmem:[#allocation14 + $0xa0] ss:$16 sps:$4 sm:$0xff]   ;;  %v7963_v4 = vld [vmem:[#allocation14 + $0xa8] ss:$16 sps:$4 sm:$0xff]  }
0x1e5e   :  { %5937 = vmatprep.subr.bf16.mxu0 %v10621_v3  ;;  %5978 = vmatprep.subr.bf16.mxu1 %v10624_v49  ;;  %v7964_v3 = vld [vmem:[#allocation14 + $0xc4] ss:$16 sps:$4 sm:$0xff]   ;;  %v7965_v49 = vld [vmem:[#allocation14 + $0xcc] ss:$16 sps:$4 sm:$0xff]  }
0x1e5f   :  { %5967 = vmatprep.mubr.bf16.mxu0 %v11079_v51  ;;  %6008 = vmatprep.mubr.bf16.mxu1 %v11079_v51  ;;  %v7960_v51 = vld [vmem:[#allocation14 + $0xa4] ss:$16 sps:$4 sm:$0xff]  }
0x1e61   :  { %5938 = vmatpush1.bf16.msra.mxu0 %v10629_v16  ;;  %5979 = vmatpush1.bf16.msra.mxu1 %v10632_v26  ;;  %v7966_v16 = vld [vmem:[#allocation14 + $0xc0] ss:$16 sps:$4 sm:$0xff]   ;;  %v7967_v26 = vld [vmem:[#allocation14 + $0xc8] ss:$16 sps:$4 sm:$0xff]  }
0x1e62   :  { %5939 = vmatprep.subr.bf16.mxu0 %v10635_v34  ;;  %5980 = vmatprep.subr.bf16.mxu1 %v10638_v15  ;;  %v7968_v34 = vld [vmem:[#allocation14 + $0xe4] ss:$16 sps:$4 sm:$0xff]   ;;  %v7969_v15 = vld [vmem:[#allocation14 + $0xec] ss:$16 sps:$4 sm:$0xff]  }
0x1e65   :  { %5940 = vmatpush1.bf16.msra.mxu0 %v10641_v40  ;;  %5981 = vmatpush1.bf16.msra.mxu1 %v10644_v53  ;;  %v7970_v40 = vld [vmem:[#allocation14 + $0xe0] ss:$16 sps:$4 sm:$0xff]   ;;  %v7971_v53 = vld [vmem:[#allocation14 + $0xe8] ss:$16 sps:$4 sm:$0xff]  }
0x1e66   :  { %5941 = vmatprep.subr.bf16.mxu0 %v10647_v48  ;;  %5982 = vmatprep.subr.bf16.mxu1 %v10650_v11  ;;  %v7516_v48 = vld [vmem:[%s11044_s13] sm:$0xff]   ;;  %v11243_v11 = vld [vmem:[#allocation40_spill] sm:$0xff] }
0x1e69   :  { %5942 = vmatpush1.bf16.msra.mxu0 %v10653_v43  ;;  %5983 = vmatpush1.bf16.msra.mxu1 %v10656_v8  ;;  %v4884_v43 = vadd.f32 %v11243_v11, %v10385_v6  ;;  %v11244_v8 = vld [vmem:[#allocation41_spill] sm:$0xff] }
0x1e6a   :  { %5943 = vmatprep.subr.bf16.mxu0 %v10659_v37  ;;  %5984 = vmatprep.subr.bf16.mxu1 %v10662_v35  ;;  %v4957_v37 = vadd.f32 %v11244_v8, %v10388_v23  ;;  %v11245_v35 = vld [vmem:[#allocation42_spill] sm:$0xff] }
0x1e6d   :  { %5944 = vmatpush1.bf16.msra.mxu0 %v10665_v63  ;;  %5985 = vmatpush1.bf16.msra.mxu1 %v10668_v57  ;;  %v4886_v63 = vadd.f32 %v11245_v35, %v10395_v54  ;;  %v11246_v57 = vld [vmem:[#allocation43_spill] sm:$0xff] }
0x1e6e   :  { %5945 = vmatprep.subr.bf16.mxu0 %v7960_v51  ;;  %5986 = vmatprep.subr.bf16.mxu1 %v7961_v56  ;;  %v4959_v12 = vadd.f32 %v11246_v57, %v10398_v31  ;;  %v7518_v51 = vld [vmem:[%s11044_s13 + $0x10] sm:$0xff]   ;;  %v7519_v56 = vld [vmem:[%s11044_s13 + $0x18] sm:$0xff]  }
0x1e71   :  { %5946 = vmatpush1.bf16.msra.mxu0 %v7962_v28  ;;  %5987 = vmatpush1.bf16.msra.mxu1 %v7963_v4  ;;  %v7522_v28 = vld [vmem:[%s11044_s13 + $0x30] sm:$0xff]   ;;  %v7523_v4 = vld [vmem:[%s11044_s13 + $0x38] sm:$0xff]  }
0x1e72   :  { %5947 = vmatprep.subr.bf16.mxu0 %v7964_v3  ;;  %5988 = vmatprep.subr.bf16.mxu1 %v7965_v49  ;;  %v7078_v3 = vpack.c.bf16 %v10561_v13, %v10511_v62  ;;  %v7079_v49 = vpack.c.bf16 %v10695_v10, %v10611_v22 }
0x1e75   :  { %5948 = vmatpush1.bf16.msra.mxu0 %v7966_v16  ;;  %5989 = vmatpush1.bf16.msra.mxu1 %v7967_v26  ;;  %v11247_v16 = vld [vmem:[#allocation44_spill] sm:$0xff] }
0x1e76   :  { %5949 = vmatprep.subr.bf16.mxu0 %v7968_v34  ;;  %5990 = vmatprep.subr.bf16.mxu1 %v7969_v15  ;;  %v4888_v26 = vadd.f32 %v11247_v16, %v10385_v6  ;;  %v11248_v34 = vld [vmem:[#allocation45_spill] sm:$0xff] }
0x1e77   :  { %v4961_v15 = vadd.f32 %v11248_v34, %v10388_v23 }
0x1e79   :  { %5950 = vmatpush1.bf16.msra.mxu0 %v7970_v40  ;;  %5991 = vmatpush1.bf16.msra.mxu1 %v7971_v53  ;;  %v11249_v40 = vld [vmem:[#allocation46_spill] sm:$0xff] }
0x1e7a   :  { %7093 = vmatprep.subr.bf16.mxu0 %v7516_v48  ;;  %v4890_v53 = vadd.f32 %v11249_v40, %v10395_v54 }
0x1f2f   :  { %v5863_v46 = vpop.f32.mrb[168].mxu0  ;;  %v5904_v32 = vpop.f32.mrb[200].mxu1 }
0x1f30   :  { %v5864_v59 = vadd.f32 %v5863_v46, %v4884_v43  ;;  %v5905_v14 = vadd.f32 %v5904_v32, %v4957_v37  ;;  %v5865_v24 = vpop.f32.mrb[169].mxu0  ;;  %v5906_v2 = vpop.f32.mrb[201].mxu1 }
0x1f31   :  { %v5866_v42 = vadd.f32 %v5865_v24, %v4886_v63  ;;  %v5907_v25 = vadd.f32 %v5906_v2, %v4959_v12  ;;  %v5867_v18 = vpop.f32.mrb[170].mxu0  ;;  %v5908_v9 = vpop.f32.mrb[202].mxu1 }
0x1f32   :  { %v5911_v17 = vmul.f32 0.5, %v5864_v59  ;;  %v5868_v41 = vpop.f32.mrb[171].mxu0  ;;  %v5909_v50 = vpop.f32.mrb[203].mxu1  ;;  %v5913_v36 = vmul.f32 0.5, %v5905_v14  ;;  %v8144_v9 = vmov 1966171168  }
0x1f33   :  { %v5912_v39 = vmul.f32 0.5, %v5866_v42 }
0x1f34   :  { %7824 = vtanh.f32 %v5911_v17  ;;  %v6215_v17 = vunpack.c.l.s4 %v8144_v9 }
0x1f35   :  { %7826 = vtanh.f32 %v5912_v39 }
0x1f36   :  { %7828 = vtanh.f32 %v5907_v25  ;;  %v6216_v50 = vunpack.c.0.s8 %v6215_v17 }
0x1f37   :  { %7830 = vtanh.f32 %v5913_v36  ;;  %v10777_v36 = vld [vmem:[%s11045_s14] ss:$0 sm:$0xff] }
0x1f3e   :  { %v7825_v60 = vpop.eup %7824 }
0x1f3f   :  { %v5917_v0 = vmul.f32 0.5, %v7825_v60  ;;  %v7827_v1 = vpop.eup %7826  ;;  %v11251_v60 = vld [vmem:[#allocation19_spill] sm:$0xff] }
0x1f40   :  { %v5918_v44 = vmul.f32 0.5, %v7827_v1  ;;  %v7829_v29 = vpop.eup %7828 }
0x1f41   :  { %v5920_v47 = vadd.f32 0.5, %v5917_v0  ;;  %v7831_v21 = vpop.eup %7830  ;;  %v10780_v0 = vsub.s32 %v6216_v50, %v11251_v60 }
0x1f42   :  { %v5921_v20 = vadd.f32 0.5, %v5918_v44  ;;  %v5919_v52 = vmul.f32 0.5, %v7831_v21 }
0x1f43   :  { %v5925_v30 = vmul.f32 %v7829_v29, %v5920_v47 }
0x1f44   :  { %v5924_v58 = vmul.f32 %v5921_v20, %v10692_v55  ;;  %v5922_v27 = vadd.f32 0.5, %v5919_v52  ;;  %v7077_v55 = vpack.c.bf16 %v10461_v61, %v10411_v33  ;;  %v7520_v33 = vld [vmem:[%s11044_s13 + $0x20] sm:$0xff]   ;;  %v7521_v61 = vld [vmem:[%s11044_s13 + $0x28] sm:$0xff]  }
0x1f46   :  { %v10731_v7 = vadd.f32 %v5925_v30, %v5924_v58 }
0x1f48   :  { %7832 = vtanh.f32 %v10731_v7 }
0x1f52   :  { %v7833_v45 = vpop.eup %7832 }
0x1f53   :  { %v10734_v19 = vmul.f32 %v7833_v45, %v5922_v27 }
0x1f55   :  { %v5930_v38 = vpack.c.bf16 %v10734_v19, %v10734_v19 }
0x1f57   :  { %5968 = vmatmul.mubr.bf16.vlgmr.msra.gmra.mrb[172].mxu0 %v5930_v38  ;;  %6009 = vmatmul.mubr.bf16.vlgmr.msra.gmra.mrb[204].mxu1 %v5930_v38 }
0x1f58   :  { %7094 = vmatpush3.bf16.msra.mxu0 %v7516_v48  ;;  %7109 = vmatprep.mubr.bf16.mxu0 %v7077_v55  ;;  %v11250_v48 = vld [vmem:[#allocation47_spill] sm:$0xff] }
0x1f59   :  { %7095 = vmatprep.subr.bf16.mxu0 %v7517_v5  ;;  %v4963_v11 = vadd.f32 %v11250_v48, %v10398_v31 }
0x1f5c   :  { %7096 = vmatpush3.bf16.msra.mxu0 %v7517_v5 }
0x1f5d   :  { %7097 = vmatprep.subr.bf16.mxu0 %v7518_v51 }
0x1f60   :  { %7098 = vmatpush3.bf16.msra.mxu0 %v7518_v51 }
0x1f61   :  { %7099 = vmatprep.subr.bf16.mxu0 %v7519_v56 }
0x1f64   :  { %7100 = vmatpush3.bf16.msra.mxu0 %v7519_v56 }
0x1f65   :  { %7101 = vmatprep.subr.bf16.mxu0 %v7520_v33 }
0x1f68   :  { %7102 = vmatpush3.bf16.msra.mxu0 %v7520_v33 }
0x1f69   :  { %7103 = vmatprep.subr.bf16.mxu0 %v7521_v61 }
0x1f6c   :  { %7104 = vmatpush3.bf16.msra.mxu0 %v7521_v61 }
0x1f6d   :  { %7105 = vmatprep.subr.bf16.mxu0 %v7522_v28 }
0x1f70   :  { %7106 = vmatpush3.bf16.msra.mxu0 %v7522_v28 }
0x1f71   :  { %7107 = vmatprep.subr.bf16.mxu0 %v7523_v4 }
0x1f74   :  { %7108 = vmatpush3.bf16.msra.mxu0 %v7523_v4 }
0x1f77   :  { %7110 = vmatmul.mubr.bf16.vlgmr.msra.gmra.mrb[176].mxu0 %v7078_v3 }
0x1f78   :  { %7113 = vmatprep.mubr.bf16.mxu0 %v7079_v49 }
0x202a   :  { %v5969_v43 = vpop.f32.mrb[172].mxu0  ;;  %v6010_v8 = vpop.f32.mrb[204].mxu1 }
0x202b   :  { %v5970_v62 = vadd.f32 %v5969_v43, %v4888_v26  ;;  %v6011_v13 = vadd.f32 %v6010_v8, %v4961_v15  ;;  %v5971_v37 = vpop.f32.mrb[173].mxu0  ;;  %v6012_v22 = vpop.f32.mrb[205].mxu1 }
0x202c   :  { %v5972_v10 = vadd.f32 %v5971_v37, %v4890_v53  ;;  %v6013_v35 = vadd.f32 %v6012_v22, %v4963_v11  ;;  %v5973_v63 = vpop.f32.mrb[174].mxu0  ;;  %v6014_v57 = vpop.f32.mrb[206].mxu1 }
0x202d   :  { %v6017_v6 = vmul.f32 0.5, %v5970_v62  ;;  %v5974_v12 = vpop.f32.mrb[175].mxu0  ;;  %v6015_v46 = vpop.f32.mrb[207].mxu1  ;;  %v6019_v32 = vmul.f32 0.5, %v6011_v13 }
0x202e   :  { %v6018_v23 = vmul.f32 0.5, %v5972_v10 }
0x202f   :  { %7834 = vtanh.f32 %v6017_v6 }
0x2030   :  { %7836 = vtanh.f32 %v6018_v23 }
0x2031   :  { %7838 = vtanh.f32 %v6013_v35 }
0x2032   :  { %7840 = vtanh.f32 %v6019_v32 }
0x2039   :  { %v7835_v54 = vpop.eup %7834 }
0x203a   :  { %v6023_v31 = vmul.f32 0.5, %v7835_v54  ;;  %v7837_v59 = vpop.eup %7836 }
0x203b   :  { %v6024_v24 = vmul.f32 0.5, %v7837_v59  ;;  %v7839_v2 = vpop.eup %7838 }
0x203c   :  { %v6026_v14 = vadd.f32 0.5, %v6023_v31  ;;  %v7841_v39 = vpop.eup %7840 }
0x203d   :  { %v6027_v42 = vadd.f32 0.5, %v6024_v24  ;;  %v6025_v1 = vmul.f32 0.5, %v7841_v39 }
0x203e   :  { %v6031_v25 = vmul.f32 %v7839_v2, %v6026_v14 }
0x203f   :  { %v6030_v18 = vmul.f32 %v6027_v42, %v10731_v7  ;;  %v6028_v27 = vadd.f32 0.5, %v6025_v1 }
0x2041   :  { %v6032_v41 = vadd.f32 %v6031_v25, %v6030_v18 }
0x2043   :  { %7842 = vtanh.f32 %v6032_v41 }
0x204a   :  { %v7111_v47 = vpop.f32.mrb[176].mxu0 }
0x204b   :  { %v6190_v44 = vadd.f32 %v7111_v47, %v10777_v36  ;;  %v6181_v29 = vpop.f32.mrb[177].mxu0 }
0x204c   :  { %v6182_v20 = vadd.f32 %v10777_v36, %v6181_v29  ;;  %v7112_v30 = vpop.f32.mrb[178].mxu0 }
0x204d   :  { %v6345_v58 = vcombine.high %v6190_v44, %v6190_v44  ;;  %v6352_v7 = vrot.slane %v6190_v44, %v10780_v0  ;;  %v6193_v21 = vadd.f32 %v7112_v30, %v10777_v36  ;;  %v6184_v52 = vpop.f32.mrb[179].mxu0  ;;  %v7843_v13 = vpop.eup %7842 }
0x204e   :  { %v6213_v45 = vcombine.high %v6182_v20, %v6182_v20  ;;  %v6220_v38 = vrot.slane %v6182_v20, %v10780_v0  ;;  %v6185_v5 = vadd.f32 %v10777_v36, %v6184_v52  ;;  %v6034_v24 = vmul.f32 %v7843_v13, %v6028_v27 }
0x204f   :  { %v6359_v55 = vrot.slane %v6345_v58, %v10780_v0  ;;  %v6360_v51 = vcombine.high %v6352_v7, %v6352_v7  ;;  %v6368_v56 = vrot.slane %v6352_v7, %v10780_v0  ;;  %7041 = vst.sshfl [vmem:[%s11046_s15 + $0x2] sm:$0x1 pattern:$0x73625140] %v6352_v7  ;;  %v6411_v33 = vcombine.high %v6193_v21, %v6193_v21 }
0x2050   :  { %v6227_v61 = vrot.slane %v6213_v45, %v10780_v0  ;;  %v6228_v28 = vcombine.high %v6220_v38, %v6220_v38  ;;  %v6236_v4 = vrot.slane %v6220_v38, %v10780_v0  ;;  %7033 = vst.sshfl [vmem:[%s11046_s15] sm:$0x1 pattern:$0x73625140] %v6220_v38  ;;  %v6418_v3 = vrot.slane %v6193_v21, %v10780_v0 }
0x2051   :  { %v6361_v49 = vcombine.high %v6359_v55, %v6359_v55  ;;  %v6375_v16 = vrot.slane %v6359_v55, %v10780_v0  ;;  %v6382_v26 = vrot.slane %v6360_v51, %v10780_v0  ;;  %v6390_v34 = vcombine.high %v6368_v56, %v6368_v56  ;;  %7042 = vst.sshfl [vmem:[%s11046_s15 + $0xa] sm:$0x1 pattern:$0x73625140] %v6360_v51 }
0x2052   :  { %7043 = vst.sshfl [vmem:[%s11046_s15 + $0x22] sm:$0x1 pattern:$0x73625140] %v6359_v55  ;;  %v6229_v15 = vcombine.high %v6227_v61, %v6227_v61  ;;  %v6243_v40 = vrot.slane %v6227_v61, %v10780_v0  ;;  %v6250_v53 = vrot.slane %v6228_v28, %v10780_v0  ;;  %v6258_v48 = vcombine.high %v6236_v4, %v6236_v4 }
0x2053   :  { %7034 = vst.sshfl [vmem:[%s11046_s15 + $0x8] sm:$0x1 pattern:$0x73625140] %v6228_v28  ;;  %v6389_v11 = vrot.slane %v6361_v49, %v10780_v0  ;;  %v6391_v43 = vcombine.high %v6375_v16, %v6375_v16  ;;  %v6392_v8 = vcombine.high %v6382_v26, %v6382_v26  ;;  %6404 = vst [vmem:[%s11046_s15 + $0x12] sm:$0x1] %v6390_v34 }
0x2054   :  { %7035 = vst.sshfl [vmem:[%s11046_s15 + $0x20] sm:$0x1 pattern:$0x73625140] %v6227_v61  ;;  %v6425_v62 = vrot.slane %v6411_v33, %v10780_v0  ;;  %v6257_v37 = vrot.slane %v6229_v15, %v10780_v0  ;;  %v6259_v22 = vcombine.high %v6243_v40, %v6243_v40  ;;  %v6260_v10 = vcombine.high %v6250_v53, %v6250_v53 }
0x2055   :  { %7045 = vst.sshfl [vmem:[%s11046_s15 + $0x3] sm:$0x1 pattern:$0x73625140] %v6418_v3  ;;  %6272 = vst [vmem:[%s11046_s15 + $0x10] sm:$0x1] %v6258_v48  ;;  %v6426_v35 = vcombine.high %v6418_v3, %v6418_v3  ;;  %v6393_v63 = vcombine.high %v6389_v11, %v6389_v11  ;;  %v6434_v6 = vrot.slane %v6418_v3, %v10780_v0 }
0x2056   :  { %7044 = vst.sshfl [vmem:[%s11046_s15 + $0x2a] sm:$0x1 pattern:$0x73625140] %v6361_v49  ;;  %6405 = vst [vmem:[%s11046_s15 + $0x1a] sm:$0x1] %v6392_v8  ;;  %v6427_v57 = vcombine.high %v6425_v62, %v6425_v62  ;;  %v6441_v12 = vrot.slane %v6425_v62, %v10780_v0  ;;  %v6261_v46 = vcombine.high %v6257_v37, %v6257_v37 }
0x2057   :  { %7036 = vst.sshfl [vmem:[%s11046_s15 + $0x28] sm:$0x1 pattern:$0x73625140] %v6229_v15  ;;  %6408 = vst [vmem:[%s11046_s15 + $0x32] sm:$0x1] %v6391_v43  ;;  %v6448_v23 = vrot.slane %v6426_v35, %v10780_v0  ;;  %v6279_v54 = vcombine.high %v6185_v5, %v6185_v5  ;;  %v6286_v32 = vrot.slane %v6185_v5, %v10780_v0 }
0x2058   :  { %7047 = vst.sshfl [vmem:[%s11046_s15 + $0x23] sm:$0x1 pattern:$0x73625140] %v6425_v62  ;;  %6273 = vst [vmem:[%s11046_s15 + $0x18] sm:$0x1] %v6260_v10  ;;  %v6455_v31 = vrot.slane %v6427_v57, %v10780_v0  ;;  %v6456_v59 = vcombine.high %v6434_v6, %v6434_v6  ;;  %v6457_v14 = vcombine.high %v6441_v12, %v6441_v12 }
0x2059   :  { %6276 = vst [vmem:[%s11046_s15 + $0x30] sm:$0x1] %v6259_v22  ;;  %7046 = vst.sshfl [vmem:[%s11046_s15 + $0xb] sm:$0x1 pattern:$0x73625140] %v6426_v35  ;;  %v6458_v2 = vcombine.high %v6448_v23, %v6448_v23  ;;  %v6293_v42 = vrot.slane %v6279_v54, %v10780_v0  ;;  %v6294_v25 = vcombine.high %v6286_v32, %v6286_v32 }
0x205a   :  { %6409 = vst [vmem:[%s11046_s15 + $0x3a] sm:$0x1] %v6393_v63  ;;  %7048 = vst.sshfl [vmem:[%s11046_s15 + $0x2b] sm:$0x1 pattern:$0x73625140] %v6427_v57  ;;  %v6302_v18 = vrot.slane %v6286_v32, %v10780_v0  ;;  %v6459_v9 = vcombine.high %v6455_v31, %v6455_v31  ;;  %v7080_v17 = vpack.c.bf16 %v6034_v24, %v10734_v19 }
0x205b   :  { %6277 = vst [vmem:[%s11046_s15 + $0x38] sm:$0x1] %v6261_v46  ;;  %7037 = vst.sshfl [vmem:[%s11046_s15 + $0x1] sm:$0x1 pattern:$0x73625140] %v6286_v32  ;;  %v6295_v41 = vcombine.high %v6293_v42, %v6293_v42  ;;  %v6309_v50 = vrot.slane %v6293_v42, %v10780_v0  ;;  %v6316_v39 = vrot.slane %v6294_v25, %v10780_v0 }
0x205c   :  { %6470 = vst [vmem:[%s11046_s15 + $0x13] sm:$0x1] %v6456_v59  ;;  %6474 = vst [vmem:[%s11046_s15 + $0x33] sm:$0x1] %v6457_v14  ;;  %v6324_v60 = vcombine.high %v6302_v18, %v6302_v18  ;;  %7114 = vmatmul.mubr.bf16.gmra.mrb[180].mxu0 %v7080_v17 }
0x205d   :  { %6471 = vst [vmem:[%s11046_s15 + $0x1b] sm:$0x1] %v6458_v2  ;;  %7038 = vst.sshfl [vmem:[%s11046_s15 + $0x9] sm:$0x1 pattern:$0x73625140] %v6294_v25  ;;  %v6323_v19 = vrot.slane %v6295_v41, %v10780_v0  ;;  %v6325_v1 = vcombine.high %v6309_v50, %v6309_v50  ;;  %v6326_v47 = vcombine.high %v6316_v39, %v6316_v39 }
0x205e   :  { %7039 = vst.sshfl [vmem:[%s11046_s15 + $0x21] sm:$0x1 pattern:$0x73625140] %v6293_v42  ;;  %6475 = vst [vmem:[%s11046_s15 + $0x3b] sm:$0x1] %v6459_v9 }
0x205f   :  { %6338 = vst [vmem:[%s11046_s15 + $0x11] sm:$0x1] %v6324_v60  ;;  %7040 = vst.sshfl [vmem:[%s11046_s15 + $0x29] sm:$0x1 pattern:$0x73625140] %v6295_v41  ;;  %v6327_v44 = vcombine.high %v6323_v19, %v6323_v19 }
0x2060   :  { %6339 = vst [vmem:[%s11046_s15 + $0x19] sm:$0x1] %v6326_v47  ;;  %6342 = vst [vmem:[%s11046_s15 + $0x31] sm:$0x1] %v6325_v1 }
0x2061   :  { %6343 = vst [vmem:[%s11046_s15 + $0x39] sm:$0x1] %v6327_v44 }
0x212f   :  { %v7115_v29 = vpop.f32.mrb[180].mxu0 }
0x2130   :  { %v6206_v20 = vadd.f32 %v7115_v29, %v10777_v36  ;;  %v6197_v30 = vpop.f32.mrb[181].mxu0 }
0x2131   :  { %v6198_v58 = vadd.f32 %v10777_v36, %v6197_v30  ;;  %v7116_v7 = vpop.f32.mrb[182].mxu0 }
0x2132   :  { %v6609_v21 = vcombine.high %v6206_v20, %v6206_v20  ;;  %v6616_v52 = vrot.slane %v6206_v20, %v10780_v0  ;;  %v6209_v27 = vadd.f32 %v7116_v7, %v10777_v36  ;;  %v6200_v45 = vpop.f32.mrb[183].mxu0 }
0x2133   :  { %v6477_v38 = vcombine.high %v6198_v58, %v6198_v58  ;;  %v6484_v5 = vrot.slane %v6198_v58, %v10780_v0  ;;  %v6201_v55 = vadd.f32 %v10777_v36, %v6200_v45 }
0x2134   :  { %v6623_v51 = vrot.slane %v6609_v21, %v10780_v0  ;;  %v6624_v56 = vcombine.high %v6616_v52, %v6616_v52  ;;  %v6632_v33 = vrot.slane %v6616_v52, %v10780_v0  ;;  %7057 = vst.sshfl [vmem:[%s11046_s15 + $0x6] sm:$0x1 pattern:$0x73625140] %v6616_v52  ;;  %v6675_v61 = vcombine.high %v6209_v27, %v6209_v27 }
0x2135   :  { %v6491_v28 = vrot.slane %v6477_v38, %v10780_v0  ;;  %v6492_v4 = vcombine.high %v6484_v5, %v6484_v5  ;;  %v6500_v3 = vrot.slane %v6484_v5, %v10780_v0  ;;  %7049 = vst.sshfl [vmem:[%s11046_s15 + $0x4] sm:$0x1 pattern:$0x73625140] %v6484_v5  ;;  %v6682_v36 = vrot.slane %v6209_v27, %v10780_v0 }
0x2136   :  { %v6625_v49 = vcombine.high %v6623_v51, %v6623_v51  ;;  %v6639_v16 = vrot.slane %v6623_v51, %v10780_v0  ;;  %v6646_v26 = vrot.slane %v6624_v56, %v10780_v0  ;;  %v6654_v34 = vcombine.high %v6632_v33, %v6632_v33  ;;  %7058 = vst.sshfl [vmem:[%s11046_s15 + $0xe] sm:$0x1 pattern:$0x73625140] %v6624_v56 }
0x2137   :  { %7059 = vst.sshfl [vmem:[%s11046_s15 + $0x26] sm:$0x1 pattern:$0x73625140] %v6623_v51  ;;  %v6493_v15 = vcombine.high %v6491_v28, %v6491_v28  ;;  %v6507_v40 = vrot.slane %v6491_v28, %v10780_v0  ;;  %v6514_v53 = vrot.slane %v6492_v4, %v10780_v0  ;;  %v6522_v48 = vcombine.high %v6500_v3, %v6500_v3 }
0x2138   :  { %7050 = vst.sshfl [vmem:[%s11046_s15 + $0xc] sm:$0x1 pattern:$0x73625140] %v6492_v4  ;;  %v6653_v11 = vrot.slane %v6625_v49, %v10780_v0  ;;  %v6655_v43 = vcombine.high %v6639_v16, %v6639_v16  ;;  %v6656_v8 = vcombine.high %v6646_v26, %v6646_v26  ;;  %6668 = vst [vmem:[%s11046_s15 + $0x16] sm:$0x1] %v6654_v34 }
0x2139   :  { %7051 = vst.sshfl [vmem:[%s11046_s15 + $0x24] sm:$0x1 pattern:$0x73625140] %v6491_v28  ;;  %v6689_v62 = vrot.slane %v6675_v61, %v10780_v0  ;;  %v6521_v13 = vrot.slane %v6493_v15, %v10780_v0  ;;  %v6523_v37 = vcombine.high %v6507_v40, %v6507_v40  ;;  %v6524_v22 = vcombine.high %v6514_v53, %v6514_v53 }
0x213a   :  { %7061 = vst.sshfl [vmem:[%s11046_s15 + $0x7] sm:$0x1 pattern:$0x73625140] %v6682_v36  ;;  %6536 = vst [vmem:[%s11046_s15 + $0x14] sm:$0x1] %v6522_v48  ;;  %v6690_v10 = vcombine.high %v6682_v36, %v6682_v36  ;;  %v6657_v35 = vcombine.high %v6653_v11, %v6653_v11  ;;  %v6698_v57 = vrot.slane %v6682_v36, %v10780_v0 }
0x213b   :  { %7060 = vst.sshfl [vmem:[%s11046_s15 + $0x2e] sm:$0x1 pattern:$0x73625140] %v6625_v49  ;;  %6669 = vst [vmem:[%s11046_s15 + $0x1e] sm:$0x1] %v6656_v8  ;;  %v6691_v63 = vcombine.high %v6689_v62, %v6689_v62  ;;  %v6705_v6 = vrot.slane %v6689_v62, %v10780_v0  ;;  %v6525_v12 = vcombine.high %v6521_v13, %v6521_v13 }
0x213c   :  { %7052 = vst.sshfl [vmem:[%s11046_s15 + $0x2c] sm:$0x1 pattern:$0x73625140] %v6493_v15  ;;  %6672 = vst [vmem:[%s11046_s15 + $0x36] sm:$0x1] %v6655_v43  ;;  %v6712_v46 = vrot.slane %v6690_v10, %v10780_v0  ;;  %v6543_v23 = vcombine.high %v6201_v55, %v6201_v55  ;;  %v6550_v54 = vrot.slane %v6201_v55, %v10780_v0 }
0x213d   :  { %7063 = vst.sshfl [vmem:[%s11046_s15 + $0x27] sm:$0x1 pattern:$0x73625140] %v6689_v62  ;;  %6537 = vst [vmem:[%s11046_s15 + $0x1c] sm:$0x1] %v6524_v22  ;;  %v6719_v32 = vrot.slane %v6691_v63, %v10780_v0  ;;  %v6720_v31 = vcombine.high %v6698_v57, %v6698_v57  ;;  %v6721_v59 = vcombine.high %v6705_v6, %v6705_v6 }
0x213e   :  { %6540 = vst [vmem:[%s11046_s15 + $0x34] sm:$0x1] %v6523_v37  ;;  %7062 = vst.sshfl [vmem:[%s11046_s15 + $0xf] sm:$0x1 pattern:$0x73625140] %v6690_v10  ;;  %v6722_v14 = vcombine.high %v6712_v46, %v6712_v46  ;;  %v6557_v24 = vrot.slane %v6543_v23, %v10780_v0  ;;  %v6558_v2 = vcombine.high %v6550_v54, %v6550_v54 }
0x213f   :  { %6673 = vst [vmem:[%s11046_s15 + $0x3e] sm:$0x1] %v6657_v35  ;;  %7064 = vst.sshfl [vmem:[%s11046_s15 + $0x2f] sm:$0x1 pattern:$0x73625140] %v6691_v63  ;;  %v6566_v42 = vrot.slane %v6550_v54, %v10780_v0  ;;  %v6723_v25 = vcombine.high %v6719_v32, %v6719_v32 }
0x2140   :  { %6541 = vst [vmem:[%s11046_s15 + $0x3c] sm:$0x1] %v6525_v12  ;;  %7053 = vst.sshfl [vmem:[%s11046_s15 + $0x5] sm:$0x1 pattern:$0x73625140] %v6550_v54  ;;  %v6559_v18 = vcombine.high %v6557_v24, %v6557_v24  ;;  %v6573_v9 = vrot.slane %v6557_v24, %v10780_v0  ;;  %v6580_v17 = vrot.slane %v6558_v2, %v10780_v0 }
0x2141   :  { %6734 = vst [vmem:[%s11046_s15 + $0x17] sm:$0x1] %v6720_v31  ;;  %6738 = vst [vmem:[%s11046_s15 + $0x37] sm:$0x1] %v6721_v59  ;;  %v6588_v41 = vcombine.high %v6566_v42, %v6566_v42 }
0x2142   :  { %6735 = vst [vmem:[%s11046_s15 + $0x1f] sm:$0x1] %v6722_v14  ;;  %7054 = vst.sshfl [vmem:[%s11046_s15 + $0xd] sm:$0x1 pattern:$0x73625140] %v6558_v2  ;;  %v6587_v50 = vrot.slane %v6559_v18, %v10780_v0  ;;  %v6589_v39 = vcombine.high %v6573_v9, %v6573_v9  ;;  %v6590_v60 = vcombine.high %v6580_v17, %v6580_v17 }
0x2143   :  { %7055 = vst.sshfl [vmem:[%s11046_s15 + $0x25] sm:$0x1 pattern:$0x73625140] %v6557_v24  ;;  %6739 = vst [vmem:[%s11046_s15 + $0x3f] sm:$0x1] %v6723_v25 }
0x2144   :  { %6602 = vst [vmem:[%s11046_s15 + $0x15] sm:$0x1] %v6588_v41  ;;  %7056 = vst.sshfl [vmem:[%s11046_s15 + $0x2d] sm:$0x1 pattern:$0x73625140] %v6559_v18  ;;  %v6591_v19 = vcombine.high %v6587_v50, %v6587_v50 }
0x2145   :  { %6603 = vst [vmem:[%s11046_s15 + $0x1d] sm:$0x1] %v6590_v60  ;;  %6606 = vst [vmem:[%s11046_s15 + $0x35] sm:$0x1] %v6589_v39 }
0x2146   :  { %6607 = vst [vmem:[%s11046_s15 + $0x3d] sm:$0x1] %v6591_v19 }
0x2147   :  { %6744 = vsyncpa [#allocation5], 1 }
0x2148   :  { %6745 = vsyncpa [#allocation7], 1 }
0x2149   :  { %6746 = vsyncpa [#allocation10], 1 }
0x214a   :  { %6747 = vsyncpa [#allocation13], 1 }

</bundles_post_ra>
